<compile_context>
chip_gen: v7x
topology: tpu7x:2x2x1
jax: 0.10.0
libtpu: 0.0.40
codegen_flags: <defaults>
</compile_context>

<pallas_src>
import functools

import jax
import jax.numpy as jnp
from jax.experimental import pallas as pl
from jax.experimental.pallas import tpu as pltpu

BN_EPS = 1e-5
BN_SCALE = 1.0 / (1.0 + BN_EPS) ** 0.5  # eval BN with gamma=1, mean=0, var=1


# ----------------------------------------------------------------------------
# Fused whole-network kernel: one grid step == S samples through all blocks.
# ----------------------------------------------------------------------------
def _stagcn_kernel(*refs, S, V, K, kt, T0, cfg, bigA_tins):
    """refs = (x, bigA..., per-block weights..., out).

    x:     (S, T0*V, Cin_pad) bf16
    bigA:  one (K*S*T*V, S*T*V) bf16 operator per distinct block-input T
    per block b: wg (K, Cin_b, Cout_b), wt (kt, Cout_b, Cout_b),
                 bt (1, Cout_b) f32, [wr (Cin_b, Cout_b)]
    out:   (S, T_f*V, C_f) bf16
    """
    n_a = len(bigA_tins)
    x_ref = refs[0]
    a_refs = refs[1:1 + n_a]
    o_ref = refs[-1]
    w_refs = refs[1 + n_a:-1]

    pad = (kt - 1) // 2

    # unpack per-block weight refs (static structure)
    blk_refs = []
    i = 0
    for (_cin, _cout, _stride, has_res) in cfg:
        n = 4 if has_res else 3
        blk_refs.append(w_refs[i:i + n])
        i += n

    def strided_rows(x4, start, stride, t_out):
        # rows start, start+stride, ... along axis 1 (an outer dim -> cheap)
        if stride == 1:
            return x4[:, start:start + t_out]
        return jnp.concatenate(
            [x4[:, start + stride * t: start + stride * t + 1]
             for t in range(t_out)], axis=1)

    t_in = T0
    h = x_ref[...].reshape(S * T0 * V, cfg[0][0])          # (S*T*V, Cin) bf16

    for b, (cin, cout, stride, has_res) in enumerate(cfg):
        wg_ref, wt_ref, bt_ref = blk_refs[b][0], blk_refs[b][1], blk_refs[b][2]
        wr_ref = blk_refs[b][3] if has_res else None
        a_ref = a_refs[bigA_tins.index(t_in)]
        stv = S * t_in * V
        t_out = (t_in + 2 * pad - kt) // stride + 1

        # ---- GCN: graph aggregation as ONE block-diagonal matmul over every
        #      (sample, frame), then K accumulating 1x1-conv matmuls chained
        #      into a single f32 accumulator (MRB-friendly on v7x).
        xa = jnp.dot(a_ref[...], h, preferred_element_type=jnp.float32)  # (K*stv, cin)
        z = jnp.zeros((stv, cout), jnp.float32)
        for k in range(K):
            xa_k = xa[k * stv:(k + 1) * stv].astype(jnp.bfloat16)
            z = z + jnp.dot(xa_k, wg_ref[k], preferred_element_type=jnp.float32)
        z = jnp.maximum(z, 0.0)                      # GCN BN scale folded into wg

        # ---- temporal (kt x 1) conv: zero-pad T (per sample), gather rows per
        #      tap (strided for stride-2 blocks), accumulate each tap's matmul
        #      directly into one (S*t_out*V, cout) f32 accumulator.
        z4 = z.astype(jnp.bfloat16).reshape(S, t_in, V, cout)
        zpad = jnp.zeros((S, pad, V, cout), jnp.bfloat16)
        zp = jnp.concatenate([zpad, z4, zpad], axis=1)   # (S, t_in+2*pad, V, cout)
        acc = jnp.zeros((S * t_out * V, cout), jnp.float32)
        for tap in range(kt):                            # kt = 3, unrolled
            g = strided_rows(zp, tap, stride, t_out)
            g2 = g.reshape(S * t_out * V, cout)
            acc = acc + jnp.dot(g2, wt_ref[tap], preferred_element_type=jnp.float32)

        # ---- residual branch (1x1 strided conv + BN folded, or identity) ----
        if has_res:
            if stride == 1:
                xr = h
            else:
                x4 = h.reshape(S, t_in, V, cin)
                xr = strided_rows(x4, 0, stride, t_out).reshape(S * t_out * V, cin)
            r = jnp.dot(xr, wr_ref[...], preferred_element_type=jnp.float32)
        else:
            r = h.astype(jnp.float32)                    # cin == cout, stride == 1

        hout = jnp.maximum(acc + r + bt_ref[...].astype(jnp.float32), 0.0)
        h = hout.astype(jnp.bfloat16)
        t_in = t_out

    o_ref[...] = h.reshape(S, t_in * V, cfg[-1][1]).astype(o_ref.dtype)


def _stagcn_blocks(x0, params, *, S, T0, V):
    """Runs all STA_GC blocks in ONE pallas_call.  x0: (NM, T0*V, Cin_pad) bf16."""
    NM, TV0, cin_p = x0.shape
    assert NM % S == 0
    cfg = params["cfg"]
    bigAs = params["bigAs"]
    bigA_tins = params["bigA_tins"]
    blocks = params["blocks"]
    kt = blocks[0]["wt"].shape[0]
    K = blocks[0]["wg"].shape[0]
    pad = (kt - 1) // 2

    t = T0
    for (_ci, _co, stride, _r) in cfg:
        t = (t + 2 * pad - kt) // stride + 1
    c_f = cfg[-1][1]

    ix2 = lambda n: (0, 0)
    ix3 = lambda n: (0, 0, 0)

    in_specs = [pl.BlockSpec((S, TV0, cin_p), lambda n: (n, 0, 0))]
    args = [x0]
    for a in bigAs:                                   # VMEM-resident operators
        in_specs.append(pl.BlockSpec(a.shape, ix2))
        args.append(a)
    for p in blocks:                                  # VMEM-resident weights
        in_specs.append(pl.BlockSpec(p["wg"].shape, ix3)); args.append(p["wg"])
        in_specs.append(pl.BlockSpec(p["wt"].shape, ix3)); args.append(p["wt"])
        in_specs.append(pl.BlockSpec(p["bt"].shape, ix2)); args.append(p["bt"])
        if p["wr"] is not None:
            in_specs.append(pl.BlockSpec(p["wr"].shape, ix2)); args.append(p["wr"])

    kernel = functools.partial(
        _stagcn_kernel, S=S, V=V, K=K, kt=kt, T0=T0,
        cfg=cfg, bigA_tins=bigA_tins)

    return pl.pallas_call(
        kernel,
        out_shape=jax.ShapeDtypeStruct((NM, t * V, c_f), jnp.bfloat16),
        grid_spec=pltpu.PrefetchScalarGridSpec(
            num_scalar_prefetch=0,
            grid=(NM // S,),
            in_specs=in_specs,
            out_specs=pl.BlockSpec((S, t * V, c_f), lambda n: (n, 0, 0)),
        ),
        compiler_params=pltpu.CompilerParams(
            dimension_semantics=("parallel",)),       # megacore split on v7x
    )(*args)


# ----------------------------------------------------------------------------
# Parameters (deterministic, init_param-equivalent, BN pre-folded)
# ----------------------------------------------------------------------------
def make_params(key, num_channel, kt, K, num_class, A, T0, S):
    V = A.shape[-1]
    block_cfg = [(num_channel, 64, 1), (64, 64, 1), (64, 64, 1),
                 (64, 128, 2), (128, 256, 2)]
    pad = (kt - 1) // 2
    at = jnp.transpose(A, (0, 2, 1)).astype(jnp.float32)   # A_k^T : [w, v]

    # Distinct block-input temporal extents -> one block-diag operator each:
    #   BigA[(k, st, w), (st', v)] = delta(st, st') * A[k, v, w]
    t, tins = T0, []
    for _cin, _cout, stride in block_cfg:
        tins.append(t)
        t = (t + 2 * pad - kt) // stride + 1
    bigA_tins = tuple(sorted(set(tins), reverse=True))
    bigAs = []
    for t_in in bigA_tins:
        eye = jnp.eye(S * t_in, dtype=jnp.float32)
        big = jnp.einsum('ij,kwv->kiwjv', eye, at).reshape(
            K * S * t_in * V, S * t_in * V)
        bigAs.append(big.astype(jnp.bfloat16))

    blocks, cfg = [], []
    for (cin, cout, stride) in block_cfg:
        key, k1, k2, k3 = jax.random.split(key, 4)
        cin_p = cin if cin >= 8 else 8               # pad tiny Cin (block 1) to 8
        std_g = (2.0 / (K * cout)) ** 0.5            # kaiming fan_out (1x1 -> K*cout)
        wg = jax.random.normal(k1, (K, cin, cout), jnp.float32) * std_g
        wg = jnp.pad(wg, ((0, 0), (0, cin_p - cin), (0, 0)))
        std_t = (2.0 / (cout * kt)) ** 0.5           # kaiming fan_out ((kt x 1) conv)
        wt = jax.random.normal(k2, (kt, cout, cout), jnp.float32) * std_t
        has_res = (cin != cout) or (stride != 1)
        if has_res:
            std_r = (2.0 / cout) ** 0.5              # residual 1x1 conv
            wr = jax.random.normal(k3, (cin, cout), jnp.float32) * std_r
            wr = (jnp.pad(wr, ((0, cin_p - cin), (0, 0))) * BN_SCALE
                  ).astype(jnp.bfloat16)             # residual BN folded
        else:
            wr = None
        blocks.append(dict(
            wg=(wg * BN_SCALE).astype(jnp.bfloat16),  # GCN BN folded
            wt=(wt * BN_SCALE).astype(jnp.bfloat16),  # TCN BN folded
            bt=jnp.zeros((1, cout), jnp.float32),     # conv bias 0 (init_param)
            wr=wr))
        cfg.append((cin_p, cout, stride, has_res))

    key, kf = jax.random.split(key)
    w_fc = jax.random.normal(kf, (256, num_class), jnp.float32) * 0.001  # Conv3d init
    b_fc = jnp.zeros((num_class,), jnp.float32)
    return dict(bigAs=bigAs, bigA_tins=bigA_tins, blocks=blocks,
                cfg=tuple(cfg), fc=(w_fc, b_fc))


# ----------------------------------------------------------------------------
# Forward
# ----------------------------------------------------------------------------
def stagcn_forward(x, params, *, S=2):
    """x: (N, I, C, T, V, M) f32 -> (out (N, num_class), feature (N, C, T, V, M))."""
    N, I, C, T, V, M = x.shape
    NM = N * M
    cin_p = params["cfg"][0][0]

    # permute(1,0,5,2,3,4).view(I, N*M, C, T, V).squeeze()   (I == 1)
    xp = jnp.transpose(x, (1, 0, 5, 2, 3, 4)).reshape(I, NM, C, T, V)[0]
    # channels-last, zero-pad Cin to cin_p, flatten graph rows -> (NM, T*V, Cin_p)
    h0 = jnp.transpose(xp, (0, 2, 3, 1))
    h0 = jnp.pad(h0, ((0, 0), (0, 0), (0, 0), (0, cin_p - C)))
    h0 = h0.reshape(NM, T * V, cin_p).astype(jnp.bfloat16)

    h = _stagcn_blocks(h0, params, S=S, T0=T, V=V)     # (NM, T_f*V, 256) bf16

    T_f = h.shape[1] // V
    C_f = h.shape[2]
    hf = h.astype(jnp.float32)
    # feature = x.view(N, M, C, T, V).permute(0, 2, 3, 4, 1) -> (N, C, T, V, M)
    feature = hf.reshape(N, M, T_f, V, C_f).transpose(0, 4, 2, 3, 1)

    # Classifier: AdaptiveAvgPool3d(1) over (T, V, M) + Dropout(eval=id) +
    # Conv3d(C, num_class, 1).  Kept in XLA: (2,256)@(256,10) is below kernel
    # launch overhead and its 10-wide output would be lane-sparse.
    pooled = feature.mean(axis=(2, 3, 4))
    w_fc, b_fc = params["fc"]
    out = jnp.dot(pooled, w_fc) + b_fc
    return out, feature


# ----------------------------------------------------------------------------
if __name__ == "__main__":
    # Small deterministic config: data_shape = (I=1, C=3, T=8, V=16, M=2)
    N, I, C, T, V, M = 2, 1, 3, 8, 16, 2
    kt = 3          # temporal kernel size
    K = 3           # spatial partitions (A has shape (K, V, V))
    num_class = 10
    S = 2           # samples (of N*M) per grid step -> grid=(2,), v7x-friendly

    key = jax.random.PRNGKey(0)
    key, kx = jax.random.split(key)
    x = jax.random.normal(kx, (N, I, C, T, V, M), jnp.float32)

    # deterministic adjacency: identity + forward ring + backward ring
    eye = jnp.eye(V, dtype=jnp.float32)
    ring = jnp.roll(eye, 1, axis=1)
    A = jnp.stack([eye, ring, ring.T], axis=0)

    params = make_params(key, C, kt, K, num_class, A, T0=T, S=S)

    fwd = jax.jit(functools.partial(stagcn_forward, params=params, S=S))
    out, feature = fwd(x)
    out = jax.block_until_ready(out)
    feature = jax.block_until_ready(feature)

    assert out.shape == (N, num_class), out.shape
    assert feature.shape == (N, 256, T // 4, V, M), feature.shape
    print("KERNEL_OK")
</pallas_src>

<mosaic_0001>
module attributes {stable_mosaic.version = 11 : i64} {
  func.func @_stagcn_kernel(%arg0: i32, %arg1: memref<2x128x8xbf16, #tpu.memory_space<vmem>>, %arg2: memref<768x256xbf16, #tpu.memory_space<vmem>>, %arg3: memref<384x128xbf16, #tpu.memory_space<vmem>>, %arg4: memref<3x8x64xbf16, #tpu.memory_space<vmem>>, %arg5: memref<3x64x64xbf16, #tpu.memory_space<vmem>>, %arg6: memref<1x64xf32, #tpu.memory_space<vmem>>, %arg7: memref<8x64xbf16, #tpu.memory_space<vmem>>, %arg8: memref<3x64x64xbf16, #tpu.memory_space<vmem>>, %arg9: memref<3x64x64xbf16, #tpu.memory_space<vmem>>, %arg10: memref<1x64xf32, #tpu.memory_space<vmem>>, %arg11: memref<3x64x64xbf16, #tpu.memory_space<vmem>>, %arg12: memref<3x64x64xbf16, #tpu.memory_space<vmem>>, %arg13: memref<1x64xf32, #tpu.memory_space<vmem>>, %arg14: memref<3x64x128xbf16, #tpu.memory_space<vmem>>, %arg15: memref<3x128x128xbf16, #tpu.memory_space<vmem>>, %arg16: memref<1x128xf32, #tpu.memory_space<vmem>>, %arg17: memref<64x128xbf16, #tpu.memory_space<vmem>>, %arg18: memref<3x128x256xbf16, #tpu.memory_space<vmem>>, %arg19: memref<3x256x256xbf16, #tpu.memory_space<vmem>>, %arg20: memref<1x256xf32, #tpu.memory_space<vmem>>, %arg21: memref<128x256xbf16, #tpu.memory_space<vmem>>, %arg22: memref<2x32x256xbf16, #tpu.memory_space<vmem>>) attributes {dimension_semantics = [#tpu.dimension_semantics<parallel>], iteration_bounds = array<i64: 2>, scalar_prefetch = 0 : i64, scratch_operands = 0 : i64, tpu.core_type = #tpu.core_type<tc>, window_params = [{transform_indices = @transform_0, window_bounds = array<i64: 2, 128, 8>}, {pipeline_mode = #tpu.pipeline_mode<synchronous>, transform_indices = @transform_1, window_bounds = array<i64: 768, 256>}, {pipeline_mode = #tpu.pipeline_mode<synchronous>, transform_indices = @transform_2, window_bounds = array<i64: 384, 128>}, {pipeline_mode = #tpu.pipeline_mode<synchronous>, transform_indices = @transform_3, window_bounds = array<i64: 3, 8, 64>}, {pipeline_mode = #tpu.pipeline_mode<synchronous>, transform_indices = @transform_4, window_bounds = array<i64: 3, 64, 64>}, {pipeline_mode = #tpu.pipeline_mode<synchronous>, transform_indices = @transform_5, window_bounds = array<i64: 1, 64>}, {pipeline_mode = #tpu.pipeline_mode<synchronous>, transform_indices = @transform_6, window_bounds = array<i64: 8, 64>}, {pipeline_mode = #tpu.pipeline_mode<synchronous>, transform_indices = @transform_7, window_bounds = array<i64: 3, 64, 64>}, {pipeline_mode = #tpu.pipeline_mode<synchronous>, transform_indices = @transform_8, window_bounds = array<i64: 3, 64, 64>}, {pipeline_mode = #tpu.pipeline_mode<synchronous>, transform_indices = @transform_9, window_bounds = array<i64: 1, 64>}, {pipeline_mode = #tpu.pipeline_mode<synchronous>, transform_indices = @transform_10, window_bounds = array<i64: 3, 64, 64>}, {pipeline_mode = #tpu.pipeline_mode<synchronous>, transform_indices = @transform_11, window_bounds = array<i64: 3, 64, 64>}, {pipeline_mode = #tpu.pipeline_mode<synchronous>, transform_indices = @transform_12, window_bounds = array<i64: 1, 64>}, {pipeline_mode = #tpu.pipeline_mode<synchronous>, transform_indices = @transform_13, window_bounds = array<i64: 3, 64, 128>}, {pipeline_mode = #tpu.pipeline_mode<synchronous>, transform_indices = @transform_14, window_bounds = array<i64: 3, 128, 128>}, {pipeline_mode = #tpu.pipeline_mode<synchronous>, transform_indices = @transform_15, window_bounds = array<i64: 1, 128>}, {pipeline_mode = #tpu.pipeline_mode<synchronous>, transform_indices = @transform_16, window_bounds = array<i64: 64, 128>}, {pipeline_mode = #tpu.pipeline_mode<synchronous>, transform_indices = @transform_17, window_bounds = array<i64: 3, 128, 256>}, {pipeline_mode = #tpu.pipeline_mode<synchronous>, transform_indices = @transform_18, window_bounds = array<i64: 3, 256, 256>}, {pipeline_mode = #tpu.pipeline_mode<synchronous>, transform_indices = @transform_19, window_bounds = array<i64: 1, 256>}, {pipeline_mode = #tpu.pipeline_mode<synchronous>, transform_indices = @transform_20, window_bounds = array<i64: 128, 256>}, {transform_indices = @transform_21, window_bounds = array<i64: 2, 32, 256>}]} {
    %c0 = arith.constant 0 : index
    %c0_0 = arith.constant 0 : index
    %c0_1 = arith.constant 0 : index
    %0 = vector.load %arg1[%c0, %c0_0, %c0_1] : memref<2x128x8xbf16, #tpu.memory_space<vmem>>, vector<2x128x8xbf16>
    %1 = vector.shape_cast %0 : vector<2x128x8xbf16> to vector<256x8xbf16>
    %c0_2 = arith.constant 0 : index
    %c0_3 = arith.constant 0 : index
    %2 = vector.load %arg2[%c0_2, %c0_3] : memref<768x256xbf16, #tpu.memory_space<vmem>>, vector<768x256xbf16>
    %cst = arith.constant dense<0.000000e+00> : vector<768x8xf32>
    %3 = tpu.matmul %2, %1, %cst {dimension_numbers = #tpu.dot_dimension_numbers<[1], [0], [0], [1], [0, 0, 1, 1], [], []>} : vector<768x256xbf16>, vector<256x8xbf16>, vector<768x8xf32> -> vector<768x8xf32>
    %cst_4 = arith.constant 0.000000e+00 : f32
    %4 = vector.broadcast %cst_4 : f32 to vector<256x64xf32>
    %5 = vector.extract_strided_slice %3 {offsets = [0, 0], sizes = [256, 8], strides = [1, 1]} : vector<768x8xf32> to vector<256x8xf32>
    %6 = arith.truncf %5 : vector<256x8xf32> to vector<256x8xbf16>
    %c0_5 = arith.constant 0 : index
    %c0_6 = arith.constant 0 : index
    %c0_7 = arith.constant 0 : index
    %7 = vector.load %arg4[%c0_5, %c0_6, %c0_7] : memref<3x8x64xbf16, #tpu.memory_space<vmem>>, vector<1x8x64xbf16>
    %8 = vector.shape_cast %7 : vector<1x8x64xbf16> to vector<8x64xbf16>
    %cst_8 = arith.constant dense<0.000000e+00> : vector<256x64xf32>
    %9 = tpu.matmul %6, %8, %cst_8 {dimension_numbers = #tpu.dot_dimension_numbers<[1], [0], [0], [1], [0, 0, 1, 1], [], []>} : vector<256x8xbf16>, vector<8x64xbf16>, vector<256x64xf32> -> vector<256x64xf32>
    %10 = arith.addf %4, %9 : vector<256x64xf32>
    %11 = vector.extract_strided_slice %3 {offsets = [256, 0], sizes = [256, 8], strides = [1, 1]} : vector<768x8xf32> to vector<256x8xf32>
    %12 = arith.truncf %11 : vector<256x8xf32> to vector<256x8xbf16>
    %c1 = arith.constant 1 : index
    %c0_9 = arith.constant 0 : index
    %c0_10 = arith.constant 0 : index
    %13 = vector.load %arg4[%c1, %c0_9, %c0_10] : memref<3x8x64xbf16, #tpu.memory_space<vmem>>, vector<1x8x64xbf16>
    %14 = vector.shape_cast %13 : vector<1x8x64xbf16> to vector<8x64xbf16>
    %cst_11 = arith.constant dense<0.000000e+00> : vector<256x64xf32>
    %15 = tpu.matmul %12, %14, %cst_11 {dimension_numbers = #tpu.dot_dimension_numbers<[1], [0], [0], [1], [0, 0, 1, 1], [], []>} : vector<256x8xbf16>, vector<8x64xbf16>, vector<256x64xf32> -> vector<256x64xf32>
    %16 = arith.addf %10, %15 : vector<256x64xf32>
    %17 = vector.extract_strided_slice %3 {offsets = [512, 0], sizes = [256, 8], strides = [1, 1]} : vector<768x8xf32> to vector<256x8xf32>
    %18 = arith.truncf %17 : vector<256x8xf32> to vector<256x8xbf16>
    %c2 = arith.constant 2 : index
    %c0_12 = arith.constant 0 : index
    %c0_13 = arith.constant 0 : index
    %19 = vector.load %arg4[%c2, %c0_12, %c0_13] : memref<3x8x64xbf16, #tpu.memory_space<vmem>>, vector<1x8x64xbf16>
    %20 = vector.shape_cast %19 : vector<1x8x64xbf16> to vector<8x64xbf16>
    %cst_14 = arith.constant dense<0.000000e+00> : vector<256x64xf32>
    %21 = tpu.matmul %18, %20, %cst_14 {dimension_numbers = #tpu.dot_dimension_numbers<[1], [0], [0], [1], [0, 0, 1, 1], [], []>} : vector<256x8xbf16>, vector<8x64xbf16>, vector<256x64xf32> -> vector<256x64xf32>
    %22 = arith.addf %16, %21 : vector<256x64xf32>
    %cst_15 = arith.constant 0.000000e+00 : f32
    %23 = vector.broadcast %cst_15 : f32 to vector<256x64xf32>
    %24 = arith.maximumf %22, %23 : vector<256x64xf32>
    %25 = arith.truncf %24 : vector<256x64xf32> to vector<256x64xbf16>
    %26 = vector.shape_cast %25 : vector<256x64xbf16> to vector<2x8x16x64xbf16>
    %cst_16 = arith.constant 0.000000e+00 : bf16
    %27 = vector.broadcast %cst_16 : bf16 to vector<2x1x16x64xbf16>
    %28 = tpu.concatenate %27, %26, %27 in 1 : vector<2x1x16x64xbf16>, vector<2x8x16x64xbf16>, vector<2x1x16x64xbf16> -> vector<2x10x16x64xbf16>
    %cst_17 = arith.constant 0.000000e+00 : f32
    %29 = vector.broadcast %cst_17 : f32 to vector<256x64xf32>
    %30 = vector.extract_strided_slice %28 {offsets = [0, 0, 0, 0], sizes = [2, 8, 16, 64], strides = [1, 1, 1, 1]} : vector<2x10x16x64xbf16> to vector<2x8x16x64xbf16>
    %31 = vector.shape_cast %30 : vector<2x8x16x64xbf16> to vector<256x64xbf16>
    %c0_18 = arith.constant 0 : index
    %c0_19 = arith.constant 0 : index
    %c0_20 = arith.constant 0 : index
    %32 = vector.load %arg5[%c0_18, %c0_19, %c0_20] : memref<3x64x64xbf16, #tpu.memory_space<vmem>>, vector<1x64x64xbf16>
    %33 = vector.shape_cast %32 : vector<1x64x64xbf16> to vector<64x64xbf16>
    %cst_21 = arith.constant dense<0.000000e+00> : vector<256x64xf32>
    %34 = tpu.matmul %31, %33, %cst_21 {dimension_numbers = #tpu.dot_dimension_numbers<[1], [0], [0], [1], [0, 0, 1, 1], [], []>} : vector<256x64xbf16>, vector<64x64xbf16>, vector<256x64xf32> -> vector<256x64xf32>
    %35 = arith.addf %29, %34 : vector<256x64xf32>
    %36 = vector.extract_strided_slice %28 {offsets = [0, 1, 0, 0], sizes = [2, 8, 16, 64], strides = [1, 1, 1, 1]} : vector<2x10x16x64xbf16> to vector<2x8x16x64xbf16>
    %37 = vector.shape_cast %36 : vector<2x8x16x64xbf16> to vector<256x64xbf16>
    %c1_22 = arith.constant 1 : index
    %c0_23 = arith.constant 0 : index
    %c0_24 = arith.constant 0 : index
    %38 = vector.load %arg5[%c1_22, %c0_23, %c0_24] : memref<3x64x64xbf16, #tpu.memory_space<vmem>>, vector<1x64x64xbf16>
    %39 = vector.shape_cast %38 : vector<1x64x64xbf16> to vector<64x64xbf16>
    %cst_25 = arith.constant dense<0.000000e+00> : vector<256x64xf32>
    %40 = tpu.matmul %37, %39, %cst_25 {dimension_numbers = #tpu.dot_dimension_numbers<[1], [0], [0], [1], [0, 0, 1, 1], [], []>} : vector<256x64xbf16>, vector<64x64xbf16>, vector<256x64xf32> -> vector<256x64xf32>
    %41 = arith.addf %35, %40 : vector<256x64xf32>
    %42 = vector.extract_strided_slice %28 {offsets = [0, 2, 0, 0], sizes = [2, 8, 16, 64], strides = [1, 1, 1, 1]} : vector<2x10x16x64xbf16> to vector<2x8x16x64xbf16>
    %43 = vector.shape_cast %42 : vector<2x8x16x64xbf16> to vector<256x64xbf16>
    %c2_26 = arith.constant 2 : index
    %c0_27 = arith.constant 0 : index
    %c0_28 = arith.constant 0 : index
    %44 = vector.load %arg5[%c2_26, %c0_27, %c0_28] : memref<3x64x64xbf16, #tpu.memory_space<vmem>>, vector<1x64x64xbf16>
    %45 = vector.shape_cast %44 : vector<1x64x64xbf16> to vector<64x64xbf16>
    %cst_29 = arith.constant dense<0.000000e+00> : vector<256x64xf32>
    %46 = tpu.matmul %43, %45, %cst_29 {dimension_numbers = #tpu.dot_dimension_numbers<[1], [0], [0], [1], [0, 0, 1, 1], [], []>} : vector<256x64xbf16>, vector<64x64xbf16>, vector<256x64xf32> -> vector<256x64xf32>
    %47 = arith.addf %41, %46 : vector<256x64xf32>
    %c0_30 = arith.constant 0 : index
    %c0_31 = arith.constant 0 : index
    %48 = vector.load %arg7[%c0_30, %c0_31] : memref<8x64xbf16, #tpu.memory_space<vmem>>, vector<8x64xbf16>
    %cst_32 = arith.constant dense<0.000000e+00> : vector<256x64xf32>
    %49 = tpu.matmul %1, %48, %cst_32 {dimension_numbers = #tpu.dot_dimension_numbers<[1], [0], [0], [1], [0, 0, 1, 1], [], []>} : vector<256x8xbf16>, vector<8x64xbf16>, vector<256x64xf32> -> vector<256x64xf32>
    %50 = arith.addf %47, %49 : vector<256x64xf32>
    %c0_33 = arith.constant 0 : index
    %c0_34 = arith.constant 0 : index
    %51 = vector.load %arg6[%c0_33, %c0_34] : memref<1x64xf32, #tpu.memory_space<vmem>>, vector<1x64xf32>
    %52 = vector.broadcast %51 : vector<1x64xf32> to vector<256x64xf32>
    %53 = arith.addf %50, %52 : vector<256x64xf32>
    %cst_35 = arith.constant 0.000000e+00 : f32
    %54 = vector.broadcast %cst_35 : f32 to vector<256x64xf32>
    %55 = arith.maximumf %53, %54 : vector<256x64xf32>
    %56 = arith.truncf %55 : vector<256x64xf32> to vector<256x64xbf16>
    %c0_36 = arith.constant 0 : index
    %c0_37 = arith.constant 0 : index
    %57 = vector.load %arg2[%c0_36, %c0_37] : memref<768x256xbf16, #tpu.memory_space<vmem>>, vector<768x256xbf16>
    %cst_38 = arith.constant dense<0.000000e+00> : vector<768x64xf32>
    %58 = tpu.matmul %57, %56, %cst_38 {dimension_numbers = #tpu.dot_dimension_numbers<[1], [0], [0], [1], [0, 0, 1, 1], [], []>} : vector<768x256xbf16>, vector<256x64xbf16>, vector<768x64xf32> -> vector<768x64xf32>
    %cst_39 = arith.constant 0.000000e+00 : f32
    %59 = vector.broadcast %cst_39 : f32 to vector<256x64xf32>
    %60 = vector.extract_strided_slice %58 {offsets = [0, 0], sizes = [256, 64], strides = [1, 1]} : vector<768x64xf32> to vector<256x64xf32>
    %61 = arith.truncf %60 : vector<256x64xf32> to vector<256x64xbf16>
    %c0_40 = arith.constant 0 : index
    %c0_41 = arith.constant 0 : index
    %c0_42 = arith.constant 0 : index
    %62 = vector.load %arg8[%c0_40, %c0_41, %c0_42] : memref<3x64x64xbf16, #tpu.memory_space<vmem>>, vector<1x64x64xbf16>
    %63 = vector.shape_cast %62 : vector<1x64x64xbf16> to vector<64x64xbf16>
    %cst_43 = arith.constant dense<0.000000e+00> : vector<256x64xf32>
    %64 = tpu.matmul %61, %63, %cst_43 {dimension_numbers = #tpu.dot_dimension_numbers<[1], [0], [0], [1], [0, 0, 1, 1], [], []>} : vector<256x64xbf16>, vector<64x64xbf16>, vector<256x64xf32> -> vector<256x64xf32>
    %65 = arith.addf %59, %64 : vector<256x64xf32>
    %66 = vector.extract_strided_slice %58 {offsets = [256, 0], sizes = [256, 64], strides = [1, 1]} : vector<768x64xf32> to vector<256x64xf32>
    %67 = arith.truncf %66 : vector<256x64xf32> to vector<256x64xbf16>
    %c1_44 = arith.constant 1 : index
    %c0_45 = arith.constant 0 : index
    %c0_46 = arith.constant 0 : index
    %68 = vector.load %arg8[%c1_44, %c0_45, %c0_46] : memref<3x64x64xbf16, #tpu.memory_space<vmem>>, vector<1x64x64xbf16>
    %69 = vector.shape_cast %68 : vector<1x64x64xbf16> to vector<64x64xbf16>
    %cst_47 = arith.constant dense<0.000000e+00> : vector<256x64xf32>
    %70 = tpu.matmul %67, %69, %cst_47 {dimension_numbers = #tpu.dot_dimension_numbers<[1], [0], [0], [1], [0, 0, 1, 1], [], []>} : vector<256x64xbf16>, vector<64x64xbf16>, vector<256x64xf32> -> vector<256x64xf32>
    %71 = arith.addf %65, %70 : vector<256x64xf32>
    %72 = vector.extract_strided_slice %58 {offsets = [512, 0], sizes = [256, 64], strides = [1, 1]} : vector<768x64xf32> to vector<256x64xf32>
    %73 = arith.truncf %72 : vector<256x64xf32> to vector<256x64xbf16>
    %c2_48 = arith.constant 2 : index
    %c0_49 = arith.constant 0 : index
    %c0_50 = arith.constant 0 : index
    %74 = vector.load %arg8[%c2_48, %c0_49, %c0_50] : memref<3x64x64xbf16, #tpu.memory_space<vmem>>, vector<1x64x64xbf16>
    %75 = vector.shape_cast %74 : vector<1x64x64xbf16> to vector<64x64xbf16>
    %cst_51 = arith.constant dense<0.000000e+00> : vector<256x64xf32>
    %76 = tpu.matmul %73, %75, %cst_51 {dimension_numbers = #tpu.dot_dimension_numbers<[1], [0], [0], [1], [0, 0, 1, 1], [], []>} : vector<256x64xbf16>, vector<64x64xbf16>, vector<256x64xf32> -> vector<256x64xf32>
    %77 = arith.addf %71, %76 : vector<256x64xf32>
    %cst_52 = arith.constant 0.000000e+00 : f32
    %78 = vector.broadcast %cst_52 : f32 to vector<256x64xf32>
    %79 = arith.maximumf %77, %78 : vector<256x64xf32>
    %80 = arith.truncf %79 : vector<256x64xf32> to vector<256x64xbf16>
    %81 = vector.shape_cast %80 : vector<256x64xbf16> to vector<2x8x16x64xbf16>
    %cst_53 = arith.constant 0.000000e+00 : bf16
    %82 = vector.broadcast %cst_53 : bf16 to vector<2x1x16x64xbf16>
    %83 = tpu.concatenate %82, %81, %82 in 1 : vector<2x1x16x64xbf16>, vector<2x8x16x64xbf16>, vector<2x1x16x64xbf16> -> vector<2x10x16x64xbf16>
    %cst_54 = arith.constant 0.000000e+00 : f32
    %84 = vector.broadcast %cst_54 : f32 to vector<256x64xf32>
    %85 = vector.extract_strided_slice %83 {offsets = [0, 0, 0, 0], sizes = [2, 8, 16, 64], strides = [1, 1, 1, 1]} : vector<2x10x16x64xbf16> to vector<2x8x16x64xbf16>
    %86 = vector.shape_cast %85 : vector<2x8x16x64xbf16> to vector<256x64xbf16>
    %c0_55 = arith.constant 0 : index
    %c0_56 = arith.constant 0 : index
    %c0_57 = arith.constant 0 : index
    %87 = vector.load %arg9[%c0_55, %c0_56, %c0_57] : memref<3x64x64xbf16, #tpu.memory_space<vmem>>, vector<1x64x64xbf16>
    %88 = vector.shape_cast %87 : vector<1x64x64xbf16> to vector<64x64xbf16>
    %cst_58 = arith.constant dense<0.000000e+00> : vector<256x64xf32>
    %89 = tpu.matmul %86, %88, %cst_58 {dimension_numbers = #tpu.dot_dimension_numbers<[1], [0], [0], [1], [0, 0, 1, 1], [], []>} : vector<256x64xbf16>, vector<64x64xbf16>, vector<256x64xf32> -> vector<256x64xf32>
    %90 = arith.addf %84, %89 : vector<256x64xf32>
    %91 = vector.extract_strided_slice %83 {offsets = [0, 1, 0, 0], sizes = [2, 8, 16, 64], strides = [1, 1, 1, 1]} : vector<2x10x16x64xbf16> to vector<2x8x16x64xbf16>
    %92 = vector.shape_cast %91 : vector<2x8x16x64xbf16> to vector<256x64xbf16>
    %c1_59 = arith.constant 1 : index
    %c0_60 = arith.constant 0 : index
    %c0_61 = arith.constant 0 : index
    %93 = vector.load %arg9[%c1_59, %c0_60, %c0_61] : memref<3x64x64xbf16, #tpu.memory_space<vmem>>, vector<1x64x64xbf16>
    %94 = vector.shape_cast %93 : vector<1x64x64xbf16> to vector<64x64xbf16>
    %cst_62 = arith.constant dense<0.000000e+00> : vector<256x64xf32>
    %95 = tpu.matmul %92, %94, %cst_62 {dimension_numbers = #tpu.dot_dimension_numbers<[1], [0], [0], [1], [0, 0, 1, 1], [], []>} : vector<256x64xbf16>, vector<64x64xbf16>, vector<256x64xf32> -> vector<256x64xf32>
    %96 = arith.addf %90, %95 : vector<256x64xf32>
    %97 = vector.extract_strided_slice %83 {offsets = [0, 2, 0, 0], sizes = [2, 8, 16, 64], strides = [1, 1, 1, 1]} : vector<2x10x16x64xbf16> to vector<2x8x16x64xbf16>
    %98 = vector.shape_cast %97 : vector<2x8x16x64xbf16> to vector<256x64xbf16>
    %c2_63 = arith.constant 2 : index
    %c0_64 = arith.constant 0 : index
    %c0_65 = arith.constant 0 : index
    %99 = vector.load %arg9[%c2_63, %c0_64, %c0_65] : memref<3x64x64xbf16, #tpu.memory_space<vmem>>, vector<1x64x64xbf16>
    %100 = vector.shape_cast %99 : vector<1x64x64xbf16> to vector<64x64xbf16>
    %cst_66 = arith.constant dense<0.000000e+00> : vector<256x64xf32>
    %101 = tpu.matmul %98, %100, %cst_66 {dimension_numbers = #tpu.dot_dimension_numbers<[1], [0], [0], [1], [0, 0, 1, 1], [], []>} : vector<256x64xbf16>, vector<64x64xbf16>, vector<256x64xf32> -> vector<256x64xf32>
    %102 = arith.addf %96, %101 : vector<256x64xf32>
    %103 = arith.extf %56 : vector<256x64xbf16> to vector<256x64xf32>
    %104 = arith.addf %102, %103 : vector<256x64xf32>
    %c0_67 = arith.constant 0 : index
    %c0_68 = arith.constant 0 : index
    %105 = vector.load %arg10[%c0_67, %c0_68] : memref<1x64xf32, #tpu.memory_space<vmem>>, vector<1x64xf32>
    %106 = vector.broadcast %105 : vector<1x64xf32> to vector<256x64xf32>
    %107 = arith.addf %104, %106 : vector<256x64xf32>
    %cst_69 = arith.constant 0.000000e+00 : f32
    %108 = vector.broadcast %cst_69 : f32 to vector<256x64xf32>
    %109 = arith.maximumf %107, %108 : vector<256x64xf32>
    %110 = arith.truncf %109 : vector<256x64xf32> to vector<256x64xbf16>
    %c0_70 = arith.constant 0 : index
    %c0_71 = arith.constant 0 : index
    %111 = vector.load %arg2[%c0_70, %c0_71] : memref<768x256xbf16, #tpu.memory_space<vmem>>, vector<768x256xbf16>
    %cst_72 = arith.constant dense<0.000000e+00> : vector<768x64xf32>
    %112 = tpu.matmul %111, %110, %cst_72 {dimension_numbers = #tpu.dot_dimension_numbers<[1], [0], [0], [1], [0, 0, 1, 1], [], []>} : vector<768x256xbf16>, vector<256x64xbf16>, vector<768x64xf32> -> vector<768x64xf32>
    %cst_73 = arith.constant 0.000000e+00 : f32
    %113 = vector.broadcast %cst_73 : f32 to vector<256x64xf32>
    %114 = vector.extract_strided_slice %112 {offsets = [0, 0], sizes = [256, 64], strides = [1, 1]} : vector<768x64xf32> to vector<256x64xf32>
    %115 = arith.truncf %114 : vector<256x64xf32> to vector<256x64xbf16>
    %c0_74 = arith.constant 0 : index
    %c0_75 = arith.constant 0 : index
    %c0_76 = arith.constant 0 : index
    %116 = vector.load %arg11[%c0_74, %c0_75, %c0_76] : memref<3x64x64xbf16, #tpu.memory_space<vmem>>, vector<1x64x64xbf16>
    %117 = vector.shape_cast %116 : vector<1x64x64xbf16> to vector<64x64xbf16>
    %cst_77 = arith.constant dense<0.000000e+00> : vector<256x64xf32>
    %118 = tpu.matmul %115, %117, %cst_77 {dimension_numbers = #tpu.dot_dimension_numbers<[1], [0], [0], [1], [0, 0, 1, 1], [], []>} : vector<256x64xbf16>, vector<64x64xbf16>, vector<256x64xf32> -> vector<256x64xf32>
    %119 = arith.addf %113, %118 : vector<256x64xf32>
    %120 = vector.extract_strided_slice %112 {offsets = [256, 0], sizes = [256, 64], strides = [1, 1]} : vector<768x64xf32> to vector<256x64xf32>
    %121 = arith.truncf %120 : vector<256x64xf32> to vector<256x64xbf16>
    %c1_78 = arith.constant 1 : index
    %c0_79 = arith.constant 0 : index
    %c0_80 = arith.constant 0 : index
    %122 = vector.load %arg11[%c1_78, %c0_79, %c0_80] : memref<3x64x64xbf16, #tpu.memory_space<vmem>>, vector<1x64x64xbf16>
    %123 = vector.shape_cast %122 : vector<1x64x64xbf16> to vector<64x64xbf16>
    %cst_81 = arith.constant dense<0.000000e+00> : vector<256x64xf32>
    %124 = tpu.matmul %121, %123, %cst_81 {dimension_numbers = #tpu.dot_dimension_numbers<[1], [0], [0], [1], [0, 0, 1, 1], [], []>} : vector<256x64xbf16>, vector<64x64xbf16>, vector<256x64xf32> -> vector<256x64xf32>
    %125 = arith.addf %119, %124 : vector<256x64xf32>
    %126 = vector.extract_strided_slice %112 {offsets = [512, 0], sizes = [256, 64], strides = [1, 1]} : vector<768x64xf32> to vector<256x64xf32>
    %127 = arith.truncf %126 : vector<256x64xf32> to vector<256x64xbf16>
    %c2_82 = arith.constant 2 : index
    %c0_83 = arith.constant 0 : index
    %c0_84 = arith.constant 0 : index
    %128 = vector.load %arg11[%c2_82, %c0_83, %c0_84] : memref<3x64x64xbf16, #tpu.memory_space<vmem>>, vector<1x64x64xbf16>
    %129 = vector.shape_cast %128 : vector<1x64x64xbf16> to vector<64x64xbf16>
    %cst_85 = arith.constant dense<0.000000e+00> : vector<256x64xf32>
    %130 = tpu.matmul %127, %129, %cst_85 {dimension_numbers = #tpu.dot_dimension_numbers<[1], [0], [0], [1], [0, 0, 1, 1], [], []>} : vector<256x64xbf16>, vector<64x64xbf16>, vector<256x64xf32> -> vector<256x64xf32>
    %131 = arith.addf %125, %130 : vector<256x64xf32>
    %cst_86 = arith.constant 0.000000e+00 : f32
    %132 = vector.broadcast %cst_86 : f32 to vector<256x64xf32>
    %133 = arith.maximumf %131, %132 : vector<256x64xf32>
    %134 = arith.truncf %133 : vector<256x64xf32> to vector<256x64xbf16>
    %135 = vector.shape_cast %134 : vector<256x64xbf16> to vector<2x8x16x64xbf16>
    %cst_87 = arith.constant 0.000000e+00 : bf16
    %136 = vector.broadcast %cst_87 : bf16 to vector<2x1x16x64xbf16>
    %137 = tpu.concatenate %136, %135, %136 in 1 : vector<2x1x16x64xbf16>, vector<2x8x16x64xbf16>, vector<2x1x16x64xbf16> -> vector<2x10x16x64xbf16>
    %cst_88 = arith.constant 0.000000e+00 : f32
    %138 = vector.broadcast %cst_88 : f32 to vector<256x64xf32>
    %139 = vector.extract_strided_slice %137 {offsets = [0, 0, 0, 0], sizes = [2, 8, 16, 64], strides = [1, 1, 1, 1]} : vector<2x10x16x64xbf16> to vector<2x8x16x64xbf16>
    %140 = vector.shape_cast %139 : vector<2x8x16x64xbf16> to vector<256x64xbf16>
    %c0_89 = arith.constant 0 : index
    %c0_90 = arith.constant 0 : index
    %c0_91 = arith.constant 0 : index
    %141 = vector.load %arg12[%c0_89, %c0_90, %c0_91] : memref<3x64x64xbf16, #tpu.memory_space<vmem>>, vector<1x64x64xbf16>
    %142 = vector.shape_cast %141 : vector<1x64x64xbf16> to vector<64x64xbf16>
    %cst_92 = arith.constant dense<0.000000e+00> : vector<256x64xf32>
    %143 = tpu.matmul %140, %142, %cst_92 {dimension_numbers = #tpu.dot_dimension_numbers<[1], [0], [0], [1], [0, 0, 1, 1], [], []>} : vector<256x64xbf16>, vector<64x64xbf16>, vector<256x64xf32> -> vector<256x64xf32>
    %144 = arith.addf %138, %143 : vector<256x64xf32>
    %145 = vector.extract_strided_slice %137 {offsets = [0, 1, 0, 0], sizes = [2, 8, 16, 64], strides = [1, 1, 1, 1]} : vector<2x10x16x64xbf16> to vector<2x8x16x64xbf16>
    %146 = vector.shape_cast %145 : vector<2x8x16x64xbf16> to vector<256x64xbf16>
    %c1_93 = arith.constant 1 : index
    %c0_94 = arith.constant 0 : index
    %c0_95 = arith.constant 0 : index
    %147 = vector.load %arg12[%c1_93, %c0_94, %c0_95] : memref<3x64x64xbf16, #tpu.memory_space<vmem>>, vector<1x64x64xbf16>
    %148 = vector.shape_cast %147 : vector<1x64x64xbf16> to vector<64x64xbf16>
    %cst_96 = arith.constant dense<0.000000e+00> : vector<256x64xf32>
    %149 = tpu.matmul %146, %148, %cst_96 {dimension_numbers = #tpu.dot_dimension_numbers<[1], [0], [0], [1], [0, 0, 1, 1], [], []>} : vector<256x64xbf16>, vector<64x64xbf16>, vector<256x64xf32> -> vector<256x64xf32>
    %150 = arith.addf %144, %149 : vector<256x64xf32>
    %151 = vector.extract_strided_slice %137 {offsets = [0, 2, 0, 0], sizes = [2, 8, 16, 64], strides = [1, 1, 1, 1]} : vector<2x10x16x64xbf16> to vector<2x8x16x64xbf16>
    %152 = vector.shape_cast %151 : vector<2x8x16x64xbf16> to vector<256x64xbf16>
    %c2_97 = arith.constant 2 : index
    %c0_98 = arith.constant 0 : index
    %c0_99 = arith.constant 0 : index
    %153 = vector.load %arg12[%c2_97, %c0_98, %c0_99] : memref<3x64x64xbf16, #tpu.memory_space<vmem>>, vector<1x64x64xbf16>
    %154 = vector.shape_cast %153 : vector<1x64x64xbf16> to vector<64x64xbf16>
    %cst_100 = arith.constant dense<0.000000e+00> : vector<256x64xf32>
    %155 = tpu.matmul %152, %154, %cst_100 {dimension_numbers = #tpu.dot_dimension_numbers<[1], [0], [0], [1], [0, 0, 1, 1], [], []>} : vector<256x64xbf16>, vector<64x64xbf16>, vector<256x64xf32> -> vector<256x64xf32>
    %156 = arith.addf %150, %155 : vector<256x64xf32>
    %157 = arith.extf %110 : vector<256x64xbf16> to vector<256x64xf32>
    %158 = arith.addf %156, %157 : vector<256x64xf32>
    %c0_101 = arith.constant 0 : index
    %c0_102 = arith.constant 0 : index
    %159 = vector.load %arg13[%c0_101, %c0_102] : memref<1x64xf32, #tpu.memory_space<vmem>>, vector<1x64xf32>
    %160 = vector.broadcast %159 : vector<1x64xf32> to vector<256x64xf32>
    %161 = arith.addf %158, %160 : vector<256x64xf32>
    %cst_103 = arith.constant 0.000000e+00 : f32
    %162 = vector.broadcast %cst_103 : f32 to vector<256x64xf32>
    %163 = arith.maximumf %161, %162 : vector<256x64xf32>
    %164 = arith.truncf %163 : vector<256x64xf32> to vector<256x64xbf16>
    %c0_104 = arith.constant 0 : index
    %c0_105 = arith.constant 0 : index
    %165 = vector.load %arg2[%c0_104, %c0_105] : memref<768x256xbf16, #tpu.memory_space<vmem>>, vector<768x256xbf16>
    %cst_106 = arith.constant dense<0.000000e+00> : vector<768x64xf32>
    %166 = tpu.matmul %165, %164, %cst_106 {dimension_numbers = #tpu.dot_dimension_numbers<[1], [0], [0], [1], [0, 0, 1, 1], [], []>} : vector<768x256xbf16>, vector<256x64xbf16>, vector<768x64xf32> -> vector<768x64xf32>
    %cst_107 = arith.constant 0.000000e+00 : f32
    %167 = vector.broadcast %cst_107 : f32 to vector<256x128xf32>
    %168 = vector.extract_strided_slice %166 {offsets = [0, 0], sizes = [256, 64], strides = [1, 1]} : vector<768x64xf32> to vector<256x64xf32>
    %169 = arith.truncf %168 : vector<256x64xf32> to vector<256x64xbf16>
    %c0_108 = arith.constant 0 : index
    %c0_109 = arith.constant 0 : index
    %c0_110 = arith.constant 0 : index
    %170 = vector.load %arg14[%c0_108, %c0_109, %c0_110] : memref<3x64x128xbf16, #tpu.memory_space<vmem>>, vector<1x64x128xbf16>
    %171 = vector.shape_cast %170 : vector<1x64x128xbf16> to vector<64x128xbf16>
    %cst_111 = arith.constant dense<0.000000e+00> : vector<256x128xf32>
    %172 = tpu.matmul %169, %171, %cst_111 {dimension_numbers = #tpu.dot_dimension_numbers<[1], [0], [0], [1], [0, 0, 1, 1], [], []>} : vector<256x64xbf16>, vector<64x128xbf16>, vector<256x128xf32> -> vector<256x128xf32>
    %173 = arith.addf %167, %172 : vector<256x128xf32>
    %174 = vector.extract_strided_slice %166 {offsets = [256, 0], sizes = [256, 64], strides = [1, 1]} : vector<768x64xf32> to vector<256x64xf32>
    %175 = arith.truncf %174 : vector<256x64xf32> to vector<256x64xbf16>
    %c1_112 = arith.constant 1 : index
    %c0_113 = arith.constant 0 : index
    %c0_114 = arith.constant 0 : index
    %176 = vector.load %arg14[%c1_112, %c0_113, %c0_114] : memref<3x64x128xbf16, #tpu.memory_space<vmem>>, vector<1x64x128xbf16>
    %177 = vector.shape_cast %176 : vector<1x64x128xbf16> to vector<64x128xbf16>
    %cst_115 = arith.constant dense<0.000000e+00> : vector<256x128xf32>
    %178 = tpu.matmul %175, %177, %cst_115 {dimension_numbers = #tpu.dot_dimension_numbers<[1], [0], [0], [1], [0, 0, 1, 1], [], []>} : vector<256x64xbf16>, vector<64x128xbf16>, vector<256x128xf32> -> vector<256x128xf32>
    %179 = arith.addf %173, %178 : vector<256x128xf32>
    %180 = vector.extract_strided_slice %166 {offsets = [512, 0], sizes = [256, 64], strides = [1, 1]} : vector<768x64xf32> to vector<256x64xf32>
    %181 = arith.truncf %180 : vector<256x64xf32> to vector<256x64xbf16>
    %c2_116 = arith.constant 2 : index
    %c0_117 = arith.constant 0 : index
    %c0_118 = arith.constant 0 : index
    %182 = vector.load %arg14[%c2_116, %c0_117, %c0_118] : memref<3x64x128xbf16, #tpu.memory_space<vmem>>, vector<1x64x128xbf16>
    %183 = vector.shape_cast %182 : vector<1x64x128xbf16> to vector<64x128xbf16>
    %cst_119 = arith.constant dense<0.000000e+00> : vector<256x128xf32>
    %184 = tpu.matmul %181, %183, %cst_119 {dimension_numbers = #tpu.dot_dimension_numbers<[1], [0], [0], [1], [0, 0, 1, 1], [], []>} : vector<256x64xbf16>, vector<64x128xbf16>, vector<256x128xf32> -> vector<256x128xf32>
    %185 = arith.addf %179, %184 : vector<256x128xf32>
    %cst_120 = arith.constant 0.000000e+00 : f32
    %186 = vector.broadcast %cst_120 : f32 to vector<256x128xf32>
    %187 = arith.maximumf %185, %186 : vector<256x128xf32>
    %188 = arith.truncf %187 : vector<256x128xf32> to vector<256x128xbf16>
    %189 = vector.shape_cast %188 : vector<256x128xbf16> to vector<2x8x16x128xbf16>
    %cst_121 = arith.constant 0.000000e+00 : bf16
    %190 = vector.broadcast %cst_121 : bf16 to vector<2x1x16x128xbf16>
    %191 = tpu.concatenate %190, %189, %190 in 1 : vector<2x1x16x128xbf16>, vector<2x8x16x128xbf16>, vector<2x1x16x128xbf16> -> vector<2x10x16x128xbf16>
    %cst_122 = arith.constant 0.000000e+00 : f32
    %192 = vector.broadcast %cst_122 : f32 to vector<128x128xf32>
    %193 = vector.extract_strided_slice %191 {offsets = [0, 0, 0, 0], sizes = [2, 1, 16, 128], strides = [1, 1, 1, 1]} : vector<2x10x16x128xbf16> to vector<2x1x16x128xbf16>
    %194 = vector.extract_strided_slice %191 {offsets = [0, 2, 0, 0], sizes = [2, 1, 16, 128], strides = [1, 1, 1, 1]} : vector<2x10x16x128xbf16> to vector<2x1x16x128xbf16>
    %195 = vector.extract_strided_slice %191 {offsets = [0, 4, 0, 0], sizes = [2, 1, 16, 128], strides = [1, 1, 1, 1]} : vector<2x10x16x128xbf16> to vector<2x1x16x128xbf16>
    %196 = vector.extract_strided_slice %191 {offsets = [0, 6, 0, 0], sizes = [2, 1, 16, 128], strides = [1, 1, 1, 1]} : vector<2x10x16x128xbf16> to vector<2x1x16x128xbf16>
    %197 = tpu.concatenate %193, %194, %195, %196 in 1 : vector<2x1x16x128xbf16>, vector<2x1x16x128xbf16>, vector<2x1x16x128xbf16>, vector<2x1x16x128xbf16> -> vector<2x4x16x128xbf16>
    %198 = vector.shape_cast %197 : vector<2x4x16x128xbf16> to vector<128x128xbf16>
    %c0_123 = arith.constant 0 : index
    %c0_124 = arith.constant 0 : index
    %c0_125 = arith.constant 0 : index
    %199 = vector.load %arg15[%c0_123, %c0_124, %c0_125] : memref<3x128x128xbf16, #tpu.memory_space<vmem>>, vector<1x128x128xbf16>
    %200 = vector.shape_cast %199 : vector<1x128x128xbf16> to vector<128x128xbf16>
    %cst_126 = arith.constant dense<0.000000e+00> : vector<128x128xf32>
    %201 = tpu.matmul %198, %200, %cst_126 {dimension_numbers = #tpu.dot_dimension_numbers<[1], [0], [0], [1], [0, 0, 1, 1], [], []>} : vector<128x128xbf16>, vector<128x128xbf16>, vector<128x128xf32> -> vector<128x128xf32>
    %202 = arith.addf %192, %201 : vector<128x128xf32>
    %203 = vector.extract_strided_slice %191 {offsets = [0, 1, 0, 0], sizes = [2, 1, 16, 128], strides = [1, 1, 1, 1]} : vector<2x10x16x128xbf16> to vector<2x1x16x128xbf16>
    %204 = vector.extract_strided_slice %191 {offsets = [0, 3, 0, 0], sizes = [2, 1, 16, 128], strides = [1, 1, 1, 1]} : vector<2x10x16x128xbf16> to vector<2x1x16x128xbf16>
    %205 = vector.extract_strided_slice %191 {offsets = [0, 5, 0, 0], sizes = [2, 1, 16, 128], strides = [1, 1, 1, 1]} : vector<2x10x16x128xbf16> to vector<2x1x16x128xbf16>
    %206 = vector.extract_strided_slice %191 {offsets = [0, 7, 0, 0], sizes = [2, 1, 16, 128], strides = [1, 1, 1, 1]} : vector<2x10x16x128xbf16> to vector<2x1x16x128xbf16>
    %207 = tpu.concatenate %203, %204, %205, %206 in 1 : vector<2x1x16x128xbf16>, vector<2x1x16x128xbf16>, vector<2x1x16x128xbf16>, vector<2x1x16x128xbf16> -> vector<2x4x16x128xbf16>
    %208 = vector.shape_cast %207 : vector<2x4x16x128xbf16> to vector<128x128xbf16>
    %c1_127 = arith.constant 1 : index
    %c0_128 = arith.constant 0 : index
    %c0_129 = arith.constant 0 : index
    %209 = vector.load %arg15[%c1_127, %c0_128, %c0_129] : memref<3x128x128xbf16, #tpu.memory_space<vmem>>, vector<1x128x128xbf16>
    %210 = vector.shape_cast %209 : vector<1x128x128xbf16> to vector<128x128xbf16>
    %cst_130 = arith.constant dense<0.000000e+00> : vector<128x128xf32>
    %211 = tpu.matmul %208, %210, %cst_130 {dimension_numbers = #tpu.dot_dimension_numbers<[1], [0], [0], [1], [0, 0, 1, 1], [], []>} : vector<128x128xbf16>, vector<128x128xbf16>, vector<128x128xf32> -> vector<128x128xf32>
    %212 = arith.addf %202, %211 : vector<128x128xf32>
    %213 = vector.extract_strided_slice %191 {offsets = [0, 2, 0, 0], sizes = [2, 1, 16, 128], strides = [1, 1, 1, 1]} : vector<2x10x16x128xbf16> to vector<2x1x16x128xbf16>
    %214 = vector.extract_strided_slice %191 {offsets = [0, 4, 0, 0], sizes = [2, 1, 16, 128], strides = [1, 1, 1, 1]} : vector<2x10x16x128xbf16> to vector<2x1x16x128xbf16>
    %215 = vector.extract_strided_slice %191 {offsets = [0, 6, 0, 0], sizes = [2, 1, 16, 128], strides = [1, 1, 1, 1]} : vector<2x10x16x128xbf16> to vector<2x1x16x128xbf16>
    %216 = vector.extract_strided_slice %191 {offsets = [0, 8, 0, 0], sizes = [2, 1, 16, 128], strides = [1, 1, 1, 1]} : vector<2x10x16x128xbf16> to vector<2x1x16x128xbf16>
    %217 = tpu.concatenate %213, %214, %215, %216 in 1 : vector<2x1x16x128xbf16>, vector<2x1x16x128xbf16>, vector<2x1x16x128xbf16>, vector<2x1x16x128xbf16> -> vector<2x4x16x128xbf16>
    %218 = vector.shape_cast %217 : vector<2x4x16x128xbf16> to vector<128x128xbf16>
    %c2_131 = arith.constant 2 : index
    %c0_132 = arith.constant 0 : index
    %c0_133 = arith.constant 0 : index
    %219 = vector.load %arg15[%c2_131, %c0_132, %c0_133] : memref<3x128x128xbf16, #tpu.memory_space<vmem>>, vector<1x128x128xbf16>
    %220 = vector.shape_cast %219 : vector<1x128x128xbf16> to vector<128x128xbf16>
    %cst_134 = arith.constant dense<0.000000e+00> : vector<128x128xf32>
    %221 = tpu.matmul %218, %220, %cst_134 {dimension_numbers = #tpu.dot_dimension_numbers<[1], [0], [0], [1], [0, 0, 1, 1], [], []>} : vector<128x128xbf16>, vector<128x128xbf16>, vector<128x128xf32> -> vector<128x128xf32>
    %222 = arith.addf %212, %221 : vector<128x128xf32>
    %223 = vector.shape_cast %164 : vector<256x64xbf16> to vector<2x8x16x64xbf16>
    %224 = vector.extract_strided_slice %223 {offsets = [0, 0, 0, 0], sizes = [2, 1, 16, 64], strides = [1, 1, 1, 1]} : vector<2x8x16x64xbf16> to vector<2x1x16x64xbf16>
    %225 = vector.extract_strided_slice %223 {offsets = [0, 2, 0, 0], sizes = [2, 1, 16, 64], strides = [1, 1, 1, 1]} : vector<2x8x16x64xbf16> to vector<2x1x16x64xbf16>
    %226 = vector.extract_strided_slice %223 {offsets = [0, 4, 0, 0], sizes = [2, 1, 16, 64], strides = [1, 1, 1, 1]} : vector<2x8x16x64xbf16> to vector<2x1x16x64xbf16>
    %227 = vector.extract_strided_slice %223 {offsets = [0, 6, 0, 0], sizes = [2, 1, 16, 64], strides = [1, 1, 1, 1]} : vector<2x8x16x64xbf16> to vector<2x1x16x64xbf16>
    %228 = tpu.concatenate %224, %225, %226, %227 in 1 : vector<2x1x16x64xbf16>, vector<2x1x16x64xbf16>, vector<2x1x16x64xbf16>, vector<2x1x16x64xbf16> -> vector<2x4x16x64xbf16>
    %229 = vector.shape_cast %228 : vector<2x4x16x64xbf16> to vector<128x64xbf16>
    %c0_135 = arith.constant 0 : index
    %c0_136 = arith.constant 0 : index
    %230 = vector.load %arg17[%c0_135, %c0_136] : memref<64x128xbf16, #tpu.memory_space<vmem>>, vector<64x128xbf16>
    %cst_137 = arith.constant dense<0.000000e+00> : vector<128x128xf32>
    %231 = tpu.matmul %229, %230, %cst_137 {dimension_numbers = #tpu.dot_dimension_numbers<[1], [0], [0], [1], [0, 0, 1, 1], [], []>} : vector<128x64xbf16>, vector<64x128xbf16>, vector<128x128xf32> -> vector<128x128xf32>
    %232 = arith.addf %222, %231 : vector<128x128xf32>
    %c0_138 = arith.constant 0 : index
    %c0_139 = arith.constant 0 : index
    %233 = vector.load %arg16[%c0_138, %c0_139] : memref<1x128xf32, #tpu.memory_space<vmem>>, vector<1x128xf32>
    %234 = vector.broadcast %233 : vector<1x128xf32> to vector<128x128xf32>
    %235 = arith.addf %232, %234 : vector<128x128xf32>
    %cst_140 = arith.constant 0.000000e+00 : f32
    %236 = vector.broadcast %cst_140 : f32 to vector<128x128xf32>
    %237 = arith.maximumf %235, %236 : vector<128x128xf32>
    %238 = arith.truncf %237 : vector<128x128xf32> to vector<128x128xbf16>
    %c0_141 = arith.constant 0 : index
    %c0_142 = arith.constant 0 : index
    %239 = vector.load %arg3[%c0_141, %c0_142] : memref<384x128xbf16, #tpu.memory_space<vmem>>, vector<384x128xbf16>
    %cst_143 = arith.constant dense<0.000000e+00> : vector<384x128xf32>
    %240 = tpu.matmul %239, %238, %cst_143 {dimension_numbers = #tpu.dot_dimension_numbers<[1], [0], [0], [1], [0, 0, 1, 1], [], []>} : vector<384x128xbf16>, vector<128x128xbf16>, vector<384x128xf32> -> vector<384x128xf32>
    %cst_144 = arith.constant 0.000000e+00 : f32
    %241 = vector.broadcast %cst_144 : f32 to vector<128x256xf32>
    %242 = vector.extract_strided_slice %240 {offsets = [0, 0], sizes = [128, 128], strides = [1, 1]} : vector<384x128xf32> to vector<128x128xf32>
    %243 = arith.truncf %242 : vector<128x128xf32> to vector<128x128xbf16>
    %c0_145 = arith.constant 0 : index
    %c0_146 = arith.constant 0 : index
    %c0_147 = arith.constant 0 : index
    %244 = vector.load %arg18[%c0_145, %c0_146, %c0_147] : memref<3x128x256xbf16, #tpu.memory_space<vmem>>, vector<1x128x256xbf16>
    %245 = vector.shape_cast %244 : vector<1x128x256xbf16> to vector<128x256xbf16>
    %cst_148 = arith.constant dense<0.000000e+00> : vector<128x256xf32>
    %246 = tpu.matmul %243, %245, %cst_148 {dimension_numbers = #tpu.dot_dimension_numbers<[1], [0], [0], [1], [0, 0, 1, 1], [], []>} : vector<128x128xbf16>, vector<128x256xbf16>, vector<128x256xf32> -> vector<128x256xf32>
    %247 = arith.addf %241, %246 : vector<128x256xf32>
    %248 = vector.extract_strided_slice %240 {offsets = [128, 0], sizes = [128, 128], strides = [1, 1]} : vector<384x128xf32> to vector<128x128xf32>
    %249 = arith.truncf %248 : vector<128x128xf32> to vector<128x128xbf16>
    %c1_149 = arith.constant 1 : index
    %c0_150 = arith.constant 0 : index
    %c0_151 = arith.constant 0 : index
    %250 = vector.load %arg18[%c1_149, %c0_150, %c0_151] : memref<3x128x256xbf16, #tpu.memory_space<vmem>>, vector<1x128x256xbf16>
    %251 = vector.shape_cast %250 : vector<1x128x256xbf16> to vector<128x256xbf16>
    %cst_152 = arith.constant dense<0.000000e+00> : vector<128x256xf32>
    %252 = tpu.matmul %249, %251, %cst_152 {dimension_numbers = #tpu.dot_dimension_numbers<[1], [0], [0], [1], [0, 0, 1, 1], [], []>} : vector<128x128xbf16>, vector<128x256xbf16>, vector<128x256xf32> -> vector<128x256xf32>
    %253 = arith.addf %247, %252 : vector<128x256xf32>
    %254 = vector.extract_strided_slice %240 {offsets = [256, 0], sizes = [128, 128], strides = [1, 1]} : vector<384x128xf32> to vector<128x128xf32>
    %255 = arith.truncf %254 : vector<128x128xf32> to vector<128x128xbf16>
    %c2_153 = arith.constant 2 : index
    %c0_154 = arith.constant 0 : index
    %c0_155 = arith.constant 0 : index
    %256 = vector.load %arg18[%c2_153, %c0_154, %c0_155] : memref<3x128x256xbf16, #tpu.memory_space<vmem>>, vector<1x128x256xbf16>
    %257 = vector.shape_cast %256 : vector<1x128x256xbf16> to vector<128x256xbf16>
    %cst_156 = arith.constant dense<0.000000e+00> : vector<128x256xf32>
    %258 = tpu.matmul %255, %257, %cst_156 {dimension_numbers = #tpu.dot_dimension_numbers<[1], [0], [0], [1], [0, 0, 1, 1], [], []>} : vector<128x128xbf16>, vector<128x256xbf16>, vector<128x256xf32> -> vector<128x256xf32>
    %259 = arith.addf %253, %258 : vector<128x256xf32>
    %cst_157 = arith.constant 0.000000e+00 : f32
    %260 = vector.broadcast %cst_157 : f32 to vector<128x256xf32>
    %261 = arith.maximumf %259, %260 : vector<128x256xf32>
    %262 = arith.truncf %261 : vector<128x256xf32> to vector<128x256xbf16>
    %263 = vector.shape_cast %262 : vector<128x256xbf16> to vector<2x4x16x256xbf16>
    %cst_158 = arith.constant 0.000000e+00 : bf16
    %264 = vector.broadcast %cst_158 : bf16 to vector<2x1x16x256xbf16>
    %265 = tpu.concatenate %264, %263, %264 in 1 : vector<2x1x16x256xbf16>, vector<2x4x16x256xbf16>, vector<2x1x16x256xbf16> -> vector<2x6x16x256xbf16>
    %cst_159 = arith.constant 0.000000e+00 : f32
    %266 = vector.broadcast %cst_159 : f32 to vector<64x256xf32>
    %267 = vector.extract_strided_slice %265 {offsets = [0, 0, 0, 0], sizes = [2, 1, 16, 256], strides = [1, 1, 1, 1]} : vector<2x6x16x256xbf16> to vector<2x1x16x256xbf16>
    %268 = vector.extract_strided_slice %265 {offsets = [0, 2, 0, 0], sizes = [2, 1, 16, 256], strides = [1, 1, 1, 1]} : vector<2x6x16x256xbf16> to vector<2x1x16x256xbf16>
    %269 = tpu.concatenate %267, %268 in 1 : vector<2x1x16x256xbf16>, vector<2x1x16x256xbf16> -> vector<2x2x16x256xbf16>
    %270 = vector.shape_cast %269 : vector<2x2x16x256xbf16> to vector<64x256xbf16>
    %c0_160 = arith.constant 0 : index
    %c0_161 = arith.constant 0 : index
    %c0_162 = arith.constant 0 : index
    %271 = vector.load %arg19[%c0_160, %c0_161, %c0_162] : memref<3x256x256xbf16, #tpu.memory_space<vmem>>, vector<1x256x256xbf16>
    %272 = vector.shape_cast %271 : vector<1x256x256xbf16> to vector<256x256xbf16>
    %cst_163 = arith.constant dense<0.000000e+00> : vector<64x256xf32>
    %273 = tpu.matmul %270, %272, %cst_163 {dimension_numbers = #tpu.dot_dimension_numbers<[1], [0], [0], [1], [0, 0, 1, 1], [], []>} : vector<64x256xbf16>, vector<256x256xbf16>, vector<64x256xf32> -> vector<64x256xf32>
    %274 = arith.addf %266, %273 : vector<64x256xf32>
    %275 = vector.extract_strided_slice %265 {offsets = [0, 1, 0, 0], sizes = [2, 1, 16, 256], strides = [1, 1, 1, 1]} : vector<2x6x16x256xbf16> to vector<2x1x16x256xbf16>
    %276 = vector.extract_strided_slice %265 {offsets = [0, 3, 0, 0], sizes = [2, 1, 16, 256], strides = [1, 1, 1, 1]} : vector<2x6x16x256xbf16> to vector<2x1x16x256xbf16>
    %277 = tpu.concatenate %275, %276 in 1 : vector<2x1x16x256xbf16>, vector<2x1x16x256xbf16> -> vector<2x2x16x256xbf16>
    %278 = vector.shape_cast %277 : vector<2x2x16x256xbf16> to vector<64x256xbf16>
    %c1_164 = arith.constant 1 : index
    %c0_165 = arith.constant 0 : index
    %c0_166 = arith.constant 0 : index
    %279 = vector.load %arg19[%c1_164, %c0_165, %c0_166] : memref<3x256x256xbf16, #tpu.memory_space<vmem>>, vector<1x256x256xbf16>
    %280 = vector.shape_cast %279 : vector<1x256x256xbf16> to vector<256x256xbf16>
    %cst_167 = arith.constant dense<0.000000e+00> : vector<64x256xf32>
    %281 = tpu.matmul %278, %280, %cst_167 {dimension_numbers = #tpu.dot_dimension_numbers<[1], [0], [0], [1], [0, 0, 1, 1], [], []>} : vector<64x256xbf16>, vector<256x256xbf16>, vector<64x256xf32> -> vector<64x256xf32>
    %282 = arith.addf %274, %281 : vector<64x256xf32>
    %283 = vector.extract_strided_slice %265 {offsets = [0, 2, 0, 0], sizes = [2, 1, 16, 256], strides = [1, 1, 1, 1]} : vector<2x6x16x256xbf16> to vector<2x1x16x256xbf16>
    %284 = vector.extract_strided_slice %265 {offsets = [0, 4, 0, 0], sizes = [2, 1, 16, 256], strides = [1, 1, 1, 1]} : vector<2x6x16x256xbf16> to vector<2x1x16x256xbf16>
    %285 = tpu.concatenate %283, %284 in 1 : vector<2x1x16x256xbf16>, vector<2x1x16x256xbf16> -> vector<2x2x16x256xbf16>
    %286 = vector.shape_cast %285 : vector<2x2x16x256xbf16> to vector<64x256xbf16>
    %c2_168 = arith.constant 2 : index
    %c0_169 = arith.constant 0 : index
    %c0_170 = arith.constant 0 : index
    %287 = vector.load %arg19[%c2_168, %c0_169, %c0_170] : memref<3x256x256xbf16, #tpu.memory_space<vmem>>, vector<1x256x256xbf16>
    %288 = vector.shape_cast %287 : vector<1x256x256xbf16> to vector<256x256xbf16>
    %cst_171 = arith.constant dense<0.000000e+00> : vector<64x256xf32>
    %289 = tpu.matmul %286, %288, %cst_171 {dimension_numbers = #tpu.dot_dimension_numbers<[1], [0], [0], [1], [0, 0, 1, 1], [], []>} : vector<64x256xbf16>, vector<256x256xbf16>, vector<64x256xf32> -> vector<64x256xf32>
    %290 = arith.addf %282, %289 : vector<64x256xf32>
    %291 = vector.shape_cast %238 : vector<128x128xbf16> to vector<2x4x16x128xbf16>
    %292 = vector.extract_strided_slice %291 {offsets = [0, 0, 0, 0], sizes = [2, 1, 16, 128], strides = [1, 1, 1, 1]} : vector<2x4x16x128xbf16> to vector<2x1x16x128xbf16>
    %293 = vector.extract_strided_slice %291 {offsets = [0, 2, 0, 0], sizes = [2, 1, 16, 128], strides = [1, 1, 1, 1]} : vector<2x4x16x128xbf16> to vector<2x1x16x128xbf16>
    %294 = tpu.concatenate %292, %293 in 1 : vector<2x1x16x128xbf16>, vector<2x1x16x128xbf16> -> vector<2x2x16x128xbf16>
    %295 = vector.shape_cast %294 : vector<2x2x16x128xbf16> to vector<64x128xbf16>
    %c0_172 = arith.constant 0 : index
    %c0_173 = arith.constant 0 : index
    %296 = vector.load %arg21[%c0_172, %c0_173] : memref<128x256xbf16, #tpu.memory_space<vmem>>, vector<128x256xbf16>
    %cst_174 = arith.constant dense<0.000000e+00> : vector<64x256xf32>
    %297 = tpu.matmul %295, %296, %cst_174 {dimension_numbers = #tpu.dot_dimension_numbers<[1], [0], [0], [1], [0, 0, 1, 1], [], []>} : vector<64x128xbf16>, vector<128x256xbf16>, vector<64x256xf32> -> vector<64x256xf32>
    %298 = arith.addf %290, %297 : vector<64x256xf32>
    %c0_175 = arith.constant 0 : index
    %c0_176 = arith.constant 0 : index
    %299 = vector.load %arg20[%c0_175, %c0_176] : memref<1x256xf32, #tpu.memory_space<vmem>>, vector<1x256xf32>
    %300 = vector.broadcast %299 : vector<1x256xf32> to vector<64x256xf32>
    %301 = arith.addf %298, %300 : vector<64x256xf32>
    %cst_177 = arith.constant 0.000000e+00 : f32
    %302 = vector.broadcast %cst_177 : f32 to vector<64x256xf32>
    %303 = arith.maximumf %301, %302 : vector<64x256xf32>
    %304 = arith.truncf %303 : vector<64x256xf32> to vector<64x256xbf16>
    %305 = vector.shape_cast %304 : vector<64x256xbf16> to vector<2x32x256xbf16>
    %c0_178 = arith.constant 0 : index
    %c0_179 = arith.constant 0 : index
    %c0_180 = arith.constant 0 : index
    %306 = vector.load %arg22[%c0_178, %c0_179, %c0_180] : memref<2x32x256xbf16, #tpu.memory_space<vmem>>, vector<2x32x256xbf16>
    tpu.vector_store %arg22[%c0_178, %c0_179, %c0_180], %305 {strides = array<i32>} : memref<2x32x256xbf16, #tpu.memory_space<vmem>>, vector<2x32x256xbf16>,
    return
  }
  func.func @transform_0(%arg0: i32) -> (i32, i32, i32) {
    %c0_i32 = arith.constant 0 : i32
    %c0_i32_0 = arith.constant 0 : i32
    %c0_i32_1 = arith.constant 0 : i32
    return %arg0, %c0_i32, %c0_i32_0 : i32, i32, i32
  }
  func.func @transform_1(%arg0: i32) -> (i32, i32) {
    %c0_i32 = arith.constant 0 : i32
    %c0_i32_0 = arith.constant 0 : i32
    %c0_i32_1 = arith.constant 0 : i32
    return %c0_i32, %c0_i32_0 : i32, i32
  }
  func.func @transform_2(%arg0: i32) -> (i32, i32) {
    %c0_i32 = arith.constant 0 : i32
    %c0_i32_0 = arith.constant 0 : i32
    %c0_i32_1 = arith.constant 0 : i32
    return %c0_i32, %c0_i32_0 : i32, i32
  }
  func.func @transform_3(%arg0: i32) -> (i32, i32, i32) {
    %c0_i32 = arith.constant 0 : i32
    %c0_i32_0 = arith.constant 0 : i32
    %c0_i32_1 = arith.constant 0 : i32
    %c0_i32_2 = arith.constant 0 : i32
    return %c0_i32, %c0_i32_0, %c0_i32_1 : i32, i32, i32
  }
  func.func @transform_4(%arg0: i32) -> (i32, i32, i32) {
    %c0_i32 = arith.constant 0 : i32
    %c0_i32_0 = arith.constant 0 : i32
    %c0_i32_1 = arith.constant 0 : i32
    %c0_i32_2 = arith.constant 0 : i32
    return %c0_i32, %c0_i32_0, %c0_i32_1 : i32, i32, i32
  }
  func.func @transform_5(%arg0: i32) -> (i32, i32) {
    %c0_i32 = arith.constant 0 : i32
    %c0_i32_0 = arith.constant 0 : i32
    %c0_i32_1 = arith.constant 0 : i32
    return %c0_i32, %c0_i32_0 : i32, i32
  }
  func.func @transform_6(%arg0: i32) -> (i32, i32) {
    %c0_i32 = arith.constant 0 : i32
    %c0_i32_0 = arith.constant 0 : i32
    %c0_i32_1 = arith.constant 0 : i32
    return %c0_i32, %c0_i32_0 : i32, i32
  }
  func.func @transform_7(%arg0: i32) -> (i32, i32, i32) {
    %c0_i32 = arith.constant 0 : i32
    %c0_i32_0 = arith.constant 0 : i32
    %c0_i32_1 = arith.constant 0 : i32
    %c0_i32_2 = arith.constant 0 : i32
    return %c0_i32, %c0_i32_0, %c0_i32_1 : i32, i32, i32
  }
  func.func @transform_8(%arg0: i32) -> (i32, i32, i32) {
    %c0_i32 = arith.constant 0 : i32
    %c0_i32_0 = arith.constant 0 : i32
    %c0_i32_1 = arith.constant 0 : i32
    %c0_i32_2 = arith.constant 0 : i32
    return %c0_i32, %c0_i32_0, %c0_i32_1 : i32, i32, i32
  }
  func.func @transform_9(%arg0: i32) -> (i32, i32) {
    %c0_i32 = arith.constant 0 : i32
    %c0_i32_0 = arith.constant 0 : i32
    %c0_i32_1 = arith.constant 0 : i32
    return %c0_i32, %c0_i32_0 : i32, i32
  }
  func.func @transform_10(%arg0: i32) -> (i32, i32, i32) {
    %c0_i32 = arith.constant 0 : i32
    %c0_i32_0 = arith.constant 0 : i32
    %c0_i32_1 = arith.constant 0 : i32
    %c0_i32_2 = arith.constant 0 : i32
    return %c0_i32, %c0_i32_0, %c0_i32_1 : i32, i32, i32
  }
  func.func @transform_11(%arg0: i32) -> (i32, i32, i32) {
    %c0_i32 = arith.constant 0 : i32
    %c0_i32_0 = arith.constant 0 : i32
    %c0_i32_1 = arith.constant 0 : i32
    %c0_i32_2 = arith.constant 0 : i32
    return %c0_i32, %c0_i32_0, %c0_i32_1 : i32, i32, i32
  }
  func.func @transform_12(%arg0: i32) -> (i32, i32) {
    %c0_i32 = arith.constant 0 : i32
    %c0_i32_0 = arith.constant 0 : i32
    %c0_i32_1 = arith.constant 0 : i32
    return %c0_i32, %c0_i32_0 : i32, i32
  }
  func.func @transform_13(%arg0: i32) -> (i32, i32, i32) {
    %c0_i32 = arith.constant 0 : i32
    %c0_i32_0 = arith.constant 0 : i32
    %c0_i32_1 = arith.constant 0 : i32
    %c0_i32_2 = arith.constant 0 : i32
    return %c0_i32, %c0_i32_0, %c0_i32_1 : i32, i32, i32
  }
  func.func @transform_14(%arg0: i32) -> (i32, i32, i32) {
    %c0_i32 = arith.constant 0 : i32
    %c0_i32_0 = arith.constant 0 : i32
    %c0_i32_1 = arith.constant 0 : i32
    %c0_i32_2 = arith.constant 0 : i32
    return %c0_i32, %c0_i32_0, %c0_i32_1 : i32, i32, i32
  }
  func.func @transform_15(%arg0: i32) -> (i32, i32) {
    %c0_i32 = arith.constant 0 : i32
    %c0_i32_0 = arith.constant 0 : i32
    %c0_i32_1 = arith.constant 0 : i32
    return %c0_i32, %c0_i32_0 : i32, i32
  }
  func.func @transform_16(%arg0: i32) -> (i32, i32) {
    %c0_i32 = arith.constant 0 : i32
    %c0_i32_0 = arith.constant 0 : i32
    %c0_i32_1 = arith.constant 0 : i32
    return %c0_i32, %c0_i32_0 : i32, i32
  }
  func.func @transform_17(%arg0: i32) -> (i32, i32, i32) {
    %c0_i32 = arith.constant 0 : i32
    %c0_i32_0 = arith.constant 0 : i32
    %c0_i32_1 = arith.constant 0 : i32
    %c0_i32_2 = arith.constant 0 : i32
    return %c0_i32, %c0_i32_0, %c0_i32_1 : i32, i32, i32
  }
  func.func @transform_18(%arg0: i32) -> (i32, i32, i32) {
    %c0_i32 = arith.constant 0 : i32
    %c0_i32_0 = arith.constant 0 : i32
    %c0_i32_1 = arith.constant 0 : i32
    %c0_i32_2 = arith.constant 0 : i32
    return %c0_i32, %c0_i32_0, %c0_i32_1 : i32, i32, i32
  }
  func.func @transform_19(%arg0: i32) -> (i32, i32) {
    %c0_i32 = arith.constant 0 : i32
    %c0_i32_0 = arith.constant 0 : i32
    %c0_i32_1 = arith.constant 0 : i32
    return %c0_i32, %c0_i32_0 : i32, i32
  }
  func.func @transform_20(%arg0: i32) -> (i32, i32) {
    %c0_i32 = arith.constant 0 : i32
    %c0_i32_0 = arith.constant 0 : i32
    %c0_i32_1 = arith.constant 0 : i32
    return %c0_i32, %c0_i32_0 : i32, i32
  }
  func.func @transform_21(%arg0: i32) -> (i32, i32, i32) {
    %c0_i32 = arith.constant 0 : i32
    %c0_i32_0 = arith.constant 0 : i32
    %c0_i32_1 = arith.constant 0 : i32
    return %arg0, %c0_i32, %c0_i32_0 : i32, i32, i32
  }
}

</mosaic_0001>

<bundles_post_ra>
// kernel: stagcn_forward.1
= control target key start
LH: loop header
LB: loop body
LE: loop exit
PB: predicated region body
PF: predicated region fallthrough
CT: control target
= control target key end

     0   :  { %s20172_s0 = inlined_call_operand.vmem [shape: bf16[4,128,8], index: 0, kind: input, shape index: {}]   ;;  %s20173_s1 = inlined_call_operand.vmem [shape: bf16[768,256], index: 1, kind: input, shape index: {}]   ;;  %s20174_s2 = inlined_call_operand.vmem [shape: bf16[384,128], index: 2, kind: input, shape index: {}]   ;;  %s20175_s3 = inlined_call_operand.vmem [shape: bf16[3,8,64], index: 3, kind: input, shape index: {}]   ;;  %s20176_s4 = inlined_call_operand.vmem [shape: bf16[3,64,64], index: 4, kind: input, shape index: {}]   ;;  %s20177_s5 = inlined_call_operand.vmem [shape: f32[1,64], index: 5, kind: input, shape index: {}, may-alias: {5,9,12}]   ;;  %s20178_s6 = inlined_call_operand.vmem [shape: bf16[8,64], index: 6, kind: input, shape index: {}]   ;;  %s20179_s7 = inlined_call_operand.vmem [shape: bf16[3,64,64], index: 7, kind: input, shape index: {}]   ;;  %s20180_s8 = inlined_call_operand.vmem [shape: bf16[3,64,64], index: 8, kind: input, shape index: {}]   ;;  %s20181_s9 = inlined_call_operand.vmem [shape: f32[1,64], index: 9, kind: input, shape index: {}, may-alias: {5,9,12}]   ;;  %s20182_s10 = inlined_call_operand.vmem [shape: bf16[3,64,64], index: 10, kind: input, shape index: {}]   ;;  %s20183_s11 = inlined_call_operand.vmem [shape: bf16[3,64,64], index: 11, kind: input, shape index: {}]   ;;  %s20184_s12 = inlined_call_operand.vmem [shape: f32[1,64], index: 12, kind: input, shape index: {}, may-alias: {5,9,12}]   ;;  %s20185_s13 = inlined_call_operand.vmem [shape: bf16[3,64,128], index: 13, kind: input, shape index: {}]   ;;  %s20186_s14 = inlined_call_operand.vmem [shape: bf16[3,128,128], index: 14, kind: input, shape index: {}]   ;;  %s20187_s15 = inlined_call_operand.vmem [shape: f32[1,128], index: 15, kind: input, shape index: {}]   ;;  %s20188_s16 = inlined_call_operand.vmem [shape: bf16[64,128], index: 16, kind: input, shape index: {}]   ;;  %s20189_s17 = inlined_call_operand.vmem [shape: bf16[3,128,256], index: 17, kind: input, shape index: {}]   ;;  %s20190_s18 = inlined_call_operand.vmem [shape: bf16[3,256,256], index: 18, kind: input, shape index: {}]   ;;  %s20191_s19 = inlined_call_operand.vmem [shape: f32[1,256], index: 19, kind: input, shape index: {}]   ;;  %s20192_s20 = inlined_call_operand.vmem [shape: bf16[128,256], index: 20, kind: input, shape index: {}]   ;;  %s20193_s21 = inlined_call_operand.vmem [shape: bf16[4,32,256], index: 21, kind: output, shape index: {}]  }
   0x1   :  { %20208 = sst [smem:[#allocation4_spill]] %s20172_s0 }
   0x2   :  { %20209 = sst [smem:[#allocation5_spill]] %s20173_s1 }
   0x3   :  { %20210 = sst [smem:[#allocation6_spill]] %s20174_s2  ;;  %s16193_s2 = smov 0  }
   0x4   :  { %20211 = sst [smem:[#allocation7_spill]] %s20175_s3 }
   0x5   :  { %20212 = sst [smem:[#allocation8_spill]] %s20176_s4 }
   0x6   :  { %20213 = sst [smem:[#allocation9_spill]] %s20177_s5 }
   0x7   :  { %20214 = sst [smem:[#allocation10_spill]] %s20178_s6 }
   0x8 LB: > { %s12012_s25 = sadd.s32 4294967295, %s16080_s2   ;;  %p12016_p0 = scmp.ge.s32.totalorder %s16080_s2, 1  ;;  %s16080_s2 = sphi %s16193_s2, %s31_s2  }
   0x9   : > { %p589_p1 = scmp.lt.s32.totalorder %s16080_s2, 3 }
   0xb   : > { %p590_p2 = pnand %p12016_p0, %p589_p1 }
   0xd   : > { %593 = sbr.rel (%p590_p2) target bundleno = 5787 (0x169b), region = 104 }
  0x14   : > { %s12017_s26 = sshll.u32 %s12012_s25, 1  ;;  %s20215_s28 = sld [smem:[#allocation5_spill]]  ;;  %v20198_v1 = vmov 0   ;;  %vm1871_vm0 = vcmask 1043456   ;;  %vm1822_vm1 = vcmask 64512   ;;  %vm2599_vm2 = vcmask 523264  }
  0x15   : > { %1370 = vmatprep.subr.bf16.mxu0 %v20198_v1  ;;  %p652_p3 = scmp.lt.s32.totalorder %s12017_s26, 3  ;;  %s20216_s30 = sld [smem:[#allocation4_spill]] }
  0x16   : > { %s20217_s25 = sld [smem:[#allocation7_spill]]  ;;  %s20218_s22 = sld [smem:[#allocation8_spill]] }
  0x17   : > { %s20275_s26 = smov (!%p652_p3, %s12017_s26), 3  ;;  %s20221_s6 = sld [smem:[#allocation10_spill]] }
  0x18   : > { %s13007_s29 = sshll.u32 %s20275_s26, 6 }
  0x1a   : > { %v15262_v0 = vld [vmem:[%s20215_s28 + $0x4] ss:$8 sps:$4 sm:$0xff]   ;;  %v15264_v18 = vld [vmem:[%s20215_s28] ss:$8 sps:$4 sm:$0xff]   ;;  %v15265_v19 = vld [vmem:[%s20215_s28 + $0x14] ss:$8 sps:$4 sm:$0xff]  }
  0x1b   : > { %1402 = vmatprep.mubr.bf16.mxu0 %v15262_v0  ;;  %s16211_s5 = scalar_lea.vmem %s20216_s30, %s13007_s29  ;;  %v15267_v20 = vld [vmem:[%s20215_s28 + $0x10] ss:$8 sps:$4 sm:$0xff]   ;;  %v15268_v21 = vld [vmem:[%s20215_s28 + $0x24] ss:$8 sps:$4 sm:$0xff]   ;;  %v15270_v22 = vld [vmem:[%s20215_s28 + $0x20] ss:$8 sps:$4 sm:$0xff]  }
  0x1c   : > { %v15246_v2 = vld [vmem:[%s16211_s5] sm:$0xff]   ;;  %v15247_v3 = vld [vmem:[%s16211_s5 + $0x8] sm:$0xff]   ;;  %v15248_v4 = vld [vmem:[%s16211_s5 + $0x10] sm:$0xff]   ;;  %s20222_s30 = sld [smem:[#allocation9_spill]]  ;;  %s20273_s29 = sld [smem:[#allocation6_spill]] }
  0x1d   : > { %1371 = vmatpush1.bf16.msra.mxu0 %v15246_v2  ;;  %v15249_v5 = vld [vmem:[%s16211_s5 + $0x18] sm:$0xff]   ;;  %v15250_v6 = vld [vmem:[%s16211_s5 + $0x20] sm:$0xff]   ;;  %v15251_v7 = vld [vmem:[%s16211_s5 + $0x28] sm:$0xff]  }
  0x1e   : > { %1372 = vmatprep.subr.bf16.mxu0 %v20198_v1  ;;  %v15252_v8 = vld [vmem:[%s16211_s5 + $0x30] sm:$0xff]   ;;  %v15253_v9 = vld [vmem:[%s16211_s5 + $0x38] sm:$0xff]   ;;  %v15254_v10 = vld [vmem:[%s16211_s5 + $0x40] sm:$0xff]  }
  0x1f   : > { %v15255_v11 = vld [vmem:[%s16211_s5 + $0x48] sm:$0xff]   ;;  %v15256_v12 = vld [vmem:[%s16211_s5 + $0x50] sm:$0xff]   ;;  %v15257_v13 = vld [vmem:[%s16211_s5 + $0x58] sm:$0xff]  }
  0x20   : > { %v15258_v14 = vld [vmem:[%s16211_s5 + $0x60] sm:$0xff]   ;;  %v15259_v15 = vld [vmem:[%s16211_s5 + $0x68] sm:$0xff]   ;;  %v15260_v16 = vld [vmem:[%s16211_s5 + $0x70] sm:$0xff]  }
  0x21   : > { %1373 = vmatpush1.bf16.msra.mxu0 %v15247_v3  ;;  %v15261_v17 = vld [vmem:[%s16211_s5 + $0x78] sm:$0xff]   ;;  %v15274_v25 = vld [vmem:[%s20215_s28 + $0x44] ss:$8 sps:$4 sm:$0xff]   ;;  %v15276_v26 = vld [vmem:[%s20215_s28 + $0x40] ss:$8 sps:$4 sm:$0xff]  }
  0x22   : > { %1374 = vmatprep.subr.bf16.mxu0 %v20198_v1  ;;  %v15271_v23 = vld [vmem:[%s20215_s28 + $0x34] ss:$8 sps:$4 sm:$0xff]   ;;  %v15273_v24 = vld [vmem:[%s20215_s28 + $0x30] ss:$8 sps:$4 sm:$0xff]   ;;  %v15280_v29 = vld [vmem:[%s20215_s28 + $0x64] ss:$8 sps:$4 sm:$0xff]  }
  0x23   : > { %v15277_v27 = vld [vmem:[%s20215_s28 + $0x54] ss:$8 sps:$4 sm:$0xff]   ;;  %v15279_v28 = vld [vmem:[%s20215_s28 + $0x50] ss:$8 sps:$4 sm:$0xff]   ;;  %v15282_v30 = vld [vmem:[%s20215_s28 + $0x60] ss:$8 sps:$4 sm:$0xff]  }
  0x24   : > { %v15283_v31 = vld [vmem:[%s20215_s28 + $0x74] ss:$8 sps:$4 sm:$0xff]   ;;  %v15285_v32 = vld [vmem:[%s20215_s28 + $0x70] ss:$8 sps:$4 sm:$0xff]   ;;  %v15286_v33 = vld [vmem:[%s20215_s28 + $0x84] ss:$8 sps:$4 sm:$0xff]  }
  0x25   : > { %1375 = vmatpush1.bf16.msra.mxu0 %v15248_v4  ;;  %v15288_v34 = vld [vmem:[%s20215_s28 + $0x80] ss:$8 sps:$4 sm:$0xff]   ;;  %v15289_v35 = vld [vmem:[%s20215_s28 + $0x94] ss:$8 sps:$4 sm:$0xff]   ;;  %v15291_v36 = vld [vmem:[%s20215_s28 + $0x90] ss:$8 sps:$4 sm:$0xff]  }
  0x26   : > { %1376 = vmatprep.subr.bf16.mxu0 %v20198_v1  ;;  %v15292_v37 = vld [vmem:[%s20215_s28 + $0xa4] ss:$8 sps:$4 sm:$0xff]   ;;  %v15294_v38 = vld [vmem:[%s20215_s28 + $0xa0] ss:$8 sps:$4 sm:$0xff]   ;;  %v15295_v39 = vld [vmem:[%s20215_s28 + $0xb4] ss:$8 sps:$4 sm:$0xff]  }
  0x27   : > { %v15297_v40 = vld [vmem:[%s20215_s28 + $0xb0] ss:$8 sps:$4 sm:$0xff]   ;;  %v15298_v41 = vld [vmem:[%s20215_s28 + $0xc4] ss:$8 sps:$4 sm:$0xff]   ;;  %v15300_v42 = vld [vmem:[%s20215_s28 + $0xc0] ss:$8 sps:$4 sm:$0xff]  }
  0x28   : > { %v15301_v43 = vld [vmem:[%s20215_s28 + $0xd4] ss:$8 sps:$4 sm:$0xff]   ;;  %v15303_v44 = vld [vmem:[%s20215_s28 + $0xd0] ss:$8 sps:$4 sm:$0xff]   ;;  %v15304_v45 = vld [vmem:[%s20215_s28 + $0xe4] ss:$8 sps:$4 sm:$0xff]  }
  0x29   : > { %1377 = vmatpush1.bf16.msra.mxu0 %v15249_v5  ;;  %v15306_v46 = vld [vmem:[%s20215_s28 + $0xe0] ss:$8 sps:$4 sm:$0xff]   ;;  %v15307_v47 = vld [vmem:[%s20215_s28 + $0xf4] ss:$8 sps:$4 sm:$0xff]   ;;  %v15309_v48 = vld [vmem:[%s20215_s28 + $0xf0] ss:$8 sps:$4 sm:$0xff]  }
  0x2a   : > { %1378 = vmatprep.subr.bf16.mxu0 %v20198_v1  ;;  %v15310_v49 = vld [vmem:[%s20215_s28 + $0x104] ss:$8 sps:$4 sm:$0xff]   ;;  %v15312_v50 = vld [vmem:[%s20215_s28 + $0x100] ss:$8 sps:$4 sm:$0xff]   ;;  %v15313_v51 = vld [vmem:[%s20215_s28 + $0x114] ss:$8 sps:$4 sm:$0xff]  }
  0x2b   : > { %v15315_v52 = vld [vmem:[%s20215_s28 + $0x110] ss:$8 sps:$4 sm:$0xff]   ;;  %v15316_v53 = vld [vmem:[%s20215_s28 + $0x124] ss:$8 sps:$4 sm:$0xff]   ;;  %v15318_v54 = vld [vmem:[%s20215_s28 + $0x120] ss:$8 sps:$4 sm:$0xff]  }
  0x2c   : > { %v15319_v55 = vld [vmem:[%s20215_s28 + $0x134] ss:$8 sps:$4 sm:$0xff]   ;;  %v15321_v56 = vld [vmem:[%s20215_s28 + $0x130] ss:$8 sps:$4 sm:$0xff]   ;;  %v15322_v57 = vld [vmem:[%s20215_s28 + $0x144] ss:$8 sps:$4 sm:$0xff]  }
  0x2d   : > { %1379 = vmatpush1.bf16.msra.mxu0 %v15250_v6  ;;  %v15324_v58 = vld [vmem:[%s20215_s28 + $0x140] ss:$8 sps:$4 sm:$0xff]   ;;  %v15325_v59 = vld [vmem:[%s20215_s28 + $0x154] ss:$8 sps:$4 sm:$0xff]   ;;  %v15327_v60 = vld [vmem:[%s20215_s28 + $0x150] ss:$8 sps:$4 sm:$0xff]  }
  0x2e   : > { %1380 = vmatprep.subr.bf16.mxu0 %v20198_v1  ;;  %v15328_v61 = vld [vmem:[%s20215_s28 + $0x164] ss:$8 sps:$4 sm:$0xff]   ;;  %v15330_v62 = vld [vmem:[%s20215_s28 + $0x160] ss:$8 sps:$4 sm:$0xff]   ;;  %v15331_v63 = vld [vmem:[%s20215_s28 + $0x174] ss:$8 sps:$4 sm:$0xff]  }
  0x2f   : > { %v15333_v0 = vld [vmem:[%s20215_s28 + $0x170] ss:$8 sps:$4 sm:$0xff]   ;;  %v15334_v2 = vld [vmem:[%s20215_s28 + $0x184] ss:$8 sps:$4 sm:$0xff]   ;;  %v15336_v3 = vld [vmem:[%s20215_s28 + $0x180] ss:$8 sps:$4 sm:$0xff]  }
  0x30   : > { %v15337_v4 = vld [vmem:[%s20215_s28 + $0x194] ss:$8 sps:$4 sm:$0xff]   ;;  %v15339_v5 = vld [vmem:[%s20215_s28 + $0x190] ss:$8 sps:$4 sm:$0xff]   ;;  %v15340_v6 = vld [vmem:[%s20215_s28 + $0x1a4] ss:$8 sps:$4 sm:$0xff]  }
  0x31   : > { %1381 = vmatpush1.bf16.msra.mxu0 %v15251_v7  ;;  %v15342_v7 = vld [vmem:[%s20215_s28 + $0x1a0] ss:$8 sps:$4 sm:$0xff]  }
  0x32   : > { %1382 = vmatprep.subr.bf16.mxu0 %v20198_v1 }
  0x35   : > { %1383 = vmatpush1.bf16.msra.mxu0 %v15252_v8  ;;  %v15343_v8 = vld [vmem:[%s20215_s28 + $0x1b4] ss:$8 sps:$4 sm:$0xff]  }
  0x36   : > { %1384 = vmatprep.subr.bf16.mxu0 %v20198_v1 }
  0x39   : > { %1385 = vmatpush1.bf16.msra.mxu0 %v15253_v9 }
  0x3a   : > { %1386 = vmatprep.subr.bf16.mxu0 %v20198_v1 }
  0x3d   : > { %1387 = vmatpush1.bf16.msra.mxu0 %v15254_v10 }
  0x3e   : > { %1388 = vmatprep.subr.bf16.mxu0 %v20198_v1 }
  0x41   : > { %1389 = vmatpush1.bf16.msra.mxu0 %v15255_v11  ;;  %v15345_v11 = vld [vmem:[%s20215_s28 + $0x1b0] ss:$8 sps:$4 sm:$0xff]  }
  0x42   : > { %1390 = vmatprep.subr.bf16.mxu0 %v20198_v1 }
  0x45   : > { %1391 = vmatpush1.bf16.msra.mxu0 %v15256_v12 }
  0x46   : > { %1392 = vmatprep.subr.bf16.mxu0 %v20198_v1 }
  0x49   : > { %1393 = vmatpush1.bf16.msra.mxu0 %v15257_v13  ;;  %v15346_v13 = vld [vmem:[%s20215_s28 + $0x1c4] ss:$8 sps:$4 sm:$0xff]  }
  0x4a   : > { %1394 = vmatprep.subr.bf16.mxu0 %v20198_v1 }
  0x4d   : > { %1395 = vmatpush1.bf16.msra.mxu0 %v15258_v14 }
  0x4e   : > { %1396 = vmatprep.subr.bf16.mxu0 %v20198_v1 }
  0x51   : > { %1397 = vmatpush1.bf16.msra.mxu0 %v15259_v15 }
  0x52   : > { %1398 = vmatprep.subr.bf16.mxu0 %v20198_v1 }
  0x55   : > { %1399 = vmatpush1.bf16.msra.mxu0 %v15260_v16 }
  0x56   : > { %1400 = vmatprep.subr.bf16.mxu0 %v20198_v1 }
  0x59   : > { %1401 = vmatpush1.bf16.msra.mxu0 %v15261_v17  ;;  %v12135_v17 = vld [vmem:[%s20217_s25 + $0x4] sm:$0xf] }
  0x5a   : > { %3555 = vmatprep.subr.bf16.mxu0 %v20198_v1  ;;  %15233 = vmatprep.subr.msk.bf16.mxu1 %vm1871_vm0, %v12135_v17 }
  0x5c   : > { %1403 = vmatmul.mubr.bf16.vlgmr.msra.gmra.mrb[0].mxu0 %v15264_v18 }
  0x5d   : > { %1410 = vmatprep.mubr.bf16.mxu0 %v15265_v19  ;;  %v15348_v19 = vld [vmem:[%s20215_s28 + $0x1c0] ss:$8 sps:$4 sm:$0xff]  }
  0x64   : > { %1411 = vmatmul.mubr.bf16.gmra.mrb[4].mxu0 %v15267_v20  ;;  %v1873_v20 = vsel %vm1871_vm0, %v12135_v17, 0  ;;  %v15372_v17 = vld [vmem:[%s20215_s28 + $0x240] ss:$8 sps:$4 sm:$0xff]  }
  0x65   : > { %1418 = vmatprep.mubr.bf16.mxu0 %v15268_v21  ;;  %13538 = vmatpush3.bf16.msra.mxu1 %v1873_v20 }
  0x6c   : > { %1419 = vmatmul.mubr.bf16.gmra.mrb[8].mxu0 %v15270_v22  ;;  %v15349_v22 = vld [vmem:[%s20215_s28 + $0x1d4] ss:$8 sps:$4 sm:$0xff]  }
  0x6d   : > { %1426 = vmatprep.mubr.bf16.mxu0 %v15271_v23 }
  0x74   : > { %1427 = vmatmul.mubr.bf16.gmra.mrb[12].mxu0 %v15273_v24 }
  0x75   : > { %1434 = vmatprep.mubr.bf16.mxu0 %v15274_v25 }
  0x7c   : > { %1435 = vmatmul.mubr.bf16.gmra.mrb[16].mxu0 %v15276_v26 }
  0x7d   : > { %1442 = vmatprep.mubr.bf16.mxu0 %v15277_v27  ;;  %v15351_v27 = vld [vmem:[%s20215_s28 + $0x1d0] ss:$8 sps:$4 sm:$0xff]  }
  0x84   : > { %1443 = vmatmul.mubr.bf16.gmra.mrb[20].mxu0 %v15279_v28 }
  0x85   : > { %1450 = vmatprep.mubr.bf16.mxu0 %v15280_v29  ;;  %v15352_v29 = vld [vmem:[%s20215_s28 + $0x1e4] ss:$8 sps:$4 sm:$0xff]  }
  0x8c   : > { %1451 = vmatmul.mubr.bf16.gmra.mrb[24].mxu0 %v15282_v30 }
  0x8d   : > { %1458 = vmatprep.mubr.bf16.mxu0 %v15283_v31 }
  0x94   : > { %1459 = vmatmul.mubr.bf16.gmra.mrb[28].mxu0 %v15285_v32 }
  0x95   : > { %1466 = vmatprep.mubr.bf16.mxu0 %v15286_v33 }
  0x9c   : > { %1467 = vmatmul.mubr.bf16.gmra.mrb[32].mxu0 %v15288_v34  ;;  %v15354_v34 = vld [vmem:[%s20215_s28 + $0x1e0] ss:$8 sps:$4 sm:$0xff]  }
  0x9d   : > { %1474 = vmatprep.mubr.bf16.mxu0 %v15289_v35 }
  0xa4   : > { %1475 = vmatmul.mubr.bf16.gmra.mrb[36].mxu0 %v15291_v36  ;;  %v15355_v36 = vld [vmem:[%s20215_s28 + $0x1f4] ss:$8 sps:$4 sm:$0xff]  }
  0xa5   : > { %1482 = vmatprep.mubr.bf16.mxu0 %v15292_v37 }
  0xac   : > { %1483 = vmatmul.mubr.bf16.gmra.mrb[40].mxu0 %v15294_v38 }
  0xad   : > { %1490 = vmatprep.mubr.bf16.mxu0 %v15295_v39 }
  0xb4   : > { %1491 = vmatmul.mubr.bf16.gmra.mrb[44].mxu0 %v15297_v40 }
  0xb5   : > { %1498 = vmatprep.mubr.bf16.mxu0 %v15298_v41  ;;  %v15357_v41 = vld [vmem:[%s20215_s28 + $0x1f0] ss:$8 sps:$4 sm:$0xff]  }
  0xbc   : > { %1499 = vmatmul.mubr.bf16.gmra.mrb[48].mxu0 %v15300_v42 }
  0xbd   : > { %1506 = vmatprep.mubr.bf16.mxu0 %v15301_v43  ;;  %v15358_v43 = vld [vmem:[%s20215_s28 + $0x204] ss:$8 sps:$4 sm:$0xff]  }
  0xc4   : > { %1507 = vmatmul.mubr.bf16.gmra.mrb[52].mxu0 %v15303_v44 }
  0xc5   : > { %1514 = vmatprep.mubr.bf16.mxu0 %v15304_v45 }
  0xcc   : > { %1515 = vmatmul.mubr.bf16.gmra.mrb[56].mxu0 %v15306_v46 }
  0xcd   : > { %1522 = vmatprep.mubr.bf16.mxu0 %v15307_v47 }
  0xd4   : > { %1523 = vmatmul.mubr.bf16.gmra.mrb[60].mxu0 %v15309_v48  ;;  %v15360_v48 = vld [vmem:[%s20215_s28 + $0x200] ss:$8 sps:$4 sm:$0xff]  }
  0xd5   : > { %1530 = vmatprep.mubr.bf16.mxu0 %v15310_v49 }
  0xdc   : > { %1531 = vmatmul.mubr.bf16.gmra.mrb[64].mxu0 %v15312_v50  ;;  %v15361_v50 = vld [vmem:[%s20215_s28 + $0x214] ss:$8 sps:$4 sm:$0xff]  }
  0xdd   : > { %1538 = vmatprep.mubr.bf16.mxu0 %v15313_v51 }
  0xe4   : > { %1539 = vmatmul.mubr.bf16.gmra.mrb[68].mxu0 %v15315_v52 }
  0xe5   : > { %1546 = vmatprep.mubr.bf16.mxu0 %v15316_v53 }
  0xec   : > { %1547 = vmatmul.mubr.bf16.gmra.mrb[72].mxu0 %v15318_v54 }
  0xed   : > { %1554 = vmatprep.mubr.bf16.mxu0 %v15319_v55  ;;  %v15363_v55 = vld [vmem:[%s20215_s28 + $0x210] ss:$8 sps:$4 sm:$0xff]  }
  0xf4   : > { %1555 = vmatmul.mubr.bf16.gmra.mrb[76].mxu0 %v15321_v56 }
  0xf5   : > { %1562 = vmatprep.mubr.bf16.mxu0 %v15322_v57  ;;  %v15364_v57 = vld [vmem:[%s20215_s28 + $0x224] ss:$8 sps:$4 sm:$0xff]  }
  0xfc   : > { %1563 = vmatmul.mubr.bf16.gmra.mrb[80].mxu0 %v15324_v58 }
  0xfd   : > { %1570 = vmatprep.mubr.bf16.mxu0 %v15325_v59 }
 0x104   : > { %1571 = vmatmul.mubr.bf16.gmra.mrb[84].mxu0 %v15327_v60 }
 0x105   : > { %1578 = vmatprep.mubr.bf16.mxu0 %v15328_v61 }
 0x10c   : > { %1579 = vmatmul.mubr.bf16.gmra.mrb[88].mxu0 %v15330_v62  ;;  %v15366_v62 = vld [vmem:[%s20215_s28 + $0x220] ss:$8 sps:$4 sm:$0xff]  }
 0x10d   : > { %1586 = vmatprep.mubr.bf16.mxu0 %v15331_v63 }
 0x114   : > { %1587 = vmatmul.mubr.bf16.gmra.mrb[92].mxu0 %v15333_v0  ;;  %v15367_v0 = vld [vmem:[%s20215_s28 + $0x234] ss:$8 sps:$4 sm:$0xff]  }
 0x115   : > { %1594 = vmatprep.mubr.bf16.mxu0 %v15334_v2 }
 0x11c   : > { %1595 = vmatmul.mubr.bf16.gmra.mrb[96].mxu0 %v15336_v3 }
 0x11d   : > { %1602 = vmatprep.mubr.bf16.mxu0 %v15337_v4 }
 0x124   : > { %1603 = vmatmul.mubr.bf16.gmra.mrb[100].mxu0 %v15339_v5 }
 0x125   : > { %1610 = vmatprep.mubr.bf16.mxu0 %v15340_v6  ;;  %v15369_v6 = vld [vmem:[%s20215_s28 + $0x230] ss:$8 sps:$4 sm:$0xff]  }
 0x12c   : > { %1611 = vmatmul.mubr.bf16.gmra.mrb[104].mxu0 %v15342_v7 }
 0x12d   : > { %1618 = vmatprep.mubr.bf16.mxu0 %v15343_v8  ;;  %v15370_v8 = vld [vmem:[%s20215_s28 + $0x244] ss:$8 sps:$4 sm:$0xff]  }
 0x12f   : > { %v16407_v9 = vpop.f32.mrb[0].mxu0 }
 0x130   : > { %v1406_v10 = vpop.f32.mrb[1].mxu0 }
 0x131   : > { %v16412_v12 = vpop.f32.mrb[2].mxu0 }
 0x132   : > { %v1787_v14 = vpack.c.bf16 %v16412_v12, %v16407_v9  ;;  %v1409_v15 = vpop.f32.mrb[3].mxu0 }
 0x134   : > { %1619 = vmatmul.mubr.bf16.gmra.mrb[108].mxu0 %v15345_v11 }
 0x135   : > { %1626 = vmatprep.mubr.bf16.mxu0 %v15346_v13 }
 0x137   : > { %v16419_v16 = vpop.f32.mrb[4].mxu0 }
 0x138   : > { %v1414_v18 = vpop.f32.mrb[5].mxu0 }
 0x139   : > { %v16429_v21 = vpop.f32.mrb[6].mxu0 }
 0x13a   : > { %v1788_v23 = vpack.c.bf16 %v16429_v21, %v16419_v16  ;;  %v1417_v24 = vpop.f32.mrb[7].mxu0 }
 0x13c   : > { %1627 = vmatmul.mubr.bf16.gmra.mrb[112].mxu0 %v15348_v19  ;;  %v15373_v19 = vld [vmem:[%s20215_s28 + $0x254] ss:$8 sps:$4 sm:$0xff]  }
 0x13d   : > { %1634 = vmatprep.mubr.bf16.mxu0 %v15349_v22 }
 0x13f   : > { %v16436_v25 = vpop.f32.mrb[8].mxu0 }
 0x140   : > { %v1422_v26 = vpop.f32.mrb[9].mxu0 }
 0x141   : > { %v16441_v28 = vpop.f32.mrb[10].mxu0 }
 0x142   : > { %v1789_v30 = vpack.c.bf16 %v16441_v28, %v16436_v25  ;;  %v1425_v31 = vpop.f32.mrb[11].mxu0 }
 0x143   : > { %v15376_v31 = vld [vmem:[%s20215_s28 + $0x264] ss:$8 sps:$4 sm:$0xff]  }
 0x144   : > { %1635 = vmatmul.mubr.bf16.gmra.mrb[116].mxu0 %v15351_v27  ;;  %v15375_v27 = vld [vmem:[%s20215_s28 + $0x250] ss:$8 sps:$4 sm:$0xff]  }
 0x145   : > { %1642 = vmatprep.mubr.bf16.mxu0 %v15352_v29 }
 0x147   : > { %v16448_v32 = vpop.f32.mrb[12].mxu0 }
 0x148   : > { %v1430_v33 = vpop.f32.mrb[13].mxu0 }
 0x149   : > { %v16453_v35 = vpop.f32.mrb[14].mxu0 }
 0x14a   : > { %v1790_v37 = vpack.c.bf16 %v16453_v35, %v16448_v32  ;;  %v1433_v38 = vpop.f32.mrb[15].mxu0 }
 0x14c   : > { %1643 = vmatmul.mubr.bf16.gmra.mrb[120].mxu0 %v15354_v34 }
 0x14d   : > { %1650 = vmatprep.mubr.bf16.mxu0 %v15355_v36 }
 0x14f   : > { %v16460_v39 = vpop.f32.mrb[16].mxu0 }
 0x150   : > { %v1438_v40 = vpop.f32.mrb[17].mxu0 }
 0x151   : > { %v16465_v42 = vpop.f32.mrb[18].mxu0  ;;  %v15378_v40 = vld [vmem:[%s20215_s28 + $0x260] ss:$8 sps:$4 sm:$0xff]  }
 0x152   : > { %v1791_v44 = vpack.c.bf16 %v16465_v42, %v16460_v39  ;;  %v1441_v45 = vpop.f32.mrb[19].mxu0 }
 0x154   : > { %1651 = vmatmul.mubr.bf16.gmra.mrb[124].mxu0 %v15357_v41 }
 0x155   : > { %1658 = vmatprep.mubr.bf16.mxu0 %v15358_v43  ;;  %v15379_v43 = vld [vmem:[%s20215_s28 + $0x274] ss:$8 sps:$4 sm:$0xff]  }
 0x157   : > { %v16472_v46 = vpop.f32.mrb[20].mxu0 }
 0x158   : > { %v1446_v47 = vpop.f32.mrb[21].mxu0 }
 0x159   : > { %v16477_v49 = vpop.f32.mrb[22].mxu0 }
 0x15a   : > { %v1792_v51 = vpack.c.bf16 %v16477_v49, %v16472_v46  ;;  %v1449_v52 = vpop.f32.mrb[23].mxu0 }
 0x15b   : > { %v15381_v52 = vld [vmem:[%s20215_s28 + $0x270] ss:$8 sps:$4 sm:$0xff]  }
 0x15c   : > { %1659 = vmatmul.mubr.bf16.gmra.mrb[128].mxu0 %v15360_v48 }
 0x15d   : > { %1666 = vmatprep.mubr.bf16.mxu0 %v15361_v50 }
 0x15f   : > { %v16484_v53 = vpop.f32.mrb[24].mxu0 }
 0x160   : > { %v1454_v54 = vpop.f32.mrb[25].mxu0 }
 0x161   : > { %v16489_v56 = vpop.f32.mrb[26].mxu0 }
 0x162   : > { %v1793_v58 = vpack.c.bf16 %v16489_v56, %v16484_v53  ;;  %v1457_v59 = vpop.f32.mrb[27].mxu0 }
 0x164   : > { %1667 = vmatmul.mubr.bf16.gmra.mrb[132].mxu0 %v15363_v55  ;;  %v15382_v55 = vld [vmem:[%s20215_s28 + $0x284] ss:$8 sps:$4 sm:$0xff]  }
 0x165   : > { %1674 = vmatprep.mubr.bf16.mxu0 %v15364_v57 }
 0x167   : > { %v16496_v60 = vpop.f32.mrb[28].mxu0 }
 0x168   : > { %v1462_v61 = vpop.f32.mrb[29].mxu0 }
 0x169   : > { %v16501_v63 = vpop.f32.mrb[30].mxu0 }
 0x16a   : > { %v1794_v2 = vpack.c.bf16 %v16501_v63, %v16496_v60  ;;  %v1465_v3 = vpop.f32.mrb[31].mxu0 }
 0x16c   : > { %1675 = vmatmul.mubr.bf16.gmra.mrb[136].mxu0 %v15366_v62 }
 0x16d   : > { %1682 = vmatprep.mubr.bf16.mxu0 %v15367_v0  ;;  %v15384_v0 = vld [vmem:[%s20215_s28 + $0x280] ss:$8 sps:$4 sm:$0xff]  }
 0x16f   : > { %v16508_v4 = vpop.f32.mrb[32].mxu0 }
 0x170   : > { %v1470_v5 = vpop.f32.mrb[33].mxu0 }
 0x171   : > { %v16513_v7 = vpop.f32.mrb[34].mxu0  ;;  %v15385_v5 = vld [vmem:[%s20215_s28 + $0x294] ss:$8 sps:$4 sm:$0xff]  }
 0x172   : > { %v1795_v10 = vpack.c.bf16 %v16513_v7, %v16508_v4  ;;  %v1473_v11 = vpop.f32.mrb[35].mxu0 }
 0x174   : > { %1683 = vmatmul.mubr.bf16.gmra.mrb[140].mxu0 %v15369_v6 }
 0x175   : > { %1690 = vmatprep.mubr.bf16.mxu0 %v15370_v8 }
 0x177   : > { %v16520_v13 = vpop.f32.mrb[36].mxu0 }
 0x178   : > { %v1478_v15 = vpop.f32.mrb[37].mxu0 }
 0x179   : > { %v16525_v18 = vpop.f32.mrb[38].mxu0 }
 0x17a   : > { %v1796_v20 = vpack.c.bf16 %v16525_v18, %v16520_v13  ;;  %v1481_v22 = vpop.f32.mrb[39].mxu0 }
 0x17b   : > { %v15388_v22 = vld [vmem:[%s20215_s28 + $0x2a4] ss:$8 sps:$4 sm:$0xff]  }
 0x17c   : > { %1691 = vmatmul.mubr.bf16.gmra.mrb[144].mxu0 %v15372_v17  ;;  %v15387_v17 = vld [vmem:[%s20215_s28 + $0x290] ss:$8 sps:$4 sm:$0xff]  }
 0x17d   : > { %1698 = vmatprep.mubr.bf16.mxu0 %v15373_v19 }
 0x17f   : > { %v16532_v24 = vpop.f32.mrb[40].mxu0 }
 0x180   : > { %v1486_v26 = vpop.f32.mrb[41].mxu0 }
 0x181   : > { %v16537_v29 = vpop.f32.mrb[42].mxu0 }
 0x182   : > { %v1797_v33 = vpack.c.bf16 %v16537_v29, %v16532_v24  ;;  %v1489_v34 = vpop.f32.mrb[43].mxu0 }
 0x184   : > { %1699 = vmatmul.mubr.bf16.gmra.mrb[148].mxu0 %v15375_v27 }
 0x185   : > { %1706 = vmatprep.mubr.bf16.mxu0 %v15376_v31 }
 0x187   : > { %v16544_v36 = vpop.f32.mrb[44].mxu0 }
 0x188   : > { %v1494_v38 = vpop.f32.mrb[45].mxu0 }
 0x189   : > { %v16549_v41 = vpop.f32.mrb[46].mxu0  ;;  %v15390_v38 = vld [vmem:[%s20215_s28 + $0x2a0] ss:$8 sps:$4 sm:$0xff]  }
 0x18a   : > { %v1798_v45 = vpack.c.bf16 %v16549_v41, %v16544_v36  ;;  %v1497_v47 = vpop.f32.mrb[47].mxu0 }
 0x18c   : > { %1707 = vmatmul.mubr.bf16.gmra.mrb[152].mxu0 %v15378_v40 }
 0x18d   : > { %1714 = vmatprep.mubr.bf16.mxu0 %v15379_v43  ;;  %v15391_v43 = vld [vmem:[%s20215_s28 + $0x2b4] ss:$8 sps:$4 sm:$0xff]  }
 0x18f   : > { %v16556_v48 = vpop.f32.mrb[48].mxu0 }
 0x190   : > { %v1502_v50 = vpop.f32.mrb[49].mxu0 }
 0x191   : > { %v16561_v54 = vpop.f32.mrb[50].mxu0 }
 0x192   : > { %v1799_v57 = vpack.c.bf16 %v16561_v54, %v16556_v48  ;;  %v1505_v59 = vpop.f32.mrb[51].mxu0 }
 0x194   : > { %1715 = vmatmul.mubr.bf16.gmra.mrb[156].mxu0 %v15381_v52 }
 0x195   : > { %1722 = vmatprep.mubr.bf16.mxu0 %v15382_v55  ;;  %v1803_v55 = vld [vmem:[%s20217_s25] sm:$0xf] }
 0x196   : > { %15234 = vmatprep.subr.msk.bf16.mxu1 %vm1871_vm0, %v1803_v55 }
 0x197   : > { %v16568_v61 = vpop.f32.mrb[52].mxu0 }
 0x198   : > { %v1510_v62 = vpop.f32.mrb[53].mxu0 }
 0x199   : > { %v16573_v3 = vpop.f32.mrb[54].mxu0  ;;  %v15393_v62 = vld [vmem:[%s20215_s28 + $0x2b0] ss:$8 sps:$4 sm:$0xff]  }
 0x19a   : > { %v1800_v6 = vpack.c.bf16 %v16573_v3, %v16568_v61  ;;  %v1513_v8 = vpop.f32.mrb[55].mxu0  ;;  %v15407_v61 = vld [vmem:[%s20218_s22 + $0x28] sm:$0xff]  }
 0x19c   : > { %1723 = vmatmul.mubr.bf16.gmra.mrb[160].mxu0 %v15384_v0 }
 0x19d   : > { %1730 = vmatprep.mubr.bf16.mxu0 %v15385_v5  ;;  %v15394_v5 = vld [vmem:[%s20215_s28 + $0x2c4] ss:$8 sps:$4 sm:$0xff]  }
 0x19f   : > { %v16580_v11 = vpop.f32.mrb[56].mxu0 }
 0x1a0   : > { %v1518_v15 = vpop.f32.mrb[57].mxu0 }
 0x1a1   : > { %v16585_v19 = vpop.f32.mrb[58].mxu0 }
 0x1a2   : > { %v1801_v26 = vpack.c.bf16 %v16585_v19, %v16580_v11  ;;  %v1521_v27 = vpop.f32.mrb[59].mxu0 }
 0x1a3   : > { %v15396_v27 = vld [vmem:[%s20215_s28 + $0x2c0] ss:$8 sps:$4 sm:$0xff]  }
 0x1a4   : > { %1731 = vmatmul.mubr.bf16.gmra.mrb[164].mxu0 %v15387_v17 }
 0x1a5   : > { %1738 = vmatprep.mubr.bf16.mxu0 %v15388_v22 }
 0x1a7   : > { %v16592_v31 = vpop.f32.mrb[60].mxu0 }
 0x1a8   : > { %v1526_v34 = vpop.f32.mrb[61].mxu0 }
 0x1a9   : > { %v16597_v40 = vpop.f32.mrb[62].mxu0 }
 0x1aa   : > { %v1529_v50 = vpop.f32.mrb[63].mxu0  ;;  %v20219_v36 = vpack.c.bf16 %v16597_v40, %v16592_v31 }
 0x1ac   : > { %1739 = vmatmul.mubr.bf16.gmra.mrb[168].mxu0 %v15390_v38  ;;  %v15397_v38 = vld [vmem:[%s20215_s28 + $0x2d4] ss:$8 sps:$4 sm:$0xff]  }
 0x1ad   : > { %1746 = vmatprep.mubr.bf16.mxu0 %v15391_v43 }
 0x1af   : > { %v1532_v52 = vpop.f32.mrb[64].mxu0 }
 0x1b0   : > { %v1534_v59 = vpop.f32.mrb[65].mxu0 }
 0x1b1   : > { %v1535_v0 = vpop.f32.mrb[66].mxu0  ;;  %v2085_v59 = vsel %vm1871_vm0, %v1803_v55, 0 }
 0x1b2   : > { %v1537_v8 = vpop.f32.mrb[67].mxu0  ;;  %v1804_v15 = vpack.c.bf16 %v1535_v0, %v1532_v52  ;;  %v15399_v0 = vld [vmem:[%s20215_s28 + $0x2d0] ss:$8 sps:$4 sm:$0xff]  }
 0x1b3   : > { %v15400_v8 = vld [vmem:[%s20215_s28 + $0x2e4] ss:$8 sps:$4 sm:$0xff]  }
 0x1b4   : > { %1747 = vmatmul.mubr.bf16.gmra.mrb[172].mxu0 %v15393_v62  ;;  %13539 = vmatprep.mubr.msk.bf16.mxu1 %vm1822_vm1, %v1804_v15 }
 0x1b5   : > { %1754 = vmatprep.mubr.bf16.mxu0 %v15394_v5 }
 0x1b7   : > { %v1540_v17 = vpop.f32.mrb[68].mxu0 }
 0x1b8   : > { %v1542_v22 = vpop.f32.mrb[69].mxu0 }
 0x1b9   : > { %v1543_v34 = vpop.f32.mrb[70].mxu0 }
 0x1ba   : > { %v1805_v43 = vpack.c.bf16 %v1543_v34, %v1540_v17  ;;  %v1545_v50 = vpop.f32.mrb[71].mxu0 }
 0x1bc   : > { %1755 = vmatmul.mubr.bf16.gmra.mrb[176].mxu0 %v15396_v27  ;;  %13540 = vmatmul.mubr.msk.bf16.vlgmr.msra.gmra.mrb[0].mxu1 %vm1822_vm1, %v1805_v43  ;;  %v15402_v27 = vld [vmem:[%s20215_s28 + $0x2e0] ss:$8 sps:$4 sm:$0xff]  }
 0x1bd   : > { %1762 = vmatprep.mubr.bf16.mxu0 %v15397_v38  ;;  %13572 = vmatpush3.bf16.msra.mxu1 %v2085_v59  ;;  %v15403_v38 = vld [vmem:[%s20215_s28 + $0x2f4] ss:$8 sps:$4 sm:$0xff]  }
 0x1bf   : > { %v1548_v52 = vpop.f32.mrb[72].mxu0 }
 0x1c0   : > { %v1550_v62 = vpop.f32.mrb[73].mxu0 }
 0x1c1   : > { %v1551_v5 = vpop.f32.mrb[74].mxu0  ;;  %v15405_v62 = vld [vmem:[%s20215_s28 + $0x2f0] ss:$8 sps:$4 sm:$0xff]  }
 0x1c2   : > { %v1806_v15 = vpack.c.bf16 %v1551_v5, %v1548_v52  ;;  %v1553_v17 = vpop.f32.mrb[75].mxu0 }
 0x1c4   : > { %1763 = vmatmul.mubr.bf16.gmra.mrb[180].mxu0 %v15399_v0  ;;  %13543 = vmatprep.mubr.msk.bf16.mxu1 %vm1822_vm1, %v1806_v15  ;;  %v15770_v15 = vld [vmem:[%s20215_s28 + $0x4] ss:$8 sps:$4 sm:$0xff]  }
 0x1c5   : > { %1770 = vmatprep.mubr.bf16.mxu0 %v15400_v8 }
 0x1c7   : > { %v1556_v55 = vpop.f32.mrb[76].mxu0 }
 0x1c8   : > { %v1558_v22 = vpop.f32.mrb[77].mxu0 }
 0x1c9   : > { %v1559_v34 = vpop.f32.mrb[78].mxu0 }
 0x1ca   : > { %v1807_v43 = vpack.c.bf16 %v1559_v34, %v1556_v55  ;;  %v1561_v50 = vpop.f32.mrb[79].mxu0 }
 0x1cc   : > { %1771 = vmatmul.mubr.bf16.gmra.mrb[184].mxu0 %v15402_v27  ;;  %13544 = vmatmul.mubr.msk.bf16.gmra.mrb[4].mxu1 %vm1822_vm1, %v1807_v43 }
 0x1cd   : > { %1778 = vmatprep.mubr.bf16.mxu0 %v15403_v38 }
 0x1cf   : > { %v1564_v59 = vpop.f32.mrb[80].mxu0 }
 0x1d0   : > { %v1566_v52 = vpop.f32.mrb[81].mxu0 }
 0x1d1   : > { %v1567_v0 = vpop.f32.mrb[82].mxu0 }
 0x1d2   : > { %v1808_v5 = vpack.c.bf16 %v1567_v0, %v1564_v59  ;;  %v1569_v8 = vpop.f32.mrb[83].mxu0 }
 0x1d4   : > { %1779 = vmatmul.mubr.bf16.gmra.mrb[188].mxu0 %v15405_v62  ;;  %13547 = vmatprep.mubr.msk.bf16.mxu1 %vm1822_vm1, %v1808_v5 }
 0x1d5   : > { %3587 = vmatprep.mubr.bf16.mxu0 %v15770_v15 }
 0x1d7   : > { %v1572_v17 = vpop.f32.mrb[84].mxu0 }
 0x1d8   : > { %v1574_v55 = vpop.f32.mrb[85].mxu0 }
 0x1d9   : > { %v1575_v22 = vpop.f32.mrb[86].mxu0 }
 0x1da   : > { %v1809_v27 = vpack.c.bf16 %v1575_v22, %v1572_v17  ;;  %v1577_v34 = vpop.f32.mrb[87].mxu0  ;;  %v12168_v17 = vld [vmem:[%s20217_s25 + $0x8] sm:$0xf] }
 0x1db   : > { %15235 = vmatprep.subr.msk.bf16.mxu1 %vm1871_vm0, %v12168_v17 }
 0x1dc   : > { %13548 = vmatmul.mubr.msk.bf16.gmra.mrb[8].mxu1 %vm1822_vm1, %v1809_v27 }
 0x1df   : > { %v1580_v38 = vpop.f32.mrb[88].mxu0 }
 0x1e0   : > { %v1582_v43 = vpop.f32.mrb[89].mxu0 }
 0x1e1   : > { %v1583_v50 = vpop.f32.mrb[90].mxu0 }
 0x1e2   : > { %v1810_v59 = vpack.c.bf16 %v1583_v50, %v1580_v38  ;;  %v1585_v52 = vpop.f32.mrb[91].mxu0 }
 0x1e4   : > { %13551 = vmatprep.mubr.msk.bf16.mxu1 %vm1822_vm1, %v1810_v59 }
 0x1e7   : > { %v1588_v62 = vpop.f32.mrb[92].mxu0 }
 0x1e8   : > { %v1590_v0 = vpop.f32.mrb[93].mxu0 }
 0x1e9   : > { %v1591_v5 = vpop.f32.mrb[94].mxu0 }
 0x1ea   : > { %v1811_v8 = vpack.c.bf16 %v1591_v5, %v1588_v62  ;;  %v1593_v1 = vpop.f32.mrb[95].mxu0 }
 0x1ec   : > { %13552 = vmatmul.mubr.msk.bf16.gmra.mrb[12].mxu1 %vm1822_vm1, %v1811_v8 }
 0x1ef   : > { %v1596_v15 = vpop.f32.mrb[96].mxu0 }
 0x1f0   : > { %v1598_v55 = vpop.f32.mrb[97].mxu0 }
 0x1f1   : > { %v1599_v22 = vpop.f32.mrb[98].mxu0 }
 0x1f2   : > { %v1812_v27 = vpack.c.bf16 %v1599_v22, %v1596_v15  ;;  %v1601_v34 = vpop.f32.mrb[99].mxu0 }
 0x1f4   : > { %13555 = vmatprep.mubr.msk.bf16.mxu1 %vm1822_vm1, %v1812_v27 }
 0x1f7   : > { %v1604_v38 = vpop.f32.mrb[100].mxu0 }
 0x1f8   : > { %v1606_v43 = vpop.f32.mrb[101].mxu0 }
 0x1f9   : > { %v1607_v50 = vpop.f32.mrb[102].mxu0 }
 0x1fa   : > { %v1813_v59 = vpack.c.bf16 %v1607_v50, %v1604_v38  ;;  %v1609_v1 = vpop.f32.mrb[103].mxu0 }
 0x1fc   : > { %13556 = vmatmul.mubr.msk.bf16.gmra.mrb[16].mxu1 %vm1822_vm1, %v1813_v59 }
 0x1ff   : > { %v1612_v52 = vpop.f32.mrb[104].mxu0 }
 0x200   : > { %v1614_v62 = vpop.f32.mrb[105].mxu0 }
 0x201   : > { %v1615_v0 = vpop.f32.mrb[106].mxu0 }
 0x202   : > { %v1814_v5 = vpack.c.bf16 %v1615_v0, %v1612_v52  ;;  %v1617_v8 = vpop.f32.mrb[107].mxu0 }
 0x204   : > { %13559 = vmatprep.mubr.msk.bf16.mxu1 %vm1822_vm1, %v1814_v5 }
 0x207   : > { %v1620_v55 = vpop.f32.mrb[108].mxu0 }
 0x208   : > { %v1622_v47 = vpop.f32.mrb[109].mxu0 }
 0x209   : > { %v1623_v15 = vpop.f32.mrb[110].mxu0 }
 0x20a   : > { %v1815_v22 = vpack.c.bf16 %v1623_v15, %v1620_v55  ;;  %v1625_v34 = vpop.f32.mrb[111].mxu0 }
 0x20c   : > { %13560 = vmatmul.mubr.msk.bf16.gmra.mrb[20].mxu1 %vm1822_vm1, %v1815_v22 }
 0x20f   : > { %v1628_v27 = vpop.f32.mrb[112].mxu0 }
 0x210   : > { %v1630_v43 = vpop.f32.mrb[113].mxu0 }
 0x211   : > { %v1631_v38 = vpop.f32.mrb[114].mxu0 }
 0x212   : > { %v1816_v50 = vpack.c.bf16 %v1631_v38, %v1628_v27  ;;  %v1633_v1 = vpop.f32.mrb[115].mxu0 }
 0x214   : > { %13563 = vmatprep.mubr.msk.bf16.mxu1 %vm1822_vm1, %v1816_v50 }
 0x217   : > { %v1636_v59 = vpop.f32.mrb[116].mxu0 }
 0x218   : > { %v1638_v62 = vpop.f32.mrb[117].mxu0 }
 0x219   : > { %v1639_v52 = vpop.f32.mrb[118].mxu0 }
 0x21a   : > { %v1817_v0 = vpack.c.bf16 %v1639_v52, %v1636_v59  ;;  %v1641_v8 = vpop.f32.mrb[119].mxu0 }
 0x21b   : > { %v2315_v8 = vsel %vm1871_vm0, %v12168_v17, 0 }
 0x21c   : > { %13564 = vmatmul.mubr.msk.bf16.gmra.mrb[24].mxu1 %vm1822_vm1, %v1817_v0 }
 0x21f   : > { %v1644_v47 = vpop.f32.mrb[120].mxu0 }
 0x220   : > { %v1646_v5 = vpop.f32.mrb[121].mxu0 }
 0x221   : > { %v1647_v55 = vpop.f32.mrb[122].mxu0 }
 0x222   : > { %v1818_v15 = vpack.c.bf16 %v1647_v55, %v1644_v47  ;;  %v1649_v34 = vpop.f32.mrb[123].mxu0  ;;  %v15406_v47 = vld [vmem:[%s20218_s22 + $0x20] sm:$0xff]  }
 0x224   : > { %13567 = vmatprep.mubr.msk.bf16.mxu1 %vm1822_vm1, %v1818_v15 }
 0x227   : > { %v1652_v22 = vpop.f32.mrb[124].mxu0 }
 0x228   : > { %v1654_v43 = vpop.f32.mrb[125].mxu0 }
 0x229   : > { %v1655_v27 = vpop.f32.mrb[126].mxu0 }
 0x22a   : > { %v1819_v38 = vpack.c.bf16 %v1655_v27, %v1652_v22  ;;  %v1657_v1 = vpop.f32.mrb[127].mxu0 }
 0x22c   : > { %13568 = vmatmul.mubr.msk.bf16.gmra.mrb[28].mxu1 %vm1822_vm1, %v1819_v38 }
 0x22d   : > { %13573 = vmatprep.mubr.msk.bf16.mxu1 %vm1822_vm1, %v1787_v14 }
 0x22f   : > { %v1660_v50 = vpop.f32.mrb[128].mxu0 }
 0x230   : > { %v1662_v59 = vpop.f32.mrb[129].mxu0 }
 0x231   : > { %v1663_v62 = vpop.f32.mrb[130].mxu0 }
 0x232   : > { %v2248_v52 = vpack.c.bf16 %v1663_v62, %v1660_v50  ;;  %v1665_v0 = vpop.f32.mrb[131].mxu0 }
 0x234   : > { %13574 = vmatmul.mubr.msk.bf16.vlgmr.msra.gmra.mrb[0].mxu1 %vm1822_vm1, %v1788_v23 }
 0x235   : > { %13577 = vmatprep.mubr.msk.bf16.mxu1 %vm1822_vm1, %v1789_v30  ;;  %13606 = vmatpush3.bf16.msra.mxu1 %v2315_v8 }
 0x236   : > { %13639 = vmatprep.subr.bf16.mxu1 %v15406_v47 }
 0x237   : > { %v1668_v9 = vpop.f32.mrb[132].mxu0 }
 0x238   : > { %v1670_v12 = vpop.f32.mrb[133].mxu0 }
 0x239   : > { %v1671_v14 = vpop.f32.mrb[134].mxu0 }
 0x23a   : > { %v2249_v17 = vpack.c.bf16 %v1671_v14, %v1668_v9  ;;  %v1673_v5 = vpop.f32.mrb[135].mxu0 }
 0x23c   : > { %13578 = vmatmul.mubr.msk.bf16.gmra.mrb[4].mxu1 %vm1822_vm1, %v1790_v37 }
 0x23d   : > { %13581 = vmatprep.mubr.msk.bf16.mxu1 %vm1822_vm1, %v1791_v44 }
 0x23f   : > { %v1676_v16 = vpop.f32.mrb[136].mxu0 }
 0x240   : > { %v1678_v21 = vpop.f32.mrb[137].mxu0 }
 0x241   : > { %v1679_v23 = vpop.f32.mrb[138].mxu0 }
 0x242   : > { %v2250_v25 = vpack.c.bf16 %v1679_v23, %v1676_v16  ;;  %v1681_v28 = vpop.f32.mrb[139].mxu0 }
 0x244   : > { %13582 = vmatmul.mubr.msk.bf16.gmra.mrb[8].mxu1 %vm1822_vm1, %v1792_v51 }
 0x245   : > { %13585 = vmatprep.mubr.msk.bf16.mxu1 %vm1822_vm1, %v1793_v58 }
 0x247   : > { %v1684_v30 = vpop.f32.mrb[140].mxu0 }
 0x248   : > { %v1686_v32 = vpop.f32.mrb[141].mxu0 }
 0x249   : > { %v1687_v35 = vpop.f32.mrb[142].mxu0 }
 0x24a   : > { %v2251_v37 = vpack.c.bf16 %v1687_v35, %v1684_v30  ;;  %v1689_v39 = vpop.f32.mrb[143].mxu0 }
 0x24b   : > { %v15409_v39 = vld [vmem:[%s20218_s22 + $0x38] sm:$0xff]  }
 0x24c   : > { %13586 = vmatmul.mubr.msk.bf16.gmra.mrb[12].mxu1 %vm1822_vm1, %v1794_v2 }
 0x24d   : > { %13589 = vmatprep.mubr.msk.bf16.mxu1 %vm1822_vm1, %v1795_v10 }
 0x24f   : > { %v1692_v42 = vpop.f32.mrb[144].mxu0 }
 0x250   : > { %v1694_v44 = vpop.f32.mrb[145].mxu0 }
 0x251   : > { %v1695_v46 = vpop.f32.mrb[146].mxu0 }
 0x252   : > { %v2252_v49 = vpack.c.bf16 %v1695_v46, %v1692_v42  ;;  %v1697_v51 = vpop.f32.mrb[147].mxu0  ;;  %v15410_v42 = vld [vmem:[%s20218_s22] sm:$0xff]  }
 0x254   : > { %13590 = vmatmul.mubr.msk.bf16.gmra.mrb[16].mxu1 %vm1822_vm1, %v1796_v20 }
 0x255   : > { %13593 = vmatprep.mubr.msk.bf16.mxu1 %vm1822_vm1, %v1797_v33 }
 0x257   : > { %v1700_v53 = vpop.f32.mrb[148].mxu0 }
 0x258   : > { %v1702_v56 = vpop.f32.mrb[149].mxu0 }
 0x259   : > { %v1703_v58 = vpop.f32.mrb[150].mxu0 }
 0x25a   : > { %v2253_v60 = vpack.c.bf16 %v1703_v58, %v1700_v53  ;;  %v1705_v63 = vpop.f32.mrb[151].mxu0 }
 0x25c   : > { %13594 = vmatmul.mubr.msk.bf16.gmra.mrb[20].mxu1 %vm1822_vm1, %v1798_v45 }
 0x25d   : > { %13597 = vmatprep.mubr.msk.bf16.mxu1 %vm1822_vm1, %v1799_v57 }
 0x25f   : > { %v1708_v2 = vpop.f32.mrb[152].mxu0 }
 0x260   : > { %v1710_v4 = vpop.f32.mrb[153].mxu0 }
 0x261   : > { %v1711_v7 = vpop.f32.mrb[154].mxu0  ;;  %v15411_v4 = vld [vmem:[%s20218_s22 + $0x8] sm:$0xff]  }
 0x262   : > { %v2254_v10 = vpack.c.bf16 %v1711_v7, %v1708_v2  ;;  %v1713_v13 = vpop.f32.mrb[155].mxu0 }
 0x264   : > { %13598 = vmatmul.mubr.msk.bf16.gmra.mrb[24].mxu1 %vm1822_vm1, %v1800_v6 }
 0x265   : > { %13601 = vmatprep.mubr.msk.bf16.mxu1 %vm1822_vm1, %v1801_v26 }
 0x267   : > { %v1716_v18 = vpop.f32.mrb[156].mxu0 }
 0x268   : > { %v1718_v20 = vpop.f32.mrb[157].mxu0 }
 0x269   : > { %v1719_v24 = vpop.f32.mrb[158].mxu0 }
 0x26a   : > { %v2255_v29 = vpack.c.bf16 %v1719_v24, %v1716_v18  ;;  %v1721_v33 = vpop.f32.mrb[159].mxu0 }
 0x26c   : > { %13602 = vmatmul.mubr.msk.bf16.gmra.mrb[28].mxu1 %vm1822_vm1, %v20219_v36 }
 0x26d   : > { %13607 = vmatprep.mubr.msk.bf16.mxu1 %vm1822_vm1, %v2248_v52 }
 0x26f   : > { %v1724_v41 = vpop.f32.mrb[160].mxu0 }
 0x270   : > { %v1726_v45 = vpop.f32.mrb[161].mxu0 }
 0x271   : > { %v1727_v48 = vpop.f32.mrb[162].mxu0 }
 0x272   : > { %v2256_v54 = vpack.c.bf16 %v1727_v48, %v1724_v41  ;;  %v1729_v57 = vpop.f32.mrb[163].mxu0  ;;  %v15413_v48 = vld [vmem:[%s20218_s22 + $0x18] sm:$0xff]  }
 0x274   : > { %13608 = vmatmul.mubr.msk.bf16.vlgmr.msra.gmra.mrb[0].mxu1 %vm1822_vm1, %v2249_v17 }
 0x275   : > { %13611 = vmatprep.mubr.msk.bf16.mxu1 %vm1822_vm1, %v2250_v25  ;;  %13640 = vmatpush3.bf16.msra.mxu1 %v15406_v47 }
 0x276   : > { %13641 = vmatprep.subr.bf16.mxu1 %v15407_v61 }
 0x277   : > { %v1732_v3 = vpop.f32.mrb[164].mxu0 }
 0x278   : > { %v1734_v6 = vpop.f32.mrb[165].mxu0 }
 0x279   : > { %v1735_v11 = vpop.f32.mrb[166].mxu0  ;;  %13642 = vmatpush3.bf16.msra.mxu1 %v15407_v61 }
 0x27a   : > { %v2257_v19 = vpack.c.bf16 %v1735_v11, %v1732_v3  ;;  %v1737_v26 = vpop.f32.mrb[167].mxu0 }
 0x27c   : > { %13612 = vmatmul.mubr.msk.bf16.gmra.mrb[4].mxu1 %vm1822_vm1, %v2251_v37  ;;  %v15408_v37 = vld [vmem:[%s20218_s22 + $0x30] sm:$0xff]  }
 0x27d   : > { %13615 = vmatprep.mubr.msk.bf16.mxu1 %vm1822_vm1, %v2252_v49  ;;  %13643 = vmatprep.subr.bf16.mxu1 %v15408_v37 }
 0x27e   : > { %13644 = vmatpush3.bf16.msra.mxu1 %v15408_v37 }
 0x27f   : > { %v1740_v31 = vpop.f32.mrb[168].mxu0  ;;  %13645 = vmatprep.subr.bf16.mxu1 %v15409_v39 }
 0x280   : > { %v1742_v40 = vpop.f32.mrb[169].mxu0 }
 0x281   : > { %v1743_v55 = vpop.f32.mrb[170].mxu0 }
 0x282   : > { %v2258_v15 = vpack.c.bf16 %v1743_v55, %v1740_v31  ;;  %v1745_v34 = vpop.f32.mrb[171].mxu0  ;;  %13646 = vmatpush3.bf16.msra.mxu1 %v15409_v39 }
 0x283   : > { %13679 = vmatprep.subr.bf16.mxu1 %v15410_v42 }
 0x284   : > { %13616 = vmatmul.mubr.msk.bf16.gmra.mrb[8].mxu1 %vm1822_vm1, %v2253_v60 }
 0x285   : > { %13619 = vmatprep.mubr.msk.bf16.mxu1 %vm1822_vm1, %v2254_v10 }
 0x287   : > { %v1748_v22 = vpop.f32.mrb[172].mxu0 }
 0x288   : > { %v1750_v43 = vpop.f32.mrb[173].mxu0 }
 0x289   : > { %v1751_v27 = vpop.f32.mrb[174].mxu0 }
 0x28a   : > { %v2259_v38 = vpack.c.bf16 %v1751_v27, %v1748_v22  ;;  %v1753_v1 = vpop.f32.mrb[175].mxu0 }
 0x28c   : > { %13620 = vmatmul.mubr.msk.bf16.gmra.mrb[12].mxu1 %vm1822_vm1, %v2255_v29  ;;  %v15412_v29 = vld [vmem:[%s20218_s22 + $0x10] sm:$0xff]  }
 0x28d   : > { %13623 = vmatprep.mubr.msk.bf16.mxu1 %vm1822_vm1, %v2256_v54 }
 0x28f   : > { %v1756_v50 = vpop.f32.mrb[176].mxu0 }
 0x290   : > { %v1758_v59 = vpop.f32.mrb[177].mxu0 }
 0x291   : > { %v1759_v62 = vpop.f32.mrb[178].mxu0 }
 0x292   : > { %v2260_v52 = vpack.c.bf16 %v1759_v62, %v1756_v50  ;;  %v1761_v0 = vpop.f32.mrb[179].mxu0 }
 0x294   : > { %13624 = vmatmul.mubr.msk.bf16.gmra.mrb[16].mxu1 %vm1822_vm1, %v2257_v19  ;;  %v16783_v19 = vld [vmem:[%s20218_s22 + $0x40] sm:$0xff]  }
 0x295   : > { %13627 = vmatprep.mubr.msk.bf16.mxu1 %vm1822_vm1, %v2258_v15 }
 0x297   : > { %v1764_v8 = vpop.f32.mrb[180].mxu0 }
 0x298   : > { %v1766_v47 = vpop.f32.mrb[181].mxu0 }
 0x299   : > { %v1767_v9 = vpop.f32.mrb[182].mxu0 }
 0x29a   : > { %v2261_v12 = vpack.c.bf16 %v1767_v9, %v1764_v8  ;;  %v1769_v14 = vpop.f32.mrb[183].mxu0 }
 0x29c   : > { %13628 = vmatmul.mubr.msk.bf16.gmra.mrb[20].mxu1 %vm1822_vm1, %v2259_v38 }
 0x29d   : > { %13631 = vmatprep.mubr.msk.bf16.mxu1 %vm1822_vm1, %v2260_v52 }
 0x29f   : > { %v1772_v17 = vpop.f32.mrb[184].mxu0 }
 0x2a0   : > { %v1774_v5 = vpop.f32.mrb[185].mxu0 }
 0x2a1   : > { %v1775_v16 = vpop.f32.mrb[186].mxu0 }
 0x2a2   : > { %v2262_v21 = vpack.c.bf16 %v1775_v16, %v1772_v17  ;;  %v1777_v23 = vpop.f32.mrb[187].mxu0 }
 0x2a4   : > { %13632 = vmatmul.mubr.msk.bf16.gmra.mrb[24].mxu1 %vm1822_vm1, %v2261_v12 }
 0x2a5   : > { %13635 = vmatprep.mubr.msk.bf16.mxu1 %vm1822_vm1, %v2262_v21 }
 0x2a7   : > { %v1780_v25 = vpop.f32.mrb[188].mxu0 }
 0x2a8   : > { %v1782_v28 = vpop.f32.mrb[189].mxu0 }
 0x2a9   : > { %v1783_v30 = vpop.f32.mrb[190].mxu0 }
 0x2aa   : > { %v2263_v32 = vpack.c.bf16 %v1783_v30, %v1780_v25  ;;  %v1785_v35 = vpop.f32.mrb[191].mxu0 }
 0x2ac   : > { %13636 = vmatmul.mubr.msk.bf16.gmra.mrb[28].mxu1 %vm1822_vm1, %v2263_v32 }
 0x347   : > { %v13609_v44 = vpop.f32.mrb[0].mxu1 }
 0x348   : > { %v2351_v46 = vpop.f32.mrb[1].mxu1  ;;  %v2512_v51 = vmax.f32 %v13609_v44, 0.0 }
 0x349   : > { %v13610_v49 = vpop.f32.mrb[2].mxu1  ;;  %v2510_v58 = vmax.f32 %v2351_v46, 0.0 }
 0x34a   : > { %v2513_v53 = vmax.f32 %v13610_v49, 0.0  ;;  %v2354_v56 = vpop.f32.mrb[3].mxu1 }
 0x34b   : > { %v2511_v60 = vmax.f32 %v2354_v56, 0.0 }
 0x34c   : > { %v16755_v63 = vpack.c.bf16 %v2513_v53, %v2512_v51 }
 0x34d   : > { %v16757_v2 = vpack.c.bf16 %v2511_v60, %v2510_v58 }
 0x34f   : > { %v13613_v7 = vpop.f32.mrb[4].mxu1  ;;  %13647 = vmatprep.mubr.msk.bf16.mxu1 %vm2599_vm2, %v16757_v2 }
 0x350   : > { %v2367_v10 = vpop.f32.mrb[5].mxu1  ;;  %13648 = vmatmul.mubr.msk.bf16.vlgmr.msra.gmra.mrb[32].mxu1 %vm2599_vm2, %v16755_v63  ;;  %v2516_v18 = vmax.f32 %v13613_v7, 0.0 }
 0x351   : > { %v13614_v13 = vpop.f32.mrb[6].mxu1  ;;  %13680 = vmatpush3.bf16.msra.mxu1 %v15410_v42  ;;  %v2514_v33 = vmax.f32 %v2367_v10, 0.0 }
 0x352   : > { %v2517_v20 = vmax.f32 %v13614_v13, 0.0  ;;  %v2370_v24 = vpop.f32.mrb[7].mxu1  ;;  %13681 = vmatprep.subr.bf16.mxu1 %v15411_v4 }
 0x353   : > { %v2515_v36 = vmax.f32 %v2370_v24, 0.0 }
 0x354   : > { %v16769_v41 = vpack.c.bf16 %v2517_v20, %v2516_v18 }
 0x355   : > { %v16771_v45 = vpack.c.bf16 %v2515_v36, %v2514_v33  ;;  %13682 = vmatpush3.bf16.msra.mxu1 %v15411_v4 }
 0x356   : > { %13683 = vmatprep.subr.bf16.mxu1 %v15412_v29 }
 0x357   : > { %v13617_v54 = vpop.f32.mrb[8].mxu1  ;;  %13651 = vmatprep.mubr.msk.bf16.mxu1 %vm2599_vm2, %v16771_v45 }
 0x358   : > { %v2383_v57 = vpop.f32.mrb[9].mxu1  ;;  %13652 = vmatmul.mubr.msk.bf16.gmra.mrb[36].mxu1 %vm2599_vm2, %v16769_v41  ;;  %v2520_v3 = vmax.f32 %v13617_v54, 0.0 }
 0x359   : > { %v13618_v61 = vpop.f32.mrb[10].mxu1  ;;  %13684 = vmatpush3.bf16.msra.mxu1 %v15412_v29  ;;  %v2518_v26 = vmax.f32 %v2383_v57, 0.0  ;;  %v20220_v57 = vmov 0  }
 0x35a   : > { %v2521_v6 = vmax.f32 %v13618_v61, 0.0  ;;  %v2386_v11 = vpop.f32.mrb[11].mxu1  ;;  %13685 = vmatprep.subr.bf16.mxu1 %v15413_v48  ;;  %v15415_v61 = vld [vmem:[%s20218_s22 + $0x48] sm:$0xff]  }
 0x35b   : > { %v2519_v31 = vmax.f32 %v2386_v11, 0.0 }
 0x35c   : > { %v16785_v40 = vpack.c.bf16 %v2521_v6, %v2520_v3  ;;  %v15416_v3 = vld [vmem:[%s20218_s22 + $0x50] sm:$0xff]   ;;  %v15417_v6 = vld [vmem:[%s20218_s22 + $0x58] sm:$0xff]  }
 0x35d   : > { %v16787_v55 = vpack.c.bf16 %v2519_v31, %v2518_v26  ;;  %13686 = vmatpush3.bf16.msra.mxu1 %v15413_v48  ;;  %v15775_v26 = vld [vmem:[%s16211_s5 + $0x20] sm:$0xff]   ;;  %v15776_v31 = vld [vmem:[%s16211_s5 + $0x28] sm:$0xff]  }
 0x35e   : > { %13719 = vmatprep.subr.bf16.mxu1 %v16783_v19 }
 0x35f   : > { %v13621_v15 = vpop.f32.mrb[12].mxu1  ;;  %13655 = vmatprep.mubr.msk.bf16.mxu1 %vm2599_vm2, %v16787_v55 }
 0x360   : > { %v2399_v34 = vpop.f32.mrb[13].mxu1  ;;  %13656 = vmatmul.mubr.msk.bf16.gmra.mrb[40].mxu1 %vm2599_vm2, %v16785_v40  ;;  %v2524_v43 = vmax.f32 %v13621_v15, 0.0  ;;  %v15779_v15 = vld [vmem:[%s16211_s5 + $0x40] sm:$0xff]  }
 0x361   : > { %v13622_v22 = vpop.f32.mrb[14].mxu1  ;;  %v2522_v1 = vmax.f32 %v2399_v34, 0.0  ;;  %v15780_v34 = vld [vmem:[%s16211_s5 + $0x48] sm:$0xff]  }
 0x362   : > { %v2525_v27 = vmax.f32 %v13622_v22, 0.0  ;;  %v2402_v38 = vpop.f32.mrb[15].mxu1  ;;  %v15781_v22 = vld [vmem:[%s16211_s5 + $0x50] sm:$0xff]  }
 0x363   : > { %v2523_v50 = vmax.f32 %v2402_v38, 0.0  ;;  %v15784_v38 = vld [vmem:[%s16211_s5 + $0x68] sm:$0xff]  }
 0x364   : > { %v16794_v59 = vpack.c.bf16 %v2525_v27, %v2524_v43  ;;  %v15782_v43 = vld [vmem:[%s16211_s5 + $0x58] sm:$0xff]   ;;  %v15783_v27 = vld [vmem:[%s16211_s5 + $0x60] sm:$0xff]  }
 0x365   : > { %v16796_v62 = vpack.c.bf16 %v2523_v50, %v2522_v1  ;;  %v15785_v1 = vld [vmem:[%s16211_s5 + $0x70] sm:$0xff]   ;;  %v15786_v50 = vld [vmem:[%s16211_s5 + $0x78] sm:$0xff]  }
 0x367   : > { %v13625_v52 = vpop.f32.mrb[16].mxu1  ;;  %13659 = vmatprep.mubr.msk.bf16.mxu1 %vm2599_vm2, %v16796_v62 }
 0x368   : > { %v2415_v0 = vpop.f32.mrb[17].mxu1  ;;  %13660 = vmatmul.mubr.msk.bf16.gmra.mrb[44].mxu1 %vm2599_vm2, %v16794_v59  ;;  %v2528_v47 = vmax.f32 %v13625_v52, 0.0 }
 0x369   : > { %v13626_v8 = vpop.f32.mrb[18].mxu1  ;;  %v2526_v14 = vmax.f32 %v2415_v0, 0.0 }
 0x36a   : > { %v2529_v9 = vmax.f32 %v13626_v8, 0.0  ;;  %v2418_v12 = vpop.f32.mrb[19].mxu1 }
 0x36b   : > { %v2527_v17 = vmax.f32 %v2418_v12, 0.0 }
 0x36c   : > { %v16802_v5 = vpack.c.bf16 %v2529_v9, %v2528_v47 }
 0x36d   : > { %v2550_v16 = vpack.c.bf16 %v2527_v17, %v2526_v14 }
 0x36f   : > { %v13629_v21 = vpop.f32.mrb[20].mxu1  ;;  %13663 = vmatprep.mubr.msk.bf16.mxu1 %vm2599_vm2, %v2550_v16 }
 0x370   : > { %v2431_v23 = vpop.f32.mrb[21].mxu1  ;;  %13664 = vmatmul.mubr.msk.bf16.gmra.mrb[48].mxu1 %vm2599_vm2, %v16802_v5  ;;  %v2532_v28 = vmax.f32 %v13629_v21, 0.0 }
 0x371   : > { %v13630_v25 = vpop.f32.mrb[22].mxu1  ;;  %v2530_v35 = vmax.f32 %v2431_v23, 0.0 }
 0x372   : > { %v2533_v30 = vmax.f32 %v13630_v25, 0.0  ;;  %v2434_v32 = vpop.f32.mrb[23].mxu1 }
 0x373   : > { %v2531_v37 = vmax.f32 %v2434_v32, 0.0 }
 0x374   : > { %v16807_v39 = vpack.c.bf16 %v2533_v30, %v2532_v28 }
 0x375   : > { %v16809_v42 = vpack.c.bf16 %v2531_v37, %v2530_v35 }
 0x377   : > { %v13633_v44 = vpop.f32.mrb[24].mxu1  ;;  %13667 = vmatprep.mubr.msk.bf16.mxu1 %vm2599_vm2, %v16809_v42 }
 0x378   : > { %v2447_v46 = vpop.f32.mrb[25].mxu1  ;;  %13668 = vmatmul.mubr.msk.bf16.gmra.mrb[52].mxu1 %vm2599_vm2, %v16807_v39  ;;  %v2536_v51 = vmax.f32 %v13633_v44, 0.0 }
 0x379   : > { %v13634_v49 = vpop.f32.mrb[26].mxu1  ;;  %v2534_v58 = vmax.f32 %v2447_v46, 0.0 }
 0x37a   : > { %v2537_v53 = vmax.f32 %v13634_v49, 0.0  ;;  %v2450_v56 = vpop.f32.mrb[27].mxu1 }
 0x37b   : > { %v2535_v60 = vmax.f32 %v2450_v56, 0.0 }
 0x37c   : > { %v2555_v4 = vpack.c.bf16 %v2537_v53, %v2536_v51 }
 0x37d   : > { %v2554_v7 = vpack.c.bf16 %v2535_v60, %v2534_v58 }
 0x37f   : > { %v13637_v10 = vpop.f32.mrb[28].mxu1  ;;  %13671 = vmatprep.mubr.msk.bf16.mxu1 %vm2599_vm2, %v2554_v7 }
 0x380   : > { %v2463_v13 = vpop.f32.mrb[29].mxu1  ;;  %13672 = vmatmul.mubr.msk.bf16.gmra.mrb[56].mxu1 %vm2599_vm2, %v2555_v4  ;;  %v2540_v20 = vmax.f32 %v13637_v10, 0.0 }
 0x381   : > { %v13638_v18 = vpop.f32.mrb[30].mxu1  ;;  %v2538_v33 = vmax.f32 %v2463_v13, 0.0 }
 0x382   : > { %v2541_v24 = vmax.f32 %v13638_v18, 0.0  ;;  %v2466_v29 = vpop.f32.mrb[31].mxu1 }
 0x383   : > { %v2539_v36 = vmax.f32 %v2466_v29, 0.0 }
 0x384   : > { %v2557_v48 = vpack.c.bf16 %v2541_v24, %v2540_v20 }
 0x385   : > { %v2556_v54 = vpack.c.bf16 %v2539_v36, %v2538_v33 }
 0x387   : > { %13675 = vmatprep.mubr.msk.bf16.mxu1 %vm2599_vm2, %v2556_v54 }
 0x388   : > { %13676 = vmatmul.mubr.msk.bf16.gmra.mrb[60].mxu1 %vm2599_vm2, %v2557_v48 }
 0x389   : > { %13687 = vmatprep.mubr.bf16.mxu1 %v20220_v57 }
 0x390   : > { %13688 = vmatmul.mubr.msk.bf16.vlgmr.msra.gmra.mrb[32].mxu1 %vm2599_vm2, %v16757_v2  ;;  %v3223_v2 = vld [vmem:[%s20221_s6] sm:$0xf] }
 0x391   : > { %13691 = vmatprep.mubr.msk.bf16.mxu1 %vm2599_vm2, %v16755_v63  ;;  %13720 = vmatpush3.bf16.msra.mxu1 %v16783_v19  ;;  %v3273_v11 = vsel %vm1871_vm0, %v3223_v2, 0  ;;  %v15774_v19 = vld [vmem:[%s16211_s5 + $0x18] sm:$0xff]  }
 0x392   : > { %13721 = vmatprep.subr.bf16.mxu1 %v15415_v61 }
 0x395   : > { %13722 = vmatpush3.bf16.msra.mxu1 %v15415_v61 }
 0x396   : > { %13723 = vmatprep.subr.bf16.mxu1 %v15416_v3 }
 0x398   : > { %13692 = vmatmul.mubr.msk.bf16.gmra.mrb[36].mxu1 %vm2599_vm2, %v16771_v45 }
 0x399   : > { %13695 = vmatprep.mubr.msk.bf16.mxu1 %vm2599_vm2, %v16769_v41  ;;  %13724 = vmatpush3.bf16.msra.mxu1 %v15416_v3 }
 0x39a   : > { %13725 = vmatprep.subr.bf16.mxu1 %v15417_v6 }
 0x39d   : > { %13726 = vmatpush3.bf16.msra.mxu1 %v15417_v6 }
 0x39e   : > { %15236 = vmatprep.subr.msk.bf16.mxu1 %vm1871_vm0, %v3223_v2 }
 0x3a0   : > { %13696 = vmatmul.mubr.msk.bf16.gmra.mrb[40].mxu1 %vm2599_vm2, %v16787_v55 }
 0x3a1   : > { %13699 = vmatprep.mubr.msk.bf16.mxu1 %vm2599_vm2, %v16785_v40 }
 0x3a8   : > { %13700 = vmatmul.mubr.msk.bf16.gmra.mrb[44].mxu1 %vm2599_vm2, %v16796_v62 }
 0x3a9   : > { %13703 = vmatprep.mubr.bf16.mxu1 %v20220_v57 }
 0x3b0   : > { %13704 = vmatmul.mubr.msk.bf16.gmra.mrb[48].mxu1 %vm2599_vm2, %v2550_v16 }
 0x3b1   : > { %13707 = vmatprep.mubr.msk.bf16.mxu1 %vm2599_vm2, %v16802_v5 }
 0x3b8   : > { %13708 = vmatmul.mubr.msk.bf16.gmra.mrb[52].mxu1 %vm2599_vm2, %v16809_v42 }
 0x3b9   : > { %13711 = vmatprep.mubr.msk.bf16.mxu1 %vm2599_vm2, %v16807_v39 }
 0x3c0   : > { %13712 = vmatmul.mubr.msk.bf16.gmra.mrb[56].mxu1 %vm2599_vm2, %v2554_v7 }
 0x3c1   : > { %13715 = vmatprep.mubr.msk.bf16.mxu1 %vm2599_vm2, %v2555_v4 }
 0x3c8   : > { %13716 = vmatmul.mubr.msk.bf16.gmra.mrb[60].mxu1 %vm2599_vm2, %v2556_v54 }
 0x3c9   : > { %13727 = vmatprep.mubr.msk.bf16.mxu1 %vm2599_vm2, %v16755_v63  ;;  %v15771_v63 = vld [vmem:[%s16211_s5] sm:$0xff]  }
 0x3d0   : > { %13728 = vmatmul.mubr.msk.bf16.vlgmr.msra.gmra.mrb[32].mxu1 %vm2599_vm2, %v16771_v45  ;;  %v15773_v45 = vld [vmem:[%s16211_s5 + $0x10] sm:$0xff]  }
 0x3d1   : > { %13731 = vmatprep.mubr.msk.bf16.mxu1 %vm2599_vm2, %v16769_v41  ;;  %13760 = vmatpush3.bf16.msra.mxu1 %v3273_v11  ;;  %v15772_v41 = vld [vmem:[%s16211_s5 + $0x8] sm:$0xff]  }
 0x3d8   : > { %13732 = vmatmul.mubr.msk.bf16.gmra.mrb[36].mxu1 %vm2599_vm2, %v16787_v55  ;;  %v15778_v55 = vld [vmem:[%s16211_s5 + $0x38] sm:$0xff]  }
 0x3d9   : > { %13735 = vmatprep.mubr.msk.bf16.mxu1 %vm2599_vm2, %v16785_v40  ;;  %v15777_v40 = vld [vmem:[%s16211_s5 + $0x30] sm:$0xff]  }
 0x3e0   : > { %13736 = vmatmul.mubr.msk.bf16.gmra.mrb[40].mxu1 %vm2599_vm2, %v16796_v62 }
 0x3e1   : > { %13739 = vmatprep.mubr.msk.bf16.mxu1 %vm2599_vm2, %v16794_v59  ;;  %v16921_v59 = vld [vmem:[%s20222_s30] ss:$0 sm:$0xff]  ;;  %s13008_s30 = sshll.u32 %s20275_s26, 5 }
 0x3e2   : > { %s20143_s1 = scalar_lea.vmem %s20193_s21, %s13008_s30 }
 0x3e8   : > { %13740 = vmatmul.mubr.bf16.gmra.mrb[44].mxu1 %v20220_v57 }
 0x3e9   : > { %13743 = vmatprep.mubr.msk.bf16.mxu1 %vm2599_vm2, %v16802_v5 }
 0x3f0   : > { %13744 = vmatmul.mubr.msk.bf16.gmra.mrb[48].mxu1 %vm2599_vm2, %v16809_v42 }
 0x3f1   : > { %13747 = vmatprep.mubr.msk.bf16.mxu1 %vm2599_vm2, %v16807_v39 }
 0x3f8   : > { %13748 = vmatmul.mubr.msk.bf16.gmra.mrb[52].mxu1 %vm2599_vm2, %v2554_v7 }
 0x3f9   : > { %13751 = vmatprep.mubr.msk.bf16.mxu1 %vm2599_vm2, %v2555_v4 }
 0x400   : > { %13752 = vmatmul.mubr.msk.bf16.gmra.mrb[56].mxu1 %vm2599_vm2, %v2556_v54 }
 0x401   : > { %13755 = vmatprep.mubr.msk.bf16.mxu1 %vm2599_vm2, %v2557_v48 }
 0x408   : > { %13756 = vmatmul.mubr.bf16.gmra.mrb[60].mxu1 %v20220_v57 }
 0x409   : > { %13761 = vmatprep.mubr.msk.bf16.mxu1 %vm1822_vm1, %v15771_v63 }
 0x410   : > { %13762 = vmatmul.mubr.msk.bf16.vlgmr.msra.gmra.mrb[32].mxu1 %vm1822_vm1, %v15772_v41 }
 0x411   : > { %13765 = vmatprep.mubr.msk.bf16.mxu1 %vm1822_vm1, %v15773_v45 }
 0x418   : > { %13766 = vmatmul.mubr.msk.bf16.gmra.mrb[36].mxu1 %vm1822_vm1, %v15774_v19 }
 0x419   : > { %13769 = vmatprep.mubr.msk.bf16.mxu1 %vm1822_vm1, %v15775_v26 }
 0x420   : > { %13770 = vmatmul.mubr.msk.bf16.gmra.mrb[40].mxu1 %vm1822_vm1, %v15776_v31 }
 0x421   : > { %13773 = vmatprep.mubr.msk.bf16.mxu1 %vm1822_vm1, %v15777_v40 }
 0x428   : > { %13774 = vmatmul.mubr.msk.bf16.gmra.mrb[44].mxu1 %vm1822_vm1, %v15778_v55 }
 0x429   : > { %13777 = vmatprep.mubr.msk.bf16.mxu1 %vm1822_vm1, %v15779_v15 }
 0x430   : > { %13778 = vmatmul.mubr.msk.bf16.gmra.mrb[48].mxu1 %vm1822_vm1, %v15780_v34 }
 0x431   : > { %13781 = vmatprep.mubr.msk.bf16.mxu1 %vm1822_vm1, %v15781_v22 }
 0x438   : > { %13782 = vmatmul.mubr.msk.bf16.gmra.mrb[52].mxu1 %vm1822_vm1, %v15782_v43 }
 0x439   : > { %13785 = vmatprep.mubr.msk.bf16.mxu1 %vm1822_vm1, %v15783_v27 }
 0x440   : > { %13786 = vmatmul.mubr.msk.bf16.gmra.mrb[56].mxu1 %vm1822_vm1, %v15784_v38 }
 0x441   : > { %13789 = vmatprep.mubr.msk.bf16.mxu1 %vm1822_vm1, %v15785_v1 }
 0x448   : > { %13790 = vmatmul.mubr.msk.bf16.gmra.mrb[60].mxu1 %vm1822_vm1, %v15786_v50 }
 0x4e3   : > { %v13763_v62 = vpop.f32.mrb[32].mxu1 }
 0x4e4   : > { %v3477_v52 = vadd.f32 %v13763_v62, %v16921_v59  ;;  %v3309_v0 = vpop.f32.mrb[33].mxu1 }
 0x4e5   : > { %v3475_v8 = vadd.f32 %v16921_v59, %v3309_v0  ;;  %v13764_v47 = vpop.f32.mrb[34].mxu1 }
 0x4e6   : > { %v3478_v9 = vadd.f32 %v13764_v47, %v16921_v59  ;;  %v3312_v12 = vpop.f32.mrb[35].mxu1  ;;  %v3509_v17 = vmax.f32 %v3477_v52, 0.0 }
 0x4e7   : > { %v3476_v14 = vadd.f32 %v16921_v59, %v3312_v12  ;;  %v3507_v16 = vmax.f32 %v3475_v8, 0.0 }
 0x4e8   : > { %v3510_v5 = vmax.f32 %v3478_v9, 0.0 }
 0x4e9   : > { %v3508_v21 = vmax.f32 %v3476_v14, 0.0 }
 0x4ea   : > { %v16927_v23 = vpack.c.bf16 %v3510_v5, %v3509_v17 }
 0x4eb   : > { %v13767_v25 = vpop.f32.mrb[36].mxu1  ;;  %v16929_v28 = vpack.c.bf16 %v3508_v21, %v3507_v16 }
 0x4ec   : > { %v3481_v30 = vadd.f32 %v13767_v25, %v16921_v59  ;;  %v3325_v32 = vpop.f32.mrb[37].mxu1 }
 0x4ed   : > { %v3479_v35 = vadd.f32 %v16921_v59, %v3325_v32  ;;  %v13768_v37 = vpop.f32.mrb[38].mxu1  ;;  %3556 = vmatpush1.bf16.msra.mxu0 %v16929_v28 }
 0x4ee   : > { %v3482_v39 = vadd.f32 %v13768_v37, %v16921_v59  ;;  %v3328_v42 = vpop.f32.mrb[39].mxu1  ;;  %3557 = vmatprep.subr.bf16.mxu0 %v20220_v57  ;;  %v3513_v46 = vmax.f32 %v3481_v30, 0.0 }
 0x4ef   : > { %v3480_v44 = vadd.f32 %v16921_v59, %v3328_v42  ;;  %v3511_v51 = vmax.f32 %v3479_v35, 0.0 }
 0x4f0   : > { %v3514_v49 = vmax.f32 %v3482_v39, 0.0 }
 0x4f1   : > { %v3512_v53 = vmax.f32 %v3480_v44, 0.0  ;;  %3558 = vmatpush1.bf16.msra.mxu0 %v16927_v23 }
 0x4f2   : > { %3559 = vmatprep.subr.bf16.mxu0 %v20220_v57  ;;  %v16939_v56 = vpack.c.bf16 %v3514_v49, %v3513_v46 }
 0x4f3   : > { %v13771_v58 = vpop.f32.mrb[40].mxu1  ;;  %v16941_v60 = vpack.c.bf16 %v3512_v53, %v3511_v51 }
 0x4f4   : > { %v3341_v4 = vpop.f32.mrb[41].mxu1  ;;  %v3485_v7 = vadd.f32 %v13771_v58, %v16921_v59 }
 0x4f5   : > { %v13772_v10 = vpop.f32.mrb[42].mxu1  ;;  %3560 = vmatpush1.bf16.msra.mxu0 %v16941_v60  ;;  %v3483_v13 = vadd.f32 %v16921_v59, %v3341_v4 }
 0x4f6   : > { %v3344_v18 = vpop.f32.mrb[43].mxu1  ;;  %3561 = vmatprep.subr.bf16.mxu0 %v20220_v57  ;;  %v3486_v20 = vadd.f32 %v13772_v10, %v16921_v59  ;;  %v3517_v29 = vmax.f32 %v3485_v7, 0.0 }
 0x4f7   : > { %v3484_v24 = vadd.f32 %v16921_v59, %v3344_v18  ;;  %v3515_v36 = vmax.f32 %v3483_v13, 0.0 }
 0x4f8   : > { %v3518_v33 = vmax.f32 %v3486_v20, 0.0 }
 0x4f9   : > { %3562 = vmatpush1.bf16.msra.mxu0 %v16939_v56  ;;  %v3516_v48 = vmax.f32 %v3484_v24, 0.0 }
 0x4fa   : > { %3563 = vmatprep.subr.bf16.mxu0 %v20220_v57  ;;  %v16951_v54 = vpack.c.bf16 %v3518_v33, %v3517_v29 }
 0x4fb   : > { %v13775_v61 = vpop.f32.mrb[44].mxu1  ;;  %v16953_v3 = vpack.c.bf16 %v3516_v48, %v3515_v36 }
 0x4fc   : > { %v3357_v6 = vpop.f32.mrb[45].mxu1  ;;  %v3489_v2 = vadd.f32 %v13775_v61, %v16921_v59 }
 0x4fd   : > { %v13776_v11 = vpop.f32.mrb[46].mxu1  ;;  %3564 = vmatpush1.bf16.msra.mxu0 %v16953_v3  ;;  %v3487_v63 = vadd.f32 %v16921_v59, %v3357_v6 }
 0x4fe   : > { %v3360_v41 = vpop.f32.mrb[47].mxu1  ;;  %3565 = vmatprep.subr.bf16.mxu0 %v20220_v57  ;;  %v3490_v45 = vadd.f32 %v13776_v11, %v16921_v59  ;;  %v3521_v26 = vmax.f32 %v3489_v2, 0.0 }
 0x4ff   : > { %v3488_v19 = vadd.f32 %v16921_v59, %v3360_v41  ;;  %v3519_v40 = vmax.f32 %v3487_v63, 0.0 }
 0x500   : > { %v3522_v31 = vmax.f32 %v3490_v45, 0.0 }
 0x501   : > { %3566 = vmatpush1.bf16.msra.mxu0 %v16951_v54  ;;  %v3520_v55 = vmax.f32 %v3488_v19, 0.0 }
 0x502   : > { %3567 = vmatprep.subr.bf16.mxu0 %v20220_v57  ;;  %v16963_v15 = vpack.c.bf16 %v3522_v31, %v3521_v26 }
 0x503   : > { %v13779_v34 = vpop.f32.mrb[48].mxu1  ;;  %v16965_v22 = vpack.c.bf16 %v3520_v55, %v3519_v40 }
 0x504   : > { %v3493_v43 = vadd.f32 %v13779_v34, %v16921_v59  ;;  %v3373_v27 = vpop.f32.mrb[49].mxu1 }
 0x505   : > { %v3491_v38 = vadd.f32 %v16921_v59, %v3373_v27  ;;  %v13780_v1 = vpop.f32.mrb[50].mxu1  ;;  %3568 = vmatpush1.bf16.msra.mxu0 %v16965_v22  ;;  %v15788_v27 = vld [vmem:[%s20215_s28 + $0x14] ss:$8 sps:$4 sm:$0xff]  }
 0x506   : > { %v3494_v50 = vadd.f32 %v13780_v1, %v16921_v59  ;;  %v3376_v62 = vpop.f32.mrb[51].mxu1  ;;  %3569 = vmatprep.subr.bf16.mxu0 %v20220_v57  ;;  %v3525_v0 = vmax.f32 %v3493_v43, 0.0  ;;  %v15790_v1 = vld [vmem:[%s20215_s28 + $0x24] ss:$8 sps:$4 sm:$0xff]  }
 0x507   : > { %v3492_v52 = vadd.f32 %v16921_v59, %v3376_v62  ;;  %v3523_v47 = vmax.f32 %v3491_v38, 0.0  ;;  %v15789_v38 = vld [vmem:[%s20215_s28 + $0x10] ss:$8 sps:$4 sm:$0xff]   ;;  %v15792_v62 = vld [vmem:[%s20215_s28 + $0x34] ss:$8 sps:$4 sm:$0xff]  }
 0x508   : > { %v3526_v8 = vmax.f32 %v3494_v50, 0.0  ;;  %v15791_v50 = vld [vmem:[%s20215_s28 + $0x20] ss:$8 sps:$4 sm:$0xff]  }
 0x509   : > { %v3524_v9 = vmax.f32 %v3492_v52, 0.0  ;;  %3570 = vmatpush1.bf16.msra.mxu0 %v16963_v15  ;;  %v15793_v52 = vld [vmem:[%s20215_s28 + $0x30] ss:$8 sps:$4 sm:$0xff]  }
 0x50a   : > { %v16974_v12 = vpack.c.bf16 %v3526_v8, %v3525_v0  ;;  %3571 = vmatprep.subr.bf16.mxu0 %v20220_v57  ;;  %v15794_v0 = vld [vmem:[%s20215_s28 + $0x44] ss:$8 sps:$4 sm:$0xff]   ;;  %v15795_v8 = vld [vmem:[%s20215_s28 + $0x40] ss:$8 sps:$4 sm:$0xff]  }
 0x50b   : > { %v16977_v14 = vpack.c.bf16 %v3524_v9, %v3523_v47  ;;  %v13783_v17 = vpop.f32.mrb[52].mxu1  ;;  %v15796_v47 = vld [vmem:[%s20215_s28 + $0x54] ss:$8 sps:$4 sm:$0xff]   ;;  %v15797_v9 = vld [vmem:[%s20215_s28 + $0x50] ss:$8 sps:$4 sm:$0xff]  }
 0x50c   : > { %v3497_v5 = vadd.f32 %v13783_v17, %v16921_v59  ;;  %v3389_v16 = vpop.f32.mrb[53].mxu1  ;;  %v15798_v17 = vld [vmem:[%s20215_s28 + $0x64] ss:$8 sps:$4 sm:$0xff]  }
 0x50d   : > { %v3495_v21 = vadd.f32 %v16921_v59, %v3389_v16  ;;  %v13784_v25 = vpop.f32.mrb[54].mxu1  ;;  %3572 = vmatpush1.bf16.msra.mxu0 %v16977_v14  ;;  %v15800_v16 = vld [vmem:[%s20215_s28 + $0x74] ss:$8 sps:$4 sm:$0xff]  }
 0x50e   : > { %v3498_v30 = vadd.f32 %v13784_v25, %v16921_v59  ;;  %v3392_v32 = vpop.f32.mrb[55].mxu1  ;;  %3573 = vmatprep.subr.bf16.mxu0 %v20220_v57  ;;  %v3529_v37 = vmax.f32 %v3497_v5, 0.0  ;;  %v15799_v5 = vld [vmem:[%s20215_s28 + $0x60] ss:$8 sps:$4 sm:$0xff]   ;;  %v15802_v25 = vld [vmem:[%s20215_s28 + $0x84] ss:$8 sps:$4 sm:$0xff]  }
 0x50f   : > { %v3496_v35 = vadd.f32 %v16921_v59, %v3392_v32  ;;  %v3527_v42 = vmax.f32 %v3495_v21, 0.0  ;;  %v15801_v21 = vld [vmem:[%s20215_s28 + $0x70] ss:$8 sps:$4 sm:$0xff]   ;;  %v15804_v32 = vld [vmem:[%s20215_s28 + $0x94] ss:$8 sps:$4 sm:$0xff]  }
 0x510   : > { %v3530_v39 = vmax.f32 %v3498_v30, 0.0  ;;  %v15803_v30 = vld [vmem:[%s20215_s28 + $0x80] ss:$8 sps:$4 sm:$0xff]  }
 0x511   : > { %v3528_v44 = vmax.f32 %v3496_v35, 0.0  ;;  %3574 = vmatpush1.bf16.msra.mxu0 %v16974_v12  ;;  %v15805_v35 = vld [vmem:[%s20215_s28 + $0x90] ss:$8 sps:$4 sm:$0xff]  }
 0x512   : > { %v16986_v46 = vpack.c.bf16 %v3530_v39, %v3529_v37  ;;  %3575 = vmatprep.subr.bf16.mxu0 %v20220_v57  ;;  %v15806_v37 = vld [vmem:[%s20215_s28 + $0xa4] ss:$8 sps:$4 sm:$0xff]   ;;  %v15807_v39 = vld [vmem:[%s20215_s28 + $0xa0] ss:$8 sps:$4 sm:$0xff]  }
 0x513   : > { %v16989_v49 = vpack.c.bf16 %v3528_v44, %v3527_v42  ;;  %v13787_v51 = vpop.f32.mrb[56].mxu1  ;;  %v15808_v42 = vld [vmem:[%s20215_s28 + $0xb4] ss:$8 sps:$4 sm:$0xff]   ;;  %v15809_v44 = vld [vmem:[%s20215_s28 + $0xb0] ss:$8 sps:$4 sm:$0xff]  }
 0x514   : > { %v3501_v53 = vadd.f32 %v13787_v51, %v16921_v59  ;;  %v3405_v58 = vpop.f32.mrb[57].mxu1  ;;  %v15810_v51 = vld [vmem:[%s20215_s28 + $0xc4] ss:$8 sps:$4 sm:$0xff]  }
 0x515   : > { %v3499_v4 = vadd.f32 %v16921_v59, %v3405_v58  ;;  %v13788_v7 = vpop.f32.mrb[58].mxu1  ;;  %3576 = vmatpush1.bf16.msra.mxu0 %v16989_v49  ;;  %v15812_v58 = vld [vmem:[%s20215_s28 + $0xd4] ss:$8 sps:$4 sm:$0xff]  }
 0x516   : > { %v3502_v10 = vadd.f32 %v13788_v7, %v16921_v59  ;;  %v3408_v13 = vpop.f32.mrb[59].mxu1  ;;  %3577 = vmatprep.subr.bf16.mxu0 %v20220_v57  ;;  %v3533_v20 = vmax.f32 %v3501_v53, 0.0  ;;  %v15811_v53 = vld [vmem:[%s20215_s28 + $0xc0] ss:$8 sps:$4 sm:$0xff]   ;;  %v15814_v7 = vld [vmem:[%s20215_s28 + $0xe4] ss:$8 sps:$4 sm:$0xff]  }
 0x517   : > { %v3500_v18 = vadd.f32 %v16921_v59, %v3408_v13  ;;  %v3531_v29 = vmax.f32 %v3499_v4, 0.0  ;;  %v15813_v4 = vld [vmem:[%s20215_s28 + $0xd0] ss:$8 sps:$4 sm:$0xff]   ;;  %v15816_v13 = vld [vmem:[%s20215_s28 + $0xf4] ss:$8 sps:$4 sm:$0xff]  }
 0x518   : > { %v3534_v24 = vmax.f32 %v3502_v10, 0.0  ;;  %v15815_v10 = vld [vmem:[%s20215_s28 + $0xe0] ss:$8 sps:$4 sm:$0xff]  }
 0x519   : > { %v3532_v33 = vmax.f32 %v3500_v18, 0.0  ;;  %3578 = vmatpush1.bf16.msra.mxu0 %v16986_v46  ;;  %v15817_v18 = vld [vmem:[%s20215_s28 + $0xf0] ss:$8 sps:$4 sm:$0xff]  }
 0x51a   : > { %v16998_v36 = vpack.c.bf16 %v3534_v24, %v3533_v20  ;;  %3579 = vmatprep.subr.bf16.mxu0 %v20220_v57  ;;  %v15818_v20 = vld [vmem:[%s20215_s28 + $0x104] ss:$8 sps:$4 sm:$0xff]   ;;  %v15819_v24 = vld [vmem:[%s20215_s28 + $0x100] ss:$8 sps:$4 sm:$0xff]  }
 0x51b   : > { %v17001_v48 = vpack.c.bf16 %v3532_v33, %v3531_v29  ;;  %v13791_v61 = vpop.f32.mrb[60].mxu1  ;;  %v15820_v29 = vld [vmem:[%s20215_s28 + $0x114] ss:$8 sps:$4 sm:$0xff]   ;;  %v15821_v33 = vld [vmem:[%s20215_s28 + $0x110] ss:$8 sps:$4 sm:$0xff]  }
 0x51c   : > { %v3505_v6 = vadd.f32 %v13791_v61, %v16921_v59  ;;  %v3421_v2 = vpop.f32.mrb[61].mxu1  ;;  %v15822_v61 = vld [vmem:[%s20215_s28 + $0x124] ss:$8 sps:$4 sm:$0xff]  }
 0x51d   : > { %v3503_v11 = vadd.f32 %v16921_v59, %v3421_v2  ;;  %v13792_v63 = vpop.f32.mrb[62].mxu1  ;;  %3580 = vmatpush1.bf16.msra.mxu0 %v17001_v48  ;;  %v15824_v2 = vld [vmem:[%s20215_s28 + $0x134] ss:$8 sps:$4 sm:$0xff]  }
 0x51e   : > { %v3506_v41 = vadd.f32 %v13792_v63, %v16921_v59  ;;  %v3424_v45 = vpop.f32.mrb[63].mxu1  ;;  %3581 = vmatprep.subr.bf16.mxu0 %v20220_v57  ;;  %v3537_v26 = vmax.f32 %v3505_v6, 0.0  ;;  %v15823_v6 = vld [vmem:[%s20215_s28 + $0x120] ss:$8 sps:$4 sm:$0xff]   ;;  %v15826_v63 = vld [vmem:[%s20215_s28 + $0x144] ss:$8 sps:$4 sm:$0xff]  }
 0x51f   : > { %v3504_v19 = vadd.f32 %v16921_v59, %v3424_v45  ;;  %v3535_v40 = vmax.f32 %v3503_v11, 0.0  ;;  %v15787_v59 = vld [vmem:[%s20215_s28] ss:$8 sps:$4 sm:$0xff]   ;;  %v15825_v11 = vld [vmem:[%s20215_s28 + $0x130] ss:$8 sps:$4 sm:$0xff]  }
 0x520   : > { %v3538_v31 = vmax.f32 %v3506_v41, 0.0  ;;  %v15827_v41 = vld [vmem:[%s20215_s28 + $0x140] ss:$8 sps:$4 sm:$0xff]   ;;  %v15828_v45 = vld [vmem:[%s20215_s28 + $0x154] ss:$8 sps:$4 sm:$0xff]  }
 0x521   : > { %v3536_v55 = vmax.f32 %v3504_v19, 0.0  ;;  %3582 = vmatpush1.bf16.msra.mxu0 %v16998_v36  ;;  %v15829_v19 = vld [vmem:[%s20215_s28 + $0x150] ss:$8 sps:$4 sm:$0xff]  }
 0x522   : > { %v17010_v34 = vpack.c.bf16 %v3538_v31, %v3537_v26  ;;  %3583 = vmatprep.subr.bf16.mxu0 %v20220_v57  ;;  %v15830_v26 = vld [vmem:[%s20215_s28 + $0x164] ss:$8 sps:$4 sm:$0xff]   ;;  %v15831_v31 = vld [vmem:[%s20215_s28 + $0x160] ss:$8 sps:$4 sm:$0xff]  }
 0x523   : > { %v17013_v43 = vpack.c.bf16 %v3536_v55, %v3535_v40  ;;  %v15832_v40 = vld [vmem:[%s20215_s28 + $0x174] ss:$8 sps:$4 sm:$0xff]   ;;  %v15833_v55 = vld [vmem:[%s20215_s28 + $0x170] ss:$8 sps:$4 sm:$0xff]  }
 0x524   : > { %20223 = vst [vmem:[#allocation2_spill] sm:$0xff] %v17010_v34 }
 0x525   : > { %20224 = vst [vmem:[#allocation3_spill] sm:$0xff] %v17013_v43  ;;  %3584 = vmatpush1.bf16.msra.mxu0 %v17013_v43 }
 0x526   : > { %3585 = vmatprep.subr.bf16.mxu0 %v20220_v57 }
 0x529   : > { %3586 = vmatpush1.bf16.msra.mxu0 %v17010_v34 }
 0x52a   : > { %5637 = vmatprep.subr.bf16.mxu0 %v20220_v57 }
 0x52c   : > { %3588 = vmatmul.mubr.bf16.vlgmr.msra.gmra.mrb[192].mxu0 %v15787_v59  ;;  %v15834_v59 = vld [vmem:[%s20215_s28 + $0x184] ss:$8 sps:$4 sm:$0xff]  }
 0x52d   : > { %3595 = vmatprep.mubr.bf16.mxu0 %v15788_v27  ;;  %v15835_v27 = vld [vmem:[%s20215_s28 + $0x180] ss:$8 sps:$4 sm:$0xff]  }
 0x534   : > { %3596 = vmatmul.mubr.bf16.gmra.mrb[196].mxu0 %v15789_v38  ;;  %v15836_v38 = vld [vmem:[%s20215_s28 + $0x194] ss:$8 sps:$4 sm:$0xff]  }
 0x535   : > { %3603 = vmatprep.mubr.bf16.mxu0 %v15790_v1  ;;  %v15837_v1 = vld [vmem:[%s20215_s28 + $0x190] ss:$8 sps:$4 sm:$0xff]  }
 0x53c   : > { %3604 = vmatmul.mubr.bf16.gmra.mrb[200].mxu0 %v15791_v50  ;;  %v15838_v50 = vld [vmem:[%s20215_s28 + $0x1a4] ss:$8 sps:$4 sm:$0xff]  }
 0x53d   : > { %3611 = vmatprep.mubr.bf16.mxu0 %v15792_v62  ;;  %v15418_v62 = vld [vmem:[%s20179_s7 + $0x20] sm:$0xff]  }
 0x53e   : > { %13793 = vmatprep.subr.bf16.mxu1 %v15418_v62 }
 0x53f   : > { %13794 = vmatpush3.bf16.msra.mxu1 %v15418_v62  ;;  %v15852_v62 = vld [vmem:[%s20215_s28 + $0x214] ss:$8 sps:$4 sm:$0xff]  }
 0x544   : > { %3612 = vmatmul.mubr.bf16.gmra.mrb[204].mxu0 %v15793_v52  ;;  %v15839_v52 = vld [vmem:[%s20215_s28 + $0x1a0] ss:$8 sps:$4 sm:$0xff]  }
 0x545   : > { %3619 = vmatprep.mubr.bf16.mxu0 %v15794_v0  ;;  %v15840_v0 = vld [vmem:[%s20215_s28 + $0x1b4] ss:$8 sps:$4 sm:$0xff]  }
 0x54c   : > { %3620 = vmatmul.mubr.bf16.gmra.mrb[208].mxu0 %v15795_v8  ;;  %v15419_v8 = vld [vmem:[%s20179_s7 + $0x28] sm:$0xff]  }
 0x54d   : > { %3627 = vmatprep.mubr.bf16.mxu0 %v15796_v47  ;;  %13795 = vmatprep.subr.bf16.mxu1 %v15419_v8 }
 0x54e   : > { %13796 = vmatpush3.bf16.msra.mxu1 %v15419_v8 }
 0x554   : > { %3628 = vmatmul.mubr.bf16.gmra.mrb[212].mxu0 %v15797_v9 }
 0x555   : > { %3635 = vmatprep.mubr.bf16.mxu0 %v15798_v17 }
 0x55c   : > { %3636 = vmatmul.mubr.bf16.gmra.mrb[216].mxu0 %v15799_v5 }
 0x55d   : > { %3643 = vmatprep.mubr.bf16.mxu0 %v15800_v16 }
 0x564   : > { %3644 = vmatmul.mubr.bf16.gmra.mrb[220].mxu0 %v15801_v21  ;;  %v15420_v21 = vld [vmem:[%s20179_s7 + $0x30] sm:$0xff]  }
 0x565   : > { %3651 = vmatprep.mubr.bf16.mxu0 %v15802_v25  ;;  %v15841_v25 = vld [vmem:[%s20215_s28 + $0x1b0] ss:$8 sps:$4 sm:$0xff]   ;;  %13797 = vmatprep.subr.bf16.mxu1 %v15420_v21 }
 0x566   : > { %13798 = vmatpush3.bf16.msra.mxu1 %v15420_v21  ;;  %v15853_v21 = vld [vmem:[%s20215_s28 + $0x210] ss:$8 sps:$4 sm:$0xff]  }
 0x56c   : > { %3652 = vmatmul.mubr.bf16.gmra.mrb[224].mxu0 %v15803_v30  ;;  %v15842_v30 = vld [vmem:[%s20215_s28 + $0x1c4] ss:$8 sps:$4 sm:$0xff]  }
 0x56d   : > { %3659 = vmatprep.mubr.bf16.mxu0 %v15804_v32  ;;  %v15421_v32 = vld [vmem:[%s20179_s7 + $0x38] sm:$0xff]  }
 0x56e   : > { %13799 = vmatprep.subr.bf16.mxu1 %v15421_v32 }
 0x56f   : > { %13800 = vmatpush3.bf16.msra.mxu1 %v15421_v32 }
 0x574   : > { %3660 = vmatmul.mubr.bf16.gmra.mrb[228].mxu0 %v15805_v35 }
 0x575   : > { %3667 = vmatprep.mubr.bf16.mxu0 %v15806_v37 }
 0x57c   : > { %3668 = vmatmul.mubr.bf16.gmra.mrb[232].mxu0 %v15807_v39 }
 0x57d   : > { %3675 = vmatprep.mubr.bf16.mxu0 %v15808_v42 }
 0x584   : > { %3676 = vmatmul.mubr.bf16.gmra.mrb[236].mxu0 %v15809_v44 }
 0x585   : > { %3683 = vmatprep.mubr.bf16.mxu0 %v15810_v51  ;;  %v15843_v51 = vld [vmem:[%s20215_s28 + $0x1c0] ss:$8 sps:$4 sm:$0xff]  }
 0x58c   : > { %3684 = vmatmul.mubr.bf16.gmra.mrb[240].mxu0 %v15811_v53  ;;  %v15844_v53 = vld [vmem:[%s20215_s28 + $0x1d4] ss:$8 sps:$4 sm:$0xff]  }
 0x58d   : > { %3691 = vmatprep.mubr.bf16.mxu0 %v15812_v58 }
 0x594   : > { %3692 = vmatmul.mubr.bf16.gmra.mrb[244].mxu0 %v15813_v4 }
 0x595   : > { %3699 = vmatprep.mubr.bf16.mxu0 %v15814_v7 }
 0x59c   : > { %3700 = vmatmul.mubr.bf16.gmra.mrb[248].mxu0 %v15815_v10 }
 0x59d   : > { %3707 = vmatprep.mubr.bf16.mxu0 %v15816_v13 }
 0x5a4   : > { %3708 = vmatmul.mubr.bf16.gmra.mrb[252].mxu0 %v15817_v18  ;;  %v15845_v18 = vld [vmem:[%s20215_s28 + $0x1d0] ss:$8 sps:$4 sm:$0xff]  }
 0x5a5   : > { %3715 = vmatprep.mubr.bf16.mxu0 %v15818_v20  ;;  %v15846_v20 = vld [vmem:[%s20215_s28 + $0x1e4] ss:$8 sps:$4 sm:$0xff]  }
 0x5ac   : > { %3716 = vmatmul.mubr.bf16.gmra.mrb[0].mxu0 %v15819_v24 }
 0x5ad   : > { %3723 = vmatprep.mubr.bf16.mxu0 %v15820_v29 }
 0x5b4   : > { %3724 = vmatmul.mubr.bf16.gmra.mrb[4].mxu0 %v15821_v33 }
 0x5b5   : > { %3731 = vmatprep.mubr.bf16.mxu0 %v15822_v61 }
 0x5bc   : > { %3732 = vmatmul.mubr.bf16.gmra.mrb[8].mxu0 %v15823_v6 }
 0x5bd   : > { %3739 = vmatprep.mubr.bf16.mxu0 %v15824_v2  ;;  %v15847_v2 = vld [vmem:[%s20215_s28 + $0x1e0] ss:$8 sps:$4 sm:$0xff]  }
 0x5c4   : > { %3740 = vmatmul.mubr.bf16.gmra.mrb[12].mxu0 %v15825_v11  ;;  %v15848_v11 = vld [vmem:[%s20215_s28 + $0x1f4] ss:$8 sps:$4 sm:$0xff]  }
 0x5c5   : > { %3747 = vmatprep.mubr.bf16.mxu0 %v15826_v63 }
 0x5cc   : > { %3748 = vmatmul.mubr.bf16.gmra.mrb[16].mxu0 %v15827_v41 }
 0x5cd   : > { %3755 = vmatprep.mubr.bf16.mxu0 %v15828_v45 }
 0x5d4   : > { %3756 = vmatmul.mubr.bf16.gmra.mrb[20].mxu0 %v15829_v19 }
 0x5d5   : > { %3763 = vmatprep.mubr.bf16.mxu0 %v15830_v26 }
 0x5dc   : > { %3764 = vmatmul.mubr.bf16.gmra.mrb[24].mxu0 %v15831_v31  ;;  %v15849_v31 = vld [vmem:[%s20215_s28 + $0x1f0] ss:$8 sps:$4 sm:$0xff]  }
 0x5dd   : > { %3771 = vmatprep.mubr.bf16.mxu0 %v15832_v40  ;;  %v15850_v40 = vld [vmem:[%s20215_s28 + $0x204] ss:$8 sps:$4 sm:$0xff]  }
 0x5e4   : > { %3772 = vmatmul.mubr.bf16.gmra.mrb[28].mxu0 %v15833_v55 }
 0x5e5   : > { %3779 = vmatprep.mubr.bf16.mxu0 %v15834_v59 }
 0x5ec   : > { %3780 = vmatmul.mubr.bf16.gmra.mrb[32].mxu0 %v15835_v27 }
 0x5ed   : > { %3787 = vmatprep.mubr.bf16.mxu0 %v15836_v38 }
 0x5f4   : > { %3788 = vmatmul.mubr.bf16.gmra.mrb[36].mxu0 %v15837_v1 }
 0x5f5   : > { %3795 = vmatprep.mubr.bf16.mxu0 %v15838_v50  ;;  %v15851_v50 = vld [vmem:[%s20215_s28 + $0x200] ss:$8 sps:$4 sm:$0xff]  }
 0x5fc   : > { %3796 = vmatmul.mubr.bf16.gmra.mrb[40].mxu0 %v15839_v52 }
 0x5fd   : > { %3803 = vmatprep.mubr.bf16.mxu0 %v15840_v0 }
 0x5ff   : > { %v17187_v47 = vpop.f32.mrb[192].mxu0 }
 0x600   : > { %v3591_v9 = vpop.f32.mrb[193].mxu0 }
 0x601   : > { %v17189_v17 = vpop.f32.mrb[194].mxu0 }
 0x602   : > { %v3594_v16 = vpop.f32.mrb[195].mxu0 }
 0x604   : > { %3804 = vmatmul.mubr.bf16.gmra.mrb[44].mxu0 %v15841_v25  ;;  %v15854_v25 = vld [vmem:[%s20215_s28 + $0x224] ss:$8 sps:$4 sm:$0xff]  }
 0x605   : > { %3811 = vmatprep.mubr.bf16.mxu0 %v15842_v30 }
 0x607   : > { %v17205_v35 = vpop.f32.mrb[196].mxu0 }
 0x608   : > { %v3599_v37 = vpop.f32.mrb[197].mxu0 }
 0x609   : > { %v17207_v39 = vpop.f32.mrb[198].mxu0 }
 0x60a   : > { %v3602_v44 = vpop.f32.mrb[199].mxu0 }
 0x60c   : > { %3812 = vmatmul.mubr.bf16.gmra.mrb[48].mxu0 %v15843_v51 }
 0x60d   : > { %3819 = vmatprep.mubr.bf16.mxu0 %v15844_v53  ;;  %v15855_v53 = vld [vmem:[%s20215_s28 + $0x220] ss:$8 sps:$4 sm:$0xff]  }
 0x60f   : > { %v17217_v58 = vpop.f32.mrb[200].mxu0 }
 0x610   : > { %v3607_v4 = vpop.f32.mrb[201].mxu0 }
 0x611   : > { %v17219_v7 = vpop.f32.mrb[202].mxu0  ;;  %v15856_v4 = vld [vmem:[%s20215_s28 + $0x234] ss:$8 sps:$4 sm:$0xff]  }
 0x612   : > { %v3610_v13 = vpop.f32.mrb[203].mxu0 }
 0x614   : > { %3820 = vmatmul.mubr.bf16.gmra.mrb[52].mxu0 %v15845_v18 }
 0x615   : > { %3827 = vmatprep.mubr.bf16.mxu0 %v15846_v20 }
 0x617   : > { %v17229_v24 = vpop.f32.mrb[204].mxu0 }
 0x618   : > { %v3615_v29 = vpop.f32.mrb[205].mxu0 }
 0x619   : > { %v17231_v33 = vpop.f32.mrb[206].mxu0  ;;  %v15871_v29 = vld [vmem:[%s20215_s28 + $0x2a0] ss:$8 sps:$4 sm:$0xff]  }
 0x61a   : > { %v3618_v6 = vpop.f32.mrb[207].mxu0 }
 0x61c   : > { %3828 = vmatmul.mubr.bf16.gmra.mrb[56].mxu0 %v15847_v2  ;;  %v15857_v2 = vld [vmem:[%s20215_s28 + $0x230] ss:$8 sps:$4 sm:$0xff]  }
 0x61d   : > { %3835 = vmatprep.mubr.bf16.mxu0 %v15848_v11  ;;  %v15858_v11 = vld [vmem:[%s20215_s28 + $0x244] ss:$8 sps:$4 sm:$0xff]  }
 0x61f   : > { %v17241_v63 = vpop.f32.mrb[208].mxu0 }
 0x620   : > { %v3623_v41 = vpop.f32.mrb[209].mxu0 }
 0x621   : > { %v17243_v45 = vpop.f32.mrb[210].mxu0 }
 0x622   : > { %v3626_v26 = vpop.f32.mrb[211].mxu0 }
 0x624   : > { %3836 = vmatmul.mubr.bf16.gmra.mrb[60].mxu0 %v15849_v31 }
 0x625   : > { %3843 = vmatprep.mubr.bf16.mxu0 %v15850_v40 }
 0x627   : > { %v17253_v55 = vpop.f32.mrb[212].mxu0 }
 0x628   : > { %v3631_v59 = vpop.f32.mrb[213].mxu0 }
 0x629   : > { %v17255_v27 = vpop.f32.mrb[214].mxu0 }
 0x62a   : > { %v3634_v1 = vpop.f32.mrb[215].mxu0 }
 0x62b   : > { %v15859_v1 = vld [vmem:[%s20215_s28 + $0x240] ss:$8 sps:$4 sm:$0xff]  }
 0x62c   : > { %3844 = vmatmul.mubr.bf16.gmra.mrb[64].mxu0 %v15851_v50  ;;  %v15860_v50 = vld [vmem:[%s20215_s28 + $0x254] ss:$8 sps:$4 sm:$0xff]  }
 0x62d   : > { %3851 = vmatprep.mubr.bf16.mxu0 %v15852_v62 }
 0x62f   : > { %v17265_v52 = vpop.f32.mrb[216].mxu0 }
 0x630   : > { %v3639_v0 = vpop.f32.mrb[217].mxu0 }
 0x631   : > { %v17267_v8 = vpop.f32.mrb[218].mxu0 }
 0x632   : > { %v3642_v16 = vpop.f32.mrb[219].mxu0 }
 0x634   : > { %3852 = vmatmul.mubr.bf16.gmra.mrb[68].mxu0 %v15853_v21 }
 0x635   : > { %3859 = vmatprep.mubr.bf16.mxu0 %v15854_v25 }
 0x637   : > { %v17277_v30 = vpop.f32.mrb[220].mxu0 }
 0x638   : > { %v3647_v32 = vpop.f32.mrb[221].mxu0 }
 0x639   : > { %v17279_v37 = vpop.f32.mrb[222].mxu0  ;;  %v15861_v32 = vld [vmem:[%s20215_s28 + $0x250] ss:$8 sps:$4 sm:$0xff]  }
 0x63a   : > { %v3650_v51 = vpop.f32.mrb[223].mxu0 }
 0x63b   : > { %v15862_v51 = vld [vmem:[%s20215_s28 + $0x264] ss:$8 sps:$4 sm:$0xff]  }
 0x63c   : > { %3860 = vmatmul.mubr.bf16.gmra.mrb[72].mxu0 %v15855_v53 }
 0x63d   : > { %3867 = vmatprep.mubr.bf16.mxu0 %v15856_v4 }
 0x63f   : > { %v17289_v13 = vpop.f32.mrb[224].mxu0 }
 0x640   : > { %v3655_v18 = vpop.f32.mrb[225].mxu0 }
 0x641   : > { %v17291_v20 = vpop.f32.mrb[226].mxu0 }
 0x642   : > { %v3658_v6 = vpop.f32.mrb[227].mxu0 }
 0x644   : > { %3868 = vmatmul.mubr.bf16.gmra.mrb[76].mxu0 %v15857_v2 }
 0x645   : > { %3875 = vmatprep.mubr.bf16.mxu0 %v15858_v11  ;;  %v15863_v11 = vld [vmem:[%s20215_s28 + $0x260] ss:$8 sps:$4 sm:$0xff]  }
 0x647   : > { %v17301_v41 = vpop.f32.mrb[228].mxu0 }
 0x648   : > { %v3663_v26 = vpop.f32.mrb[229].mxu0 }
 0x649   : > { %v17303_v31 = vpop.f32.mrb[230].mxu0  ;;  %v15864_v26 = vld [vmem:[%s20215_s28 + $0x274] ss:$8 sps:$4 sm:$0xff]  }
 0x64a   : > { %v3666_v59 = vpop.f32.mrb[231].mxu0 }
 0x64c   : > { %3876 = vmatmul.mubr.bf16.gmra.mrb[80].mxu0 %v15859_v1 }
 0x64d   : > { %3883 = vmatprep.mubr.bf16.mxu0 %v15860_v50 }
 0x64f   : > { %v17313_v62 = vpop.f32.mrb[232].mxu0 }
 0x650   : > { %v3671_v0 = vpop.f32.mrb[233].mxu0 }
 0x651   : > { %v17315_v16 = vpop.f32.mrb[234].mxu0 }
 0x652   : > { %v3674_v25 = vpop.f32.mrb[235].mxu0 }
 0x654   : > { %3884 = vmatmul.mubr.bf16.gmra.mrb[84].mxu0 %v15861_v32  ;;  %v15865_v32 = vld [vmem:[%s20215_s28 + $0x270] ss:$8 sps:$4 sm:$0xff]  }
 0x655   : > { %3891 = vmatprep.mubr.bf16.mxu0 %v15862_v51  ;;  %v15866_v51 = vld [vmem:[%s20215_s28 + $0x284] ss:$8 sps:$4 sm:$0xff]  }
 0x657   : > { %v17325_v53 = vpop.f32.mrb[236].mxu0 }
 0x658   : > { %v3679_v4 = vpop.f32.mrb[237].mxu0 }
 0x659   : > { %v17327_v18 = vpop.f32.mrb[238].mxu0 }
 0x65a   : > { %v3682_v2 = vpop.f32.mrb[239].mxu0 }
 0x65c   : > { %3892 = vmatmul.mubr.bf16.gmra.mrb[88].mxu0 %v15863_v11 }
 0x65d   : > { %3899 = vmatprep.mubr.bf16.mxu0 %v15864_v26 }
 0x65f   : > { %v17337_v59 = vpop.f32.mrb[240].mxu0 }
 0x660   : > { %v3687_v1 = vpop.f32.mrb[241].mxu0 }
 0x661   : > { %v17339_v50 = vpop.f32.mrb[242].mxu0 }
 0x662   : > { %v3690_v25 = vpop.f32.mrb[243].mxu0 }
 0x663   : > { %v15867_v25 = vld [vmem:[%s20215_s28 + $0x280] ss:$8 sps:$4 sm:$0xff]  }
 0x664   : > { %3900 = vmatmul.mubr.bf16.gmra.mrb[92].mxu0 %v15865_v32  ;;  %v15868_v32 = vld [vmem:[%s20215_s28 + $0x294] ss:$8 sps:$4 sm:$0xff]  }
 0x665   : > { %3907 = vmatprep.mubr.bf16.mxu0 %v15866_v51 }
 0x667   : > { %v17349_v4 = vpop.f32.mrb[244].mxu0 }
 0x668   : > { %v3695_v2 = vpop.f32.mrb[245].mxu0 }
 0x669   : > { %v17351_v11 = vpop.f32.mrb[246].mxu0 }
 0x66a   : > { %v3698_v1 = vpop.f32.mrb[247].mxu0 }
 0x66b   : > { %v15422_v1 = vld [vmem:[%s20179_s7] sm:$0xff]  }
 0x66c   : > { %3908 = vmatmul.mubr.bf16.gmra.mrb[96].mxu0 %v15867_v25  ;;  %v15869_v25 = vld [vmem:[%s20215_s28 + $0x290] ss:$8 sps:$4 sm:$0xff]   ;;  %13833 = vmatprep.subr.bf16.mxu1 %v15422_v1 }
 0x66d   : > { %3915 = vmatprep.mubr.bf16.mxu0 %v15868_v32 }
 0x66f   : > { %v17361_v51 = vpop.f32.mrb[248].mxu0 }
 0x670   : > { %v3703_v0 = vpop.f32.mrb[249].mxu0 }
 0x671   : > { %v17363_v2 = vpop.f32.mrb[250].mxu0  ;;  %v15870_v0 = vld [vmem:[%s20215_s28 + $0x2a4] ss:$8 sps:$4 sm:$0xff]  }
 0x672   : > { %v3706_v26 = vpop.f32.mrb[251].mxu0 }
 0x673   : > { %v15873_v26 = vld [vmem:[%s20215_s28 + $0x2b0] ss:$8 sps:$4 sm:$0xff]  }
 0x674   : > { %3916 = vmatmul.mubr.bf16.gmra.mrb[100].mxu0 %v15869_v25  ;;  %v15872_v25 = vld [vmem:[%s20215_s28 + $0x2b4] ss:$8 sps:$4 sm:$0xff]  }
 0x675   : > { %3923 = vmatprep.mubr.bf16.mxu0 %v15870_v0 }
 0x677   : > { %v17376_v32 = vpop.f32.mrb[252].mxu0 }
 0x678   : > { %v3711_v21 = vpop.f32.mrb[253].mxu0 }
 0x679   : > { %v17378_v6 = vpop.f32.mrb[254].mxu0 }
 0x67a   : > { %v3714_v40 = vpop.f32.mrb[255].mxu0 }
 0x67c   : > { %3924 = vmatmul.mubr.bf16.gmra.mrb[104].mxu0 %v15871_v29  ;;  %v15874_v29 = vld [vmem:[%s20215_s28 + $0x2c4] ss:$8 sps:$4 sm:$0xff]  }
 0x67d   : > { %3931 = vmatprep.mubr.bf16.mxu0 %v15872_v25 }
 0x67f   : > { %v3717_v0 = vpop.f32.mrb[0].mxu0 }
 0x680   : > { %v3719_v44 = vpop.f32.mrb[1].mxu0 }
 0x681   : > { %v3720_v9 = vpop.f32.mrb[2].mxu0 }
 0x682   : > { %v3996_v21 = vpack.c.bf16 %v3720_v9, %v3717_v0  ;;  %v3722_v38 = vpop.f32.mrb[3].mxu0  ;;  %v15875_v9 = vld [vmem:[%s20215_s28 + $0x2c0] ss:$8 sps:$4 sm:$0xff]  }
 0x683   : > { %v15423_v38 = vld [vmem:[%s20179_s7 + $0x8] sm:$0xff]  }
 0x684   : > { %3932 = vmatmul.mubr.bf16.gmra.mrb[108].mxu0 %v15873_v26  ;;  %13801 = vmatprep.mubr.msk.bf16.mxu1 %vm2599_vm2, %v3996_v21  ;;  %v15876_v26 = vld [vmem:[%s20215_s28 + $0x2d4] ss:$8 sps:$4 sm:$0xff]  }
 0x685   : > { %3939 = vmatprep.mubr.bf16.mxu0 %v15874_v29 }
 0x687   : > { %v3725_v40 = vpop.f32.mrb[4].mxu0 }
 0x688   : > { %v3727_v19 = vpop.f32.mrb[5].mxu0 }
 0x689   : > { %v3728_v25 = vpop.f32.mrb[6].mxu0  ;;  %v15424_v19 = vld [vmem:[%s20179_s7 + $0x10] sm:$0xff]  }
 0x68a   : > { %v3997_v61 = vpack.c.bf16 %v3728_v25, %v3725_v40  ;;  %v3730_v44 = vpop.f32.mrb[7].mxu0 }
 0x68b   : > { %v15878_v44 = vld [vmem:[%s20215_s28 + $0x2e4] ss:$8 sps:$4 sm:$0xff]  }
 0x68c   : > { %3940 = vmatmul.mubr.bf16.gmra.mrb[112].mxu0 %v15875_v9  ;;  %13802 = vmatmul.mubr.msk.bf16.vlgmr.msra.gmra.mrb[64].mxu1 %vm2599_vm2, %v3997_v61  ;;  %v15425_v61 = vld [vmem:[%s20179_s7 + $0x18] sm:$0xff]  }
 0x68d   : > { %3947 = vmatprep.mubr.bf16.mxu0 %v15876_v26  ;;  %13834 = vmatpush3.bf16.msra.mxu1 %v15422_v1  ;;  %v15877_v1 = vld [vmem:[%s20215_s28 + $0x2d0] ss:$8 sps:$4 sm:$0xff]  }
 0x68e   : > { %13835 = vmatprep.subr.bf16.mxu1 %v15423_v38 }
 0x68f   : > { %v3733_v0 = vpop.f32.mrb[8].mxu0 }
 0x690   : > { %v3735_v21 = vpop.f32.mrb[9].mxu0 }
 0x691   : > { %v3736_v29 = vpop.f32.mrb[10].mxu0  ;;  %13836 = vmatpush3.bf16.msra.mxu1 %v15423_v38 }
 0x692   : > { %v3998_v40 = vpack.c.bf16 %v3736_v29, %v3733_v0  ;;  %v3738_v25 = vpop.f32.mrb[11].mxu0  ;;  %13837 = vmatprep.subr.bf16.mxu1 %v15424_v19  ;;  %v15879_v29 = vld [vmem:[%s20215_s28 + $0x2e0] ss:$8 sps:$4 sm:$0xff]  }
 0x694   : > { %3948 = vmatmul.mubr.bf16.gmra.mrb[116].mxu0 %v15877_v1  ;;  %13805 = vmatprep.mubr.msk.bf16.mxu1 %vm2599_vm2, %v3998_v40  ;;  %v15880_v40 = vld [vmem:[%s20215_s28 + $0x2f4] ss:$8 sps:$4 sm:$0xff]  }
 0x695   : > { %3955 = vmatprep.mubr.bf16.mxu0 %v15878_v44  ;;  %13838 = vmatpush3.bf16.msra.mxu1 %v15424_v19 }
 0x696   : > { %13839 = vmatprep.subr.bf16.mxu1 %v15425_v61 }
 0x697   : > { %v3741_v38 = vpop.f32.mrb[12].mxu0 }
 0x698   : > { %v3743_v9 = vpop.f32.mrb[13].mxu0 }
 0x699   : > { %v3744_v26 = vpop.f32.mrb[14].mxu0  ;;  %13840 = vmatpush3.bf16.msra.mxu1 %v15425_v61  ;;  %v15881_v61 = vld [vmem:[%s20215_s28 + $0x2f0] ss:$8 sps:$4 sm:$0xff]  }
 0x69a   : > { %v3999_v0 = vpack.c.bf16 %v3744_v26, %v3741_v38  ;;  %v3746_v21 = vpop.f32.mrb[15].mxu0  ;;  %v15882_v38 = vld [vmem:[%s20215_s28 + $0x4] ss:$8 sps:$4 sm:$0xff]  }
 0x69c   : > { %3956 = vmatmul.mubr.bf16.gmra.mrb[120].mxu0 %v15879_v29  ;;  %13806 = vmatmul.mubr.msk.bf16.gmra.mrb[68].mxu1 %vm2599_vm2, %v3999_v0 }
 0x69d   : > { %3963 = vmatprep.mubr.bf16.mxu0 %v15880_v40 }
 0x69f   : > { %v3749_v19 = vpop.f32.mrb[16].mxu0 }
 0x6a0   : > { %v3751_v25 = vpop.f32.mrb[17].mxu0 }
 0x6a1   : > { %v3752_v1 = vpop.f32.mrb[18].mxu0 }
 0x6a2   : > { %v4000_v44 = vpack.c.bf16 %v3752_v1, %v3749_v19  ;;  %v3754_v9 = vpop.f32.mrb[19].mxu0 }
 0x6a4   : > { %3964 = vmatmul.mubr.bf16.gmra.mrb[124].mxu0 %v15881_v61  ;;  %13809 = vmatprep.mubr.msk.bf16.mxu1 %vm2599_vm2, %v4000_v44  ;;  %v17436_v44 = vld [vmem:[%s20179_s7 + $0x40] sm:$0xff]  }
 0x6a5   : > { %5669 = vmatprep.mubr.bf16.mxu0 %v15882_v38  ;;  %13873 = vmatprep.subr.bf16.mxu1 %v17436_v44 }
 0x6a7   : > { %v3757_v26 = vpop.f32.mrb[20].mxu0 }
 0x6a8   : > { %v3759_v0 = vpop.f32.mrb[21].mxu0 }
 0x6a9   : > { %v3760_v21 = vpop.f32.mrb[22].mxu0 }
 0x6aa   : > { %v4001_v29 = vpack.c.bf16 %v3760_v21, %v3757_v26  ;;  %v3762_v40 = vpop.f32.mrb[23].mxu0 }
 0x6ac   : > { %13810 = vmatmul.mubr.msk.bf16.gmra.mrb[72].mxu1 %vm2599_vm2, %v4001_v29 }
 0x6af   : > { %v3765_v19 = vpop.f32.mrb[24].mxu0 }
 0x6b0   : > { %v3767_v25 = vpop.f32.mrb[25].mxu0 }
 0x6b1   : > { %v3768_v1 = vpop.f32.mrb[26].mxu0 }
 0x6b2   : > { %v4002_v9 = vpack.c.bf16 %v3768_v1, %v3765_v19  ;;  %v3770_v10 = vpop.f32.mrb[27].mxu0 }
 0x6b4   : > { %13813 = vmatprep.mubr.msk.bf16.mxu1 %vm2599_vm2, %v4002_v9 }
 0x6b7   : > { %v3773_v61 = vpop.f32.mrb[28].mxu0 }
 0x6b8   : > { %v3775_v38 = vpop.f32.mrb[29].mxu0 }
 0x6b9   : > { %v3776_v26 = vpop.f32.mrb[30].mxu0 }
 0x6ba   : > { %v4003_v0 = vpack.c.bf16 %v3776_v26, %v3773_v61  ;;  %v3778_v21 = vpop.f32.mrb[31].mxu0 }
 0x6bc   : > { %13814 = vmatmul.mubr.msk.bf16.gmra.mrb[76].mxu1 %vm2599_vm2, %v4003_v0 }
 0x6bf   : > { %v3781_v29 = vpop.f32.mrb[32].mxu0 }
 0x6c0   : > { %v3783_v40 = vpop.f32.mrb[33].mxu0 }
 0x6c1   : > { %v3784_v19 = vpop.f32.mrb[34].mxu0 }
 0x6c2   : > { %v4004_v10 = vpack.c.bf16 %v3784_v19, %v3781_v29  ;;  %v3786_v25 = vpop.f32.mrb[35].mxu0 }
 0x6c4   : > { %13817 = vmatprep.mubr.msk.bf16.mxu1 %vm2599_vm2, %v4004_v10 }
 0x6c7   : > { %v3789_v1 = vpop.f32.mrb[36].mxu0 }
 0x6c8   : > { %v3791_v42 = vpop.f32.mrb[37].mxu0 }
 0x6c9   : > { %v3792_v5 = vpop.f32.mrb[38].mxu0 }
 0x6ca   : > { %v4005_v9 = vpack.c.bf16 %v3792_v5, %v3789_v1  ;;  %v3794_v43 = vpop.f32.mrb[39].mxu0 }
 0x6cc   : > { %13818 = vmatmul.mubr.msk.bf16.gmra.mrb[80].mxu1 %vm2599_vm2, %v4005_v9 }
 0x6cf   : > { %v3797_v38 = vpop.f32.mrb[40].mxu0 }
 0x6d0   : > { %v3799_v34 = vpop.f32.mrb[41].mxu0 }
 0x6d1   : > { %v3800_v61 = vpop.f32.mrb[42].mxu0 }
 0x6d2   : > { %v4006_v26 = vpack.c.bf16 %v3800_v61, %v3797_v38  ;;  %v3802_v21 = vpop.f32.mrb[43].mxu0 }
 0x6d4   : > { %13821 = vmatprep.mubr.msk.bf16.mxu1 %vm2599_vm2, %v4006_v26 }
 0x6d7   : > { %v3805_v0 = vpop.f32.mrb[44].mxu0 }
 0x6d8   : > { %v3807_v40 = vpop.f32.mrb[45].mxu0 }
 0x6d9   : > { %v3808_v29 = vpop.f32.mrb[46].mxu0 }
 0x6da   : > { %v4007_v19 = vpack.c.bf16 %v3808_v29, %v3805_v0  ;;  %v3810_v25 = vpop.f32.mrb[47].mxu0 }
 0x6dc   : > { %13822 = vmatmul.mubr.msk.bf16.gmra.mrb[84].mxu1 %vm2599_vm2, %v4007_v19 }
 0x6df   : > { %v3813_v42 = vpop.f32.mrb[48].mxu0 }
 0x6e0   : > { %v3815_v10 = vpop.f32.mrb[49].mxu0 }
 0x6e1   : > { %v3816_v5 = vpop.f32.mrb[50].mxu0 }
 0x6e2   : > { %v4008_v43 = vpack.c.bf16 %v3816_v5, %v3813_v42  ;;  %v3818_v1 = vpop.f32.mrb[51].mxu0 }
 0x6e4   : > { %13825 = vmatprep.mubr.msk.bf16.mxu1 %vm2599_vm2, %v4008_v43  ;;  %v20225_v43 = vpack.c.bf16 %v17189_v17, %v17187_v47  ;;  %v20227_v47 = vpack.c.bf16 %v17219_v7, %v17217_v58  ;;  %v15428_v17 = vld [vmem:[%s20179_s7 + $0x50] sm:$0xff]   ;;  %v15429_v58 = vld [vmem:[%s20179_s7 + $0x58] sm:$0xff]   ;;  %v20228_v7 = vpack.c.bf16 %v17231_v33, %v17229_v24  ;;  %v20230_v24 = vpack.c.bf16 %v17255_v27, %v17253_v55 }
 0x6e5   : > { %v20231_v33 = vpack.c.bf16 %v17267_v8, %v17265_v52  ;;  %v20233_v55 = vpack.c.bf16 %v17291_v20, %v17289_v13 }
 0x6e7   : > { %v3821_v34 = vpop.f32.mrb[52].mxu0 }
 0x6e8   : > { %v3823_v9 = vpop.f32.mrb[53].mxu0 }
 0x6e9   : > { %v3824_v38 = vpop.f32.mrb[54].mxu0 }
 0x6ea   : > { %v4009_v61 = vpack.c.bf16 %v3824_v38, %v3821_v34  ;;  %v3826_v21 = vpop.f32.mrb[55].mxu0 }
 0x6ec   : > { %13826 = vmatmul.mubr.msk.bf16.gmra.mrb[88].mxu1 %vm2599_vm2, %v4009_v61 }
 0x6ef   : > { %v3829_v26 = vpop.f32.mrb[56].mxu0 }
 0x6f0   : > { %v3831_v40 = vpop.f32.mrb[57].mxu0 }
 0x6f1   : > { %v3832_v0 = vpop.f32.mrb[58].mxu0  ;;  %v20226_v40 = vpack.c.bf16 %v17207_v39, %v17205_v35 }
 0x6f2   : > { %v4010_v29 = vpack.c.bf16 %v3832_v0, %v3829_v26  ;;  %v3834_v25 = vpop.f32.mrb[59].mxu0  ;;  %v15427_v26 = vld [vmem:[%s20179_s7 + $0x48] sm:$0xff]  }
 0x6f4   : > { %13829 = vmatprep.mubr.msk.bf16.mxu1 %vm2599_vm2, %v4010_v29 }
 0x6f7   : > { %v3837_v19 = vpop.f32.mrb[60].mxu0 }
 0x6f8   : > { %v3839_v10 = vpop.f32.mrb[61].mxu0 }
 0x6f9   : > { %v3840_v42 = vpop.f32.mrb[62].mxu0 }
 0x6fa   : > { %v4011_v5 = vpack.c.bf16 %v3840_v42, %v3837_v19  ;;  %v3842_v1 = vpop.f32.mrb[63].mxu0  ;;  %v15430_v19 = vld [vmem:[%s20180_s8 + $0x20] sm:$0xff]  }
 0x6fc   : > { %13830 = vmatmul.mubr.msk.bf16.gmra.mrb[92].mxu1 %vm2599_vm2, %v4011_v5 }
 0x6fd   : > { %13841 = vmatprep.mubr.msk.bf16.mxu1 %vm2599_vm2, %v20225_v43 }
 0x6ff   : > { %v17453_v34 = vpop.f32.mrb[64].mxu0 }
 0x700   : > { %v3847_v9 = vpop.f32.mrb[65].mxu0 }
 0x701   : > { %v17455_v38 = vpop.f32.mrb[66].mxu0 }
 0x702   : > { %v4487_v61 = vpack.c.bf16 %v17455_v38, %v17453_v34  ;;  %v3850_v21 = vpop.f32.mrb[67].mxu0 }
 0x704   : > { %13842 = vmatmul.mubr.msk.bf16.vlgmr.msra.gmra.mrb[64].mxu1 %vm2599_vm2, %v20226_v40  ;;  %v20232_v40 = vpack.c.bf16 %v17279_v37, %v17277_v30  ;;  %v20235_v30 = vpack.c.bf16 %v17315_v16, %v17313_v62 }
 0x705   : > { %13845 = vmatprep.mubr.msk.bf16.mxu1 %vm2599_vm2, %v20227_v47  ;;  %13874 = vmatpush3.bf16.msra.mxu1 %v17436_v44  ;;  %v20229_v44 = vpack.c.bf16 %v17243_v45, %v17241_v63 }
 0x706   : > { %13875 = vmatprep.subr.bf16.mxu1 %v15427_v26 }
 0x707   : > { %v17474_v0 = vpop.f32.mrb[68].mxu0 }
 0x708   : > { %v3855_v29 = vpop.f32.mrb[69].mxu0 }
 0x709   : > { %v3856_v25 = vpop.f32.mrb[70].mxu0  ;;  %13876 = vmatpush3.bf16.msra.mxu1 %v15427_v26 }
 0x70a   : > { %v4488_v35 = vpack.c.bf16 %v3856_v25, %v17474_v0  ;;  %v3858_v39 = vpop.f32.mrb[71].mxu0  ;;  %13877 = vmatprep.subr.bf16.mxu1 %v15428_v17  ;;  %v20234_v0 = vpack.c.bf16 %v17303_v31, %v17301_v41  ;;  %v20237_v41 = vpack.c.bf16 %v17339_v50, %v17337_v59 }
 0x70b   : > { %v20236_v39 = vpack.c.bf16 %v17327_v18, %v17325_v53  ;;  %v20239_v53 = vpack.c.bf16 %v17363_v2, %v17361_v51 }
 0x70c   : > { %13846 = vmatmul.mubr.msk.bf16.gmra.mrb[68].mxu1 %vm2599_vm2, %v20228_v7 }
 0x70d   : > { %13849 = vmatprep.mubr.msk.bf16.mxu1 %vm2599_vm2, %v20229_v44  ;;  %13878 = vmatpush3.bf16.msra.mxu1 %v15428_v17  ;;  %v20238_v44 = vpack.c.bf16 %v17351_v11, %v17349_v4 }
 0x70e   : > { %13879 = vmatprep.subr.bf16.mxu1 %v15429_v58 }
 0x70f   : > { %v3861_v10 = vpop.f32.mrb[72].mxu0 }
 0x710   : > { %v3863_v42 = vpop.f32.mrb[73].mxu0 }
 0x711   : > { %v3864_v5 = vpop.f32.mrb[74].mxu0  ;;  %13880 = vmatpush3.bf16.msra.mxu1 %v15429_v58 }
 0x712   : > { %v4489_v1 = vpack.c.bf16 %v3864_v5, %v3861_v10  ;;  %v3866_v43 = vpop.f32.mrb[75].mxu0  ;;  %13913 = vmatprep.subr.bf16.mxu1 %v15430_v19  ;;  %v20240_v5 = vpack.c.bf16 %v17378_v6, %v17376_v32 }
 0x714   : > { %13850 = vmatmul.mubr.msk.bf16.gmra.mrb[72].mxu1 %vm2599_vm2, %v20230_v24  ;;  %v15431_v24 = vld [vmem:[%s20180_s8 + $0x28] sm:$0xff]  }
 0x715   : > { %13853 = vmatprep.mubr.msk.bf16.mxu1 %vm2599_vm2, %v20231_v33 }
 0x717   : > { %v3869_v63 = vpop.f32.mrb[76].mxu0 }
 0x718   : > { %v3871_v45 = vpop.f32.mrb[77].mxu0 }
 0x719   : > { %v3872_v9 = vpop.f32.mrb[78].mxu0 }
 0x71a   : > { %v4490_v21 = vpack.c.bf16 %v3872_v9, %v3869_v63  ;;  %v3874_v26 = vpop.f32.mrb[79].mxu0 }
 0x71c   : > { %13854 = vmatmul.mubr.msk.bf16.gmra.mrb[76].mxu1 %vm2599_vm2, %v20232_v40 }
 0x71d   : > { %13857 = vmatprep.mubr.msk.bf16.mxu1 %vm2599_vm2, %v20233_v55 }
 0x71f   : > { %v3877_v27 = vpop.f32.mrb[80].mxu0 }
 0x720   : > { %v3879_v47 = vpop.f32.mrb[81].mxu0 }
 0x721   : > { %v3880_v52 = vpop.f32.mrb[82].mxu0 }
 0x722   : > { %v4491_v8 = vpack.c.bf16 %v3880_v52, %v3877_v27  ;;  %v3882_v17 = vpop.f32.mrb[83].mxu0 }
 0x724   : > { %13858 = vmatmul.mubr.msk.bf16.gmra.mrb[80].mxu1 %vm2599_vm2, %v20234_v0 }
 0x725   : > { %13861 = vmatprep.mubr.msk.bf16.mxu1 %vm2599_vm2, %v20235_v30 }
 0x727   : > { %v3885_v37 = vpop.f32.mrb[84].mxu0 }
 0x728   : > { %v3887_v29 = vpop.f32.mrb[85].mxu0 }
 0x729   : > { %v3888_v13 = vpop.f32.mrb[86].mxu0 }
 0x72a   : > { %v4492_v20 = vpack.c.bf16 %v3888_v13, %v3885_v37  ;;  %v3890_v25 = vpop.f32.mrb[87].mxu0 }
 0x72c   : > { %13862 = vmatmul.mubr.msk.bf16.gmra.mrb[84].mxu1 %vm2599_vm2, %v20236_v39 }
 0x72d   : > { %13865 = vmatprep.mubr.msk.bf16.mxu1 %vm2599_vm2, %v20237_v41 }
 0x72f   : > { %v3893_v31 = vpop.f32.mrb[88].mxu0 }
 0x730   : > { %v3895_v58 = vpop.f32.mrb[89].mxu0 }
 0x731   : > { %v3896_v62 = vpop.f32.mrb[90].mxu0 }
 0x732   : > { %v4493_v16 = vpack.c.bf16 %v3896_v62, %v3893_v31  ;;  %v3898_v7 = vpop.f32.mrb[91].mxu0 }
 0x734   : > { %13866 = vmatmul.mubr.msk.bf16.gmra.mrb[88].mxu1 %vm2599_vm2, %v20238_v44  ;;  %v15432_v44 = vld [vmem:[%s20180_s8 + $0x30] sm:$0xff]  }
 0x735   : > { %13869 = vmatprep.mubr.msk.bf16.mxu1 %vm2599_vm2, %v20239_v53  ;;  %v15433_v53 = vld [vmem:[%s20180_s8 + $0x38] sm:$0xff]  }
 0x737   : > { %v3901_v18 = vpop.f32.mrb[92].mxu0 }
 0x738   : > { %v3903_v10 = vpop.f32.mrb[93].mxu0 }
 0x739   : > { %v3904_v59 = vpop.f32.mrb[94].mxu0 }
 0x73a   : > { %v4494_v50 = vpack.c.bf16 %v3904_v59, %v3901_v18  ;;  %v3906_v42 = vpop.f32.mrb[95].mxu0  ;;  %v15434_v18 = vld [vmem:[%s20180_s8] sm:$0xff]  }
 0x73c   : > { %13870 = vmatmul.mubr.msk.bf16.gmra.mrb[92].mxu1 %vm2599_vm2, %v20240_v5 }
 0x73d   : > { %13881 = vmatprep.mubr.msk.bf16.mxu1 %vm2599_vm2, %v4487_v61 }
 0x73f   : > { %v3909_v4 = vpop.f32.mrb[96].mxu0 }
 0x740   : > { %v3911_v11 = vpop.f32.mrb[97].mxu0 }
 0x741   : > { %v3912_v51 = vpop.f32.mrb[98].mxu0 }
 0x742   : > { %v4495_v2 = vpack.c.bf16 %v3912_v51, %v3909_v4  ;;  %v3914_v43 = vpop.f32.mrb[99].mxu0 }
 0x744   : > { %13882 = vmatmul.mubr.msk.bf16.vlgmr.msra.gmra.mrb[64].mxu1 %vm2599_vm2, %v4488_v35 }
 0x745   : > { %13885 = vmatprep.mubr.msk.bf16.mxu1 %vm2599_vm2, %v4489_v1  ;;  %13914 = vmatpush3.bf16.msra.mxu1 %v15430_v19 }
 0x746   : > { %13915 = vmatprep.subr.bf16.mxu1 %v15431_v24 }
 0x747   : > { %v3917_v6 = vpop.f32.mrb[100].mxu0 }
 0x748   : > { %v3919_v32 = vpop.f32.mrb[101].mxu0 }
 0x749   : > { %v3920_v34 = vpop.f32.mrb[102].mxu0  ;;  %13916 = vmatpush3.bf16.msra.mxu1 %v15431_v24  ;;  %v15435_v24 = vld [vmem:[%s20180_s8 + $0x8] sm:$0xff]  }
 0x74a   : > { %v4496_v38 = vpack.c.bf16 %v3920_v34, %v3917_v6  ;;  %v3922_v61 = vpop.f32.mrb[103].mxu0  ;;  %13917 = vmatprep.subr.bf16.mxu1 %v15432_v44 }
 0x74c   : > { %13886 = vmatmul.mubr.msk.bf16.gmra.mrb[68].mxu1 %vm2599_vm2, %v4490_v21 }
 0x74d   : > { %13889 = vmatprep.mubr.msk.bf16.mxu1 %vm2599_vm2, %v4491_v8  ;;  %13918 = vmatpush3.bf16.msra.mxu1 %v15432_v44 }
 0x74e   : > { %13919 = vmatprep.subr.bf16.mxu1 %v15433_v53 }
 0x74f   : > { %v3925_v33 = vpop.f32.mrb[104].mxu0 }
 0x750   : > { %v3927_v63 = vpop.f32.mrb[105].mxu0 }
 0x751   : > { %v3928_v45 = vpop.f32.mrb[106].mxu0  ;;  %13920 = vmatpush3.bf16.msra.mxu1 %v15433_v53  ;;  %v15436_v63 = vld [vmem:[%s20180_s8 + $0x10] sm:$0xff]  }
 0x752   : > { %v4497_v9 = vpack.c.bf16 %v3928_v45, %v3925_v33  ;;  %v3930_v26 = vpop.f32.mrb[107].mxu0  ;;  %13953 = vmatprep.subr.bf16.mxu1 %v15434_v18 }
 0x754   : > { %13890 = vmatmul.mubr.msk.bf16.gmra.mrb[72].mxu1 %vm2599_vm2, %v4492_v20 }
 0x755   : > { %13893 = vmatprep.mubr.msk.bf16.mxu1 %vm2599_vm2, %v4493_v16 }
 0x757   : > { %v3933_v35 = vpop.f32.mrb[108].mxu0 }
 0x758   : > { %v3935_v19 = vpop.f32.mrb[109].mxu0 }
 0x759   : > { %v3936_v1 = vpop.f32.mrb[110].mxu0  ;;  %v15437_v19 = vld [vmem:[%s20180_s8 + $0x18] sm:$0xff]  }
 0x75a   : > { %v4498_v40 = vpack.c.bf16 %v3936_v1, %v3933_v35  ;;  %v3938_v55 = vpop.f32.mrb[111].mxu0 }
 0x75c   : > { %13894 = vmatmul.mubr.msk.bf16.gmra.mrb[76].mxu1 %vm2599_vm2, %v4494_v50 }
 0x75d   : > { %13897 = vmatprep.mubr.msk.bf16.mxu1 %vm2599_vm2, %v4495_v2 }
 0x75f   : > { %v3941_v21 = vpop.f32.mrb[112].mxu0 }
 0x760   : > { %v3943_v27 = vpop.f32.mrb[113].mxu0 }
 0x761   : > { %v3944_v47 = vpop.f32.mrb[114].mxu0 }
 0x762   : > { %v4499_v52 = vpack.c.bf16 %v3944_v47, %v3941_v21  ;;  %v3946_v8 = vpop.f32.mrb[115].mxu0 }
 0x764   : > { %13898 = vmatmul.mubr.msk.bf16.gmra.mrb[80].mxu1 %vm2599_vm2, %v4496_v38 }
 0x765   : > { %13901 = vmatprep.mubr.msk.bf16.mxu1 %vm2599_vm2, %v4497_v9 }
 0x767   : > { %v3949_v17 = vpop.f32.mrb[116].mxu0 }
 0x768   : > { %v3951_v0 = vpop.f32.mrb[117].mxu0 }
 0x769   : > { %v3952_v30 = vpop.f32.mrb[118].mxu0 }
 0x76a   : > { %v4500_v37 = vpack.c.bf16 %v3952_v30, %v3949_v17  ;;  %v3954_v29 = vpop.f32.mrb[119].mxu0 }
 0x76c   : > { %13902 = vmatmul.mubr.msk.bf16.gmra.mrb[84].mxu1 %vm2599_vm2, %v4498_v40 }
 0x76d   : > { %13905 = vmatprep.mubr.msk.bf16.mxu1 %vm2599_vm2, %v4499_v52  ;;  %v17594_v52 = vld [vmem:[%s20180_s8 + $0x40] sm:$0xff]  }
 0x76f   : > { %v3957_v13 = vpop.f32.mrb[120].mxu0 }
 0x770   : > { %v3959_v20 = vpop.f32.mrb[121].mxu0 }
 0x771   : > { %v3960_v25 = vpop.f32.mrb[122].mxu0 }
 0x772   : > { %v4501_v39 = vpack.c.bf16 %v3960_v25, %v3957_v13  ;;  %v3962_v41 = vpop.f32.mrb[123].mxu0 }
 0x774   : > { %13906 = vmatmul.mubr.msk.bf16.gmra.mrb[88].mxu1 %vm2599_vm2, %v4500_v37 }
 0x775   : > { %13909 = vmatprep.mubr.msk.bf16.mxu1 %vm2599_vm2, %v4501_v39 }
 0x777   : > { %v3965_v31 = vpop.f32.mrb[124].mxu0 }
 0x778   : > { %v3967_v58 = vpop.f32.mrb[125].mxu0 }
 0x779   : > { %v3968_v62 = vpop.f32.mrb[126].mxu0 }
 0x77a   : > { %v4502_v16 = vpack.c.bf16 %v3968_v62, %v3965_v31  ;;  %v3970_v7 = vpop.f32.mrb[127].mxu0 }
 0x77c   : > { %13910 = vmatmul.mubr.msk.bf16.gmra.mrb[92].mxu1 %vm2599_vm2, %v4502_v16 }
 0x817   : > { %v13883_v10 = vpop.f32.mrb[64].mxu1 }
 0x818   : > { %v4618_v59 = vpop.f32.mrb[65].mxu1  ;;  %v4779_v42 = vmax.f32 %v13883_v10, 0.0 }
 0x819   : > { %v13884_v50 = vpop.f32.mrb[66].mxu1  ;;  %v4777_v11 = vmax.f32 %v4618_v59, 0.0 }
 0x81a   : > { %v4780_v5 = vmax.f32 %v13884_v50, 0.0  ;;  %v4621_v4 = vpop.f32.mrb[67].mxu1 }
 0x81b   : > { %v4778_v51 = vmax.f32 %v4621_v4, 0.0 }
 0x81c   : > { %v17566_v2 = vpack.c.bf16 %v4780_v5, %v4779_v42 }
 0x81d   : > { %v17568_v43 = vpack.c.bf16 %v4778_v51, %v4777_v11 }
 0x81f   : > { %v13887_v6 = vpop.f32.mrb[68].mxu1  ;;  %13921 = vmatprep.mubr.msk.bf16.mxu1 %vm2599_vm2, %v17568_v43 }
 0x820   : > { %v4634_v32 = vpop.f32.mrb[69].mxu1  ;;  %13922 = vmatmul.mubr.msk.bf16.vlgmr.msra.gmra.mrb[96].mxu1 %vm2599_vm2, %v17566_v2  ;;  %v4783_v38 = vmax.f32 %v13887_v6, 0.0 }
 0x821   : > { %v13888_v34 = vpop.f32.mrb[70].mxu1  ;;  %13954 = vmatpush3.bf16.msra.mxu1 %v15434_v18  ;;  %v4781_v45 = vmax.f32 %v4634_v32, 0.0 }
 0x822   : > { %v4784_v61 = vmax.f32 %v13888_v34, 0.0  ;;  %v4637_v33 = vpop.f32.mrb[71].mxu1  ;;  %13955 = vmatprep.subr.bf16.mxu1 %v15435_v24 }
 0x823   : > { %v4782_v9 = vmax.f32 %v4637_v33, 0.0 }
 0x824   : > { %v17580_v26 = vpack.c.bf16 %v4784_v61, %v4783_v38 }
 0x825   : > { %v17582_v35 = vpack.c.bf16 %v4782_v9, %v4781_v45  ;;  %13956 = vmatpush3.bf16.msra.mxu1 %v15435_v24 }
 0x826   : > { %13957 = vmatprep.subr.bf16.mxu1 %v15436_v63 }
 0x827   : > { %v13891_v1 = vpop.f32.mrb[72].mxu1  ;;  %13925 = vmatprep.mubr.msk.bf16.mxu1 %vm2599_vm2, %v17582_v35 }
 0x828   : > { %v4650_v40 = vpop.f32.mrb[73].mxu1  ;;  %13926 = vmatmul.mubr.msk.bf16.gmra.mrb[100].mxu1 %vm2599_vm2, %v17580_v26  ;;  %v4787_v21 = vmax.f32 %v13891_v1, 0.0 }
 0x829   : > { %v13892_v55 = vpop.f32.mrb[74].mxu1  ;;  %13958 = vmatpush3.bf16.msra.mxu1 %v15436_v63  ;;  %v4785_v8 = vmax.f32 %v4650_v40, 0.0 }
 0x82a   : > { %v4788_v27 = vmax.f32 %v13892_v55, 0.0  ;;  %v4653_v47 = vpop.f32.mrb[75].mxu1  ;;  %13959 = vmatprep.subr.bf16.mxu1 %v15437_v19 }
 0x82b   : > { %v4786_v17 = vmax.f32 %v4653_v47, 0.0 }
 0x82c   : > { %v17596_v0 = vpack.c.bf16 %v4788_v27, %v4787_v21 }
 0x82d   : > { %v17598_v30 = vpack.c.bf16 %v4786_v17, %v4785_v8  ;;  %13960 = vmatpush3.bf16.msra.mxu1 %v15437_v19 }
 0x82e   : > { %13993 = vmatprep.subr.bf16.mxu1 %v17594_v52 }
 0x82f   : > { %v13895_v37 = vpop.f32.mrb[76].mxu1  ;;  %13929 = vmatprep.mubr.msk.bf16.mxu1 %vm2599_vm2, %v17598_v30 }
 0x830   : > { %v4666_v29 = vpop.f32.mrb[77].mxu1  ;;  %13930 = vmatmul.mubr.msk.bf16.gmra.mrb[104].mxu1 %vm2599_vm2, %v17596_v0  ;;  %v4791_v20 = vmax.f32 %v13895_v37, 0.0 }
 0x831   : > { %v13896_v13 = vpop.f32.mrb[78].mxu1  ;;  %v4789_v41 = vmax.f32 %v4666_v29, 0.0 }
 0x832   : > { %v4792_v25 = vmax.f32 %v13896_v13, 0.0  ;;  %v4669_v39 = vpop.f32.mrb[79].mxu1 }
 0x833   : > { %v4790_v31 = vmax.f32 %v4669_v39, 0.0 }
 0x834   : > { %v17605_v58 = vpack.c.bf16 %v4792_v25, %v4791_v20 }
 0x835   : > { %v17607_v62 = vpack.c.bf16 %v4790_v31, %v4789_v41 }
 0x837   : > { %v13899_v16 = vpop.f32.mrb[80].mxu1  ;;  %13933 = vmatprep.mubr.msk.bf16.mxu1 %vm2599_vm2, %v17607_v62 }
 0x838   : > { %v4682_v7 = vpop.f32.mrb[81].mxu1  ;;  %13934 = vmatmul.mubr.msk.bf16.gmra.mrb[108].mxu1 %vm2599_vm2, %v17605_v58  ;;  %v4795_v53 = vmax.f32 %v13899_v16, 0.0  ;;  %v15439_v16 = vld [vmem:[%s20180_s8 + $0x48] sm:$0xff]  }
 0x839   : > { %v13900_v44 = vpop.f32.mrb[82].mxu1  ;;  %v4793_v59 = vmax.f32 %v4682_v7, 0.0  ;;  %v15440_v7 = vld [vmem:[%s20180_s8 + $0x50] sm:$0xff]  }
 0x83a   : > { %v4796_v18 = vmax.f32 %v13900_v44, 0.0  ;;  %v4685_v10 = vpop.f32.mrb[83].mxu1  ;;  %v15441_v44 = vld [vmem:[%s20180_s8 + $0x58] sm:$0xff]  }
 0x83b   : > { %v4794_v50 = vmax.f32 %v4685_v10, 0.0 }
 0x83c   : > { %v17613_v42 = vpack.c.bf16 %v4796_v18, %v4795_v53  ;;  %v5487_v53 = vunpack.c.h.bf16 %v16929_v28 }
 0x83d   : > { %v4817_v5 = vpack.c.bf16 %v4794_v50, %v4793_v59 }
 0x83f   : > { %v13903_v4 = vpop.f32.mrb[84].mxu1  ;;  %13937 = vmatprep.mubr.msk.bf16.mxu1 %vm2599_vm2, %v4817_v5 }
 0x840   : > { %v4698_v11 = vpop.f32.mrb[85].mxu1  ;;  %13938 = vmatmul.mubr.msk.bf16.gmra.mrb[112].mxu1 %vm2599_vm2, %v17613_v42  ;;  %v4799_v24 = vmax.f32 %v13903_v4, 0.0 }
 0x841   : > { %v13904_v51 = vpop.f32.mrb[86].mxu1  ;;  %v4797_v34 = vmax.f32 %v4698_v11, 0.0 }
 0x842   : > { %v4800_v6 = vmax.f32 %v13904_v51, 0.0  ;;  %v4701_v32 = vpop.f32.mrb[87].mxu1 }
 0x843   : > { %v4798_v38 = vmax.f32 %v4701_v32, 0.0 }
 0x844   : > { %v17618_v61 = vpack.c.bf16 %v4800_v6, %v4799_v24  ;;  %v5492_v24 = vunpack.c.l.bf16 %v16939_v56 }
 0x845   : > { %v4819_v33 = vpack.c.bf16 %v4798_v38, %v4797_v34 }
 0x847   : > { %v13907_v63 = vpop.f32.mrb[88].mxu1  ;;  %13941 = vmatprep.mubr.msk.bf16.mxu1 %vm2599_vm2, %v4819_v33 }
 0x848   : > { %v4714_v45 = vpop.f32.mrb[89].mxu1  ;;  %13942 = vmatmul.mubr.msk.bf16.gmra.mrb[116].mxu1 %vm2599_vm2, %v17618_v61  ;;  %v4803_v19 = vmax.f32 %v13907_v63, 0.0 }
 0x849   : > { %v13908_v9 = vpop.f32.mrb[90].mxu1  ;;  %v4801_v55 = vmax.f32 %v4714_v45, 0.0 }
 0x84a   : > { %v4804_v1 = vmax.f32 %v13908_v9, 0.0  ;;  %v4717_v40 = vpop.f32.mrb[91].mxu1 }
 0x84b   : > { %v4802_v21 = vmax.f32 %v4717_v40, 0.0 }
 0x84c   : > { %v4822_v27 = vpack.c.bf16 %v4804_v1, %v4803_v19  ;;  %v5491_v19 = vunpack.c.h.bf16 %v16941_v60 }
 0x84d   : > { %v4821_v47 = vpack.c.bf16 %v4802_v21, %v4801_v55 }
 0x84f   : > { %v13911_v8 = vpop.f32.mrb[92].mxu1  ;;  %13945 = vmatprep.mubr.msk.bf16.mxu1 %vm2599_vm2, %v4821_v47 }
 0x850   : > { %v4730_v17 = vpop.f32.mrb[93].mxu1  ;;  %13946 = vmatmul.mubr.msk.bf16.gmra.mrb[120].mxu1 %vm2599_vm2, %v4822_v27  ;;  %v4807_v29 = vmax.f32 %v13911_v8, 0.0 }
 0x851   : > { %v13912_v37 = vpop.f32.mrb[94].mxu1  ;;  %v4805_v25 = vmax.f32 %v4730_v17, 0.0 }
 0x852   : > { %v4808_v13 = vmax.f32 %v13912_v37, 0.0  ;;  %v4733_v20 = vpop.f32.mrb[95].mxu1  ;;  %v5496_v37 = vunpack.c.l.bf16 %v16951_v54 }
 0x853   : > { %v4806_v39 = vmax.f32 %v4733_v20, 0.0  ;;  %v5494_v20 = vunpack.c.l.bf16 %v16953_v3 }
 0x854   : > { %v4824_v41 = vpack.c.bf16 %v4808_v13, %v4807_v29 }
 0x855   : > { %v4823_v31 = vpack.c.bf16 %v4806_v39, %v4805_v25 }
 0x857   : > { %13949 = vmatprep.mubr.msk.bf16.mxu1 %vm2599_vm2, %v4823_v31 }
 0x858   : > { %13950 = vmatmul.mubr.msk.bf16.gmra.mrb[124].mxu1 %vm2599_vm2, %v4824_v41 }
 0x859   : > { %13961 = vmatprep.mubr.bf16.mxu1 %v20220_v57 }
 0x860   : > { %13962 = vmatmul.mubr.msk.bf16.vlgmr.msra.gmra.mrb[96].mxu1 %vm2599_vm2, %v17568_v43 }
 0x861   : > { %13965 = vmatprep.mubr.msk.bf16.mxu1 %vm2599_vm2, %v17566_v2  ;;  %13994 = vmatpush3.bf16.msra.mxu1 %v17594_v52 }
 0x862   : > { %13995 = vmatprep.subr.bf16.mxu1 %v15439_v16 }
 0x865   : > { %13996 = vmatpush3.bf16.msra.mxu1 %v15439_v16 }
 0x866   : > { %13997 = vmatprep.subr.bf16.mxu1 %v15440_v7 }
 0x868   : > { %13966 = vmatmul.mubr.msk.bf16.gmra.mrb[100].mxu1 %vm2599_vm2, %v17582_v35 }
 0x869   : > { %13969 = vmatprep.mubr.msk.bf16.mxu1 %vm2599_vm2, %v17580_v26  ;;  %13998 = vmatpush3.bf16.msra.mxu1 %v15440_v7 }
 0x86a   : > { %13999 = vmatprep.subr.bf16.mxu1 %v15441_v44 }
 0x86d   : > { %14000 = vmatpush3.bf16.msra.mxu1 %v15441_v44 }
 0x870   : > { %13970 = vmatmul.mubr.msk.bf16.gmra.mrb[104].mxu1 %vm2599_vm2, %v17598_v30 }
 0x871   : > { %13973 = vmatprep.mubr.msk.bf16.mxu1 %vm2599_vm2, %v17596_v0 }
 0x878   : > { %13974 = vmatmul.mubr.msk.bf16.gmra.mrb[108].mxu1 %vm2599_vm2, %v17607_v62 }
 0x879   : > { %13977 = vmatprep.mubr.bf16.mxu1 %v20220_v57 }
 0x880   : > { %13978 = vmatmul.mubr.msk.bf16.gmra.mrb[112].mxu1 %vm2599_vm2, %v4817_v5 }
 0x881   : > { %13981 = vmatprep.mubr.msk.bf16.mxu1 %vm2599_vm2, %v17613_v42 }
 0x888   : > { %13982 = vmatmul.mubr.msk.bf16.gmra.mrb[116].mxu1 %vm2599_vm2, %v4819_v33 }
 0x889   : > { %13985 = vmatprep.mubr.msk.bf16.mxu1 %vm2599_vm2, %v17618_v61 }
 0x890   : > { %13986 = vmatmul.mubr.msk.bf16.gmra.mrb[120].mxu1 %vm2599_vm2, %v4821_v47 }
 0x891   : > { %13989 = vmatprep.mubr.msk.bf16.mxu1 %vm2599_vm2, %v4822_v27 }
 0x898   : > { %13990 = vmatmul.mubr.msk.bf16.gmra.mrb[124].mxu1 %vm2599_vm2, %v4823_v31 }
 0x899   : > { %14001 = vmatprep.mubr.msk.bf16.mxu1 %vm2599_vm2, %v17566_v2  ;;  %v5488_v2 = vunpack.c.l.bf16 %v16927_v23 }
 0x8a0   : > { %14002 = vmatmul.mubr.msk.bf16.vlgmr.msra.gmra.mrb[96].mxu1 %vm2599_vm2, %v17582_v35  ;;  %v5486_v35 = vunpack.c.l.bf16 %v16929_v28  ;;  %v5490_v28 = vunpack.c.l.bf16 %v16941_v60 }
 0x8a1   : > { %14005 = vmatprep.mubr.msk.bf16.mxu1 %vm2599_vm2, %v17580_v26  ;;  %v17691_v26 = vld [vmem:[%s20181_s9] ss:$0 sm:$0xff] }
 0x8a8   : > { %14006 = vmatmul.mubr.msk.bf16.gmra.mrb[100].mxu1 %vm2599_vm2, %v17598_v30  ;;  %v5489_v30 = vunpack.c.h.bf16 %v16927_v23 }
 0x8a9   : > { %14009 = vmatprep.mubr.msk.bf16.mxu1 %vm2599_vm2, %v17596_v0 }
 0x8b0   : > { %14010 = vmatmul.mubr.msk.bf16.gmra.mrb[104].mxu1 %vm2599_vm2, %v17607_v62 }
 0x8b1   : > { %14013 = vmatprep.mubr.msk.bf16.mxu1 %vm2599_vm2, %v17605_v58 }
 0x8b8   : > { %14014 = vmatmul.mubr.bf16.gmra.mrb[108].mxu1 %v20220_v57 }
 0x8b9   : > { %14017 = vmatprep.mubr.msk.bf16.mxu1 %vm2599_vm2, %v17613_v42 }
 0x8c0   : > { %14018 = vmatmul.mubr.msk.bf16.gmra.mrb[112].mxu1 %vm2599_vm2, %v4819_v33  ;;  %v5493_v33 = vunpack.c.h.bf16 %v16939_v56 }
 0x8c1   : > { %14021 = vmatprep.mubr.msk.bf16.mxu1 %vm2599_vm2, %v17618_v61 }
 0x8c8   : > { %14022 = vmatmul.mubr.msk.bf16.gmra.mrb[116].mxu1 %vm2599_vm2, %v4821_v47 }
 0x8c9   : > { %14025 = vmatprep.mubr.msk.bf16.mxu1 %vm2599_vm2, %v4822_v27 }
 0x8d0   : > { %14026 = vmatmul.mubr.msk.bf16.gmra.mrb[120].mxu1 %vm2599_vm2, %v4823_v31  ;;  %v5497_v31 = vunpack.c.h.bf16 %v16951_v54 }
 0x8d1   : > { %14029 = vmatprep.mubr.msk.bf16.mxu1 %vm2599_vm2, %v4824_v41 }
 0x8d8   : > { %14030 = vmatmul.mubr.bf16.gmra.mrb[124].mxu1 %v20220_v57 }
 0x973   : > { %v14003_v43 = vpop.f32.mrb[96].mxu1 }
 0x974   : > { %v5520_v52 = vadd.f32 %v14003_v43, %v5488_v2  ;;  %v5327_v0 = vpop.f32.mrb[97].mxu1  ;;  %v5495_v2 = vunpack.c.h.bf16 %v16953_v3 }
 0x975   : > { %v5518_v58 = vadd.f32 %v5486_v35, %v5327_v0  ;;  %v14004_v62 = vpop.f32.mrb[98].mxu1 }
 0x976   : > { %v5559_v18 = vadd.f32 %v17691_v26, %v5520_v52  ;;  %v5521_v10 = vadd.f32 %v14004_v62, %v5489_v30  ;;  %v5330_v59 = vpop.f32.mrb[99].mxu1 }
 0x977   : > { %v5557_v50 = vadd.f32 %v17691_v26, %v5518_v58  ;;  %v5519_v42 = vadd.f32 %v5487_v53, %v5330_v59 }
 0x978   : > { %v5560_v5 = vadd.f32 %v17691_v26, %v5521_v10  ;;  %v5591_v11 = vmax.f32 %v5559_v18, 0.0  ;;  %v5500_v18 = vunpack.c.l.bf16 %v16963_v15 }
 0x979   : > { %v5558_v4 = vadd.f32 %v17691_v26, %v5519_v42  ;;  %v5589_v23 = vmax.f32 %v5557_v50, 0.0  ;;  %v5498_v50 = vunpack.c.l.bf16 %v16965_v22 }
 0x97a   : > { %v5592_v51 = vmax.f32 %v5560_v5, 0.0 }
 0x97b   : > { %v5590_v6 = vmax.f32 %v5558_v4, 0.0  ;;  %v14007_v32 = vpop.f32.mrb[100].mxu1 }
 0x97c   : > { %v17702_v34 = vpack.c.bf16 %v5592_v51, %v5591_v11  ;;  %v5524_v38 = vadd.f32 %v14007_v32, %v5492_v24  ;;  %v5343_v61 = vpop.f32.mrb[101].mxu1  ;;  %v5501_v11 = vunpack.c.h.bf16 %v16963_v15 }
 0x97d   : > { %v17705_v63 = vpack.c.bf16 %v5590_v6, %v5589_v23  ;;  %v5522_v45 = vadd.f32 %v5490_v28, %v5343_v61  ;;  %v14008_v9 = vpop.f32.mrb[102].mxu1  ;;  %v5499_v6 = vunpack.c.h.bf16 %v16965_v22 }
 0x97e   : > { %v5563_v1 = vadd.f32 %v17691_v26, %v5524_v38  ;;  %v5525_v40 = vadd.f32 %v14008_v9, %v5493_v33  ;;  %v5346_v55 = vpop.f32.mrb[103].mxu1 }
 0x97f   : > { %v5561_v21 = vadd.f32 %v17691_v26, %v5522_v45  ;;  %v5523_v27 = vadd.f32 %v5491_v19, %v5346_v55  ;;  %5638 = vmatpush1.bf16.msra.mxu0 %v17705_v63 }
 0x980   : > { %v5564_v47 = vadd.f32 %v17691_v26, %v5525_v40  ;;  %5639 = vmatprep.subr.bf16.mxu0 %v20220_v57  ;;  %v5595_v8 = vmax.f32 %v5563_v1, 0.0  ;;  %v5504_v1 = vunpack.c.l.bf16 %v16974_v12 }
 0x981   : > { %v5562_v56 = vadd.f32 %v17691_v26, %v5523_v27  ;;  %v5593_v60 = vmax.f32 %v5561_v21, 0.0  ;;  %v5502_v21 = vunpack.c.l.bf16 %v16977_v14 }
 0x982   : > { %v5596_v17 = vmax.f32 %v5564_v47, 0.0 }
 0x983   : > { %v5594_v29 = vmax.f32 %v5562_v56, 0.0  ;;  %v14011_v13 = vpop.f32.mrb[104].mxu1  ;;  %5640 = vmatpush1.bf16.msra.mxu0 %v17702_v34 }
 0x984   : > { %v17717_v25 = vpack.c.bf16 %v5596_v17, %v5595_v8  ;;  %v5528_v39 = vadd.f32 %v14011_v13, %v5496_v37  ;;  %v5359_v41 = vpop.f32.mrb[105].mxu1  ;;  %5641 = vmatprep.subr.bf16.mxu0 %v20220_v57  ;;  %v5505_v8 = vunpack.c.h.bf16 %v16974_v12 }
 0x985   : > { %v17721_v16 = vpack.c.bf16 %v5594_v29, %v5593_v60  ;;  %v5526_v7 = vadd.f32 %v5494_v20, %v5359_v41  ;;  %v14012_v44 = vpop.f32.mrb[106].mxu1  ;;  %v5503_v29 = vunpack.c.h.bf16 %v16977_v14 }
 0x986   : > { %v5567_v43 = vadd.f32 %v17691_v26, %v5528_v39  ;;  %v5529_v35 = vadd.f32 %v14012_v44, %v5497_v31  ;;  %v5362_v52 = vpop.f32.mrb[107].mxu1 }
 0x987   : > { %v5565_v0 = vadd.f32 %v17691_v26, %v5526_v7  ;;  %v5527_v30 = vadd.f32 %v5495_v2, %v5362_v52  ;;  %5642 = vmatpush1.bf16.msra.mxu0 %v17721_v16 }
 0x988   : > { %v5568_v58 = vadd.f32 %v17691_v26, %v5529_v35  ;;  %5643 = vmatprep.subr.bf16.mxu0 %v20220_v57  ;;  %v5599_v62 = vmax.f32 %v5567_v43, 0.0  ;;  %v5508_v43 = vunpack.c.l.bf16 %v16986_v46 }
 0x989   : > { %v5566_v54 = vadd.f32 %v17691_v26, %v5527_v30  ;;  %v5597_v3 = vmax.f32 %v5565_v0, 0.0  ;;  %v5506_v0 = vunpack.c.l.bf16 %v16989_v49 }
 0x98a   : > { %v5600_v53 = vmax.f32 %v5568_v58, 0.0 }
 0x98b   : > { %v5598_v10 = vmax.f32 %v5566_v54, 0.0  ;;  %v14015_v59 = vpop.f32.mrb[108].mxu1  ;;  %5644 = vmatpush1.bf16.msra.mxu0 %v17717_v25 }
 0x98c   : > { %v17733_v42 = vpack.c.bf16 %v5600_v53, %v5599_v62  ;;  %v5532_v5 = vadd.f32 %v14015_v59, %v5500_v18  ;;  %v5375_v4 = vpop.f32.mrb[109].mxu1  ;;  %5645 = vmatprep.subr.bf16.mxu0 %v20220_v57  ;;  %v5509_v62 = vunpack.c.h.bf16 %v16986_v46 }
 0x98d   : > { %v17737_v51 = vpack.c.bf16 %v5598_v10, %v5597_v3  ;;  %v5530_v24 = vadd.f32 %v5498_v50, %v5375_v4  ;;  %v14016_v23 = vpop.f32.mrb[110].mxu1  ;;  %v5507_v10 = vunpack.c.h.bf16 %v16989_v49 }
 0x98e   : > { %v5571_v32 = vadd.f32 %v17691_v26, %v5532_v5  ;;  %v5533_v28 = vadd.f32 %v14016_v23, %v5501_v11  ;;  %v5378_v38 = vpop.f32.mrb[111].mxu1 }
 0x98f   : > { %v5569_v61 = vadd.f32 %v17691_v26, %v5530_v24  ;;  %v5531_v33 = vadd.f32 %v5499_v6, %v5378_v38  ;;  %5646 = vmatpush1.bf16.msra.mxu0 %v17737_v51 }
 0x990   : > { %v5572_v45 = vadd.f32 %v17691_v26, %v5533_v28  ;;  %5647 = vmatprep.subr.bf16.mxu0 %v20220_v57  ;;  %v5603_v9 = vmax.f32 %v5571_v32, 0.0  ;;  %v5512_v32 = vunpack.c.l.bf16 %v16998_v36 }
 0x991   : > { %v5570_v15 = vadd.f32 %v17691_v26, %v5531_v33  ;;  %v5601_v22 = vmax.f32 %v5569_v61, 0.0  ;;  %v5510_v61 = vunpack.c.l.bf16 %v17001_v48 }
 0x992   : > { %v5604_v19 = vmax.f32 %v5572_v45, 0.0 }
 0x993   : > { %v5602_v40 = vmax.f32 %v5570_v15, 0.0  ;;  %v14019_v55 = vpop.f32.mrb[112].mxu1  ;;  %5648 = vmatpush1.bf16.msra.mxu0 %v17733_v42 }
 0x994   : > { %v17749_v27 = vpack.c.bf16 %v5604_v19, %v5603_v9  ;;  %v5536_v47 = vadd.f32 %v14019_v55, %v5504_v1  ;;  %v5391_v56 = vpop.f32.mrb[113].mxu1  ;;  %5649 = vmatprep.subr.bf16.mxu0 %v20220_v57  ;;  %v5513_v9 = vunpack.c.h.bf16 %v16998_v36 }
 0x995   : > { %v17753_v17 = vpack.c.bf16 %v5602_v40, %v5601_v22  ;;  %v5534_v37 = vadd.f32 %v5502_v21, %v5391_v56  ;;  %v14020_v60 = vpop.f32.mrb[114].mxu1  ;;  %v5511_v40 = vunpack.c.h.bf16 %v17001_v48 }
 0x996   : > { %v5575_v13 = vadd.f32 %v17691_v26, %v5536_v47  ;;  %v5537_v20 = vadd.f32 %v14020_v60, %v5505_v8  ;;  %v5394_v39 = vpop.f32.mrb[115].mxu1 }
 0x997   : > { %v5573_v41 = vadd.f32 %v17691_v26, %v5534_v37  ;;  %v5535_v31 = vadd.f32 %v5503_v29, %v5394_v39  ;;  %5650 = vmatpush1.bf16.msra.mxu0 %v17753_v17 }
 0x998   : > { %v5576_v7 = vadd.f32 %v17691_v26, %v5537_v20  ;;  %5651 = vmatprep.subr.bf16.mxu0 %v20220_v57  ;;  %v5607_v44 = vmax.f32 %v5575_v13, 0.0  ;;  %v20241_v13 = vld [vmem:[#allocation2_spill] sm:$0xff] }
 0x999   : > { %v5574_v12 = vadd.f32 %v17691_v26, %v5535_v31  ;;  %v5605_v14 = vmax.f32 %v5573_v41, 0.0  ;;  %v5516_v20 = vunpack.c.l.bf16 %v20241_v13  ;;  %v20242_v31 = vld [vmem:[#allocation3_spill] sm:$0xff] }
 0x99a   : > { %v5608_v2 = vmax.f32 %v5576_v7, 0.0  ;;  %v5514_v7 = vunpack.c.l.bf16 %v20242_v31 }
 0x99b   : > { %v5606_v35 = vmax.f32 %v5574_v12, 0.0  ;;  %v14023_v52 = vpop.f32.mrb[116].mxu1  ;;  %5652 = vmatpush1.bf16.msra.mxu0 %v17749_v27 }
 0x99c   : > { %v17765_v30 = vpack.c.bf16 %v5608_v2, %v5607_v44  ;;  %v5540_v58 = vadd.f32 %v14023_v52, %v5508_v43  ;;  %v5407_v54 = vpop.f32.mrb[117].mxu1  ;;  %5653 = vmatprep.subr.bf16.mxu0 %v20220_v57  ;;  %v5517_v43 = vunpack.c.h.bf16 %v20241_v13  ;;  %v15906_v13 = vld [vmem:[%s20215_s28 + $0xc4] ss:$8 sps:$4 sm:$0xff]  }
 0x99d   : > { %v17769_v53 = vpack.c.bf16 %v5606_v35, %v5605_v14  ;;  %v5538_v18 = vadd.f32 %v5506_v0, %v5407_v54  ;;  %v14024_v3 = vpop.f32.mrb[118].mxu1  ;;  %v5515_v0 = vunpack.c.h.bf16 %v20242_v31  ;;  %v15911_v31 = vld [vmem:[%s20215_s28 + $0xe0] ss:$8 sps:$4 sm:$0xff]  }
 0x99e   : > { %v5579_v59 = vadd.f32 %v17691_v26, %v5540_v58  ;;  %v5541_v50 = vadd.f32 %v14024_v3, %v5509_v62  ;;  %v5410_v5 = vpop.f32.mrb[119].mxu1 }
 0x99f   : > { %v5577_v4 = vadd.f32 %v17691_v26, %v5538_v18  ;;  %v5539_v11 = vadd.f32 %v5507_v10, %v5410_v5  ;;  %5654 = vmatpush1.bf16.msra.mxu0 %v17769_v53 }
 0x9a0   : > { %v5580_v24 = vadd.f32 %v17691_v26, %v5541_v50  ;;  %5655 = vmatprep.subr.bf16.mxu0 %v20220_v57  ;;  %v5611_v23 = vmax.f32 %v5579_v59, 0.0 }
 0x9a1   : > { %v5578_v46 = vadd.f32 %v17691_v26, %v5539_v11  ;;  %v5609_v49 = vmax.f32 %v5577_v4, 0.0 }
 0x9a2   : > { %v5612_v6 = vmax.f32 %v5580_v24, 0.0 }
 0x9a3   : > { %v5610_v28 = vmax.f32 %v5578_v46, 0.0  ;;  %v14027_v38 = vpop.f32.mrb[120].mxu1  ;;  %5656 = vmatpush1.bf16.msra.mxu0 %v17765_v30 }
 0x9a4   : > { %v17781_v33 = vpack.c.bf16 %v5612_v6, %v5611_v23  ;;  %v5544_v45 = vadd.f32 %v14027_v38, %v5512_v32  ;;  %v5423_v15 = vpop.f32.mrb[121].mxu1  ;;  %5657 = vmatprep.subr.bf16.mxu0 %v20220_v57  ;;  %v15884_v23 = vld [vmem:[%s20215_s28 + $0x14] ss:$8 sps:$4 sm:$0xff]   ;;  %v15885_v6 = vld [vmem:[%s20215_s28 + $0x10] ss:$8 sps:$4 sm:$0xff]  }
 0x9a5   : > { %v17785_v19 = vpack.c.bf16 %v5610_v28, %v5609_v49  ;;  %v5542_v1 = vadd.f32 %v5510_v61, %v5423_v15  ;;  %v14028_v22 = vpop.f32.mrb[122].mxu1  ;;  %v15886_v32 = vld [vmem:[%s20215_s28 + $0x24] ss:$8 sps:$4 sm:$0xff]   ;;  %v15887_v49 = vld [vmem:[%s20215_s28 + $0x20] ss:$8 sps:$4 sm:$0xff]  }
 0x9a6   : > { %v5583_v55 = vadd.f32 %v17691_v26, %v5544_v45  ;;  %v5545_v21 = vadd.f32 %v14028_v22, %v5513_v9  ;;  %v5426_v47 = vpop.f32.mrb[123].mxu1  ;;  %v15888_v28 = vld [vmem:[%s20215_s28 + $0x34] ss:$8 sps:$4 sm:$0xff]   ;;  %v15889_v38 = vld [vmem:[%s20215_s28 + $0x30] ss:$8 sps:$4 sm:$0xff]  }
 0x9a7   : > { %v5581_v56 = vadd.f32 %v17691_v26, %v5542_v1  ;;  %v5543_v8 = vadd.f32 %v5511_v40, %v5426_v47  ;;  %5658 = vmatpush1.bf16.msra.mxu0 %v17785_v19  ;;  %v15890_v61 = vld [vmem:[%s20215_s28 + $0x44] ss:$8 sps:$4 sm:$0xff]   ;;  %v15891_v45 = vld [vmem:[%s20215_s28 + $0x40] ss:$8 sps:$4 sm:$0xff]   ;;  %v15892_v15 = vld [vmem:[%s20215_s28 + $0x54] ss:$8 sps:$4 sm:$0xff]  }
 0x9a8   : > { %v5584_v37 = vadd.f32 %v17691_v26, %v5545_v21  ;;  %5659 = vmatprep.subr.bf16.mxu0 %v20220_v57  ;;  %v5615_v60 = vmax.f32 %v5583_v55, 0.0  ;;  %v15893_v9 = vld [vmem:[%s20215_s28 + $0x50] ss:$8 sps:$4 sm:$0xff]   ;;  %v15894_v1 = vld [vmem:[%s20215_s28 + $0x64] ss:$8 sps:$4 sm:$0xff]  }
 0x9a9   : > { %v5582_v36 = vadd.f32 %v17691_v26, %v5543_v8  ;;  %v5613_v48 = vmax.f32 %v5581_v56, 0.0  ;;  %v15895_v22 = vld [vmem:[%s20215_s28 + $0x60] ss:$8 sps:$4 sm:$0xff]   ;;  %v15896_v40 = vld [vmem:[%s20215_s28 + $0x74] ss:$8 sps:$4 sm:$0xff]  }
 0x9aa   : > { %v5616_v29 = vmax.f32 %v5584_v37, 0.0  ;;  %v15897_v55 = vld [vmem:[%s20215_s28 + $0x70] ss:$8 sps:$4 sm:$0xff]   ;;  %v15898_v21 = vld [vmem:[%s20215_s28 + $0x84] ss:$8 sps:$4 sm:$0xff]  }
 0x9ab   : > { %v5614_v39 = vmax.f32 %v5582_v36, 0.0  ;;  %v14031_v41 = vpop.f32.mrb[124].mxu1  ;;  %5660 = vmatpush1.bf16.msra.mxu0 %v17781_v33  ;;  %v15899_v47 = vld [vmem:[%s20215_s28 + $0x80] ss:$8 sps:$4 sm:$0xff]   ;;  %v15900_v56 = vld [vmem:[%s20215_s28 + $0x94] ss:$8 sps:$4 sm:$0xff]  }
 0x9ac   : > { %v17797_v12 = vpack.c.bf16 %v5616_v29, %v5615_v60  ;;  %v5548_v44 = vadd.f32 %v14031_v41, %v5516_v20  ;;  %v5439_v2 = vpop.f32.mrb[125].mxu1  ;;  %5661 = vmatprep.subr.bf16.mxu0 %v20220_v57  ;;  %v15901_v8 = vld [vmem:[%s20215_s28 + $0x90] ss:$8 sps:$4 sm:$0xff]   ;;  %v15902_v37 = vld [vmem:[%s20215_s28 + $0xa4] ss:$8 sps:$4 sm:$0xff]  }
 0x9ad   : > { %v17801_v14 = vpack.c.bf16 %v5614_v39, %v5613_v48  ;;  %v5546_v35 = vadd.f32 %v5514_v7, %v5439_v2  ;;  %v14032_v52 = vpop.f32.mrb[126].mxu1  ;;  %v15903_v36 = vld [vmem:[%s20215_s28 + $0xa0] ss:$8 sps:$4 sm:$0xff]   ;;  %v15904_v60 = vld [vmem:[%s20215_s28 + $0xb4] ss:$8 sps:$4 sm:$0xff]  }
 0x9ae   : > { %v5587_v58 = vadd.f32 %v17691_v26, %v5548_v44  ;;  %v5549_v54 = vadd.f32 %v14032_v52, %v5517_v43  ;;  %v5442_v62 = vpop.f32.mrb[127].mxu1  ;;  %v15905_v29 = vld [vmem:[%s20215_s28 + $0xb0] ss:$8 sps:$4 sm:$0xff]   ;;  %v15907_v20 = vld [vmem:[%s20215_s28 + $0xc0] ss:$8 sps:$4 sm:$0xff]  }
 0x9af   : > { %v5585_v18 = vadd.f32 %v17691_v26, %v5546_v35  ;;  %v5547_v3 = vadd.f32 %v5515_v0, %v5442_v62  ;;  %5662 = vmatpush1.bf16.msra.mxu0 %v17801_v14  ;;  %v15908_v48 = vld [vmem:[%s20215_s28 + $0xd4] ss:$8 sps:$4 sm:$0xff]   ;;  %v15909_v39 = vld [vmem:[%s20215_s28 + $0xd0] ss:$8 sps:$4 sm:$0xff]   ;;  %v15910_v41 = vld [vmem:[%s20215_s28 + $0xe4] ss:$8 sps:$4 sm:$0xff]  }
 0x9b0   : > { %v5588_v10 = vadd.f32 %v17691_v26, %v5549_v54  ;;  %5663 = vmatprep.subr.bf16.mxu0 %v20220_v57  ;;  %v5619_v50 = vmax.f32 %v5587_v58, 0.0  ;;  %v15912_v7 = vld [vmem:[%s20215_s28 + $0xf4] ss:$8 sps:$4 sm:$0xff]   ;;  %v15913_v44 = vld [vmem:[%s20215_s28 + $0xf0] ss:$8 sps:$4 sm:$0xff]  }
 0x9b1   : > { %v5586_v59 = vadd.f32 %v17691_v26, %v5547_v3  ;;  %v5617_v4 = vmax.f32 %v5585_v18, 0.0  ;;  %v15883_v26 = vld [vmem:[%s20215_s28] ss:$8 sps:$4 sm:$0xff]   ;;  %v15914_v2 = vld [vmem:[%s20215_s28 + $0x104] ss:$8 sps:$4 sm:$0xff]  }
 0x9b2   : > { %v5620_v5 = vmax.f32 %v5588_v10, 0.0  ;;  %v15915_v43 = vld [vmem:[%s20215_s28 + $0x100] ss:$8 sps:$4 sm:$0xff]   ;;  %v15916_v35 = vld [vmem:[%s20215_s28 + $0x114] ss:$8 sps:$4 sm:$0xff]  }
 0x9b3   : > { %v5618_v11 = vmax.f32 %v5586_v59, 0.0  ;;  %5664 = vmatpush1.bf16.msra.mxu0 %v17797_v12  ;;  %v15917_v52 = vld [vmem:[%s20215_s28 + $0x110] ss:$8 sps:$4 sm:$0xff]   ;;  %v15918_v0 = vld [vmem:[%s20215_s28 + $0x124] ss:$8 sps:$4 sm:$0xff]  }
 0x9b4   : > { %v17811_v24 = vpack.c.bf16 %v5620_v5, %v5619_v50  ;;  %5665 = vmatprep.subr.bf16.mxu0 %v20220_v57  ;;  %v15919_v58 = vld [vmem:[%s20215_s28 + $0x120] ss:$8 sps:$4 sm:$0xff]   ;;  %v15920_v54 = vld [vmem:[%s20215_s28 + $0x134] ss:$8 sps:$4 sm:$0xff]   ;;  %v15921_v62 = vld [vmem:[%s20215_s28 + $0x130] ss:$8 sps:$4 sm:$0xff]  }
 0x9b5   : > { %v17814_v46 = vpack.c.bf16 %v5618_v11, %v5617_v4  ;;  %v15922_v18 = vld [vmem:[%s20215_s28 + $0x144] ss:$8 sps:$4 sm:$0xff]   ;;  %v15923_v3 = vld [vmem:[%s20215_s28 + $0x140] ss:$8 sps:$4 sm:$0xff]   ;;  %v15924_v10 = vld [vmem:[%s20215_s28 + $0x154] ss:$8 sps:$4 sm:$0xff]  }
 0x9b6   : > { %20243 = vst [vmem:[#allocation2_spill] sm:$0xff] %v17811_v24  ;;  %v15925_v59 = vld [vmem:[%s20215_s28 + $0x150] ss:$8 sps:$4 sm:$0xff]   ;;  %v15926_v50 = vld [vmem:[%s20215_s28 + $0x164] ss:$8 sps:$4 sm:$0xff]  }
 0x9b7   : > { %20244 = vst [vmem:[#allocation3_spill] sm:$0xff] %v17814_v46  ;;  %5666 = vmatpush1.bf16.msra.mxu0 %v17814_v46  ;;  %v15927_v5 = vld [vmem:[%s20215_s28 + $0x160] ss:$8 sps:$4 sm:$0xff]   ;;  %v15928_v4 = vld [vmem:[%s20215_s28 + $0x174] ss:$8 sps:$4 sm:$0xff]  }
 0x9b8   : > { %5667 = vmatprep.subr.bf16.mxu0 %v20220_v57  ;;  %v15929_v11 = vld [vmem:[%s20215_s28 + $0x170] ss:$8 sps:$4 sm:$0xff]  }
 0x9bb   : > { %5668 = vmatpush1.bf16.msra.mxu0 %v17811_v24 }
 0x9bc   : > { %7719 = vmatprep.subr.bf16.mxu0 %v20220_v57 }
 0x9be   : > { %5670 = vmatmul.mubr.bf16.vlgmr.msra.gmra.mrb[128].mxu0 %v15883_v26  ;;  %v15930_v26 = vld [vmem:[%s20215_s28 + $0x184] ss:$8 sps:$4 sm:$0xff]  }
 0x9bf   : > { %5677 = vmatprep.mubr.bf16.mxu0 %v15884_v23  ;;  %v15931_v23 = vld [vmem:[%s20215_s28 + $0x180] ss:$8 sps:$4 sm:$0xff]  }
 0x9c6   : > { %5678 = vmatmul.mubr.bf16.gmra.mrb[132].mxu0 %v15885_v6  ;;  %v15932_v6 = vld [vmem:[%s20215_s28 + $0x194] ss:$8 sps:$4 sm:$0xff]  }
 0x9c7   : > { %5685 = vmatprep.mubr.bf16.mxu0 %v15886_v32  ;;  %v15933_v32 = vld [vmem:[%s20215_s28 + $0x190] ss:$8 sps:$4 sm:$0xff]  }
 0x9ce   : > { %5686 = vmatmul.mubr.bf16.gmra.mrb[136].mxu0 %v15887_v49  ;;  %v15934_v49 = vld [vmem:[%s20215_s28 + $0x1a4] ss:$8 sps:$4 sm:$0xff]  }
 0x9cf   : > { %5693 = vmatprep.mubr.bf16.mxu0 %v15888_v28  ;;  %v15442_v28 = vld [vmem:[%s20182_s10 + $0x20] sm:$0xff]  }
 0x9d0   : > { %14033 = vmatprep.subr.bf16.mxu1 %v15442_v28 }
 0x9d1   : > { %14034 = vmatpush3.bf16.msra.mxu1 %v15442_v28  ;;  %v15948_v28 = vld [vmem:[%s20215_s28 + $0x214] ss:$8 sps:$4 sm:$0xff]  }
 0x9d6   : > { %5694 = vmatmul.mubr.bf16.gmra.mrb[140].mxu0 %v15889_v38  ;;  %v15935_v38 = vld [vmem:[%s20215_s28 + $0x1a0] ss:$8 sps:$4 sm:$0xff]  }
 0x9d7   : > { %5701 = vmatprep.mubr.bf16.mxu0 %v15890_v61  ;;  %v15936_v61 = vld [vmem:[%s20215_s28 + $0x1b4] ss:$8 sps:$4 sm:$0xff]  }
 0x9de   : > { %5702 = vmatmul.mubr.bf16.gmra.mrb[144].mxu0 %v15891_v45  ;;  %v15443_v45 = vld [vmem:[%s20182_s10 + $0x28] sm:$0xff]  }
 0x9df   : > { %5709 = vmatprep.mubr.bf16.mxu0 %v15892_v15  ;;  %14035 = vmatprep.subr.bf16.mxu1 %v15443_v45 }
 0x9e0   : > { %14036 = vmatpush3.bf16.msra.mxu1 %v15443_v45 }
 0x9e6   : > { %5710 = vmatmul.mubr.bf16.gmra.mrb[148].mxu0 %v15893_v9 }
 0x9e7   : > { %5717 = vmatprep.mubr.bf16.mxu0 %v15894_v1 }
 0x9ee   : > { %5718 = vmatmul.mubr.bf16.gmra.mrb[152].mxu0 %v15895_v22 }
 0x9ef   : > { %5725 = vmatprep.mubr.bf16.mxu0 %v15896_v40 }
 0x9f6   : > { %5726 = vmatmul.mubr.bf16.gmra.mrb[156].mxu0 %v15897_v55  ;;  %v15444_v55 = vld [vmem:[%s20182_s10 + $0x30] sm:$0xff]  }
 0x9f7   : > { %5733 = vmatprep.mubr.bf16.mxu0 %v15898_v21  ;;  %v15937_v21 = vld [vmem:[%s20215_s28 + $0x1b0] ss:$8 sps:$4 sm:$0xff]   ;;  %14037 = vmatprep.subr.bf16.mxu1 %v15444_v55 }
 0x9f8   : > { %14038 = vmatpush3.bf16.msra.mxu1 %v15444_v55  ;;  %v15949_v55 = vld [vmem:[%s20215_s28 + $0x210] ss:$8 sps:$4 sm:$0xff]  }
 0x9fe   : > { %5734 = vmatmul.mubr.bf16.gmra.mrb[160].mxu0 %v15899_v47  ;;  %v15938_v47 = vld [vmem:[%s20215_s28 + $0x1c4] ss:$8 sps:$4 sm:$0xff]  }
 0x9ff   : > { %5741 = vmatprep.mubr.bf16.mxu0 %v15900_v56  ;;  %v15445_v56 = vld [vmem:[%s20182_s10 + $0x38] sm:$0xff]  }
 0xa00   : > { %14039 = vmatprep.subr.bf16.mxu1 %v15445_v56 }
 0xa01   : > { %14040 = vmatpush3.bf16.msra.mxu1 %v15445_v56 }
 0xa06   : > { %5742 = vmatmul.mubr.bf16.gmra.mrb[164].mxu0 %v15901_v8 }
 0xa07   : > { %5749 = vmatprep.mubr.bf16.mxu0 %v15902_v37 }
 0xa0e   : > { %5750 = vmatmul.mubr.bf16.gmra.mrb[168].mxu0 %v15903_v36 }
 0xa0f   : > { %5757 = vmatprep.mubr.bf16.mxu0 %v15904_v60 }
 0xa16   : > { %5758 = vmatmul.mubr.bf16.gmra.mrb[172].mxu0 %v15905_v29 }
 0xa17   : > { %5765 = vmatprep.mubr.bf16.mxu0 %v15906_v13  ;;  %v15939_v13 = vld [vmem:[%s20215_s28 + $0x1c0] ss:$8 sps:$4 sm:$0xff]  }
 0xa1e   : > { %5766 = vmatmul.mubr.bf16.gmra.mrb[176].mxu0 %v15907_v20  ;;  %v15940_v20 = vld [vmem:[%s20215_s28 + $0x1d4] ss:$8 sps:$4 sm:$0xff]  }
 0xa1f   : > { %5773 = vmatprep.mubr.bf16.mxu0 %v15908_v48 }
 0xa26   : > { %5774 = vmatmul.mubr.bf16.gmra.mrb[180].mxu0 %v15909_v39 }
 0xa27   : > { %5781 = vmatprep.mubr.bf16.mxu0 %v15910_v41 }
 0xa2e   : > { %5782 = vmatmul.mubr.bf16.gmra.mrb[184].mxu0 %v15911_v31 }
 0xa2f   : > { %5789 = vmatprep.mubr.bf16.mxu0 %v15912_v7 }
 0xa36   : > { %5790 = vmatmul.mubr.bf16.gmra.mrb[188].mxu0 %v15913_v44  ;;  %v15941_v44 = vld [vmem:[%s20215_s28 + $0x1d0] ss:$8 sps:$4 sm:$0xff]  }
 0xa37   : > { %5797 = vmatprep.mubr.bf16.mxu0 %v15914_v2  ;;  %v15942_v2 = vld [vmem:[%s20215_s28 + $0x1e4] ss:$8 sps:$4 sm:$0xff]  }
 0xa3e   : > { %5798 = vmatmul.mubr.bf16.gmra.mrb[192].mxu0 %v15915_v43 }
 0xa3f   : > { %5805 = vmatprep.mubr.bf16.mxu0 %v15916_v35 }
 0xa46   : > { %5806 = vmatmul.mubr.bf16.gmra.mrb[196].mxu0 %v15917_v52 }
 0xa47   : > { %5813 = vmatprep.mubr.bf16.mxu0 %v15918_v0 }
 0xa4e   : > { %5814 = vmatmul.mubr.bf16.gmra.mrb[200].mxu0 %v15919_v58 }
 0xa4f   : > { %5821 = vmatprep.mubr.bf16.mxu0 %v15920_v54  ;;  %v15943_v54 = vld [vmem:[%s20215_s28 + $0x1e0] ss:$8 sps:$4 sm:$0xff]  }
 0xa56   : > { %5822 = vmatmul.mubr.bf16.gmra.mrb[204].mxu0 %v15921_v62  ;;  %v15944_v62 = vld [vmem:[%s20215_s28 + $0x1f4] ss:$8 sps:$4 sm:$0xff]  }
 0xa57   : > { %5829 = vmatprep.mubr.bf16.mxu0 %v15922_v18 }
 0xa5e   : > { %5830 = vmatmul.mubr.bf16.gmra.mrb[208].mxu0 %v15923_v3 }
 0xa5f   : > { %5837 = vmatprep.mubr.bf16.mxu0 %v15924_v10 }
 0xa66   : > { %5838 = vmatmul.mubr.bf16.gmra.mrb[212].mxu0 %v15925_v59 }
 0xa67   : > { %5845 = vmatprep.mubr.bf16.mxu0 %v15926_v50 }
 0xa6e   : > { %5846 = vmatmul.mubr.bf16.gmra.mrb[216].mxu0 %v15927_v5  ;;  %v15945_v5 = vld [vmem:[%s20215_s28 + $0x1f0] ss:$8 sps:$4 sm:$0xff]  }
 0xa6f   : > { %5853 = vmatprep.mubr.bf16.mxu0 %v15928_v4  ;;  %v15946_v4 = vld [vmem:[%s20215_s28 + $0x204] ss:$8 sps:$4 sm:$0xff]  }
 0xa76   : > { %5854 = vmatmul.mubr.bf16.gmra.mrb[220].mxu0 %v15929_v11 }
 0xa77   : > { %5861 = vmatprep.mubr.bf16.mxu0 %v15930_v26 }
 0xa7e   : > { %5862 = vmatmul.mubr.bf16.gmra.mrb[224].mxu0 %v15931_v23 }
 0xa7f   : > { %5869 = vmatprep.mubr.bf16.mxu0 %v15932_v6 }
 0xa86   : > { %5870 = vmatmul.mubr.bf16.gmra.mrb[228].mxu0 %v15933_v32 }
 0xa87   : > { %5877 = vmatprep.mubr.bf16.mxu0 %v15934_v49  ;;  %v15947_v49 = vld [vmem:[%s20215_s28 + $0x200] ss:$8 sps:$4 sm:$0xff]  }
 0xa8e   : > { %5878 = vmatmul.mubr.bf16.gmra.mrb[232].mxu0 %v15935_v38 }
 0xa8f   : > { %5885 = vmatprep.mubr.bf16.mxu0 %v15936_v61 }
 0xa91   : > { %v17988_v15 = vpop.f32.mrb[128].mxu0 }
 0xa92   : > { %v5673_v9 = vpop.f32.mrb[129].mxu0 }
 0xa93   : > { %v17990_v1 = vpop.f32.mrb[130].mxu0 }
 0xa94   : > { %v5676_v40 = vpop.f32.mrb[131].mxu0 }
 0xa96   : > { %5886 = vmatmul.mubr.bf16.gmra.mrb[236].mxu0 %v15937_v21  ;;  %v15950_v21 = vld [vmem:[%s20215_s28 + $0x224] ss:$8 sps:$4 sm:$0xff]  }
 0xa97   : > { %5893 = vmatprep.mubr.bf16.mxu0 %v15938_v47 }
 0xa99   : > { %v18006_v8 = vpop.f32.mrb[132].mxu0 }
 0xa9a   : > { %v5681_v37 = vpop.f32.mrb[133].mxu0 }
 0xa9b   : > { %v18008_v36 = vpop.f32.mrb[134].mxu0 }
 0xa9c   : > { %v5684_v29 = vpop.f32.mrb[135].mxu0 }
 0xa9e   : > { %5894 = vmatmul.mubr.bf16.gmra.mrb[240].mxu0 %v15939_v13 }
 0xa9f   : > { %5901 = vmatprep.mubr.bf16.mxu0 %v15940_v20  ;;  %v15951_v20 = vld [vmem:[%s20215_s28 + $0x220] ss:$8 sps:$4 sm:$0xff]  }
 0xaa1   : > { %v18018_v48 = vpop.f32.mrb[136].mxu0 }
 0xaa2   : > { %v5689_v39 = vpop.f32.mrb[137].mxu0 }
 0xaa3   : > { %v18020_v41 = vpop.f32.mrb[138].mxu0  ;;  %v15952_v39 = vld [vmem:[%s20215_s28 + $0x234] ss:$8 sps:$4 sm:$0xff]  }
 0xaa4   : > { %v5692_v7 = vpop.f32.mrb[139].mxu0 }
 0xaa6   : > { %5902 = vmatmul.mubr.bf16.gmra.mrb[244].mxu0 %v15941_v44 }
 0xaa7   : > { %5909 = vmatprep.mubr.bf16.mxu0 %v15942_v2 }
 0xaa9   : > { %v18030_v43 = vpop.f32.mrb[140].mxu0 }
 0xaaa   : > { %v5697_v35 = vpop.f32.mrb[141].mxu0 }
 0xaab   : > { %v18032_v52 = vpop.f32.mrb[142].mxu0  ;;  %v15967_v35 = vld [vmem:[%s20215_s28 + $0x2a0] ss:$8 sps:$4 sm:$0xff]  }
 0xaac   : > { %v5700_v58 = vpop.f32.mrb[143].mxu0 }
 0xaae   : > { %5910 = vmatmul.mubr.bf16.gmra.mrb[248].mxu0 %v15943_v54  ;;  %v15953_v54 = vld [vmem:[%s20215_s28 + $0x230] ss:$8 sps:$4 sm:$0xff]  }
 0xaaf   : > { %5917 = vmatprep.mubr.bf16.mxu0 %v15944_v62  ;;  %v15954_v62 = vld [vmem:[%s20215_s28 + $0x244] ss:$8 sps:$4 sm:$0xff]  }
 0xab1   : > { %v18042_v18 = vpop.f32.mrb[144].mxu0 }
 0xab2   : > { %v5705_v3 = vpop.f32.mrb[145].mxu0 }
 0xab3   : > { %v18044_v10 = vpop.f32.mrb[146].mxu0 }
 0xab4   : > { %v5708_v50 = vpop.f32.mrb[147].mxu0 }
 0xab6   : > { %5918 = vmatmul.mubr.bf16.gmra.mrb[252].mxu0 %v15945_v5 }
 0xab7   : > { %5925 = vmatprep.mubr.bf16.mxu0 %v15946_v4 }
 0xab9   : > { %v18054_v11 = vpop.f32.mrb[148].mxu0 }
 0xaba   : > { %v5713_v26 = vpop.f32.mrb[149].mxu0 }
 0xabb   : > { %v18056_v23 = vpop.f32.mrb[150].mxu0 }
 0xabc   : > { %v5716_v32 = vpop.f32.mrb[151].mxu0 }
 0xabd   : > { %v15955_v32 = vld [vmem:[%s20215_s28 + $0x240] ss:$8 sps:$4 sm:$0xff]  }
 0xabe   : > { %5926 = vmatmul.mubr.bf16.gmra.mrb[0].mxu0 %v15947_v49  ;;  %v15956_v49 = vld [vmem:[%s20215_s28 + $0x254] ss:$8 sps:$4 sm:$0xff]  }
 0xabf   : > { %5933 = vmatprep.mubr.bf16.mxu0 %v15948_v28 }
 0xac1   : > { %v18066_v38 = vpop.f32.mrb[152].mxu0 }
 0xac2   : > { %v5721_v61 = vpop.f32.mrb[153].mxu0 }
 0xac3   : > { %v18068_v45 = vpop.f32.mrb[154].mxu0 }
 0xac4   : > { %v5724_v40 = vpop.f32.mrb[155].mxu0 }
 0xac6   : > { %5934 = vmatmul.mubr.bf16.gmra.mrb[4].mxu0 %v15949_v55 }
 0xac7   : > { %5941 = vmatprep.mubr.bf16.mxu0 %v15950_v21 }
 0xac9   : > { %v18078_v47 = vpop.f32.mrb[156].mxu0 }
 0xaca   : > { %v5729_v56 = vpop.f32.mrb[157].mxu0 }
 0xacb   : > { %v18080_v37 = vpop.f32.mrb[158].mxu0  ;;  %v15957_v56 = vld [vmem:[%s20215_s28 + $0x250] ss:$8 sps:$4 sm:$0xff]  }
 0xacc   : > { %v5732_v13 = vpop.f32.mrb[159].mxu0 }
 0xacd   : > { %v15958_v13 = vld [vmem:[%s20215_s28 + $0x264] ss:$8 sps:$4 sm:$0xff]  }
 0xace   : > { %5942 = vmatmul.mubr.bf16.gmra.mrb[8].mxu0 %v15951_v20 }
 0xacf   : > { %5949 = vmatprep.mubr.bf16.mxu0 %v15952_v39 }
 0xad1   : > { %v18090_v7 = vpop.f32.mrb[160].mxu0 }
 0xad2   : > { %v5737_v44 = vpop.f32.mrb[161].mxu0 }
 0xad3   : > { %v18092_v2 = vpop.f32.mrb[162].mxu0 }
 0xad4   : > { %v5740_v58 = vpop.f32.mrb[163].mxu0 }
 0xad6   : > { %5950 = vmatmul.mubr.bf16.gmra.mrb[12].mxu0 %v15953_v54 }
 0xad7   : > { %5957 = vmatprep.mubr.bf16.mxu0 %v15954_v62  ;;  %v15959_v62 = vld [vmem:[%s20215_s28 + $0x260] ss:$8 sps:$4 sm:$0xff]  }
 0xad9   : > { %v18102_v3 = vpop.f32.mrb[164].mxu0 }
 0xada   : > { %v5745_v50 = vpop.f32.mrb[165].mxu0 }
 0xadb   : > { %v18104_v5 = vpop.f32.mrb[166].mxu0  ;;  %v15960_v50 = vld [vmem:[%s20215_s28 + $0x274] ss:$8 sps:$4 sm:$0xff]  }
 0xadc   : > { %v5748_v26 = vpop.f32.mrb[167].mxu0 }
 0xade   : > { %5958 = vmatmul.mubr.bf16.gmra.mrb[16].mxu0 %v15955_v32 }
 0xadf   : > { %5965 = vmatprep.mubr.bf16.mxu0 %v15956_v49 }
 0xae1   : > { %v18114_v28 = vpop.f32.mrb[168].mxu0 }
 0xae2   : > { %v5753_v61 = vpop.f32.mrb[169].mxu0 }
 0xae3   : > { %v18116_v40 = vpop.f32.mrb[170].mxu0 }
 0xae4   : > { %v5756_v21 = vpop.f32.mrb[171].mxu0 }
 0xae6   : > { %5966 = vmatmul.mubr.bf16.gmra.mrb[20].mxu0 %v15957_v56  ;;  %v15961_v56 = vld [vmem:[%s20215_s28 + $0x270] ss:$8 sps:$4 sm:$0xff]  }
 0xae7   : > { %5973 = vmatprep.mubr.bf16.mxu0 %v15958_v13  ;;  %v15962_v13 = vld [vmem:[%s20215_s28 + $0x284] ss:$8 sps:$4 sm:$0xff]  }
 0xae9   : > { %v18126_v20 = vpop.f32.mrb[172].mxu0 }
 0xaea   : > { %v5761_v39 = vpop.f32.mrb[173].mxu0 }
 0xaeb   : > { %v18128_v44 = vpop.f32.mrb[174].mxu0 }
 0xaec   : > { %v5764_v54 = vpop.f32.mrb[175].mxu0 }
 0xaee   : > { %5974 = vmatmul.mubr.bf16.gmra.mrb[24].mxu0 %v15959_v62 }
 0xaef   : > { %5981 = vmatprep.mubr.bf16.mxu0 %v15960_v50 }
 0xaf1   : > { %v18138_v26 = vpop.f32.mrb[176].mxu0 }
 0xaf2   : > { %v5769_v32 = vpop.f32.mrb[177].mxu0 }
 0xaf3   : > { %v18140_v49 = vpop.f32.mrb[178].mxu0 }
 0xaf4   : > { %v5772_v21 = vpop.f32.mrb[179].mxu0 }
 0xaf5   : > { %v15963_v21 = vld [vmem:[%s20215_s28 + $0x280] ss:$8 sps:$4 sm:$0xff]  }
 0xaf6   : > { %5982 = vmatmul.mubr.bf16.gmra.mrb[28].mxu0 %v15961_v56  ;;  %v15964_v56 = vld [vmem:[%s20215_s28 + $0x294] ss:$8 sps:$4 sm:$0xff]  }
 0xaf7   : > { %5989 = vmatprep.mubr.bf16.mxu0 %v15962_v13 }
 0xaf9   : > { %v18150_v39 = vpop.f32.mrb[180].mxu0 }
 0xafa   : > { %v5777_v54 = vpop.f32.mrb[181].mxu0 }
 0xafb   : > { %v18152_v62 = vpop.f32.mrb[182].mxu0 }
 0xafc   : > { %v5780_v32 = vpop.f32.mrb[183].mxu0 }
 0xafd   : > { %v15446_v32 = vld [vmem:[%s20182_s10] sm:$0xff]  }
 0xafe   : > { %5990 = vmatmul.mubr.bf16.gmra.mrb[32].mxu0 %v15963_v21  ;;  %v15965_v21 = vld [vmem:[%s20215_s28 + $0x290] ss:$8 sps:$4 sm:$0xff]   ;;  %14073 = vmatprep.subr.bf16.mxu1 %v15446_v32 }
 0xaff   : > { %5997 = vmatprep.mubr.bf16.mxu0 %v15964_v56 }
 0xb01   : > { %v18162_v13 = vpop.f32.mrb[184].mxu0 }
 0xb02   : > { %v5785_v61 = vpop.f32.mrb[185].mxu0 }
 0xb03   : > { %v18164_v54 = vpop.f32.mrb[186].mxu0  ;;  %v15966_v61 = vld [vmem:[%s20215_s28 + $0x2a4] ss:$8 sps:$4 sm:$0xff]  }
 0xb04   : > { %v5788_v50 = vpop.f32.mrb[187].mxu0 }
 0xb05   : > { %v15969_v50 = vld [vmem:[%s20215_s28 + $0x2b0] ss:$8 sps:$4 sm:$0xff]  }
 0xb06   : > { %5998 = vmatmul.mubr.bf16.gmra.mrb[36].mxu0 %v15965_v21  ;;  %v15968_v21 = vld [vmem:[%s20215_s28 + $0x2b4] ss:$8 sps:$4 sm:$0xff]  }
 0xb07   : > { %6005 = vmatprep.mubr.bf16.mxu0 %v15966_v61 }
 0xb09   : > { %v18177_v56 = vpop.f32.mrb[188].mxu0 }
 0xb0a   : > { %v5793_v55 = vpop.f32.mrb[189].mxu0 }
 0xb0b   : > { %v18179_v58 = vpop.f32.mrb[190].mxu0 }
 0xb0c   : > { %v5796_v4 = vpop.f32.mrb[191].mxu0 }
 0xb0e   : > { %6006 = vmatmul.mubr.bf16.gmra.mrb[40].mxu0 %v15967_v35  ;;  %v15970_v35 = vld [vmem:[%s20215_s28 + $0x2c4] ss:$8 sps:$4 sm:$0xff]  }
 0xb0f   : > { %6013 = vmatprep.mubr.bf16.mxu0 %v15968_v21 }
 0xb11   : > { %v5799_v61 = vpop.f32.mrb[192].mxu0 }
 0xb12   : > { %v5801_v29 = vpop.f32.mrb[193].mxu0 }
 0xb13   : > { %v5802_v9 = vpop.f32.mrb[194].mxu0 }
 0xb14   : > { %v6078_v55 = vpack.c.bf16 %v5802_v9, %v5799_v61  ;;  %v5804_v6 = vpop.f32.mrb[195].mxu0  ;;  %v15971_v9 = vld [vmem:[%s20215_s28 + $0x2c0] ss:$8 sps:$4 sm:$0xff]  }
 0xb15   : > { %v15447_v6 = vld [vmem:[%s20182_s10 + $0x8] sm:$0xff]  }
 0xb16   : > { %6014 = vmatmul.mubr.bf16.gmra.mrb[44].mxu0 %v15969_v50  ;;  %14041 = vmatprep.mubr.msk.bf16.mxu1 %vm2599_vm2, %v6078_v55  ;;  %v15972_v50 = vld [vmem:[%s20215_s28 + $0x2d4] ss:$8 sps:$4 sm:$0xff]  }
 0xb17   : > { %6021 = vmatprep.mubr.bf16.mxu0 %v15970_v35 }
 0xb19   : > { %v5807_v4 = vpop.f32.mrb[196].mxu0 }
 0xb1a   : > { %v5809_v59 = vpop.f32.mrb[197].mxu0 }
 0xb1b   : > { %v5810_v21 = vpop.f32.mrb[198].mxu0  ;;  %v15448_v59 = vld [vmem:[%s20182_s10 + $0x10] sm:$0xff]  }
 0xb1c   : > { %v6079_v0 = vpack.c.bf16 %v5810_v21, %v5807_v4  ;;  %v5812_v29 = vpop.f32.mrb[199].mxu0 }
 0xb1d   : > { %v15974_v29 = vld [vmem:[%s20215_s28 + $0x2e4] ss:$8 sps:$4 sm:$0xff]  }
 0xb1e   : > { %6022 = vmatmul.mubr.bf16.gmra.mrb[48].mxu0 %v15971_v9  ;;  %14042 = vmatmul.mubr.msk.bf16.vlgmr.msra.gmra.mrb[128].mxu1 %vm2599_vm2, %v6079_v0  ;;  %v15449_v0 = vld [vmem:[%s20182_s10 + $0x18] sm:$0xff]  }
 0xb1f   : > { %6029 = vmatprep.mubr.bf16.mxu0 %v15972_v50  ;;  %14074 = vmatpush3.bf16.msra.mxu1 %v15446_v32  ;;  %v15973_v32 = vld [vmem:[%s20215_s28 + $0x2d0] ss:$8 sps:$4 sm:$0xff]  }
 0xb20   : > { %14075 = vmatprep.subr.bf16.mxu1 %v15447_v6 }
 0xb21   : > { %v5815_v61 = vpop.f32.mrb[200].mxu0 }
 0xb22   : > { %v5817_v55 = vpop.f32.mrb[201].mxu0 }
 0xb23   : > { %v5818_v35 = vpop.f32.mrb[202].mxu0  ;;  %14076 = vmatpush3.bf16.msra.mxu1 %v15447_v6 }
 0xb24   : > { %v6080_v4 = vpack.c.bf16 %v5818_v35, %v5815_v61  ;;  %v5820_v21 = vpop.f32.mrb[203].mxu0  ;;  %14077 = vmatprep.subr.bf16.mxu1 %v15448_v59  ;;  %v15975_v35 = vld [vmem:[%s20215_s28 + $0x2e0] ss:$8 sps:$4 sm:$0xff]  }
 0xb26   : > { %6030 = vmatmul.mubr.bf16.gmra.mrb[52].mxu0 %v15973_v32  ;;  %14045 = vmatprep.mubr.msk.bf16.mxu1 %vm2599_vm2, %v6080_v4  ;;  %v15976_v4 = vld [vmem:[%s20215_s28 + $0x2f4] ss:$8 sps:$4 sm:$0xff]  }
 0xb27   : > { %6037 = vmatprep.mubr.bf16.mxu0 %v15974_v29  ;;  %14078 = vmatpush3.bf16.msra.mxu1 %v15448_v59 }
 0xb28   : > { %14079 = vmatprep.subr.bf16.mxu1 %v15449_v0 }
 0xb29   : > { %v5823_v6 = vpop.f32.mrb[204].mxu0 }
 0xb2a   : > { %v5825_v9 = vpop.f32.mrb[205].mxu0 }
 0xb2b   : > { %v5826_v50 = vpop.f32.mrb[206].mxu0  ;;  %14080 = vmatpush3.bf16.msra.mxu1 %v15449_v0  ;;  %v15977_v0 = vld [vmem:[%s20215_s28 + $0x2f0] ss:$8 sps:$4 sm:$0xff]  }
 0xb2c   : > { %v6081_v61 = vpack.c.bf16 %v5826_v50, %v5823_v6  ;;  %v5828_v55 = vpop.f32.mrb[207].mxu0  ;;  %v15978_v6 = vld [vmem:[%s20215_s28 + $0x4] ss:$8 sps:$4 sm:$0xff]  }
 0xb2e   : > { %6038 = vmatmul.mubr.bf16.gmra.mrb[56].mxu0 %v15975_v35  ;;  %14046 = vmatmul.mubr.msk.bf16.gmra.mrb[132].mxu1 %vm2599_vm2, %v6081_v61 }
 0xb2f   : > { %6045 = vmatprep.mubr.bf16.mxu0 %v15976_v4 }
 0xb31   : > { %v5831_v59 = vpop.f32.mrb[208].mxu0 }
 0xb32   : > { %v5833_v21 = vpop.f32.mrb[209].mxu0 }
 0xb33   : > { %v5834_v32 = vpop.f32.mrb[210].mxu0 }
 0xb34   : > { %v6082_v29 = vpack.c.bf16 %v5834_v32, %v5831_v59  ;;  %v5836_v9 = vpop.f32.mrb[211].mxu0 }
 0xb36   : > { %6046 = vmatmul.mubr.bf16.gmra.mrb[60].mxu0 %v15977_v0  ;;  %14049 = vmatprep.mubr.msk.bf16.mxu1 %vm2599_vm2, %v6082_v29  ;;  %v18237_v29 = vld [vmem:[%s20182_s10 + $0x40] sm:$0xff]  }
 0xb37   : > { %7751 = vmatprep.mubr.bf16.mxu0 %v15978_v6  ;;  %14113 = vmatprep.subr.bf16.mxu1 %v18237_v29 }
 0xb39   : > { %v5839_v50 = vpop.f32.mrb[212].mxu0 }
 0xb3a   : > { %v5841_v61 = vpop.f32.mrb[213].mxu0 }
 0xb3b   : > { %v5842_v55 = vpop.f32.mrb[214].mxu0 }
 0xb3c   : > { %v6083_v35 = vpack.c.bf16 %v5842_v55, %v5839_v50  ;;  %v5844_v4 = vpop.f32.mrb[215].mxu0 }
 0xb3e   : > { %14050 = vmatmul.mubr.msk.bf16.gmra.mrb[136].mxu1 %vm2599_vm2, %v6083_v35 }
 0xb41   : > { %v5847_v59 = vpop.f32.mrb[216].mxu0 }
 0xb42   : > { %v5849_v21 = vpop.f32.mrb[217].mxu0 }
 0xb43   : > { %v5850_v32 = vpop.f32.mrb[218].mxu0 }
 0xb44   : > { %v6084_v9 = vpack.c.bf16 %v5850_v32, %v5847_v59  ;;  %v5852_v31 = vpop.f32.mrb[219].mxu0 }
 0xb46   : > { %14053 = vmatprep.mubr.msk.bf16.mxu1 %vm2599_vm2, %v6084_v9 }
 0xb49   : > { %v5855_v0 = vpop.f32.mrb[220].mxu0 }
 0xb4a   : > { %v5857_v6 = vpop.f32.mrb[221].mxu0 }
 0xb4b   : > { %v5858_v50 = vpop.f32.mrb[222].mxu0 }
 0xb4c   : > { %v6085_v61 = vpack.c.bf16 %v5858_v50, %v5855_v0  ;;  %v5860_v55 = vpop.f32.mrb[223].mxu0 }
 0xb4e   : > { %14054 = vmatmul.mubr.msk.bf16.gmra.mrb[140].mxu1 %vm2599_vm2, %v6085_v61 }
 0xb51   : > { %v5863_v35 = vpop.f32.mrb[224].mxu0 }
 0xb52   : > { %v5865_v4 = vpop.f32.mrb[225].mxu0 }
 0xb53   : > { %v5866_v59 = vpop.f32.mrb[226].mxu0 }
 0xb54   : > { %v6086_v31 = vpack.c.bf16 %v5866_v59, %v5863_v35  ;;  %v5868_v21 = vpop.f32.mrb[227].mxu0 }
 0xb56   : > { %14057 = vmatprep.mubr.msk.bf16.mxu1 %vm2599_vm2, %v6086_v31 }
 0xb59   : > { %v5871_v32 = vpop.f32.mrb[228].mxu0 }
 0xb5a   : > { %v5873_v60 = vpop.f32.mrb[229].mxu0 }
 0xb5b   : > { %v5874_v22 = vpop.f32.mrb[230].mxu0 }
 0xb5c   : > { %v6087_v9 = vpack.c.bf16 %v5874_v22, %v5871_v32  ;;  %v5876_v46 = vpop.f32.mrb[231].mxu0 }
 0xb5e   : > { %14058 = vmatmul.mubr.msk.bf16.gmra.mrb[144].mxu1 %vm2599_vm2, %v6087_v9 }
 0xb61   : > { %v5879_v6 = vpop.f32.mrb[232].mxu0 }
 0xb62   : > { %v5881_v24 = vpop.f32.mrb[233].mxu0 }
 0xb63   : > { %v5882_v0 = vpop.f32.mrb[234].mxu0 }
 0xb64   : > { %v6088_v50 = vpack.c.bf16 %v5882_v0, %v5879_v6  ;;  %v5884_v55 = vpop.f32.mrb[235].mxu0 }
 0xb66   : > { %14061 = vmatprep.mubr.msk.bf16.mxu1 %vm2599_vm2, %v6088_v50 }
 0xb69   : > { %v5887_v61 = vpop.f32.mrb[236].mxu0 }
 0xb6a   : > { %v5889_v4 = vpop.f32.mrb[237].mxu0 }
 0xb6b   : > { %v5890_v35 = vpop.f32.mrb[238].mxu0 }
 0xb6c   : > { %v6089_v59 = vpack.c.bf16 %v5890_v35, %v5887_v61  ;;  %v5892_v21 = vpop.f32.mrb[239].mxu0 }
 0xb6e   : > { %14062 = vmatmul.mubr.msk.bf16.gmra.mrb[148].mxu1 %vm2599_vm2, %v6089_v59 }
 0xb71   : > { %v5895_v60 = vpop.f32.mrb[240].mxu0 }
 0xb72   : > { %v5897_v31 = vpop.f32.mrb[241].mxu0 }
 0xb73   : > { %v5898_v22 = vpop.f32.mrb[242].mxu0 }
 0xb74   : > { %v6090_v46 = vpack.c.bf16 %v5898_v22, %v5895_v60  ;;  %v5900_v32 = vpop.f32.mrb[243].mxu0 }
 0xb76   : > { %14065 = vmatprep.mubr.msk.bf16.mxu1 %vm2599_vm2, %v6090_v46  ;;  %v20245_v46 = vpack.c.bf16 %v17990_v1, %v17988_v15  ;;  %v20247_v15 = vpack.c.bf16 %v18020_v41, %v18018_v48  ;;  %v15452_v1 = vld [vmem:[%s20182_s10 + $0x50] sm:$0xff]   ;;  %v15453_v48 = vld [vmem:[%s20182_s10 + $0x58] sm:$0xff]   ;;  %v20248_v41 = vpack.c.bf16 %v18032_v52, %v18030_v43  ;;  %v20250_v43 = vpack.c.bf16 %v18056_v23, %v18054_v11 }
 0xb77   : > { %v20251_v52 = vpack.c.bf16 %v18068_v45, %v18066_v38  ;;  %v20253_v11 = vpack.c.bf16 %v18092_v2, %v18090_v7 }
 0xb79   : > { %v5903_v24 = vpop.f32.mrb[244].mxu0 }
 0xb7a   : > { %v5905_v9 = vpop.f32.mrb[245].mxu0 }
 0xb7b   : > { %v5906_v6 = vpop.f32.mrb[246].mxu0 }
 0xb7c   : > { %v6091_v0 = vpack.c.bf16 %v5906_v6, %v5903_v24  ;;  %v5908_v55 = vpop.f32.mrb[247].mxu0 }
 0xb7d   : > { %v15451_v55 = vld [vmem:[%s20182_s10 + $0x48] sm:$0xff]  }
 0xb7e   : > { %14066 = vmatmul.mubr.msk.bf16.gmra.mrb[152].mxu1 %vm2599_vm2, %v6091_v0 }
 0xb81   : > { %v5911_v50 = vpop.f32.mrb[248].mxu0 }
 0xb82   : > { %v5913_v4 = vpop.f32.mrb[249].mxu0 }
 0xb83   : > { %v5914_v61 = vpop.f32.mrb[250].mxu0  ;;  %v20246_v4 = vpack.c.bf16 %v18008_v36, %v18006_v8 }
 0xb84   : > { %v6092_v35 = vpack.c.bf16 %v5914_v61, %v5911_v50  ;;  %v5916_v21 = vpop.f32.mrb[251].mxu0 }
 0xb86   : > { %14069 = vmatprep.mubr.msk.bf16.mxu1 %vm2599_vm2, %v6092_v35 }
 0xb89   : > { %v5919_v59 = vpop.f32.mrb[252].mxu0 }
 0xb8a   : > { %v5921_v31 = vpop.f32.mrb[253].mxu0 }
 0xb8b   : > { %v5922_v60 = vpop.f32.mrb[254].mxu0 }
 0xb8c   : > { %v6093_v22 = vpack.c.bf16 %v5922_v60, %v5919_v59  ;;  %v5924_v32 = vpop.f32.mrb[255].mxu0  ;;  %v15454_v59 = vld [vmem:[%s20183_s11 + $0x20] sm:$0xff]  }
 0xb8e   : > { %14070 = vmatmul.mubr.msk.bf16.gmra.mrb[156].mxu1 %vm2599_vm2, %v6093_v22 }
 0xb8f   : > { %14081 = vmatprep.mubr.msk.bf16.mxu1 %vm2599_vm2, %v20245_v46 }
 0xb91   : > { %v18254_v24 = vpop.f32.mrb[0].mxu0 }
 0xb92   : > { %v5929_v9 = vpop.f32.mrb[1].mxu0 }
 0xb93   : > { %v18256_v6 = vpop.f32.mrb[2].mxu0 }
 0xb94   : > { %v5932_v0 = vpop.f32.mrb[3].mxu0  ;;  %v6569_v50 = vpack.c.bf16 %v18256_v6, %v18254_v24 }
 0xb95   : > { %v20252_v0 = vpack.c.bf16 %v18080_v37, %v18078_v47  ;;  %v20255_v47 = vpack.c.bf16 %v18116_v40, %v18114_v28 }
 0xb96   : > { %14082 = vmatmul.mubr.msk.bf16.vlgmr.msra.gmra.mrb[128].mxu1 %vm2599_vm2, %v20246_v4 }
 0xb97   : > { %14085 = vmatprep.mubr.msk.bf16.mxu1 %vm2599_vm2, %v20247_v15  ;;  %14114 = vmatpush3.bf16.msra.mxu1 %v18237_v29  ;;  %v20249_v29 = vpack.c.bf16 %v18044_v10, %v18042_v18  ;;  %v20254_v15 = vpack.c.bf16 %v18104_v5, %v18102_v3  ;;  %v20257_v3 = vpack.c.bf16 %v18140_v49, %v18138_v26 }
 0xb98   : > { %14115 = vmatprep.subr.bf16.mxu1 %v15451_v55 }
 0xb99   : > { %v18275_v61 = vpop.f32.mrb[4].mxu0 }
 0xb9a   : > { %v5937_v35 = vpop.f32.mrb[5].mxu0 }
 0xb9b   : > { %v5938_v21 = vpop.f32.mrb[6].mxu0  ;;  %14116 = vmatpush3.bf16.msra.mxu1 %v15451_v55  ;;  %v20256_v35 = vpack.c.bf16 %v18128_v44, %v18126_v20  ;;  %v20259_v20 = vpack.c.bf16 %v18164_v54, %v18162_v13  ;;  %v15455_v13 = vld [vmem:[%s20183_s11 + $0x28] sm:$0xff]  }
 0xb9c   : > { %v6570_v8 = vpack.c.bf16 %v5938_v21, %v18275_v61  ;;  %v5940_v36 = vpop.f32.mrb[7].mxu0  ;;  %14117 = vmatprep.subr.bf16.mxu1 %v15452_v1 }
 0xb9e   : > { %14086 = vmatmul.mubr.msk.bf16.gmra.mrb[132].mxu1 %vm2599_vm2, %v20248_v41 }
 0xb9f   : > { %14089 = vmatprep.mubr.msk.bf16.mxu1 %vm2599_vm2, %v20249_v29  ;;  %14118 = vmatpush3.bf16.msra.mxu1 %v15452_v1 }
 0xba0   : > { %14119 = vmatprep.subr.bf16.mxu1 %v15453_v48 }
 0xba1   : > { %v5943_v31 = vpop.f32.mrb[8].mxu0 }
 0xba2   : > { %v5945_v60 = vpop.f32.mrb[9].mxu0 }
 0xba3   : > { %v5946_v22 = vpop.f32.mrb[10].mxu0  ;;  %14120 = vmatpush3.bf16.msra.mxu1 %v15453_v48  ;;  %v20258_v48 = vpack.c.bf16 %v18152_v62, %v18150_v39 }
 0xba4   : > { %v5948_v32 = vpop.f32.mrb[11].mxu0  ;;  %v6571_v46 = vpack.c.bf16 %v5946_v22, %v5943_v31  ;;  %14153 = vmatprep.subr.bf16.mxu1 %v15454_v59  ;;  %v20260_v31 = vpack.c.bf16 %v18179_v58, %v18177_v56 }
 0xba6   : > { %14090 = vmatmul.mubr.msk.bf16.gmra.mrb[136].mxu1 %vm2599_vm2, %v20250_v43 }
 0xba7   : > { %14093 = vmatprep.mubr.msk.bf16.mxu1 %vm2599_vm2, %v20251_v52 }
 0xba9   : > { %v5951_v18 = vpop.f32.mrb[12].mxu0 }
 0xbaa   : > { %v5953_v10 = vpop.f32.mrb[13].mxu0 }
 0xbab   : > { %v5954_v24 = vpop.f32.mrb[14].mxu0 }
 0xbac   : > { %v5956_v9 = vpop.f32.mrb[15].mxu0  ;;  %v6572_v6 = vpack.c.bf16 %v5954_v24, %v5951_v18 }
 0xbae   : > { %14094 = vmatmul.mubr.msk.bf16.gmra.mrb[140].mxu1 %vm2599_vm2, %v20252_v0 }
 0xbaf   : > { %14097 = vmatprep.mubr.msk.bf16.mxu1 %vm2599_vm2, %v20253_v11 }
 0xbb1   : > { %v5959_v23 = vpop.f32.mrb[16].mxu0 }
 0xbb2   : > { %v5961_v55 = vpop.f32.mrb[17].mxu0 }
 0xbb3   : > { %v5962_v38 = vpop.f32.mrb[18].mxu0 }
 0xbb4   : > { %v5964_v45 = vpop.f32.mrb[19].mxu0  ;;  %v6573_v4 = vpack.c.bf16 %v5962_v38, %v5959_v23 }
 0xbb6   : > { %14098 = vmatmul.mubr.msk.bf16.gmra.mrb[144].mxu1 %vm2599_vm2, %v20254_v15 }
 0xbb7   : > { %14101 = vmatprep.mubr.msk.bf16.mxu1 %vm2599_vm2, %v20255_v47 }
 0xbb9   : > { %v5967_v37 = vpop.f32.mrb[20].mxu0 }
 0xbba   : > { %v5969_v1 = vpop.f32.mrb[21].mxu0 }
 0xbbb   : > { %v5970_v7 = vpop.f32.mrb[22].mxu0 }
 0xbbc   : > { %v5972_v2 = vpop.f32.mrb[23].mxu0  ;;  %v6574_v61 = vpack.c.bf16 %v5970_v7, %v5967_v37 }
 0xbbe   : > { %14102 = vmatmul.mubr.msk.bf16.gmra.mrb[148].mxu1 %vm2599_vm2, %v20256_v35 }
 0xbbf   : > { %14105 = vmatprep.mubr.msk.bf16.mxu1 %vm2599_vm2, %v20257_v3 }
 0xbc1   : > { %v5975_v5 = vpop.f32.mrb[24].mxu0 }
 0xbc2   : > { %v5977_v21 = vpop.f32.mrb[25].mxu0 }
 0xbc3   : > { %v5978_v28 = vpop.f32.mrb[26].mxu0 }
 0xbc4   : > { %v5980_v40 = vpop.f32.mrb[27].mxu0  ;;  %v6575_v36 = vpack.c.bf16 %v5978_v28, %v5975_v5 }
 0xbc6   : > { %14106 = vmatmul.mubr.msk.bf16.gmra.mrb[152].mxu1 %vm2599_vm2, %v20258_v48  ;;  %v15456_v48 = vld [vmem:[%s20183_s11 + $0x30] sm:$0xff]  }
 0xbc7   : > { %14109 = vmatprep.mubr.msk.bf16.mxu1 %vm2599_vm2, %v20259_v20  ;;  %v15457_v20 = vld [vmem:[%s20183_s11 + $0x38] sm:$0xff]  }
 0xbc9   : > { %v5983_v44 = vpop.f32.mrb[28].mxu0 }
 0xbca   : > { %v5985_v41 = vpop.f32.mrb[29].mxu0 }
 0xbcb   : > { %v5986_v26 = vpop.f32.mrb[30].mxu0 }
 0xbcc   : > { %v5988_v49 = vpop.f32.mrb[31].mxu0  ;;  %v6576_v29 = vpack.c.bf16 %v5986_v26, %v5983_v44  ;;  %v15458_v44 = vld [vmem:[%s20183_s11] sm:$0xff]  }
 0xbce   : > { %14110 = vmatmul.mubr.msk.bf16.gmra.mrb[156].mxu1 %vm2599_vm2, %v20260_v31 }
 0xbcf   : > { %14121 = vmatprep.mubr.msk.bf16.mxu1 %vm2599_vm2, %v6569_v50 }
 0xbd1   : > { %v5991_v39 = vpop.f32.mrb[32].mxu0 }
 0xbd2   : > { %v5993_v62 = vpop.f32.mrb[33].mxu0 }
 0xbd3   : > { %v5994_v60 = vpop.f32.mrb[34].mxu0 }
 0xbd4   : > { %v6577_v22 = vpack.c.bf16 %v5994_v60, %v5991_v39  ;;  %v5996_v32 = vpop.f32.mrb[35].mxu0 }
 0xbd6   : > { %14122 = vmatmul.mubr.msk.bf16.vlgmr.msra.gmra.mrb[128].mxu1 %vm2599_vm2, %v6570_v8 }
 0xbd7   : > { %14125 = vmatprep.mubr.msk.bf16.mxu1 %vm2599_vm2, %v6571_v46  ;;  %14154 = vmatpush3.bf16.msra.mxu1 %v15454_v59 }
 0xbd8   : > { %14155 = vmatprep.subr.bf16.mxu1 %v15455_v13 }
 0xbd9   : > { %v5999_v58 = vpop.f32.mrb[36].mxu0 }
 0xbda   : > { %v6001_v54 = vpop.f32.mrb[37].mxu0 }
 0xbdb   : > { %v6002_v56 = vpop.f32.mrb[38].mxu0  ;;  %14156 = vmatpush3.bf16.msra.mxu1 %v15455_v13  ;;  %v15459_v13 = vld [vmem:[%s20183_s11 + $0x8] sm:$0xff]  }
 0xbdc   : > { %v6578_v50 = vpack.c.bf16 %v6002_v56, %v5999_v58  ;;  %v6004_v43 = vpop.f32.mrb[39].mxu0  ;;  %14157 = vmatprep.subr.bf16.mxu1 %v15456_v48 }
 0xbde   : > { %14126 = vmatmul.mubr.msk.bf16.gmra.mrb[132].mxu1 %vm2599_vm2, %v6572_v6 }
 0xbdf   : > { %14129 = vmatprep.mubr.msk.bf16.mxu1 %vm2599_vm2, %v6573_v4  ;;  %14158 = vmatpush3.bf16.msra.mxu1 %v15456_v48 }
 0xbe0   : > { %14159 = vmatprep.subr.bf16.mxu1 %v15457_v20 }
 0xbe1   : > { %v6007_v52 = vpop.f32.mrb[40].mxu0 }
 0xbe2   : > { %v6009_v18 = vpop.f32.mrb[41].mxu0 }
 0xbe3   : > { %v6010_v10 = vpop.f32.mrb[42].mxu0  ;;  %14160 = vmatpush3.bf16.msra.mxu1 %v15457_v20  ;;  %v15460_v18 = vld [vmem:[%s20183_s11 + $0x10] sm:$0xff]  }
 0xbe4   : > { %v6579_v24 = vpack.c.bf16 %v6010_v10, %v6007_v52  ;;  %v6012_v9 = vpop.f32.mrb[43].mxu0  ;;  %14193 = vmatprep.subr.bf16.mxu1 %v15458_v44 }
 0xbe6   : > { %14130 = vmatmul.mubr.msk.bf16.gmra.mrb[136].mxu1 %vm2599_vm2, %v6574_v61 }
 0xbe7   : > { %14133 = vmatprep.mubr.msk.bf16.mxu1 %vm2599_vm2, %v6575_v36 }
 0xbe9   : > { %v6015_v8 = vpop.f32.mrb[44].mxu0 }
 0xbea   : > { %v6017_v59 = vpop.f32.mrb[45].mxu0 }
 0xbeb   : > { %v6018_v46 = vpop.f32.mrb[46].mxu0  ;;  %v15461_v59 = vld [vmem:[%s20183_s11 + $0x18] sm:$0xff]  }
 0xbec   : > { %v6580_v0 = vpack.c.bf16 %v6018_v46, %v6015_v8  ;;  %v6020_v11 = vpop.f32.mrb[47].mxu0 }
 0xbee   : > { %14134 = vmatmul.mubr.msk.bf16.gmra.mrb[140].mxu1 %vm2599_vm2, %v6576_v29 }
 0xbef   : > { %14137 = vmatprep.mubr.msk.bf16.mxu1 %vm2599_vm2, %v6577_v22 }
 0xbf1   : > { %v6023_v6 = vpop.f32.mrb[48].mxu0 }
 0xbf2   : > { %v6025_v23 = vpop.f32.mrb[49].mxu0 }
 0xbf3   : > { %v6026_v55 = vpop.f32.mrb[50].mxu0 }
 0xbf4   : > { %v6581_v38 = vpack.c.bf16 %v6026_v55, %v6023_v6  ;;  %v6028_v45 = vpop.f32.mrb[51].mxu0 }
 0xbf6   : > { %14138 = vmatmul.mubr.msk.bf16.gmra.mrb[144].mxu1 %vm2599_vm2, %v6578_v50 }
 0xbf7   : > { %14141 = vmatprep.mubr.msk.bf16.mxu1 %vm2599_vm2, %v6579_v24 }
 0xbf9   : > { %v6031_v4 = vpop.f32.mrb[52].mxu0 }
 0xbfa   : > { %v6033_v15 = vpop.f32.mrb[53].mxu0 }
 0xbfb   : > { %v6034_v47 = vpop.f32.mrb[54].mxu0 }
 0xbfc   : > { %v6582_v37 = vpack.c.bf16 %v6034_v47, %v6031_v4  ;;  %v6036_v1 = vpop.f32.mrb[55].mxu0 }
 0xbfe   : > { %14142 = vmatmul.mubr.msk.bf16.gmra.mrb[148].mxu1 %vm2599_vm2, %v6580_v0 }
 0xbff   : > { %14145 = vmatprep.mubr.msk.bf16.mxu1 %vm2599_vm2, %v6581_v38  ;;  %v18392_v38 = vld [vmem:[%s20183_s11 + $0x40] sm:$0xff]  }
 0xc01   : > { %v6039_v7 = vpop.f32.mrb[56].mxu0 }
 0xc02   : > { %v6041_v2 = vpop.f32.mrb[57].mxu0 }
 0xc03   : > { %v6042_v61 = vpop.f32.mrb[58].mxu0 }
 0xc04   : > { %v6583_v35 = vpack.c.bf16 %v6042_v61, %v6039_v7  ;;  %v6044_v3 = vpop.f32.mrb[59].mxu0 }
 0xc06   : > { %14146 = vmatmul.mubr.msk.bf16.gmra.mrb[152].mxu1 %vm2599_vm2, %v6582_v37 }
 0xc07   : > { %14149 = vmatprep.mubr.msk.bf16.mxu1 %vm2599_vm2, %v6583_v35 }
 0xc09   : > { %v6047_v5 = vpop.f32.mrb[60].mxu0 }
 0xc0a   : > { %v6049_v21 = vpop.f32.mrb[61].mxu0 }
 0xc0b   : > { %v6050_v28 = vpop.f32.mrb[62].mxu0 }
 0xc0c   : > { %v6584_v40 = vpack.c.bf16 %v6050_v28, %v6047_v5  ;;  %v6052_v36 = vpop.f32.mrb[63].mxu0 }
 0xc0e   : > { %14150 = vmatmul.mubr.msk.bf16.gmra.mrb[156].mxu1 %vm2599_vm2, %v6584_v40 }
 0xca9   : > { %v14123_v41 = vpop.f32.mrb[128].mxu1 }
 0xcaa   : > { %v6700_v26 = vpop.f32.mrb[129].mxu1  ;;  %v6861_v29 = vmax.f32 %v14123_v41, 0.0 }
 0xcab   : > { %v14124_v49 = vpop.f32.mrb[130].mxu1  ;;  %v6859_v62 = vmax.f32 %v6700_v26, 0.0 }
 0xcac   : > { %v6862_v31 = vmax.f32 %v14124_v49, 0.0  ;;  %v6703_v39 = vpop.f32.mrb[131].mxu1 }
 0xcad   : > { %v6860_v60 = vmax.f32 %v6703_v39, 0.0 }
 0xcae   : > { %v18364_v22 = vpack.c.bf16 %v6862_v31, %v6861_v29 }
 0xcaf   : > { %v18366_v32 = vpack.c.bf16 %v6860_v60, %v6859_v62 }
 0xcb1   : > { %v14127_v58 = vpop.f32.mrb[132].mxu1  ;;  %14161 = vmatprep.mubr.msk.bf16.mxu1 %vm2599_vm2, %v18366_v32 }
 0xcb2   : > { %v6716_v54 = vpop.f32.mrb[133].mxu1  ;;  %14162 = vmatmul.mubr.msk.bf16.vlgmr.msra.gmra.mrb[160].mxu1 %vm2599_vm2, %v18364_v22  ;;  %v6865_v50 = vmax.f32 %v14127_v58, 0.0 }
 0xcb3   : > { %v14128_v56 = vpop.f32.mrb[134].mxu1  ;;  %14194 = vmatpush3.bf16.msra.mxu1 %v15458_v44  ;;  %v6863_v10 = vmax.f32 %v6716_v54, 0.0 }
 0xcb4   : > { %v6866_v43 = vmax.f32 %v14128_v56, 0.0  ;;  %v6719_v52 = vpop.f32.mrb[135].mxu1  ;;  %14195 = vmatprep.subr.bf16.mxu1 %v15459_v13 }
 0xcb5   : > { %v6864_v24 = vmax.f32 %v6719_v52, 0.0 }
 0xcb6   : > { %v18378_v9 = vpack.c.bf16 %v6866_v43, %v6865_v50 }
 0xcb7   : > { %v18380_v8 = vpack.c.bf16 %v6864_v24, %v6863_v10  ;;  %14196 = vmatpush3.bf16.msra.mxu1 %v15459_v13 }
 0xcb8   : > { %14197 = vmatprep.subr.bf16.mxu1 %v15460_v18 }
 0xcb9   : > { %v14131_v46 = vpop.f32.mrb[136].mxu1  ;;  %14165 = vmatprep.mubr.msk.bf16.mxu1 %vm2599_vm2, %v18380_v8 }
 0xcba   : > { %v6732_v0 = vpop.f32.mrb[137].mxu1  ;;  %14166 = vmatmul.mubr.msk.bf16.gmra.mrb[164].mxu1 %vm2599_vm2, %v18378_v9  ;;  %v6869_v6 = vmax.f32 %v14131_v46, 0.0 }
 0xcbb   : > { %v14132_v11 = vpop.f32.mrb[138].mxu1  ;;  %14198 = vmatpush3.bf16.msra.mxu1 %v15460_v18  ;;  %v6867_v45 = vmax.f32 %v6732_v0, 0.0 }
 0xcbc   : > { %v6870_v23 = vmax.f32 %v14132_v11, 0.0  ;;  %v6735_v55 = vpop.f32.mrb[139].mxu1  ;;  %14199 = vmatprep.subr.bf16.mxu1 %v15461_v59 }
 0xcbd   : > { %v6868_v4 = vmax.f32 %v6735_v55, 0.0 }
 0xcbe   : > { %v18394_v15 = vpack.c.bf16 %v6870_v23, %v6869_v6 }
 0xcbf   : > { %v18396_v47 = vpack.c.bf16 %v6868_v4, %v6867_v45  ;;  %14200 = vmatpush3.bf16.msra.mxu1 %v15461_v59 }
 0xcc0   : > { %14233 = vmatprep.subr.bf16.mxu1 %v18392_v38 }
 0xcc1   : > { %v14135_v37 = vpop.f32.mrb[140].mxu1  ;;  %14169 = vmatprep.mubr.msk.bf16.mxu1 %vm2599_vm2, %v18396_v47 }
 0xcc2   : > { %v6748_v1 = vpop.f32.mrb[141].mxu1  ;;  %14170 = vmatmul.mubr.msk.bf16.gmra.mrb[168].mxu1 %vm2599_vm2, %v18394_v15  ;;  %v6873_v2 = vmax.f32 %v14135_v37, 0.0 }
 0xcc3   : > { %v14136_v7 = vpop.f32.mrb[142].mxu1  ;;  %v6871_v3 = vmax.f32 %v6748_v1, 0.0 }
 0xcc4   : > { %v6874_v61 = vmax.f32 %v14136_v7, 0.0  ;;  %v6751_v35 = vpop.f32.mrb[143].mxu1 }
 0xcc5   : > { %v6872_v5 = vmax.f32 %v6751_v35, 0.0 }
 0xcc6   : > { %v18403_v21 = vpack.c.bf16 %v6874_v61, %v6873_v2 }
 0xcc7   : > { %v18405_v28 = vpack.c.bf16 %v6872_v5, %v6871_v3 }
 0xcc9   : > { %v14139_v40 = vpop.f32.mrb[144].mxu1  ;;  %14173 = vmatprep.mubr.msk.bf16.mxu1 %vm2599_vm2, %v18405_v28 }
 0xcca   : > { %v6764_v36 = vpop.f32.mrb[145].mxu1  ;;  %14174 = vmatmul.mubr.msk.bf16.gmra.mrb[172].mxu1 %vm2599_vm2, %v18403_v21  ;;  %v6877_v20 = vmax.f32 %v14139_v40, 0.0  ;;  %v15463_v40 = vld [vmem:[%s20183_s11 + $0x48] sm:$0xff]  }
 0xccb   : > { %v14140_v48 = vpop.f32.mrb[146].mxu1  ;;  %v6875_v26 = vmax.f32 %v6764_v36, 0.0  ;;  %v15464_v36 = vld [vmem:[%s20183_s11 + $0x50] sm:$0xff]  }
 0xccc   : > { %v6878_v44 = vmax.f32 %v14140_v48, 0.0  ;;  %v6767_v41 = vpop.f32.mrb[147].mxu1  ;;  %v15465_v48 = vld [vmem:[%s20183_s11 + $0x58] sm:$0xff]  }
 0xccd   : > { %v6876_v49 = vmax.f32 %v6767_v41, 0.0 }
 0xcce   : > { %v18411_v29 = vpack.c.bf16 %v6878_v44, %v6877_v20  ;;  %v7569_v20 = vunpack.c.h.bf16 %v17705_v63 }
 0xccf   : > { %v6899_v31 = vpack.c.bf16 %v6876_v49, %v6875_v26 }
 0xcd1   : > { %v14143_v39 = vpop.f32.mrb[148].mxu1  ;;  %14177 = vmatprep.mubr.msk.bf16.mxu1 %vm2599_vm2, %v6899_v31 }
 0xcd2   : > { %v6780_v62 = vpop.f32.mrb[149].mxu1  ;;  %14178 = vmatmul.mubr.msk.bf16.gmra.mrb[176].mxu1 %vm2599_vm2, %v18411_v29  ;;  %v6881_v13 = vmax.f32 %v14143_v39, 0.0 }
 0xcd3   : > { %v14144_v60 = vpop.f32.mrb[150].mxu1  ;;  %v6879_v56 = vmax.f32 %v6780_v62, 0.0 }
 0xcd4   : > { %v6882_v58 = vmax.f32 %v14144_v60, 0.0  ;;  %v6783_v54 = vpop.f32.mrb[151].mxu1 }
 0xcd5   : > { %v6880_v50 = vmax.f32 %v6783_v54, 0.0 }
 0xcd6   : > { %v18416_v43 = vpack.c.bf16 %v6882_v58, %v6881_v13  ;;  %v7574_v13 = vunpack.c.l.bf16 %v17717_v25 }
 0xcd7   : > { %v6901_v52 = vpack.c.bf16 %v6880_v50, %v6879_v56 }
 0xcd9   : > { %v14147_v18 = vpop.f32.mrb[152].mxu1  ;;  %14181 = vmatprep.mubr.msk.bf16.mxu1 %vm2599_vm2, %v6901_v52 }
 0xcda   : > { %v6796_v10 = vpop.f32.mrb[153].mxu1  ;;  %14182 = vmatmul.mubr.msk.bf16.gmra.mrb[180].mxu1 %vm2599_vm2, %v18416_v43  ;;  %v6885_v59 = vmax.f32 %v14147_v18, 0.0 }
 0xcdb   : > { %v14148_v24 = vpop.f32.mrb[154].mxu1  ;;  %v6883_v11 = vmax.f32 %v6796_v10, 0.0 }
 0xcdc   : > { %v6886_v46 = vmax.f32 %v14148_v24, 0.0  ;;  %v6799_v0 = vpop.f32.mrb[155].mxu1 }
 0xcdd   : > { %v6884_v6 = vmax.f32 %v6799_v0, 0.0 }
 0xcde   : > { %v6904_v23 = vpack.c.bf16 %v6886_v46, %v6885_v59  ;;  %v7573_v59 = vunpack.c.h.bf16 %v17721_v16 }
 0xcdf   : > { %v6903_v55 = vpack.c.bf16 %v6884_v6, %v6883_v11 }
 0xce1   : > { %v14151_v45 = vpop.f32.mrb[156].mxu1  ;;  %14185 = vmatprep.mubr.msk.bf16.mxu1 %vm2599_vm2, %v6903_v55 }
 0xce2   : > { %v6812_v4 = vpop.f32.mrb[157].mxu1  ;;  %14186 = vmatmul.mubr.msk.bf16.gmra.mrb[184].mxu1 %vm2599_vm2, %v6904_v23  ;;  %v6889_v1 = vmax.f32 %v14151_v45, 0.0 }
 0xce3   : > { %v14152_v37 = vpop.f32.mrb[158].mxu1  ;;  %v6887_v61 = vmax.f32 %v6812_v4, 0.0 }
 0xce4   : > { %v6890_v7 = vmax.f32 %v14152_v37, 0.0  ;;  %v6815_v2 = vpop.f32.mrb[159].mxu1  ;;  %v7578_v37 = vunpack.c.l.bf16 %v17733_v42 }
 0xce5   : > { %v6888_v35 = vmax.f32 %v6815_v2, 0.0  ;;  %v7576_v2 = vunpack.c.l.bf16 %v17737_v51 }
 0xce6   : > { %v6906_v3 = vpack.c.bf16 %v6890_v7, %v6889_v1 }
 0xce7   : > { %v6905_v5 = vpack.c.bf16 %v6888_v35, %v6887_v61 }
 0xce9   : > { %14189 = vmatprep.mubr.msk.bf16.mxu1 %vm2599_vm2, %v6905_v5 }
 0xcea   : > { %14190 = vmatmul.mubr.msk.bf16.gmra.mrb[188].mxu1 %vm2599_vm2, %v6906_v3 }
 0xceb   : > { %14201 = vmatprep.mubr.bf16.mxu1 %v20220_v57 }
 0xcf2   : > { %14202 = vmatmul.mubr.msk.bf16.vlgmr.msra.gmra.mrb[160].mxu1 %vm2599_vm2, %v18366_v32 }
 0xcf3   : > { %14205 = vmatprep.mubr.msk.bf16.mxu1 %vm2599_vm2, %v18364_v22  ;;  %14234 = vmatpush3.bf16.msra.mxu1 %v18392_v38 }
 0xcf4   : > { %14235 = vmatprep.subr.bf16.mxu1 %v15463_v40 }
 0xcf7   : > { %14236 = vmatpush3.bf16.msra.mxu1 %v15463_v40 }
 0xcf8   : > { %14237 = vmatprep.subr.bf16.mxu1 %v15464_v36 }
 0xcfa   : > { %14206 = vmatmul.mubr.msk.bf16.gmra.mrb[164].mxu1 %vm2599_vm2, %v18380_v8 }
 0xcfb   : > { %14209 = vmatprep.mubr.msk.bf16.mxu1 %vm2599_vm2, %v18378_v9  ;;  %14238 = vmatpush3.bf16.msra.mxu1 %v15464_v36 }
 0xcfc   : > { %14239 = vmatprep.subr.bf16.mxu1 %v15465_v48 }
 0xcff   : > { %14240 = vmatpush3.bf16.msra.mxu1 %v15465_v48 }
 0xd02   : > { %14210 = vmatmul.mubr.msk.bf16.gmra.mrb[168].mxu1 %vm2599_vm2, %v18396_v47 }
 0xd03   : > { %14213 = vmatprep.mubr.msk.bf16.mxu1 %vm2599_vm2, %v18394_v15 }
 0xd0a   : > { %14214 = vmatmul.mubr.msk.bf16.gmra.mrb[172].mxu1 %vm2599_vm2, %v18405_v28 }
 0xd0b   : > { %14217 = vmatprep.mubr.bf16.mxu1 %v20220_v57 }
 0xd12   : > { %14218 = vmatmul.mubr.msk.bf16.gmra.mrb[176].mxu1 %vm2599_vm2, %v6899_v31 }
 0xd13   : > { %14221 = vmatprep.mubr.msk.bf16.mxu1 %vm2599_vm2, %v18411_v29 }
 0xd1a   : > { %14222 = vmatmul.mubr.msk.bf16.gmra.mrb[180].mxu1 %vm2599_vm2, %v6901_v52 }
 0xd1b   : > { %14225 = vmatprep.mubr.msk.bf16.mxu1 %vm2599_vm2, %v18416_v43 }
 0xd22   : > { %14226 = vmatmul.mubr.msk.bf16.gmra.mrb[184].mxu1 %vm2599_vm2, %v6903_v55 }
 0xd23   : > { %14229 = vmatprep.mubr.msk.bf16.mxu1 %vm2599_vm2, %v6904_v23 }
 0xd2a   : > { %14230 = vmatmul.mubr.msk.bf16.gmra.mrb[188].mxu1 %vm2599_vm2, %v6905_v5 }
 0xd2b   : > { %14241 = vmatprep.mubr.msk.bf16.mxu1 %vm2599_vm2, %v18364_v22  ;;  %v7570_v22 = vunpack.c.l.bf16 %v17702_v34 }
 0xd32   : > { %14242 = vmatmul.mubr.msk.bf16.vlgmr.msra.gmra.mrb[160].mxu1 %vm2599_vm2, %v18380_v8  ;;  %v7568_v8 = vunpack.c.l.bf16 %v17705_v63  ;;  %v7572_v63 = vunpack.c.l.bf16 %v17721_v16 }
 0xd33   : > { %14245 = vmatprep.mubr.msk.bf16.mxu1 %vm2599_vm2, %v18378_v9  ;;  %v18489_v9 = vld [vmem:[%s20184_s12] ss:$0 sm:$0xff] }
 0xd3a   : > { %14246 = vmatmul.mubr.msk.bf16.gmra.mrb[164].mxu1 %vm2599_vm2, %v18396_v47  ;;  %v7571_v47 = vunpack.c.h.bf16 %v17702_v34 }
 0xd3b   : > { %14249 = vmatprep.mubr.msk.bf16.mxu1 %vm2599_vm2, %v18394_v15 }
 0xd42   : > { %14250 = vmatmul.mubr.msk.bf16.gmra.mrb[168].mxu1 %vm2599_vm2, %v18405_v28 }
 0xd43   : > { %14253 = vmatprep.mubr.msk.bf16.mxu1 %vm2599_vm2, %v18403_v21 }
 0xd4a   : > { %14254 = vmatmul.mubr.bf16.gmra.mrb[172].mxu1 %v20220_v57 }
 0xd4b   : > { %14257 = vmatprep.mubr.msk.bf16.mxu1 %vm2599_vm2, %v18411_v29 }
 0xd52   : > { %14258 = vmatmul.mubr.msk.bf16.gmra.mrb[176].mxu1 %vm2599_vm2, %v6901_v52  ;;  %v7575_v52 = vunpack.c.h.bf16 %v17717_v25 }
 0xd53   : > { %14261 = vmatprep.mubr.msk.bf16.mxu1 %vm2599_vm2, %v18416_v43 }
 0xd5a   : > { %14262 = vmatmul.mubr.msk.bf16.gmra.mrb[180].mxu1 %vm2599_vm2, %v6903_v55 }
 0xd5b   : > { %14265 = vmatprep.mubr.msk.bf16.mxu1 %vm2599_vm2, %v6904_v23 }
 0xd62   : > { %14266 = vmatmul.mubr.msk.bf16.gmra.mrb[184].mxu1 %vm2599_vm2, %v6905_v5  ;;  %v7579_v5 = vunpack.c.h.bf16 %v17733_v42 }
 0xd63   : > { %14269 = vmatprep.mubr.msk.bf16.mxu1 %vm2599_vm2, %v6906_v3 }
 0xd6a   : > { %14270 = vmatmul.mubr.bf16.gmra.mrb[188].mxu1 %v20220_v57 }
 0xe05   : > { %v14243_v32 = vpop.f32.mrb[160].mxu1 }
 0xe06   : > { %v7602_v38 = vadd.f32 %v14243_v32, %v7570_v22  ;;  %v7409_v15 = vpop.f32.mrb[161].mxu1  ;;  %v7577_v22 = vunpack.c.h.bf16 %v17737_v51 }
 0xe07   : > { %v7600_v21 = vadd.f32 %v7568_v8, %v7409_v15  ;;  %v14244_v28 = vpop.f32.mrb[162].mxu1 }
 0xe08   : > { %v7641_v44 = vadd.f32 %v18489_v9, %v7602_v38  ;;  %v7603_v41 = vadd.f32 %v14244_v28, %v7571_v47  ;;  %v7412_v26 = vpop.f32.mrb[163].mxu1 }
 0xe09   : > { %v7639_v49 = vadd.f32 %v18489_v9, %v7600_v21  ;;  %v7601_v29 = vadd.f32 %v7569_v20, %v7412_v26 }
 0xe0a   : > { %v7642_v31 = vadd.f32 %v18489_v9, %v7603_v41  ;;  %v7673_v62 = vmax.f32 %v7641_v44, 0.0  ;;  %v7582_v44 = vunpack.c.l.bf16 %v17749_v27 }
 0xe0b   : > { %v7640_v39 = vadd.f32 %v18489_v9, %v7601_v29  ;;  %v7671_v34 = vmax.f32 %v7639_v49, 0.0  ;;  %v7580_v49 = vunpack.c.l.bf16 %v17753_v17 }
 0xe0c   : > { %v7674_v60 = vmax.f32 %v7642_v31, 0.0 }
 0xe0d   : > { %v7672_v58 = vmax.f32 %v7640_v39, 0.0  ;;  %v14247_v54 = vpop.f32.mrb[164].mxu1 }
 0xe0e   : > { %v7704_v56 = vpack.c.bf16 %v7674_v60, %v7673_v62  ;;  %v7606_v50 = vadd.f32 %v14247_v54, %v7574_v13  ;;  %v7425_v43 = vpop.f32.mrb[165].mxu1  ;;  %v7583_v62 = vunpack.c.h.bf16 %v17749_v27 }
 0xe0f   : > { %v18501_v18 = vpack.c.bf16 %v7672_v58, %v7671_v34  ;;  %v7604_v10 = vadd.f32 %v7572_v63, %v7425_v43  ;;  %v14248_v24 = vpop.f32.mrb[166].mxu1  ;;  %v7581_v58 = vunpack.c.h.bf16 %v17753_v17 }
 0xe10   : > { %v7645_v46 = vadd.f32 %v18489_v9, %v7606_v50  ;;  %v7607_v0 = vadd.f32 %v14248_v24, %v7575_v52  ;;  %v7428_v11 = vpop.f32.mrb[167].mxu1 }
 0xe11   : > { %v7643_v6 = vadd.f32 %v18489_v9, %v7604_v10  ;;  %v7605_v23 = vadd.f32 %v7573_v59, %v7428_v11  ;;  %7720 = vmatpush1.bf16.msra.mxu0 %v18501_v18  ;;  %v7586_v59 = vunpack.c.l.bf16 %v17765_v30  ;;  %v7584_v11 = vunpack.c.l.bf16 %v17769_v53 }
 0xe12   : > { %v7646_v55 = vadd.f32 %v18489_v9, %v7607_v0  ;;  %7721 = vmatprep.subr.bf16.mxu0 %v20220_v57  ;;  %v7677_v45 = vmax.f32 %v7645_v46, 0.0 }
 0xe13   : > { %v7644_v25 = vadd.f32 %v18489_v9, %v7605_v23  ;;  %v7675_v16 = vmax.f32 %v7643_v6, 0.0 }
 0xe14   : > { %v7678_v4 = vmax.f32 %v7646_v55, 0.0 }
 0xe15   : > { %v7676_v1 = vmax.f32 %v7644_v25, 0.0  ;;  %v14251_v7 = vpop.f32.mrb[168].mxu1  ;;  %7722 = vmatpush1.bf16.msra.mxu0 %v7704_v56  ;;  %v7587_v25 = vunpack.c.h.bf16 %v17765_v30 }
 0xe16   : > { %v7706_v61 = vpack.c.bf16 %v7678_v4, %v7677_v45  ;;  %v7610_v35 = vadd.f32 %v14251_v7, %v7578_v37  ;;  %v7441_v3 = vpop.f32.mrb[169].mxu1  ;;  %7723 = vmatprep.subr.bf16.mxu0 %v20220_v57 }
 0xe17   : > { %v18514_v40 = vpack.c.bf16 %v7676_v1, %v7675_v16  ;;  %v7608_v36 = vadd.f32 %v7576_v2, %v7441_v3  ;;  %v14252_v48 = vpop.f32.mrb[170].mxu1  ;;  %v7585_v16 = vunpack.c.h.bf16 %v17769_v53 }
 0xe18   : > { %v7649_v32 = vadd.f32 %v18489_v9, %v7610_v35  ;;  %v7611_v8 = vadd.f32 %v14252_v48, %v7579_v5  ;;  %v7444_v38 = vpop.f32.mrb[171].mxu1  ;;  %v7590_v48 = vunpack.c.l.bf16 %v17781_v33 }
 0xe19   : > { %v7647_v15 = vadd.f32 %v18489_v9, %v7608_v36  ;;  %v7609_v47 = vadd.f32 %v7577_v22, %v7444_v38  ;;  %7724 = vmatpush1.bf16.msra.mxu0 %v18514_v40 }
 0xe1a   : > { %v7650_v21 = vadd.f32 %v18489_v9, %v7611_v8  ;;  %7725 = vmatprep.subr.bf16.mxu0 %v20220_v57  ;;  %v7681_v28 = vmax.f32 %v7649_v32, 0.0  ;;  %v7588_v8 = vunpack.c.l.bf16 %v17785_v19 }
 0xe1b   : > { %v7648_v42 = vadd.f32 %v18489_v9, %v7609_v47  ;;  %v7679_v51 = vmax.f32 %v7647_v15, 0.0 }
 0xe1c   : > { %v7682_v20 = vmax.f32 %v7650_v21, 0.0  ;;  %v7591_v21 = vunpack.c.h.bf16 %v17781_v33 }
 0xe1d   : > { %v7680_v41 = vmax.f32 %v7648_v42, 0.0  ;;  %v14255_v26 = vpop.f32.mrb[172].mxu1  ;;  %7726 = vmatpush1.bf16.msra.mxu0 %v7706_v61 }
 0xe1e   : > { %v7708_v29 = vpack.c.bf16 %v7682_v20, %v7681_v28  ;;  %v7614_v31 = vadd.f32 %v14255_v26, %v7582_v44  ;;  %v7457_v39 = vpop.f32.mrb[173].mxu1  ;;  %7727 = vmatprep.subr.bf16.mxu0 %v20220_v57  ;;  %v7589_v44 = vunpack.c.h.bf16 %v17785_v19 }
 0xe1f   : > { %v18527_v60 = vpack.c.bf16 %v7680_v41, %v7679_v51  ;;  %v7612_v13 = vadd.f32 %v7580_v49, %v7457_v39  ;;  %v14256_v34 = vpop.f32.mrb[174].mxu1 }
 0xe20   : > { %v7653_v54 = vadd.f32 %v18489_v9, %v7614_v31  ;;  %v7615_v63 = vadd.f32 %v14256_v34, %v7583_v62  ;;  %v7460_v56 = vpop.f32.mrb[175].mxu1 }
 0xe21   : > { %v7651_v50 = vadd.f32 %v18489_v9, %v7612_v13  ;;  %v7613_v43 = vadd.f32 %v7581_v58, %v7460_v56  ;;  %7728 = vmatpush1.bf16.msra.mxu0 %v18527_v60  ;;  %v7594_v13 = vunpack.c.l.bf16 %v17797_v12 }
 0xe22   : > { %v7654_v52 = vadd.f32 %v18489_v9, %v7615_v63  ;;  %7729 = vmatprep.subr.bf16.mxu0 %v20220_v57  ;;  %v7685_v10 = vmax.f32 %v7653_v54, 0.0  ;;  %v7592_v54 = vunpack.c.l.bf16 %v17801_v14 }
 0xe23   : > { %v7652_v27 = vadd.f32 %v18489_v9, %v7613_v43  ;;  %v7683_v17 = vmax.f32 %v7651_v50, 0.0  ;;  %v7595_v43 = vunpack.c.h.bf16 %v17797_v12 }
 0xe24   : > { %v7686_v24 = vmax.f32 %v7654_v52, 0.0 }
 0xe25   : > { %v7684_v46 = vmax.f32 %v7652_v27, 0.0  ;;  %v14259_v0 = vpop.f32.mrb[176].mxu1  ;;  %7730 = vmatpush1.bf16.msra.mxu0 %v7708_v29 }
 0xe26   : > { %v7710_v6 = vpack.c.bf16 %v7686_v24, %v7685_v10  ;;  %v7618_v23 = vadd.f32 %v14259_v0, %v7586_v59  ;;  %v7473_v55 = vpop.f32.mrb[177].mxu1  ;;  %7731 = vmatprep.subr.bf16.mxu0 %v20220_v57  ;;  %v7593_v24 = vunpack.c.h.bf16 %v17801_v14 }
 0xe27   : > { %v18540_v45 = vpack.c.bf16 %v7684_v46, %v7683_v17  ;;  %v7616_v4 = vadd.f32 %v7584_v11, %v7473_v55  ;;  %v14260_v37 = vpop.f32.mrb[178].mxu1 }
 0xe28   : > { %v7657_v1 = vadd.f32 %v18489_v9, %v7618_v23  ;;  %v7619_v7 = vadd.f32 %v14260_v37, %v7587_v25  ;;  %v7476_v2 = vpop.f32.mrb[179].mxu1  ;;  %v20261_v25 = vld [vmem:[#allocation2_spill] sm:$0xff] }
 0xe29   : > { %v7655_v61 = vadd.f32 %v18489_v9, %v7616_v4  ;;  %v7617_v35 = vadd.f32 %v7585_v16, %v7476_v2  ;;  %7732 = vmatpush1.bf16.msra.mxu0 %v18540_v45  ;;  %v7598_v4 = vunpack.c.l.bf16 %v20261_v25 }
 0xe2a   : > { %v7658_v3 = vadd.f32 %v18489_v9, %v7619_v7  ;;  %7733 = vmatprep.subr.bf16.mxu0 %v20220_v57  ;;  %v7689_v5 = vmax.f32 %v7657_v1, 0.0  ;;  %v20262_v1 = vld [vmem:[#allocation3_spill] sm:$0xff] }
 0xe2b   : > { %v7656_v30 = vadd.f32 %v18489_v9, %v7617_v35  ;;  %v7687_v53 = vmax.f32 %v7655_v61, 0.0  ;;  %v7596_v7 = vunpack.c.l.bf16 %v20262_v1 }
 0xe2c   : > { %v7690_v36 = vmax.f32 %v7658_v3, 0.0  ;;  %v7599_v3 = vunpack.c.h.bf16 %v20261_v25  ;;  %v16008_v25 = vld [vmem:[%s20215_s28 + $0xf4] ss:$8 sps:$4 sm:$0xff]  }
 0xe2d   : > { %v7688_v22 = vmax.f32 %v7656_v30, 0.0  ;;  %v14263_v32 = vpop.f32.mrb[180].mxu1  ;;  %7734 = vmatpush1.bf16.msra.mxu0 %v7710_v6 }
 0xe2e   : > { %v7712_v38 = vpack.c.bf16 %v7690_v36, %v7689_v5  ;;  %v7622_v15 = vadd.f32 %v14263_v32, %v7590_v48  ;;  %v7489_v47 = vpop.f32.mrb[181].mxu1  ;;  %7735 = vmatprep.subr.bf16.mxu0 %v20220_v57  ;;  %v7597_v48 = vunpack.c.h.bf16 %v20262_v1  ;;  %v16013_v1 = vld [vmem:[%s20215_s28 + $0x110] ss:$8 sps:$4 sm:$0xff]  }
 0xe2f   : > { %v18553_v42 = vpack.c.bf16 %v7688_v22, %v7687_v53  ;;  %v7620_v28 = vadd.f32 %v7588_v8, %v7489_v47  ;;  %v14264_v20 = vpop.f32.mrb[182].mxu1 }
 0xe30   : > { %v7661_v51 = vadd.f32 %v18489_v9, %v7622_v15  ;;  %v7623_v41 = vadd.f32 %v14264_v20, %v7591_v21  ;;  %v7492_v26 = vpop.f32.mrb[183].mxu1 }
 0xe31   : > { %v7659_v49 = vadd.f32 %v18489_v9, %v7620_v28  ;;  %v7621_v29 = vadd.f32 %v7589_v44, %v7492_v26  ;;  %7736 = vmatpush1.bf16.msra.mxu0 %v18553_v42  ;;  %v15979_v26 = vld [vmem:[%s20215_s28] ss:$8 sps:$4 sm:$0xff]  }
 0xe32   : > { %v7662_v31 = vadd.f32 %v18489_v9, %v7623_v41  ;;  %7737 = vmatprep.subr.bf16.mxu0 %v20220_v57  ;;  %v7693_v39 = vmax.f32 %v7661_v51, 0.0 }
 0xe33   : > { %v7660_v33 = vadd.f32 %v18489_v9, %v7621_v29  ;;  %v7691_v19 = vmax.f32 %v7659_v49, 0.0  ;;  %v15981_v49 = vld [vmem:[%s20215_s28 + $0x10] ss:$8 sps:$4 sm:$0xff]   ;;  %v15982_v29 = vld [vmem:[%s20215_s28 + $0x24] ss:$8 sps:$4 sm:$0xff]  }
 0xe34   : > { %v7694_v62 = vmax.f32 %v7662_v31, 0.0  ;;  %v15983_v31 = vld [vmem:[%s20215_s28 + $0x20] ss:$8 sps:$4 sm:$0xff]  }
 0xe35   : > { %v7692_v34 = vmax.f32 %v7660_v33, 0.0  ;;  %v14267_v58 = vpop.f32.mrb[184].mxu1  ;;  %7738 = vmatpush1.bf16.msra.mxu0 %v7712_v38  ;;  %v15984_v33 = vld [vmem:[%s20215_s28 + $0x34] ss:$8 sps:$4 sm:$0xff]  }
 0xe36   : > { %v7714_v63 = vpack.c.bf16 %v7694_v62, %v7693_v39  ;;  %v7626_v56 = vadd.f32 %v14267_v58, %v7594_v13  ;;  %v7505_v50 = vpop.f32.mrb[185].mxu1  ;;  %7739 = vmatprep.subr.bf16.mxu0 %v20220_v57  ;;  %v15985_v39 = vld [vmem:[%s20215_s28 + $0x30] ss:$8 sps:$4 sm:$0xff]   ;;  %v15986_v62 = vld [vmem:[%s20215_s28 + $0x44] ss:$8 sps:$4 sm:$0xff]  }
 0xe37   : > { %v18566_v52 = vpack.c.bf16 %v7692_v34, %v7691_v19  ;;  %v7624_v27 = vadd.f32 %v7592_v54, %v7505_v50  ;;  %v14268_v10 = vpop.f32.mrb[186].mxu1  ;;  %v15987_v13 = vld [vmem:[%s20215_s28 + $0x40] ss:$8 sps:$4 sm:$0xff]   ;;  %v15988_v19 = vld [vmem:[%s20215_s28 + $0x54] ss:$8 sps:$4 sm:$0xff]  }
 0xe38   : > { %v7665_v59 = vadd.f32 %v18489_v9, %v7626_v56  ;;  %v7627_v17 = vadd.f32 %v14268_v10, %v7595_v43  ;;  %v7508_v46 = vpop.f32.mrb[187].mxu1  ;;  %v15989_v34 = vld [vmem:[%s20215_s28 + $0x50] ss:$8 sps:$4 sm:$0xff]   ;;  %v15990_v58 = vld [vmem:[%s20215_s28 + $0x64] ss:$8 sps:$4 sm:$0xff]  }
 0xe39   : > { %v7663_v0 = vadd.f32 %v18489_v9, %v7624_v27  ;;  %v7625_v11 = vadd.f32 %v7593_v24, %v7508_v46  ;;  %7740 = vmatpush1.bf16.msra.mxu0 %v18566_v52  ;;  %v15991_v54 = vld [vmem:[%s20215_s28 + $0x60] ss:$8 sps:$4 sm:$0xff]   ;;  %v15993_v56 = vld [vmem:[%s20215_s28 + $0x70] ss:$8 sps:$4 sm:$0xff]   ;;  %v15994_v50 = vld [vmem:[%s20215_s28 + $0x84] ss:$8 sps:$4 sm:$0xff]  }
 0xe3a   : > { %v7666_v6 = vadd.f32 %v18489_v9, %v7627_v17  ;;  %7741 = vmatprep.subr.bf16.mxu0 %v20220_v57  ;;  %v7697_v23 = vmax.f32 %v7665_v59, 0.0  ;;  %v15995_v43 = vld [vmem:[%s20215_s28 + $0x80] ss:$8 sps:$4 sm:$0xff]   ;;  %v15996_v27 = vld [vmem:[%s20215_s28 + $0x94] ss:$8 sps:$4 sm:$0xff]  }
 0xe3b   : > { %v7664_v12 = vadd.f32 %v18489_v9, %v7625_v11  ;;  %v7695_v14 = vmax.f32 %v7663_v0, 0.0  ;;  %v15997_v10 = vld [vmem:[%s20215_s28 + $0x90] ss:$8 sps:$4 sm:$0xff]   ;;  %v15998_v24 = vld [vmem:[%s20215_s28 + $0xa4] ss:$8 sps:$4 sm:$0xff]  }
 0xe3c   : > { %v7698_v55 = vmax.f32 %v7666_v6, 0.0  ;;  %v15999_v59 = vld [vmem:[%s20215_s28 + $0xa0] ss:$8 sps:$4 sm:$0xff]   ;;  %v16000_v17 = vld [vmem:[%s20215_s28 + $0xb4] ss:$8 sps:$4 sm:$0xff]  }
 0xe3d   : > { %v7696_v37 = vmax.f32 %v7664_v12, 0.0  ;;  %v14271_v16 = vpop.f32.mrb[188].mxu1  ;;  %7742 = vmatpush1.bf16.msra.mxu0 %v7714_v63  ;;  %v15992_v63 = vld [vmem:[%s20215_s28 + $0x74] ss:$8 sps:$4 sm:$0xff]   ;;  %v16001_v46 = vld [vmem:[%s20215_s28 + $0xb0] ss:$8 sps:$4 sm:$0xff]  }
 0xe3e   : > { %v7716_v2 = vpack.c.bf16 %v7698_v55, %v7697_v23  ;;  %v7630_v61 = vadd.f32 %v14271_v16, %v7598_v4  ;;  %v7521_v35 = vpop.f32.mrb[189].mxu1  ;;  %7743 = vmatprep.subr.bf16.mxu0 %v20220_v57  ;;  %v16002_v0 = vld [vmem:[%s20215_s28 + $0xc4] ss:$8 sps:$4 sm:$0xff]   ;;  %v16003_v11 = vld [vmem:[%s20215_s28 + $0xc0] ss:$8 sps:$4 sm:$0xff]  }
 0xe3f   : > { %v18579_v30 = vpack.c.bf16 %v7696_v37, %v7695_v14  ;;  %v7628_v5 = vadd.f32 %v7596_v7, %v7521_v35  ;;  %v14272_v36 = vpop.f32.mrb[190].mxu1  ;;  %v16004_v6 = vld [vmem:[%s20215_s28 + $0xd4] ss:$8 sps:$4 sm:$0xff]   ;;  %v16005_v12 = vld [vmem:[%s20215_s28 + $0xd0] ss:$8 sps:$4 sm:$0xff]  }
 0xe40   : > { %v7669_v53 = vadd.f32 %v18489_v9, %v7630_v61  ;;  %v7631_v22 = vadd.f32 %v14272_v36, %v7599_v3  ;;  %v7524_v32 = vpop.f32.mrb[191].mxu1  ;;  %v16006_v23 = vld [vmem:[%s20215_s28 + $0xe4] ss:$8 sps:$4 sm:$0xff]   ;;  %v16007_v55 = vld [vmem:[%s20215_s28 + $0xe0] ss:$8 sps:$4 sm:$0xff]  }
 0xe41   : > { %v7667_v8 = vadd.f32 %v18489_v9, %v7628_v5  ;;  %v7629_v38 = vadd.f32 %v7597_v48, %v7524_v32  ;;  %7744 = vmatpush1.bf16.msra.mxu0 %v18579_v30  ;;  %v16009_v4 = vld [vmem:[%s20215_s28 + $0xf0] ss:$8 sps:$4 sm:$0xff]   ;;  %v16010_v14 = vld [vmem:[%s20215_s28 + $0x104] ss:$8 sps:$4 sm:$0xff]   ;;  %v16011_v37 = vld [vmem:[%s20215_s28 + $0x100] ss:$8 sps:$4 sm:$0xff]  }
 0xe42   : > { %v7670_v15 = vadd.f32 %v18489_v9, %v7631_v22  ;;  %7745 = vmatprep.subr.bf16.mxu0 %v20220_v57  ;;  %v7701_v21 = vmax.f32 %v7669_v53, 0.0  ;;  %v16012_v16 = vld [vmem:[%s20215_s28 + $0x114] ss:$8 sps:$4 sm:$0xff]   ;;  %v16014_v7 = vld [vmem:[%s20215_s28 + $0x124] ss:$8 sps:$4 sm:$0xff]  }
 0xe43   : > { %v7668_v47 = vadd.f32 %v18489_v9, %v7629_v38  ;;  %v7699_v20 = vmax.f32 %v7667_v8, 0.0  ;;  %v15980_v9 = vld [vmem:[%s20215_s28 + $0x14] ss:$8 sps:$4 sm:$0xff]   ;;  %v16017_v35 = vld [vmem:[%s20215_s28 + $0x130] ss:$8 sps:$4 sm:$0xff]  }
 0xe44   : > { %v7702_v28 = vmax.f32 %v7670_v15, 0.0  ;;  %v16016_v61 = vld [vmem:[%s20215_s28 + $0x134] ss:$8 sps:$4 sm:$0xff]   ;;  %v16018_v3 = vld [vmem:[%s20215_s28 + $0x144] ss:$8 sps:$4 sm:$0xff]  }
 0xe45   : > { %v7700_v44 = vmax.f32 %v7668_v47, 0.0  ;;  %7746 = vmatpush1.bf16.msra.mxu0 %v7716_v2  ;;  %v16015_v2 = vld [vmem:[%s20215_s28 + $0x120] ss:$8 sps:$4 sm:$0xff]   ;;  %v16020_v36 = vld [vmem:[%s20215_s28 + $0x154] ss:$8 sps:$4 sm:$0xff]  }
 0xe46   : > { %v7718_v51 = vpack.c.bf16 %v7702_v28, %v7701_v21  ;;  %7747 = vmatprep.subr.bf16.mxu0 %v20220_v57  ;;  %v16019_v5 = vld [vmem:[%s20215_s28 + $0x140] ss:$8 sps:$4 sm:$0xff]   ;;  %v16021_v48 = vld [vmem:[%s20215_s28 + $0x150] ss:$8 sps:$4 sm:$0xff]   ;;  %v16022_v53 = vld [vmem:[%s20215_s28 + $0x164] ss:$8 sps:$4 sm:$0xff]  }
 0xe47   : > { %v18589_v41 = vpack.c.bf16 %v7700_v44, %v7699_v20  ;;  %v16023_v22 = vld [vmem:[%s20215_s28 + $0x160] ss:$8 sps:$4 sm:$0xff]   ;;  %v16024_v32 = vld [vmem:[%s20215_s28 + $0x174] ss:$8 sps:$4 sm:$0xff]   ;;  %v16025_v8 = vld [vmem:[%s20215_s28 + $0x170] ss:$8 sps:$4 sm:$0xff]  }
 0xe48   : > { %v16026_v38 = vld [vmem:[%s20215_s28 + $0x184] ss:$8 sps:$4 sm:$0xff]   ;;  %v16027_v15 = vld [vmem:[%s20215_s28 + $0x180] ss:$8 sps:$4 sm:$0xff]   ;;  %v16028_v47 = vld [vmem:[%s20215_s28 + $0x194] ss:$8 sps:$4 sm:$0xff]  }
 0xe49   : > { %7748 = vmatpush1.bf16.msra.mxu0 %v18589_v41  ;;  %v16029_v21 = vld [vmem:[%s20215_s28 + $0x190] ss:$8 sps:$4 sm:$0xff]   ;;  %v16030_v28 = vld [vmem:[%s20215_s28 + $0x1a4] ss:$8 sps:$4 sm:$0xff]   ;;  %v16031_v44 = vld [vmem:[%s20215_s28 + $0x1a0] ss:$8 sps:$4 sm:$0xff]  }
 0xe4a   : > { %7749 = vmatprep.subr.bf16.mxu0 %v20220_v57  ;;  %v15466_v20 = vld [vmem:[%s20185_s13 + $0x20] sm:$0xff]  }
 0xe4b   : > { %14273 = vmatprep.subr.bf16.mxu1 %v15466_v20 }
 0xe4c   : > { %14274 = vmatpush3.bf16.msra.mxu1 %v15466_v20 }
 0xe4d   : > { %7750 = vmatpush1.bf16.msra.mxu0 %v7718_v51  ;;  %v16032_v51 = vld [vmem:[%s20215_s28 + $0x1b4] ss:$8 sps:$4 sm:$0xff]  }
 0xe50   : > { %7752 = vmatmul.mubr.bf16.vlgmr.msra.gmra.mrb[64].mxu0 %v15979_v26  ;;  %v15467_v26 = vld [vmem:[%s20185_s13 + $0x28] sm:$0xff]  }
 0xe51   : > { %7759 = vmatprep.mubr.bf16.mxu0 %v15980_v9  ;;  %14275 = vmatprep.subr.bf16.mxu1 %v15467_v26 }
 0xe52   : > { %14276 = vmatpush3.bf16.msra.mxu1 %v15467_v26 }
 0xe58   : > { %7760 = vmatmul.mubr.bf16.gmra.mrb[68].mxu0 %v15981_v49 }
 0xe59   : > { %7767 = vmatprep.mubr.bf16.mxu0 %v15982_v29 }
 0xe60   : > { %7768 = vmatmul.mubr.bf16.gmra.mrb[72].mxu0 %v15983_v31 }
 0xe61   : > { %7775 = vmatprep.mubr.bf16.mxu0 %v15984_v33 }
 0xe68   : > { %7776 = vmatmul.mubr.bf16.gmra.mrb[76].mxu0 %v15985_v39  ;;  %v15468_v39 = vld [vmem:[%s20185_s13 + $0x30] sm:$0xff]  }
 0xe69   : > { %7783 = vmatprep.mubr.bf16.mxu0 %v15986_v62  ;;  %v16033_v62 = vld [vmem:[%s20215_s28 + $0x1b0] ss:$8 sps:$4 sm:$0xff]   ;;  %14277 = vmatprep.subr.bf16.mxu1 %v15468_v39 }
 0xe6a   : > { %14278 = vmatpush3.bf16.msra.mxu1 %v15468_v39  ;;  %v16048_v39 = vld [vmem:[%s20215_s28 + $0x234] ss:$8 sps:$4 sm:$0xff]  }
 0xe70   : > { %7784 = vmatmul.mubr.bf16.gmra.mrb[80].mxu0 %v15987_v13  ;;  %v16034_v13 = vld [vmem:[%s20215_s28 + $0x1c4] ss:$8 sps:$4 sm:$0xff]  }
 0xe71   : > { %7791 = vmatprep.mubr.bf16.mxu0 %v15988_v19  ;;  %v15469_v19 = vld [vmem:[%s20185_s13 + $0x38] sm:$0xff]  }
 0xe72   : > { %14279 = vmatprep.subr.bf16.mxu1 %v15469_v19 }
 0xe73   : > { %14280 = vmatpush3.bf16.msra.mxu1 %v15469_v19 }
 0xe78   : > { %7792 = vmatmul.mubr.bf16.gmra.mrb[84].mxu0 %v15989_v34 }
 0xe79   : > { %7799 = vmatprep.mubr.bf16.mxu0 %v15990_v58 }
 0xe80   : > { %7800 = vmatmul.mubr.bf16.gmra.mrb[88].mxu0 %v15991_v54 }
 0xe81   : > { %7807 = vmatprep.mubr.bf16.mxu0 %v15992_v63 }
 0xe88   : > { %7808 = vmatmul.mubr.bf16.gmra.mrb[92].mxu0 %v15993_v56 }
 0xe89   : > { %7815 = vmatprep.mubr.bf16.mxu0 %v15994_v50  ;;  %v16035_v50 = vld [vmem:[%s20215_s28 + $0x1c0] ss:$8 sps:$4 sm:$0xff]  }
 0xe90   : > { %7816 = vmatmul.mubr.bf16.gmra.mrb[96].mxu0 %v15995_v43  ;;  %v16036_v43 = vld [vmem:[%s20215_s28 + $0x1d4] ss:$8 sps:$4 sm:$0xff]  }
 0xe91   : > { %7823 = vmatprep.mubr.bf16.mxu0 %v15996_v27 }
 0xe98   : > { %7824 = vmatmul.mubr.bf16.gmra.mrb[100].mxu0 %v15997_v10 }
 0xe99   : > { %7831 = vmatprep.mubr.bf16.mxu0 %v15998_v24 }
 0xea0   : > { %7832 = vmatmul.mubr.bf16.gmra.mrb[104].mxu0 %v15999_v59 }
 0xea1   : > { %7839 = vmatprep.mubr.bf16.mxu0 %v16000_v17 }
 0xea8   : > { %7840 = vmatmul.mubr.bf16.gmra.mrb[108].mxu0 %v16001_v46  ;;  %v16037_v46 = vld [vmem:[%s20215_s28 + $0x1d0] ss:$8 sps:$4 sm:$0xff]  }
 0xea9   : > { %7847 = vmatprep.mubr.bf16.mxu0 %v16002_v0  ;;  %v16038_v0 = vld [vmem:[%s20215_s28 + $0x1e4] ss:$8 sps:$4 sm:$0xff]  }
 0xeb0   : > { %7848 = vmatmul.mubr.bf16.gmra.mrb[112].mxu0 %v16003_v11 }
 0xeb1   : > { %7855 = vmatprep.mubr.bf16.mxu0 %v16004_v6 }
 0xeb8   : > { %7856 = vmatmul.mubr.bf16.gmra.mrb[116].mxu0 %v16005_v12 }
 0xeb9   : > { %7863 = vmatprep.mubr.bf16.mxu0 %v16006_v23 }
 0xec0   : > { %7864 = vmatmul.mubr.bf16.gmra.mrb[120].mxu0 %v16007_v55 }
 0xec1   : > { %7871 = vmatprep.mubr.bf16.mxu0 %v16008_v25  ;;  %v16039_v25 = vld [vmem:[%s20215_s28 + $0x1e0] ss:$8 sps:$4 sm:$0xff]  }
 0xec8   : > { %7872 = vmatmul.mubr.bf16.gmra.mrb[124].mxu0 %v16009_v4  ;;  %v16040_v4 = vld [vmem:[%s20215_s28 + $0x1f4] ss:$8 sps:$4 sm:$0xff]  }
 0xec9   : > { %7879 = vmatprep.mubr.bf16.mxu0 %v16010_v14 }
 0xed0   : > { %7880 = vmatmul.mubr.bf16.gmra.mrb[128].mxu0 %v16011_v37 }
 0xed1   : > { %7887 = vmatprep.mubr.bf16.mxu0 %v16012_v16 }
 0xed8   : > { %7888 = vmatmul.mubr.bf16.gmra.mrb[132].mxu0 %v16013_v1 }
 0xed9   : > { %7895 = vmatprep.mubr.bf16.mxu0 %v16014_v7 }
 0xee0   : > { %7896 = vmatmul.mubr.bf16.gmra.mrb[136].mxu0 %v16015_v2  ;;  %v16041_v2 = vld [vmem:[%s20215_s28 + $0x1f0] ss:$8 sps:$4 sm:$0xff]  }
 0xee1   : > { %7903 = vmatprep.mubr.bf16.mxu0 %v16016_v61  ;;  %v16042_v61 = vld [vmem:[%s20215_s28 + $0x204] ss:$8 sps:$4 sm:$0xff]  }
 0xee8   : > { %7904 = vmatmul.mubr.bf16.gmra.mrb[140].mxu0 %v16017_v35 }
 0xee9   : > { %7911 = vmatprep.mubr.bf16.mxu0 %v16018_v3 }
 0xef0   : > { %7912 = vmatmul.mubr.bf16.gmra.mrb[144].mxu0 %v16019_v5 }
 0xef1   : > { %7919 = vmatprep.mubr.bf16.mxu0 %v16020_v36 }
 0xef8   : > { %7920 = vmatmul.mubr.bf16.gmra.mrb[148].mxu0 %v16021_v48 }
 0xef9   : > { %7927 = vmatprep.mubr.bf16.mxu0 %v16022_v53  ;;  %v16043_v53 = vld [vmem:[%s20215_s28 + $0x200] ss:$8 sps:$4 sm:$0xff]  }
 0xf00   : > { %7928 = vmatmul.mubr.bf16.gmra.mrb[152].mxu0 %v16023_v22  ;;  %v16044_v22 = vld [vmem:[%s20215_s28 + $0x214] ss:$8 sps:$4 sm:$0xff]  }
 0xf01   : > { %7935 = vmatprep.mubr.bf16.mxu0 %v16024_v32 }
 0xf08   : > { %7936 = vmatmul.mubr.bf16.gmra.mrb[156].mxu0 %v16025_v8 }
 0xf09   : > { %7943 = vmatprep.mubr.bf16.mxu0 %v16026_v38 }
 0xf10   : > { %7944 = vmatmul.mubr.bf16.gmra.mrb[160].mxu0 %v16027_v15 }
 0xf11   : > { %7951 = vmatprep.mubr.bf16.mxu0 %v16028_v47 }
 0xf18   : > { %7952 = vmatmul.mubr.bf16.gmra.mrb[164].mxu0 %v16029_v21  ;;  %v16045_v21 = vld [vmem:[%s20215_s28 + $0x210] ss:$8 sps:$4 sm:$0xff]  }
 0xf19   : > { %7959 = vmatprep.mubr.bf16.mxu0 %v16030_v28  ;;  %v16046_v28 = vld [vmem:[%s20215_s28 + $0x224] ss:$8 sps:$4 sm:$0xff]  }
 0xf20   : > { %7960 = vmatmul.mubr.bf16.gmra.mrb[168].mxu0 %v16031_v44 }
 0xf21   : > { %7967 = vmatprep.mubr.bf16.mxu0 %v16032_v51 }
 0xf23   : > { %v18761_v9 = vpop.f32.mrb[64].mxu0 }
 0xf24   : > { %v7755_v49 = vpop.f32.mrb[65].mxu0 }
 0xf25   : > { %v18763_v29 = vpop.f32.mrb[66].mxu0 }
 0xf26   : > { %v8136_v31 = vpack.c.bf16 %v18763_v29, %v18761_v9  ;;  %v7758_v33 = vpop.f32.mrb[67].mxu0  ;;  %v15476_v9 = vld [vmem:[%s20185_s13 + $0x50] sm:$0xff]  }
 0xf27   : > { %v16047_v33 = vld [vmem:[%s20215_s28 + $0x220] ss:$8 sps:$4 sm:$0xff]  }
 0xf28   : > { %7968 = vmatmul.mubr.bf16.gmra.mrb[172].mxu0 %v16033_v62 }
 0xf29   : > { %7975 = vmatprep.mubr.bf16.mxu0 %v16034_v13 }
 0xf2b   : > { %v18779_v34 = vpop.f32.mrb[68].mxu0 }
 0xf2c   : > { %v7763_v58 = vpop.f32.mrb[69].mxu0 }
 0xf2d   : > { %v18781_v54 = vpop.f32.mrb[70].mxu0 }
 0xf2e   : > { %v8137_v63 = vpack.c.bf16 %v18781_v54, %v18779_v34  ;;  %v7766_v56 = vpop.f32.mrb[71].mxu0  ;;  %v15477_v34 = vld [vmem:[%s20185_s13 + $0x58] sm:$0xff]  }
 0xf30   : > { %7976 = vmatmul.mubr.bf16.gmra.mrb[176].mxu0 %v16035_v50  ;;  %v16049_v50 = vld [vmem:[%s20215_s28 + $0x230] ss:$8 sps:$4 sm:$0xff]  }
 0xf31   : > { %7983 = vmatprep.mubr.bf16.mxu0 %v16036_v43  ;;  %v16050_v43 = vld [vmem:[%s20215_s28 + $0x244] ss:$8 sps:$4 sm:$0xff]  }
 0xf33   : > { %v18791_v27 = vpop.f32.mrb[72].mxu0 }
 0xf34   : > { %v7771_v10 = vpop.f32.mrb[73].mxu0 }
 0xf35   : > { %v18793_v24 = vpop.f32.mrb[74].mxu0 }
 0xf36   : > { %v8138_v59 = vpack.c.bf16 %v18793_v24, %v18791_v27  ;;  %v7774_v17 = vpop.f32.mrb[75].mxu0  ;;  %v15478_v27 = vld [vmem:[%s20186_s14 + $0x40] sm:$0xff]  }
 0xf38   : > { %7984 = vmatmul.mubr.bf16.gmra.mrb[180].mxu0 %v16037_v46 }
 0xf39   : > { %7991 = vmatprep.mubr.bf16.mxu0 %v16038_v0 }
 0xf3b   : > { %v18803_v11 = vpop.f32.mrb[76].mxu0 }
 0xf3c   : > { %v7779_v6 = vpop.f32.mrb[77].mxu0 }
 0xf3d   : > { %v18805_v12 = vpop.f32.mrb[78].mxu0 }
 0xf3e   : > { %v8139_v23 = vpack.c.bf16 %v18805_v12, %v18803_v11  ;;  %v7782_v55 = vpop.f32.mrb[79].mxu0 }
 0xf3f   : > { %v16051_v55 = vld [vmem:[%s20215_s28 + $0x240] ss:$8 sps:$4 sm:$0xff]  }
 0xf40   : > { %7992 = vmatmul.mubr.bf16.gmra.mrb[184].mxu0 %v16039_v25  ;;  %v16052_v25 = vld [vmem:[%s20215_s28 + $0x254] ss:$8 sps:$4 sm:$0xff]  }
 0xf41   : > { %7999 = vmatprep.mubr.bf16.mxu0 %v16040_v4 }
 0xf43   : > { %v18815_v14 = vpop.f32.mrb[80].mxu0 }
 0xf44   : > { %v7787_v37 = vpop.f32.mrb[81].mxu0 }
 0xf45   : > { %v18817_v16 = vpop.f32.mrb[82].mxu0 }
 0xf46   : > { %v8140_v1 = vpack.c.bf16 %v18817_v16, %v18815_v14  ;;  %v7790_v7 = vpop.f32.mrb[83].mxu0 }
 0xf48   : > { %8000 = vmatmul.mubr.bf16.gmra.mrb[188].mxu0 %v16041_v2 }
 0xf49   : > { %8007 = vmatprep.mubr.bf16.mxu0 %v16042_v61 }
 0xf4b   : > { %v18827_v35 = vpop.f32.mrb[84].mxu0 }
 0xf4c   : > { %v7795_v3 = vpop.f32.mrb[85].mxu0 }
 0xf4d   : > { %v18829_v5 = vpop.f32.mrb[86].mxu0  ;;  %v16053_v3 = vld [vmem:[%s20215_s28 + $0x250] ss:$8 sps:$4 sm:$0xff]  }
 0xf4e   : > { %v8141_v36 = vpack.c.bf16 %v18829_v5, %v18827_v35  ;;  %v7798_v48 = vpop.f32.mrb[87].mxu0 }
 0xf4f   : > { %v16054_v48 = vld [vmem:[%s20215_s28 + $0x264] ss:$8 sps:$4 sm:$0xff]  }
 0xf50   : > { %8008 = vmatmul.mubr.bf16.gmra.mrb[192].mxu0 %v16043_v53 }
 0xf51   : > { %8015 = vmatprep.mubr.bf16.mxu0 %v16044_v22 }
 0xf53   : > { %v18839_v32 = vpop.f32.mrb[88].mxu0 }
 0xf54   : > { %v7803_v8 = vpop.f32.mrb[89].mxu0 }
 0xf55   : > { %v18841_v38 = vpop.f32.mrb[90].mxu0 }
 0xf56   : > { %v7806_v47 = vpop.f32.mrb[91].mxu0  ;;  %v20263_v11 = vpack.c.bf16 %v18841_v38, %v18839_v32 }
 0xf58   : > { %8016 = vmatmul.mubr.bf16.gmra.mrb[196].mxu0 %v16045_v21 }
 0xf59   : > { %8023 = vmatprep.mubr.bf16.mxu0 %v16046_v28  ;;  %v16055_v28 = vld [vmem:[%s20215_s28 + $0x260] ss:$8 sps:$4 sm:$0xff]  }
 0xf5b   : > { %v18851_v20 = vpop.f32.mrb[92].mxu0 }
 0xf5c   : > { %v7811_v44 = vpop.f32.mrb[93].mxu0 }
 0xf5d   : > { %v18853_v51 = vpop.f32.mrb[94].mxu0  ;;  %v16056_v44 = vld [vmem:[%s20215_s28 + $0x274] ss:$8 sps:$4 sm:$0xff]  }
 0xf5e   : > { %v7814_v49 = vpop.f32.mrb[95].mxu0 }
 0xf60   : > { %8024 = vmatmul.mubr.bf16.gmra.mrb[200].mxu0 %v16047_v33 }
 0xf61   : > { %8031 = vmatprep.mubr.bf16.mxu0 %v16048_v39 }
 0xf63   : > { %v18863_v62 = vpop.f32.mrb[96].mxu0 }
 0xf64   : > { %v7819_v13 = vpop.f32.mrb[97].mxu0 }
 0xf65   : > { %v18865_v19 = vpop.f32.mrb[98].mxu0 }
 0xf66   : > { %v7822_v56 = vpop.f32.mrb[99].mxu0  ;;  %v20265_v35 = vpack.c.bf16 %v18865_v19, %v18863_v62 }
 0xf68   : > { %8032 = vmatmul.mubr.bf16.gmra.mrb[204].mxu0 %v16049_v50  ;;  %v16057_v50 = vld [vmem:[%s20215_s28 + $0x270] ss:$8 sps:$4 sm:$0xff]  }
 0xf69   : > { %8039 = vmatprep.mubr.bf16.mxu0 %v16050_v43  ;;  %v16058_v43 = vld [vmem:[%s20215_s28 + $0x284] ss:$8 sps:$4 sm:$0xff]  }
 0xf6b   : > { %v18875_v10 = vpop.f32.mrb[100].mxu0 }
 0xf6c   : > { %v7827_v17 = vpop.f32.mrb[101].mxu0 }
 0xf6d   : > { %v18877_v46 = vpop.f32.mrb[102].mxu0 }
 0xf6e   : > { %v7830_v6 = vpop.f32.mrb[103].mxu0 }
 0xf70   : > { %8040 = vmatmul.mubr.bf16.gmra.mrb[208].mxu0 %v16051_v55 }
 0xf71   : > { %8047 = vmatprep.mubr.bf16.mxu0 %v16052_v25 }
 0xf73   : > { %v18887_v4 = vpop.f32.mrb[104].mxu0 }
 0xf74   : > { %v7835_v37 = vpop.f32.mrb[105].mxu0 }
 0xf75   : > { %v18889_v7 = vpop.f32.mrb[106].mxu0 }
 0xf76   : > { %v7838_v61 = vpop.f32.mrb[107].mxu0 }
 0xf77   : > { %v16059_v61 = vld [vmem:[%s20215_s28 + $0x280] ss:$8 sps:$4 sm:$0xff]  }
 0xf78   : > { %8048 = vmatmul.mubr.bf16.gmra.mrb[212].mxu0 %v16053_v3  ;;  %v16060_v3 = vld [vmem:[%s20215_s28 + $0x294] ss:$8 sps:$4 sm:$0xff]  }
 0xf79   : > { %8055 = vmatprep.mubr.bf16.mxu0 %v16054_v48 }
 0xf7b   : > { %v18899_v53 = vpop.f32.mrb[108].mxu0 }
 0xf7c   : > { %v7843_v22 = vpop.f32.mrb[109].mxu0 }
 0xf7d   : > { %v18901_v8 = vpop.f32.mrb[110].mxu0 }
 0xf7e   : > { %v7846_v21 = vpop.f32.mrb[111].mxu0 }
 0xf7f   : > { %v15470_v21 = vld [vmem:[%s20185_s13] sm:$0xff]  }
 0xf80   : > { %8056 = vmatmul.mubr.bf16.gmra.mrb[216].mxu0 %v16055_v28  ;;  %14313 = vmatprep.subr.bf16.mxu1 %v15470_v21 }
 0xf81   : > { %8063 = vmatprep.mubr.bf16.mxu0 %v16056_v44 }
 0xf83   : > { %v18911_v49 = vpop.f32.mrb[112].mxu0 }
 0xf84   : > { %v7851_v33 = vpop.f32.mrb[113].mxu0 }
 0xf85   : > { %v18913_v39 = vpop.f32.mrb[114].mxu0 }
 0xf86   : > { %v7854_v56 = vpop.f32.mrb[115].mxu0 }
 0xf87   : > { %v16061_v56 = vld [vmem:[%s20215_s28 + $0x290] ss:$8 sps:$4 sm:$0xff]  }
 0xf88   : > { %8064 = vmatmul.mubr.bf16.gmra.mrb[220].mxu0 %v16057_v50  ;;  %v16062_v50 = vld [vmem:[%s20215_s28 + $0x2a4] ss:$8 sps:$4 sm:$0xff]  }
 0xf89   : > { %8071 = vmatprep.mubr.bf16.mxu0 %v16058_v43 }
 0xf8b   : > { %v18923_v17 = vpop.f32.mrb[116].mxu0 }
 0xf8c   : > { %v7859_v6 = vpop.f32.mrb[117].mxu0 }
 0xf8d   : > { %v18925_v55 = vpop.f32.mrb[118].mxu0 }
 0xf8e   : > { %v7862_v37 = vpop.f32.mrb[119].mxu0 }
 0xf90   : > { %8072 = vmatmul.mubr.bf16.gmra.mrb[224].mxu0 %v16059_v61  ;;  %v16065_v61 = vld [vmem:[%s20215_s28 + $0x2b0] ss:$8 sps:$4 sm:$0xff]  }
 0xf91   : > { %8079 = vmatprep.mubr.bf16.mxu0 %v16060_v3 }
 0xf93   : > { %v18935_v48 = vpop.f32.mrb[120].mxu0 }
 0xf94   : > { %v7867_v22 = vpop.f32.mrb[121].mxu0 }
 0xf95   : > { %v18940_v28 = vpop.f32.mrb[122].mxu0  ;;  %v16063_v22 = vld [vmem:[%s20215_s28 + $0x2a0] ss:$8 sps:$4 sm:$0xff]  }
 0xf96   : > { %v7870_v33 = vpop.f32.mrb[123].mxu0 }
 0xf97   : > { %v16064_v33 = vld [vmem:[%s20215_s28 + $0x2b4] ss:$8 sps:$4 sm:$0xff]  }
 0xf98   : > { %8080 = vmatmul.mubr.bf16.gmra.mrb[228].mxu0 %v16061_v56 }
 0xf99   : > { %8087 = vmatprep.mubr.bf16.mxu0 %v16062_v50 }
 0xf9b   : > { %v18950_v43 = vpop.f32.mrb[124].mxu0 }
 0xf9c   : > { %v7875_v6 = vpop.f32.mrb[125].mxu0 }
 0xf9d   : > { %v18952_v37 = vpop.f32.mrb[126].mxu0 }
 0xf9e   : > { %v7878_v3 = vpop.f32.mrb[127].mxu0 }
 0xf9f   : > { %v16066_v3 = vld [vmem:[%s20215_s28 + $0x2c4] ss:$8 sps:$4 sm:$0xff]  }
 0xfa0   : > { %8088 = vmatmul.mubr.bf16.gmra.mrb[232].mxu0 %v16063_v22 }
 0xfa1   : > { %8095 = vmatprep.mubr.bf16.mxu0 %v16064_v33 }
 0xfa3   : > { %v7881_v56 = vpop.f32.mrb[128].mxu0 }
 0xfa4   : > { %v7883_v50 = vpop.f32.mrb[129].mxu0 }
 0xfa5   : > { %v7884_v44 = vpop.f32.mrb[130].mxu0 }
 0xfa6   : > { %v8160_v6 = vpack.c.bf16 %v7884_v44, %v7881_v56  ;;  %v7886_v25 = vpop.f32.mrb[131].mxu0  ;;  %v16067_v44 = vld [vmem:[%s20215_s28 + $0x2c0] ss:$8 sps:$4 sm:$0xff]  }
 0xfa7   : > { %v15471_v25 = vld [vmem:[%s20185_s13 + $0x8] sm:$0xff]  }
 0xfa8   : > { %8096 = vmatmul.mubr.bf16.gmra.mrb[236].mxu0 %v16065_v61  ;;  %14281 = vmatprep.mubr.msk.bf16.mxu1 %vm2599_vm2, %v8160_v6  ;;  %v16068_v61 = vld [vmem:[%s20215_s28 + $0x2d4] ss:$8 sps:$4 sm:$0xff]  }
 0xfa9   : > { %8103 = vmatprep.mubr.bf16.mxu0 %v16066_v3 }
 0xfab   : > { %v7889_v22 = vpop.f32.mrb[132].mxu0 }
 0xfac   : > { %v7891_v13 = vpop.f32.mrb[133].mxu0 }
 0xfad   : > { %v7892_v33 = vpop.f32.mrb[134].mxu0  ;;  %v15472_v13 = vld [vmem:[%s20185_s13 + $0x10] sm:$0xff]  }
 0xfae   : > { %v8161_v47 = vpack.c.bf16 %v7892_v33, %v7889_v22  ;;  %v7894_v50 = vpop.f32.mrb[135].mxu0 }
 0xfaf   : > { %v16070_v50 = vld [vmem:[%s20215_s28 + $0x2e4] ss:$8 sps:$4 sm:$0xff]  }
 0xfb0   : > { %8104 = vmatmul.mubr.bf16.gmra.mrb[240].mxu0 %v16067_v44  ;;  %14282 = vmatmul.mubr.msk.bf16.vlgmr.msra.gmra.mrb[192].mxu1 %vm2599_vm2, %v8161_v47  ;;  %v15473_v47 = vld [vmem:[%s20185_s13 + $0x18] sm:$0xff]  }
 0xfb1   : > { %8111 = vmatprep.mubr.bf16.mxu0 %v16068_v61  ;;  %14314 = vmatpush3.bf16.msra.mxu1 %v15470_v21  ;;  %v16069_v21 = vld [vmem:[%s20215_s28 + $0x2d0] ss:$8 sps:$4 sm:$0xff]  }
 0xfb2   : > { %14315 = vmatprep.subr.bf16.mxu1 %v15471_v25 }
 0xfb3   : > { %v7897_v56 = vpop.f32.mrb[136].mxu0 }
 0xfb4   : > { %v7899_v6 = vpop.f32.mrb[137].mxu0 }
 0xfb5   : > { %v7900_v3 = vpop.f32.mrb[138].mxu0  ;;  %14316 = vmatpush3.bf16.msra.mxu1 %v15471_v25 }
 0xfb6   : > { %v8162_v22 = vpack.c.bf16 %v7900_v3, %v7897_v56  ;;  %v7902_v33 = vpop.f32.mrb[139].mxu0  ;;  %14317 = vmatprep.subr.bf16.mxu1 %v15472_v13  ;;  %v16071_v3 = vld [vmem:[%s20215_s28 + $0x2e0] ss:$8 sps:$4 sm:$0xff]  }
 0xfb8   : > { %8112 = vmatmul.mubr.bf16.gmra.mrb[244].mxu0 %v16069_v21  ;;  %14285 = vmatprep.mubr.msk.bf16.mxu1 %vm2599_vm2, %v8162_v22  ;;  %v16072_v22 = vld [vmem:[%s20215_s28 + $0x2f4] ss:$8 sps:$4 sm:$0xff]  }
 0xfb9   : > { %8119 = vmatprep.mubr.bf16.mxu0 %v16070_v50  ;;  %14318 = vmatpush3.bf16.msra.mxu1 %v15472_v13 }
 0xfba   : > { %14319 = vmatprep.subr.bf16.mxu1 %v15473_v47 }
 0xfbb   : > { %v7905_v25 = vpop.f32.mrb[140].mxu0 }
 0xfbc   : > { %v7907_v44 = vpop.f32.mrb[141].mxu0 }
 0xfbd   : > { %v7908_v61 = vpop.f32.mrb[142].mxu0  ;;  %14320 = vmatpush3.bf16.msra.mxu1 %v15473_v47  ;;  %v16073_v47 = vld [vmem:[%s20215_s28 + $0x2f0] ss:$8 sps:$4 sm:$0xff]  }
 0xfbe   : > { %v8163_v56 = vpack.c.bf16 %v7908_v61, %v7905_v25  ;;  %v7910_v6 = vpop.f32.mrb[143].mxu0 }
 0xfc0   : > { %8120 = vmatmul.mubr.bf16.gmra.mrb[248].mxu0 %v16071_v3  ;;  %14286 = vmatmul.mubr.msk.bf16.gmra.mrb[196].mxu1 %vm2599_vm2, %v8163_v56 }
 0xfc1   : > { %8127 = vmatprep.mubr.bf16.mxu0 %v16072_v22 }
 0xfc3   : > { %v7913_v13 = vpop.f32.mrb[144].mxu0 }
 0xfc4   : > { %v7915_v33 = vpop.f32.mrb[145].mxu0 }
 0xfc5   : > { %v7916_v21 = vpop.f32.mrb[146].mxu0 }
 0xfc6   : > { %v8164_v50 = vpack.c.bf16 %v7916_v21, %v7913_v13  ;;  %v7918_v44 = vpop.f32.mrb[147].mxu0 }
 0xfc8   : > { %8128 = vmatmul.mubr.bf16.gmra.mrb[252].mxu0 %v16073_v47  ;;  %14289 = vmatprep.mubr.msk.bf16.mxu1 %vm2599_vm2, %v8164_v50  ;;  %v19008_v47 = vld [vmem:[%s20185_s13 + $0x40] sm:$0xff]  }
 0xfc9   : > { %10284 = vmatprep.mubr.bf16.mxu0 %v20220_v57  ;;  %14353 = vmatprep.subr.bf16.mxu1 %v19008_v47 }
 0xfcb   : > { %v7921_v25 = vpop.f32.mrb[148].mxu0 }
 0xfcc   : > { %v7923_v61 = vpop.f32.mrb[149].mxu0 }
 0xfcd   : > { %v7924_v56 = vpop.f32.mrb[150].mxu0 }
 0xfce   : > { %v8165_v6 = vpack.c.bf16 %v7924_v56, %v7921_v25  ;;  %v7926_v3 = vpop.f32.mrb[151].mxu0 }
 0xfd0   : > { %14290 = vmatmul.mubr.msk.bf16.gmra.mrb[200].mxu1 %vm2599_vm2, %v8165_v6 }
 0xfd3   : > { %v7929_v22 = vpop.f32.mrb[152].mxu0 }
 0xfd4   : > { %v7931_v33 = vpop.f32.mrb[153].mxu0 }
 0xfd5   : > { %v7932_v13 = vpop.f32.mrb[154].mxu0 }
 0xfd6   : > { %v8166_v21 = vpack.c.bf16 %v7932_v13, %v7929_v22  ;;  %v7934_v44 = vpop.f32.mrb[155].mxu0 }
 0xfd8   : > { %14293 = vmatprep.mubr.msk.bf16.mxu1 %vm2599_vm2, %v8166_v21 }
 0xfdb   : > { %v7937_v50 = vpop.f32.mrb[156].mxu0 }
 0xfdc   : > { %v7939_v61 = vpop.f32.mrb[157].mxu0 }
 0xfdd   : > { %v7940_v25 = vpop.f32.mrb[158].mxu0 }
 0xfde   : > { %v8167_v56 = vpack.c.bf16 %v7940_v25, %v7937_v50  ;;  %v7942_v3 = vpop.f32.mrb[159].mxu0 }
 0xfe0   : > { %14294 = vmatmul.mubr.msk.bf16.gmra.mrb[204].mxu1 %vm2599_vm2, %v8167_v56 }
 0xfe3   : > { %v7945_v6 = vpop.f32.mrb[160].mxu0 }
 0xfe4   : > { %v7947_v33 = vpop.f32.mrb[161].mxu0 }
 0xfe5   : > { %v7948_v22 = vpop.f32.mrb[162].mxu0 }
 0xfe6   : > { %v8168_v13 = vpack.c.bf16 %v7948_v22, %v7945_v6  ;;  %v7950_v44 = vpop.f32.mrb[163].mxu0 }
 0xfe8   : > { %14297 = vmatprep.mubr.msk.bf16.mxu1 %vm2599_vm2, %v8168_v13 }
 0xfeb   : > { %v7953_v2 = vpop.f32.mrb[164].mxu0 }
 0xfec   : > { %v7955_v0 = vpop.f32.mrb[165].mxu0 }
 0xfed   : > { %v7956_v58 = vpop.f32.mrb[166].mxu0 }
 0xfee   : > { %v8169_v21 = vpack.c.bf16 %v7956_v58, %v7953_v2  ;;  %v7958_v26 = vpop.f32.mrb[167].mxu0 }
 0xff0   : > { %14298 = vmatmul.mubr.msk.bf16.gmra.mrb[208].mxu1 %vm2599_vm2, %v8169_v21 }
 0xff3   : > { %v7961_v61 = vpop.f32.mrb[168].mxu0 }
 0xff4   : > { %v7963_v15 = vpop.f32.mrb[169].mxu0 }
 0xff5   : > { %v7964_v50 = vpop.f32.mrb[170].mxu0 }
 0xff6   : > { %v8170_v25 = vpack.c.bf16 %v7964_v50, %v7961_v61  ;;  %v7966_v3 = vpop.f32.mrb[171].mxu0 }
 0xff8   : > { %14301 = vmatprep.mubr.msk.bf16.mxu1 %vm2599_vm2, %v8170_v25 }
 0xffb   : > { %v7969_v56 = vpop.f32.mrb[172].mxu0 }
 0xffc   : > { %v7971_v33 = vpop.f32.mrb[173].mxu0 }
 0xffd   : > { %v7972_v6 = vpop.f32.mrb[174].mxu0 }
 0xffe   : > { %v8171_v22 = vpack.c.bf16 %v7972_v6, %v7969_v56  ;;  %v7974_v44 = vpop.f32.mrb[175].mxu0 }
0x1000   : > { %14302 = vmatmul.mubr.msk.bf16.gmra.mrb[212].mxu1 %vm2599_vm2, %v8171_v22 }
0x1003   : > { %v7977_v0 = vpop.f32.mrb[176].mxu0 }
0x1004   : > { %v7979_v13 = vpop.f32.mrb[177].mxu0 }
0x1005   : > { %v7980_v58 = vpop.f32.mrb[178].mxu0 }
0x1006   : > { %v8172_v26 = vpack.c.bf16 %v7980_v58, %v7977_v0  ;;  %v7982_v2 = vpop.f32.mrb[179].mxu0 }
0x1008   : > { %14305 = vmatprep.mubr.msk.bf16.mxu1 %vm2599_vm2, %v8172_v26 }
0x100b   : > { %v7985_v15 = vpop.f32.mrb[180].mxu0 }
0x100c   : > { %v7987_v21 = vpop.f32.mrb[181].mxu0 }
0x100d   : > { %v7988_v61 = vpop.f32.mrb[182].mxu0 }
0x100e   : > { %v8173_v50 = vpack.c.bf16 %v7988_v61, %v7985_v15  ;;  %v7990_v3 = vpop.f32.mrb[183].mxu0  ;;  %v15475_v61 = vld [vmem:[%s20185_s13 + $0x48] sm:$0xff]  }
0x1010   : > { %14306 = vmatmul.mubr.msk.bf16.gmra.mrb[216].mxu1 %vm2599_vm2, %v8173_v50 }
0x1013   : > { %v7993_v25 = vpop.f32.mrb[184].mxu0 }
0x1014   : > { %v7995_v33 = vpop.f32.mrb[185].mxu0 }
0x1015   : > { %v7996_v56 = vpop.f32.mrb[186].mxu0 }
0x1016   : > { %v8174_v6 = vpack.c.bf16 %v7996_v56, %v7993_v25  ;;  %v7998_v44 = vpop.f32.mrb[187].mxu0 }
0x1018   : > { %14309 = vmatprep.mubr.msk.bf16.mxu1 %vm2599_vm2, %v8174_v6  ;;  %v20264_v6 = vpack.c.bf16 %v18853_v51, %v18851_v20  ;;  %v20267_v20 = vpack.c.bf16 %v18889_v7, %v18887_v4 }
0x101b   : > { %v8001_v22 = vpop.f32.mrb[188].mxu0 }
0x101c   : > { %v8003_v13 = vpop.f32.mrb[189].mxu0 }
0x101d   : > { %v8004_v0 = vpop.f32.mrb[190].mxu0 }
0x101e   : > { %v8175_v58 = vpack.c.bf16 %v8004_v0, %v8001_v22  ;;  %v8006_v2 = vpop.f32.mrb[191].mxu0  ;;  %v20266_v22 = vpack.c.bf16 %v18877_v46, %v18875_v10  ;;  %v20269_v10 = vpack.c.bf16 %v18913_v39, %v18911_v49 }
0x1020   : > { %14310 = vmatmul.mubr.msk.bf16.gmra.mrb[220].mxu1 %vm2599_vm2, %v8175_v58  ;;  %v20268_v58 = vpack.c.bf16 %v18901_v8, %v18899_v53  ;;  %v20271_v53 = vpack.c.bf16 %v18940_v28, %v18935_v48 }
0x1021   : > { %14321 = vmatprep.mubr.msk.bf16.mxu1 %vm2599_vm2, %v8136_v31 }
0x1023   : > { %v19025_v26 = vpop.f32.mrb[192].mxu0 }
0x1024   : > { %v8011_v15 = vpop.f32.mrb[193].mxu0 }
0x1025   : > { %v19027_v21 = vpop.f32.mrb[194].mxu0 }
0x1026   : > { %v8651_v50 = vpack.c.bf16 %v19027_v21, %v19025_v26  ;;  %v8014_v3 = vpop.f32.mrb[195].mxu0 }
0x1028   : > { %14322 = vmatmul.mubr.msk.bf16.vlgmr.msra.gmra.mrb[192].mxu1 %vm2599_vm2, %v8137_v63 }
0x1029   : > { %14325 = vmatprep.mubr.msk.bf16.mxu1 %vm2599_vm2, %v8138_v59  ;;  %14354 = vmatpush3.bf16.msra.mxu1 %v19008_v47 }
0x102a   : > { %14355 = vmatprep.subr.bf16.mxu1 %v15475_v61 }
0x102b   : > { %v19046_v29 = vpop.f32.mrb[196].mxu0 }
0x102c   : > { %v8019_v31 = vpop.f32.mrb[197].mxu0 }
0x102d   : > { %14356 = vmatpush3.bf16.msra.mxu1 %v15475_v61  ;;  %v8020_v25 = vpop.f32.mrb[198].mxu0  ;;  %v20270_v61 = vpack.c.bf16 %v18925_v55, %v18923_v17 }
0x102e   : > { %14357 = vmatprep.subr.bf16.mxu1 %v15476_v9  ;;  %v8652_v54 = vpack.c.bf16 %v8020_v25, %v19046_v29  ;;  %v8022_v63 = vpop.f32.mrb[199].mxu0  ;;  %v20272_v29 = vpack.c.bf16 %v18952_v37, %v18950_v43  ;;  %v15479_v25 = vld [vmem:[%s20186_s14 + $0x48] sm:$0xff]  }
0x1030   : > { %14326 = vmatmul.mubr.msk.bf16.gmra.mrb[196].mxu1 %vm2599_vm2, %v8139_v23 }
0x1031   : > { %14329 = vmatprep.mubr.msk.bf16.mxu1 %vm2599_vm2, %v8140_v1  ;;  %14358 = vmatpush3.bf16.msra.mxu1 %v15476_v9 }
0x1032   : > { %14359 = vmatprep.subr.bf16.mxu1 %v15477_v34 }
0x1033   : > { %v8025_v24 = vpop.f32.mrb[200].mxu0 }
0x1034   : > { %v8027_v59 = vpop.f32.mrb[201].mxu0 }
0x1035   : > { %14360 = vmatpush3.bf16.msra.mxu1 %v15477_v34  ;;  %v8028_v47 = vpop.f32.mrb[202].mxu0 }
0x1036   : > { %v8653_v33 = vpack.c.bf16 %v8028_v47, %v8025_v24  ;;  %v8030_v56 = vpop.f32.mrb[203].mxu0  ;;  %14393 = vmatprep.subr.bf16.mxu1 %v15478_v27 }
0x1038   : > { %14330 = vmatmul.mubr.msk.bf16.gmra.mrb[200].mxu1 %vm2599_vm2, %v8141_v36 }
0x1039   : > { %14333 = vmatprep.mubr.msk.bf16.mxu1 %vm2599_vm2, %v20263_v11 }
0x103b   : > { %v8033_v12 = vpop.f32.mrb[204].mxu0 }
0x103c   : > { %v8035_v23 = vpop.f32.mrb[205].mxu0 }
0x103d   : > { %v8036_v14 = vpop.f32.mrb[206].mxu0 }
0x103e   : > { %v8654_v16 = vpack.c.bf16 %v8036_v14, %v8033_v12  ;;  %v8038_v1 = vpop.f32.mrb[207].mxu0 }
0x1040   : > { %14334 = vmatmul.mubr.msk.bf16.gmra.mrb[204].mxu1 %vm2599_vm2, %v20264_v6 }
0x1041   : > { %14337 = vmatprep.mubr.msk.bf16.mxu1 %vm2599_vm2, %v20265_v35 }
0x1043   : > { %v8041_v5 = vpop.f32.mrb[208].mxu0 }
0x1044   : > { %v8043_v36 = vpop.f32.mrb[209].mxu0 }
0x1045   : > { %v8044_v32 = vpop.f32.mrb[210].mxu0 }
0x1046   : > { %v8655_v38 = vpack.c.bf16 %v8044_v32, %v8041_v5  ;;  %v8046_v44 = vpop.f32.mrb[211].mxu0 }
0x1048   : > { %14338 = vmatmul.mubr.msk.bf16.gmra.mrb[208].mxu1 %vm2599_vm2, %v20266_v22 }
0x1049   : > { %14341 = vmatprep.mubr.msk.bf16.mxu1 %vm2599_vm2, %v20267_v20 }
0x104b   : > { %v8049_v51 = vpop.f32.mrb[212].mxu0 }
0x104c   : > { %v8051_v13 = vpop.f32.mrb[213].mxu0 }
0x104d   : > { %v8052_v62 = vpop.f32.mrb[214].mxu0 }
0x104e   : > { %v8656_v19 = vpack.c.bf16 %v8052_v62, %v8049_v51  ;;  %v8054_v0 = vpop.f32.mrb[215].mxu0 }
0x1050   : > { %14342 = vmatmul.mubr.msk.bf16.gmra.mrb[212].mxu1 %vm2599_vm2, %v20268_v58 }
0x1051   : > { %14345 = vmatprep.mubr.msk.bf16.mxu1 %vm2599_vm2, %v20269_v10  ;;  %v15480_v10 = vld [vmem:[%s20186_s14 + $0x50] sm:$0xff]  }
0x1053   : > { %v8057_v46 = vpop.f32.mrb[216].mxu0 }
0x1054   : > { %v8059_v2 = vpop.f32.mrb[217].mxu0 }
0x1055   : > { %v8060_v4 = vpop.f32.mrb[218].mxu0  ;;  %v15482_v2 = vld [vmem:[%s20186_s14 + $0x60] sm:$0xff]  }
0x1056   : > { %v8657_v7 = vpack.c.bf16 %v8060_v4, %v8057_v46  ;;  %v8062_v15 = vpop.f32.mrb[219].mxu0  ;;  %v15481_v46 = vld [vmem:[%s20186_s14 + $0x58] sm:$0xff]   ;;  %v15483_v4 = vld [vmem:[%s20186_s14 + $0x68] sm:$0xff]  }
0x1057   : > { %v15485_v15 = vld [vmem:[%s20186_s14 + $0x78] sm:$0xff]  }
0x1058   : > { %14346 = vmatmul.mubr.msk.bf16.gmra.mrb[216].mxu1 %vm2599_vm2, %v20270_v61  ;;  %v15486_v61 = vld [vmem:[%s20186_s14] sm:$0xff]  }
0x1059   : > { %14349 = vmatprep.mubr.msk.bf16.mxu1 %vm2599_vm2, %v20271_v53 }
0x105b   : > { %v8065_v8 = vpop.f32.mrb[220].mxu0 }
0x105c   : > { %v8067_v3 = vpop.f32.mrb[221].mxu0 }
0x105d   : > { %v8068_v49 = vpop.f32.mrb[222].mxu0 }
0x105e   : > { %v8658_v39 = vpack.c.bf16 %v8068_v49, %v8065_v8  ;;  %v8070_v9 = vpop.f32.mrb[223].mxu0 }
0x1060   : > { %14350 = vmatmul.mubr.msk.bf16.gmra.mrb[220].mxu1 %vm2599_vm2, %v20272_v29 }
0x1061   : > { %14361 = vmatprep.mubr.msk.bf16.mxu1 %vm2599_vm2, %v8651_v50 }
0x1063   : > { %v8073_v17 = vpop.f32.mrb[224].mxu0 }
0x1064   : > { %v8075_v55 = vpop.f32.mrb[225].mxu0 }
0x1065   : > { %v8076_v48 = vpop.f32.mrb[226].mxu0 }
0x1066   : > { %v8659_v28 = vpack.c.bf16 %v8076_v48, %v8073_v17  ;;  %v8078_v31 = vpop.f32.mrb[227].mxu0 }
0x1068   : > { %14362 = vmatmul.mubr.msk.bf16.vlgmr.msra.gmra.mrb[192].mxu1 %vm2599_vm2, %v8652_v54 }
0x1069   : > { %14365 = vmatprep.mubr.msk.bf16.mxu1 %vm2599_vm2, %v8653_v33  ;;  %14394 = vmatpush3.bf16.msra.mxu1 %v15478_v27 }
0x106a   : > { %14395 = vmatprep.subr.bf16.mxu1 %v15479_v25 }
0x106b   : > { %v8081_v43 = vpop.f32.mrb[228].mxu0 }
0x106c   : > { %v8083_v37 = vpop.f32.mrb[229].mxu0 }
0x106d   : > { %v8084_v26 = vpop.f32.mrb[230].mxu0  ;;  %14396 = vmatpush3.bf16.msra.mxu1 %v15479_v25 }
0x106e   : > { %v8660_v21 = vpack.c.bf16 %v8084_v26, %v8081_v43  ;;  %v8086_v50 = vpop.f32.mrb[231].mxu0  ;;  %14397 = vmatprep.subr.bf16.mxu1 %v15480_v10 }
0x1070   : > { %14366 = vmatmul.mubr.msk.bf16.gmra.mrb[196].mxu1 %vm2599_vm2, %v8654_v16 }
0x1071   : > { %14369 = vmatprep.mubr.msk.bf16.mxu1 %vm2599_vm2, %v8655_v38  ;;  %14398 = vmatpush3.bf16.msra.mxu1 %v15480_v10  ;;  %v15492_v10 = vld [vmem:[%s20186_s14 + $0x30] sm:$0xff]  }
0x1072   : > { %14399 = vmatprep.subr.bf16.mxu1 %v15481_v46 }
0x1073   : > { %v8089_v34 = vpop.f32.mrb[232].mxu0 }
0x1074   : > { %v8091_v63 = vpop.f32.mrb[233].mxu0 }
0x1075   : > { %v8092_v24 = vpop.f32.mrb[234].mxu0  ;;  %14400 = vmatpush3.bf16.msra.mxu1 %v15481_v46 }
0x1076   : > { %v8661_v59 = vpack.c.bf16 %v8092_v24, %v8089_v34  ;;  %v8094_v47 = vpop.f32.mrb[235].mxu0  ;;  %14401 = vmatprep.subr.bf16.mxu1 %v15482_v2  ;;  %v15487_v24 = vld [vmem:[%s20186_s14 + $0x8] sm:$0xff]  }
0x1078   : > { %14370 = vmatmul.mubr.msk.bf16.gmra.mrb[200].mxu1 %vm2599_vm2, %v8656_v19 }
0x1079   : > { %14373 = vmatprep.mubr.msk.bf16.mxu1 %vm2599_vm2, %v8657_v7  ;;  %14402 = vmatpush3.bf16.msra.mxu1 %v15482_v2  ;;  %v15484_v7 = vld [vmem:[%s20186_s14 + $0x70] sm:$0xff]  }
0x107a   : > { %14403 = vmatprep.subr.bf16.mxu1 %v15483_v4 }
0x107b   : > { %v8097_v54 = vpop.f32.mrb[236].mxu0 }
0x107c   : > { %v8099_v27 = vpop.f32.mrb[237].mxu0 }
0x107d   : > { %v8100_v33 = vpop.f32.mrb[238].mxu0  ;;  %14404 = vmatpush3.bf16.msra.mxu1 %v15483_v4  ;;  %v15488_v27 = vld [vmem:[%s20186_s14 + $0x10] sm:$0xff]  }
0x107e   : > { %v8662_v56 = vpack.c.bf16 %v8100_v33, %v8097_v54  ;;  %v8102_v11 = vpop.f32.mrb[239].mxu0  ;;  %14405 = vmatprep.subr.bf16.mxu1 %v15484_v7 }
0x1080   : > { %14374 = vmatmul.mubr.msk.bf16.gmra.mrb[204].mxu1 %vm2599_vm2, %v8658_v39 }
0x1081   : > { %14377 = vmatprep.mubr.msk.bf16.mxu1 %vm2599_vm2, %v8659_v28  ;;  %14406 = vmatpush3.bf16.msra.mxu1 %v15484_v7 }
0x1082   : > { %14407 = vmatprep.subr.bf16.mxu1 %v15485_v15 }
0x1083   : > { %v8105_v12 = vpop.f32.mrb[240].mxu0 }
0x1084   : > { %v8107_v23 = vpop.f32.mrb[241].mxu0 }
0x1085   : > { %v8108_v14 = vpop.f32.mrb[242].mxu0  ;;  %14408 = vmatpush3.bf16.msra.mxu1 %v15485_v15 }
0x1086   : > { %v8663_v16 = vpack.c.bf16 %v8108_v14, %v8105_v12  ;;  %v8110_v1 = vpop.f32.mrb[243].mxu0  ;;  %14425 = vmatprep.subr.bf16.mxu1 %v15486_v61 }
0x1087   : > { %v15489_v1 = vld [vmem:[%s20186_s14 + $0x18] sm:$0xff]  }
0x1088   : > { %14378 = vmatmul.mubr.msk.bf16.gmra.mrb[208].mxu1 %vm2599_vm2, %v8660_v21 }
0x1089   : > { %14381 = vmatprep.mubr.msk.bf16.mxu1 %vm2599_vm2, %v8661_v59 }
0x108b   : > { %v8113_v6 = vpop.f32.mrb[244].mxu0 }
0x108c   : > { %v8115_v35 = vpop.f32.mrb[245].mxu0 }
0x108d   : > { %v8116_v5 = vpop.f32.mrb[246].mxu0 }
0x108e   : > { %v8664_v36 = vpack.c.bf16 %v8116_v5, %v8113_v6  ;;  %v8118_v32 = vpop.f32.mrb[247].mxu0 }
0x1090   : > { %14382 = vmatmul.mubr.msk.bf16.gmra.mrb[212].mxu1 %vm2599_vm2, %v8662_v56 }
0x1091   : > { %14385 = vmatprep.mubr.msk.bf16.mxu1 %vm2599_vm2, %v8663_v16 }
0x1093   : > { %v8121_v38 = vpop.f32.mrb[248].mxu0 }
0x1094   : > { %v8123_v44 = vpop.f32.mrb[249].mxu0 }
0x1095   : > { %v8124_v22 = vpop.f32.mrb[250].mxu0 }
0x1096   : > { %v8665_v20 = vpack.c.bf16 %v8124_v22, %v8121_v38  ;;  %v8126_v51 = vpop.f32.mrb[251].mxu0 }
0x1098   : > { %14386 = vmatmul.mubr.msk.bf16.gmra.mrb[216].mxu1 %vm2599_vm2, %v8664_v36  ;;  %v15490_v36 = vld [vmem:[%s20186_s14 + $0x20] sm:$0xff]  }
0x1099   : > { %14389 = vmatprep.mubr.msk.bf16.mxu1 %vm2599_vm2, %v8665_v20 }
0x109b   : > { %v8129_v13 = vpop.f32.mrb[252].mxu0 }
0x109c   : > { %v8131_v62 = vpop.f32.mrb[253].mxu0 }
0x109d   : > { %v8132_v19 = vpop.f32.mrb[254].mxu0  ;;  %v15491_v62 = vld [vmem:[%s20186_s14 + $0x28] sm:$0xff]  }
0x109e   : > { %v8666_v0 = vpack.c.bf16 %v8132_v19, %v8129_v13  ;;  %v8134_v58 = vpop.f32.mrb[255].mxu0 }
0x10a0   : > { %14390 = vmatmul.mubr.msk.bf16.gmra.mrb[220].mxu1 %vm2599_vm2, %v8666_v0 }
0x113b   : > { %v14363_v53 = vpop.f32.mrb[192].mxu1 }
0x113c   : > { %v8782_v8 = vpop.f32.mrb[193].mxu1  ;;  %v8943_v49 = vmax.f32 %v14363_v53, 0.0 }
0x113d   : > { %v14364_v3 = vpop.f32.mrb[194].mxu1  ;;  %v8941_v29 = vmax.f32 %v8782_v8, 0.0  ;;  %v15493_v8 = vld [vmem:[%s20186_s14 + $0x38] sm:$0xff]  }
0x113e   : > { %v8944_v39 = vmax.f32 %v14364_v3, 0.0  ;;  %v8785_v9 = vpop.f32.mrb[195].mxu1 }
0x113f   : > { %v8942_v17 = vmax.f32 %v8785_v9, 0.0  ;;  %v15494_v9 = vld [vmem:[%s20186_s14 + $0x80] sm:$0xff]  }
0x1140   : > { %v19150_v55 = vpack.c.bf16 %v8944_v39, %v8943_v49 }
0x1141   : > { %v8973_v48 = vpack.c.bf16 %v8942_v17, %v8941_v29 }
0x1143   : > { %14409 = vmatprep.mubr.bf16.mxu1 %v8973_v48  ;;  %v14367_v28 = vpop.f32.mrb[196].mxu1 }
0x1144   : > { %v8798_v31 = vpop.f32.mrb[197].mxu1  ;;  %v8947_v43 = vmax.f32 %v14367_v28, 0.0 }
0x1145   : > { %v14368_v25 = vpop.f32.mrb[198].mxu1  ;;  %v8945_v21 = vmax.f32 %v8798_v31, 0.0 }
0x1146   : > { %v8948_v37 = vmax.f32 %v14368_v25, 0.0  ;;  %v8801_v26 = vpop.f32.mrb[199].mxu1 }
0x1147   : > { %v8946_v50 = vmax.f32 %v8801_v26, 0.0 }
0x1148   : > { %v19152_v34 = vpack.c.bf16 %v8948_v37, %v8947_v43 }
0x1149   : > { %v8975_v63 = vpack.c.bf16 %v8946_v50, %v8945_v21 }
0x114b   : > { %14410 = vmatmul.mubr.bf16.vlgmr.msra.gmra.mrb[224].mxu1 %v8975_v63  ;;  %v14371_v59 = vpop.f32.mrb[200].mxu1 }
0x114c   : > { %v8814_v47 = vpop.f32.mrb[201].mxu1  ;;  %14426 = vmatpush3.bf16.msra.mxu1 %v15486_v61  ;;  %v8951_v33 = vmax.f32 %v14371_v59, 0.0 }
0x114d   : > { %v14372_v54 = vpop.f32.mrb[202].mxu1  ;;  %14427 = vmatprep.subr.bf16.mxu1 %v15487_v24  ;;  %v8949_v12 = vmax.f32 %v8814_v47, 0.0 }
0x114e   : > { %v8952_v56 = vmax.f32 %v14372_v54, 0.0  ;;  %v8817_v11 = vpop.f32.mrb[203].mxu1 }
0x114f   : > { %v8950_v23 = vmax.f32 %v8817_v11, 0.0 }
0x1150   : > { %v19160_v14 = vpack.c.bf16 %v8952_v56, %v8951_v33  ;;  %14428 = vmatpush3.bf16.msra.mxu1 %v15487_v24 }
0x1151   : > { %v8977_v16 = vpack.c.bf16 %v8950_v23, %v8949_v12  ;;  %14429 = vmatprep.subr.bf16.mxu1 %v15488_v27 }
0x1153   : > { %v14375_v6 = vpop.f32.mrb[204].mxu1  ;;  %14413 = vmatprep.mubr.bf16.mxu1 %v8977_v16 }
0x1154   : > { %v8830_v35 = vpop.f32.mrb[205].mxu1  ;;  %14430 = vmatpush3.bf16.msra.mxu1 %v15488_v27  ;;  %v8955_v32 = vmax.f32 %v14375_v6, 0.0 }
0x1155   : > { %v14376_v5 = vpop.f32.mrb[206].mxu1  ;;  %14431 = vmatprep.subr.bf16.mxu1 %v15489_v1  ;;  %v8953_v22 = vmax.f32 %v8830_v35, 0.0 }
0x1156   : > { %v8956_v38 = vmax.f32 %v14376_v5, 0.0  ;;  %v8833_v44 = vpop.f32.mrb[207].mxu1 }
0x1157   : > { %v8954_v20 = vmax.f32 %v8833_v44, 0.0  ;;  %v15498_v44 = vld [vmem:[%s20186_s14 + $0xa0] sm:$0xff]  }
0x1158   : > { %v19168_v51 = vpack.c.bf16 %v8956_v38, %v8955_v32  ;;  %14432 = vmatpush3.bf16.msra.mxu1 %v15489_v1  ;;  %v15496_v32 = vld [vmem:[%s20186_s14 + $0x90] sm:$0xff]   ;;  %v15497_v38 = vld [vmem:[%s20186_s14 + $0x98] sm:$0xff]  }
0x1159   : > { %v8979_v13 = vpack.c.bf16 %v8954_v20, %v8953_v22  ;;  %14433 = vmatprep.subr.bf16.mxu1 %v15490_v36  ;;  %v15499_v22 = vld [vmem:[%s20186_s14 + $0xa8] sm:$0xff]   ;;  %v15500_v20 = vld [vmem:[%s20186_s14 + $0xb0] sm:$0xff]  }
0x115b   : > { %v14379_v19 = vpop.f32.mrb[208].mxu1  ;;  %14414 = vmatmul.mubr.bf16.gmra.mrb[228].mxu1 %v8979_v13  ;;  %v15501_v13 = vld [vmem:[%s20186_s14 + $0xb8] sm:$0xff]  }
0x115c   : > { %v8846_v0 = vpop.f32.mrb[209].mxu1  ;;  %14434 = vmatpush3.bf16.msra.mxu1 %v15490_v36  ;;  %v8959_v46 = vmax.f32 %v14379_v19, 0.0  ;;  %v15495_v36 = vld [vmem:[%s20186_s14 + $0x88] sm:$0xff]  }
0x115d   : > { %v14380_v58 = vpop.f32.mrb[210].mxu1  ;;  %14435 = vmatprep.subr.bf16.mxu1 %v15491_v62  ;;  %v8957_v7 = vmax.f32 %v8846_v0, 0.0  ;;  %v15503_v19 = vld [vmem:[%s20188_s16 + $0x8] sm:$0xff]   ;;  %v15505_v0 = vld [vmem:[%s20188_s16 + $0x18] sm:$0xff]  }
0x115e   : > { %v8960_v2 = vmax.f32 %v14380_v58, 0.0  ;;  %v8849_v4 = vpop.f32.mrb[211].mxu1 }
0x115f   : > { %v8958_v15 = vmax.f32 %v8849_v4, 0.0 }
0x1160   : > { %v19176_v61 = vpack.c.bf16 %v8960_v2, %v8959_v46  ;;  %14436 = vmatpush3.bf16.msra.mxu1 %v15491_v62  ;;  %v15502_v62 = vld [vmem:[%s20188_s16] sm:$0xff]  }
0x1161   : > { %v8981_v53 = vpack.c.bf16 %v8958_v15, %v8957_v7  ;;  %14437 = vmatprep.subr.bf16.mxu1 %v15492_v10  ;;  %v15538_v46 = vld [vmem:[%s20189_s17 + $0xa4] ss:$8 sps:$4 sm:$0xff]   ;;  %v15536_v15 = vld [vmem:[%s20189_s17 + $0xa0] ss:$8 sps:$4 sm:$0xff]  }
0x1163   : > { %v14383_v3 = vpop.f32.mrb[212].mxu1  ;;  %14417 = vmatprep.mubr.bf16.mxu1 %v8981_v53 }
0x1164   : > { %v8862_v49 = vpop.f32.mrb[213].mxu1  ;;  %14438 = vmatpush3.bf16.msra.mxu1 %v15492_v10  ;;  %v8963_v29 = vmax.f32 %v14383_v3, 0.0 }
0x1165   : > { %v14384_v39 = vpop.f32.mrb[214].mxu1  ;;  %14439 = vmatprep.subr.bf16.mxu1 %v15493_v8  ;;  %v8961_v28 = vmax.f32 %v8862_v49, 0.0 }
0x1166   : > { %v8964_v17 = vmax.f32 %v14384_v39, 0.0  ;;  %v8865_v48 = vpop.f32.mrb[215].mxu1 }
0x1167   : > { %v8962_v31 = vmax.f32 %v8865_v48, 0.0 }
0x1168   : > { %v19184_v25 = vpack.c.bf16 %v8964_v17, %v8963_v29  ;;  %14440 = vmatpush3.bf16.msra.mxu1 %v15493_v8 }
0x1169   : > { %v8983_v43 = vpack.c.bf16 %v8962_v31, %v8961_v28  ;;  %14457 = vmatprep.subr.bf16.mxu1 %v15494_v9 }
0x116b   : > { %v14387_v37 = vpop.f32.mrb[216].mxu1  ;;  %14418 = vmatmul.mubr.bf16.gmra.mrb[232].mxu1 %v8983_v43 }
0x116c   : > { %v8878_v26 = vpop.f32.mrb[217].mxu1  ;;  %v8967_v50 = vmax.f32 %v14387_v37, 0.0 }
0x116d   : > { %v14388_v21 = vpop.f32.mrb[218].mxu1  ;;  %v8965_v59 = vmax.f32 %v8878_v26, 0.0 }
0x116e   : > { %v8968_v63 = vmax.f32 %v14388_v21, 0.0  ;;  %v8881_v24 = vpop.f32.mrb[219].mxu1 }
0x116f   : > { %v8966_v47 = vmax.f32 %v8881_v24, 0.0 }
0x1170   : > { %v8986_v54 = vpack.c.bf16 %v8968_v63, %v8967_v50 }
0x1171   : > { %v8985_v27 = vpack.c.bf16 %v8966_v47, %v8965_v59 }
0x1173   : > { %v14391_v33 = vpop.f32.mrb[220].mxu1  ;;  %14421 = vmatprep.mubr.bf16.mxu1 %v8985_v27 }
0x1174   : > { %v8894_v56 = vpop.f32.mrb[221].mxu1  ;;  %v8971_v12 = vmax.f32 %v14391_v33, 0.0 }
0x1175   : > { %v14392_v11 = vpop.f32.mrb[222].mxu1  ;;  %v8969_v1 = vmax.f32 %v8894_v56, 0.0 }
0x1176   : > { %v8972_v23 = vmax.f32 %v14392_v11, 0.0  ;;  %v8897_v16 = vpop.f32.mrb[223].mxu1 }
0x1177   : > { %v8970_v6 = vmax.f32 %v8897_v16, 0.0 }
0x1178   : > { %v8988_v35 = vpack.c.bf16 %v8972_v23, %v8971_v12 }
0x1179   : > { %v8987_v5 = vpack.c.bf16 %v8970_v6, %v8969_v1 }
0x117b   : > { %14422 = vmatmul.mubr.bf16.gmra.mrb[236].mxu1 %v8987_v5 }
0x117c   : > { %14441 = vmatprep.mubr.bf16.mxu1 %v20220_v57 }
0x1183   : > { %14442 = vmatmul.mubr.bf16.vlgmr.msra.gmra.mrb[224].mxu1 %v19150_v55 }
0x1184   : > { %14445 = vmatprep.mubr.bf16.mxu1 %v19152_v34  ;;  %14458 = vmatpush3.bf16.msra.mxu1 %v15494_v9 }
0x1185   : > { %14459 = vmatprep.subr.bf16.mxu1 %v15495_v36 }
0x1188   : > { %14460 = vmatpush3.bf16.msra.mxu1 %v15495_v36 }
0x1189   : > { %14461 = vmatprep.subr.bf16.mxu1 %v15496_v32 }
0x118b   : > { %14446 = vmatmul.mubr.bf16.gmra.mrb[228].mxu1 %v19160_v14 }
0x118c   : > { %14462 = vmatpush3.bf16.msra.mxu1 %v15496_v32  ;;  %14449 = vmatprep.mubr.bf16.mxu1 %v20220_v57 }
0x118d   : > { %14463 = vmatprep.subr.bf16.mxu1 %v15497_v38 }
0x1190   : > { %14464 = vmatpush3.bf16.msra.mxu1 %v15497_v38 }
0x1191   : > { %14465 = vmatprep.subr.bf16.mxu1 %v15498_v44 }
0x1193   : > { %14450 = vmatmul.mubr.bf16.gmra.mrb[232].mxu1 %v19176_v61 }
0x1194   : > { %14466 = vmatpush3.bf16.msra.mxu1 %v15498_v44  ;;  %14453 = vmatprep.mubr.bf16.mxu1 %v19184_v25 }
0x1195   : > { %14467 = vmatprep.subr.bf16.mxu1 %v15499_v22 }
0x1198   : > { %14468 = vmatpush3.bf16.msra.mxu1 %v15499_v22 }
0x1199   : > { %14469 = vmatprep.subr.bf16.mxu1 %v15500_v20 }
0x119b   : > { %14454 = vmatmul.mubr.bf16.gmra.mrb[236].mxu1 %v8986_v54 }
0x119c   : > { %14470 = vmatpush3.bf16.msra.mxu1 %v15500_v20  ;;  %14473 = vmatprep.mubr.bf16.mxu1 %v19150_v55  ;;  %v15504_v55 = vld [vmem:[%s20188_s16 + $0x10] sm:$0xff]  }
0x119d   : > { %14471 = vmatprep.subr.bf16.mxu1 %v15501_v13 }
0x11a0   : > { %14472 = vmatpush3.bf16.msra.mxu1 %v15501_v13 }
0x11a1   : > { %14489 = vmatprep.subr.bf16.mxu1 %v15502_v62 }
0x11a3   : > { %14474 = vmatmul.mubr.bf16.vlgmr.msra.gmra.mrb[224].mxu1 %v19152_v34 }
0x11a4   : > { %14477 = vmatprep.mubr.bf16.mxu1 %v19160_v14  ;;  %14490 = vmatpush3.bf16.msra.mxu1 %v15502_v62  ;;  %v15533_v14 = vld [vmem:[%s20189_s17 + $0x90] ss:$8 sps:$4 sm:$0xff]  }
0x11a5   : > { %14491 = vmatprep.subr.bf16.mxu1 %v15503_v19 }
0x11a8   : > { %14492 = vmatpush3.bf16.msra.mxu1 %v15503_v19 }
0x11a9   : > { %14493 = vmatprep.subr.bf16.mxu1 %v15504_v55 }
0x11ab   : > { %14478 = vmatmul.mubr.bf16.gmra.mrb[228].mxu1 %v19168_v51  ;;  %v15535_v51 = vld [vmem:[%s20189_s17 + $0x94] ss:$8 sps:$4 sm:$0xff]  }
0x11ac   : > { %14481 = vmatprep.mubr.bf16.mxu1 %v19176_v61  ;;  %14494 = vmatpush3.bf16.msra.mxu1 %v15504_v55 }
0x11ad   : > { %14495 = vmatprep.subr.bf16.mxu1 %v15505_v0 }
0x11b0   : > { %14496 = vmatpush3.bf16.msra.mxu1 %v15505_v0 }
0x11b3   : > { %14482 = vmatmul.mubr.bf16.gmra.mrb[232].mxu1 %v19184_v25 }
0x11b4   : > { %14485 = vmatprep.mubr.bf16.mxu1 %v8986_v54 }
0x11bb   : > { %14486 = vmatmul.mubr.bf16.gmra.mrb[236].mxu1 %v8988_v35 }
0x11bc   : > { %14497 = vmatprep.mubr.msk.bf16.mxu1 %vm2599_vm2, %v18501_v18  ;;  %v15506_v18 = vld [vmem:[%s20273_s29] sm:$0xff]  }
0x11c3   : > { %14498 = vmatmul.mubr.msk.bf16.vlgmr.msra.gmra.mrb[224].mxu1 %vm2599_vm2, %v18514_v40  ;;  %v15526_v40 = vld [vmem:[%s20189_s17 + $0x80] ss:$8 sps:$4 sm:$0xff]  }
0x11c4   : > { %14501 = vmatprep.mubr.msk.bf16.mxu1 %vm2599_vm2, %v18527_v60  ;;  %v15528_v60 = vld [vmem:[%s20189_s17 + $0x84] ss:$8 sps:$4 sm:$0xff]  }
0x11c5   : > { %10252 = vmatprep.subr.bf16.mxu0 %v15528_v60  ;;  %v15508_v60 = vld [vmem:[%s20273_s29 + $0x10] sm:$0xff]  }
0x11c6   : > { %10253 = vmatpush1.bf16.msra.mxu0 %v15526_v40  ;;  %v15507_v40 = vld [vmem:[%s20273_s29 + $0x8] sm:$0xff]  }
0x11c7   : > { %10254 = vmatprep.subr.bf16.mxu0 %v15535_v51  ;;  %v15516_v51 = vld [vmem:[%s20273_s29 + $0x50] sm:$0xff]  }
0x11ca   : > { %10255 = vmatpush1.bf16.msra.mxu0 %v15533_v14  ;;  %v15515_v14 = vld [vmem:[%s20273_s29 + $0x48] sm:$0xff]  }
0x11cb   : > { %14502 = vmatmul.mubr.msk.bf16.gmra.mrb[228].mxu1 %vm2599_vm2, %v18540_v45  ;;  %v19260_v45 = vld [vmem:[%s20187_s15] ss:$0 sm:$0xff]  ;;  %10256 = vmatprep.subr.bf16.mxu0 %v15538_v46  ;;  %v15519_v46 = vld [vmem:[%s20273_s29 + $0x68] sm:$0xff]  }
0x11cc   : > { %14505 = vmatprep.mubr.msk.bf16.mxu1 %vm2599_vm2, %v18553_v42 }
0x11ce   : > { %10257 = vmatpush1.bf16.msra.mxu0 %v15536_v15  ;;  %v15523_v15 = vld [vmem:[%s20273_s29 + $0x88] sm:$0xff]  }
0x11d3   : > { %14506 = vmatmul.mubr.msk.bf16.gmra.mrb[232].mxu1 %vm2599_vm2, %v18566_v52 }
0x11d4   : > { %14509 = vmatprep.mubr.msk.bf16.mxu1 %vm2599_vm2, %v18579_v30 }
0x11db   : > { %14510 = vmatmul.mubr.msk.bf16.gmra.mrb[236].mxu1 %vm2599_vm2, %v18589_v41 }
0x11dc   : > { %14529 = vmatprep.mubr.bf16.mxu1 %v15506_v18 }
0x1296   : > { %v14499_v42 = vpop.f32.mrb[224].mxu1 }
0x1297   : > { %v9668_v52 = vadd.f32 %v14499_v42, %v19260_v45  ;;  %v9580_v30 = vpop.f32.mrb[225].mxu1  ;;  %v15510_v42 = vld [vmem:[%s20273_s29 + $0x20] sm:$0xff]  }
0x1298   : > { %v9666_v41 = vadd.f32 %v19260_v45, %v9580_v30  ;;  %v14500_v34 = vpop.f32.mrb[226].mxu1  ;;  %v15512_v30 = vld [vmem:[%s20273_s29 + $0x30] sm:$0xff]  }
0x1299   : > { %v9669_v58 = vadd.f32 %v14500_v34, %v19260_v45  ;;  %v9583_v10 = vpop.f32.mrb[227].mxu1  ;;  %v9684_v4 = vmax.f32 %v9668_v52, 0.0  ;;  %v15511_v52 = vld [vmem:[%s20273_s29 + $0x28] sm:$0xff]   ;;  %v15514_v34 = vld [vmem:[%s20273_s29 + $0x40] sm:$0xff]  }
0x129a   : > { %v9667_v2 = vadd.f32 %v19260_v45, %v9583_v10  ;;  %v9682_v61 = vmax.f32 %v9666_v41, 0.0  ;;  %v15513_v41 = vld [vmem:[%s20273_s29 + $0x38] sm:$0xff]   ;;  %v15518_v10 = vld [vmem:[%s20273_s29 + $0x60] sm:$0xff]  }
0x129b   : > { %v9685_v7 = vmax.f32 %v9669_v58, 0.0  ;;  %v15517_v58 = vld [vmem:[%s20273_s29 + $0x58] sm:$0xff]  }
0x129c   : > { %v9683_v53 = vmax.f32 %v9667_v2, 0.0  ;;  %v15520_v2 = vld [vmem:[%s20273_s29 + $0x70] sm:$0xff]  }
0x129d   : > { %v9699_v8 = vpack.c.bf16 %v9685_v7, %v9684_v4  ;;  %v15521_v4 = vld [vmem:[%s20273_s29 + $0x78] sm:$0xff]   ;;  %v15522_v7 = vld [vmem:[%s20273_s29 + $0x80] sm:$0xff]  }
0x129e   : > { %v19278_v3 = vpack.c.bf16 %v9683_v53, %v9682_v61  ;;  %v14503_v49 = vpop.f32.mrb[228].mxu1  ;;  %v15524_v61 = vld [vmem:[%s20273_s29 + $0x90] sm:$0xff]   ;;  %v15525_v53 = vld [vmem:[%s20273_s29 + $0x98] sm:$0xff]  }
0x129f   : > { %v9672_v39 = vadd.f32 %v14503_v49, %v19260_v45  ;;  %v9596_v9 = vpop.f32.mrb[229].mxu1  ;;  %v15530_v49 = vld [vmem:[%s20273_s29 + $0xa8] sm:$0xff]  }
0x12a0   : > { %v9670_v29 = vadd.f32 %v19260_v45, %v9596_v9  ;;  %v14504_v17 = vpop.f32.mrb[230].mxu1  ;;  %14513 = vmatprep.subr.bf16.mxu1 %v19278_v3  ;;  %v15532_v9 = vld [vmem:[%s20273_s29 + $0xb8] sm:$0xff]  }
0x12a1   : > { %v9673_v48 = vadd.f32 %v14504_v17, %v19260_v45  ;;  %v9599_v28 = vpop.f32.mrb[231].mxu1  ;;  %14514 = vmatpush3.bf16.msra.mxu1 %v19278_v3  ;;  %v9688_v25 = vmax.f32 %v9672_v39, 0.0  ;;  %v15531_v39 = vld [vmem:[%s20273_s29 + $0xb0] sm:$0xff]  }
0x12a2   : > { %v9671_v31 = vadd.f32 %v19260_v45, %v9599_v28  ;;  %14515 = vmatprep.subr.bf16.mxu1 %v9699_v8  ;;  %v9686_v37 = vmax.f32 %v9670_v29, 0.0  ;;  %v15539_v29 = vld [vmem:[%s20189_s17 + $0xb0] ss:$8 sps:$4 sm:$0xff]   ;;  %v15541_v17 = vld [vmem:[%s20189_s17 + $0xb4] ss:$8 sps:$4 sm:$0xff]  }
0x12a3   : > { %v9689_v43 = vmax.f32 %v9673_v48, 0.0  ;;  %10258 = vmatprep.subr.bf16.mxu0 %v15541_v17  ;;  %v15542_v48 = vld [vmem:[%s20189_s17 + $0xc0] ss:$8 sps:$4 sm:$0xff]   ;;  %v15544_v28 = vld [vmem:[%s20189_s17 + $0xc4] ss:$8 sps:$4 sm:$0xff]  }
0x12a4   : > { %v9687_v26 = vmax.f32 %v9671_v31, 0.0  ;;  %10259 = vmatpush1.bf16.msra.mxu0 %v15539_v29  ;;  %v15545_v31 = vld [vmem:[%s20189_s17 + $0xd0] ss:$8 sps:$4 sm:$0xff]   ;;  %v15566_v17 = vld [vmem:[%s20189_s17 + $0x40] ss:$8 sps:$4 sm:$0xff]  }
0x12a5   : > { %v9701_v21 = vpack.c.bf16 %v9689_v43, %v9688_v25  ;;  %14516 = vmatpush3.bf16.msra.mxu1 %v9699_v8  ;;  %v15529_v8 = vld [vmem:[%s20273_s29 + $0xa0] sm:$0xff]   ;;  %10260 = vmatprep.subr.bf16.mxu0 %v15544_v28  ;;  %v15547_v25 = vld [vmem:[%s20189_s17 + $0xd4] ss:$8 sps:$4 sm:$0xff]  }
0x12a6   : > { %v19286_v50 = vpack.c.bf16 %v9687_v26, %v9686_v37  ;;  %v14507_v63 = vpop.f32.mrb[232].mxu1  ;;  %v15548_v43 = vld [vmem:[%s20189_s17 + $0xe0] ss:$8 sps:$4 sm:$0xff]   ;;  %v15550_v37 = vld [vmem:[%s20189_s17 + $0xe4] ss:$8 sps:$4 sm:$0xff]  }
0x12a7   : > { %v9676_v24 = vadd.f32 %v14507_v63, %v19260_v45  ;;  %v9612_v59 = vpop.f32.mrb[233].mxu1  ;;  %v15553_v26 = vld [vmem:[%s20189_s17 + $0xf4] ss:$8 sps:$4 sm:$0xff]   ;;  %v15556_v63 = vld [vmem:[%s20189_s17 + $0x4] ss:$8 sps:$4 sm:$0xff]  }
0x12a8   : > { %v9674_v47 = vadd.f32 %v19260_v45, %v9612_v59  ;;  %v14508_v54 = vpop.f32.mrb[234].mxu1  ;;  %14517 = vmatprep.subr.bf16.mxu1 %v19286_v50  ;;  %10261 = vmatpush1.bf16.msra.mxu0 %v15542_v48  ;;  %v15571_v28 = vld [vmem:[%s20189_s17 + $0x54] ss:$8 sps:$4 sm:$0xff]  }
0x12a9   : > { %v9677_v27 = vadd.f32 %v14508_v54, %v19260_v45  ;;  %v9615_v33 = vpop.f32.mrb[235].mxu1  ;;  %14518 = vmatpush3.bf16.msra.mxu1 %v19286_v50  ;;  %v9692_v11 = vmax.f32 %v9676_v24, 0.0  ;;  %10262 = vmatprep.subr.bf16.mxu0 %v15547_v25 }
0x12aa   : > { %v9675_v56 = vadd.f32 %v19260_v45, %v9615_v33  ;;  %14519 = vmatprep.subr.bf16.mxu1 %v9701_v21  ;;  %v9690_v23 = vmax.f32 %v9674_v47, 0.0 }
0x12ab   : > { %v9693_v12 = vmax.f32 %v9677_v27, 0.0 }
0x12ac   : > { %v9691_v16 = vmax.f32 %v9675_v56, 0.0  ;;  %10263 = vmatpush1.bf16.msra.mxu0 %v15545_v31  ;;  %v15569_v31 = vld [vmem:[%s20189_s17 + $0x50] ss:$8 sps:$4 sm:$0xff]  }
0x12ad   : > { %v9703_v1 = vpack.c.bf16 %v9693_v12, %v9692_v11  ;;  %14520 = vmatpush3.bf16.msra.mxu1 %v9701_v21  ;;  %10264 = vmatprep.subr.bf16.mxu0 %v15550_v37  ;;  %v15551_v21 = vld [vmem:[%s20189_s17 + $0xf0] ss:$8 sps:$4 sm:$0xff]  }
0x12ae   : > { %v19294_v6 = vpack.c.bf16 %v9691_v16, %v9690_v23  ;;  %v14511_v35 = vpop.f32.mrb[236].mxu1 }
0x12af   : > { %v9680_v5 = vadd.f32 %v14511_v35, %v19260_v45  ;;  %v9628_v36 = vpop.f32.mrb[237].mxu1 }
0x12b0   : > { %v9678_v32 = vadd.f32 %v19260_v45, %v9628_v36  ;;  %v14512_v38 = vpop.f32.mrb[238].mxu1  ;;  %14521 = vmatprep.subr.bf16.mxu1 %v19294_v6  ;;  %10265 = vmatpush1.bf16.msra.mxu0 %v15548_v43  ;;  %v15574_v43 = vld [vmem:[%s20189_s17 + $0x64] ss:$8 sps:$4 sm:$0xff]  }
0x12b1   : > { %v9681_v44 = vadd.f32 %v14512_v38, %v19260_v45  ;;  %v9631_v22 = vpop.f32.mrb[239].mxu1  ;;  %14522 = vmatpush3.bf16.msra.mxu1 %v19294_v6  ;;  %v9696_v13 = vmax.f32 %v9680_v5, 0.0  ;;  %10266 = vmatprep.subr.bf16.mxu0 %v15553_v26 }
0x12b2   : > { %v9679_v20 = vadd.f32 %v19260_v45, %v9631_v22  ;;  %14523 = vmatprep.subr.bf16.mxu1 %v9703_v1  ;;  %v9694_v19 = vmax.f32 %v9678_v32, 0.0  ;;  %v15509_v45 = vld [vmem:[%s20273_s29 + $0x18] sm:$0xff]  }
0x12b3   : > { %v9697_v62 = vmax.f32 %v9681_v44, 0.0 }
0x12b4   : > { %v9695_v55 = vmax.f32 %v9679_v20, 0.0  ;;  %10267 = vmatpush1.bf16.msra.mxu0 %v15551_v21 }
0x12b5   : > { %v9705_v0 = vpack.c.bf16 %v9697_v62, %v9696_v13  ;;  %14524 = vmatpush3.bf16.msra.mxu1 %v9703_v1  ;;  %10445 = vmatprep.subr.bf16.mxu0 %v15556_v63 }
0x12b6   : > { %v19302_v18 = vpack.c.bf16 %v9695_v55, %v9694_v19 }
0x12b8   : > { %14525 = vmatprep.subr.bf16.mxu1 %v19302_v18 }
0x12b9   : > { %14526 = vmatpush3.bf16.msra.mxu1 %v19302_v18 }
0x12ba   : > { %14527 = vmatprep.subr.bf16.mxu1 %v9705_v0 }
0x12bd   : > { %14528 = vmatpush3.bf16.msra.mxu1 %v9705_v0 }
0x12c0   : > { %14530 = vmatmul.mubr.bf16.vlgmr.msra.gmra.mrb[240].mxu1 %v15507_v40 }
0x12c1   : > { %14533 = vmatprep.mubr.bf16.mxu1 %v15508_v60 }
0x12c8   : > { %14534 = vmatmul.mubr.bf16.gmra.mrb[244].mxu1 %v15509_v45 }
0x12c9   : > { %14537 = vmatprep.mubr.bf16.mxu1 %v15510_v42 }
0x12d0   : > { %14538 = vmatmul.mubr.bf16.gmra.mrb[248].mxu1 %v15511_v52  ;;  %v15554_v52 = vld [vmem:[%s20189_s17] ss:$8 sps:$4 sm:$0xff]  }
0x12d1   : > { %14541 = vmatprep.mubr.bf16.mxu1 %v15512_v30 }
0x12d8   : > { %14542 = vmatmul.mubr.bf16.gmra.mrb[252].mxu1 %v15513_v41  ;;  %v15559_v41 = vld [vmem:[%s20189_s17 + $0x14] ss:$8 sps:$4 sm:$0xff]  }
0x12d9   : > { %14545 = vmatprep.mubr.bf16.mxu1 %v15514_v34  ;;  %v15557_v34 = vld [vmem:[%s20189_s17 + $0x10] ss:$8 sps:$4 sm:$0xff]  }
0x12e0   : > { %14546 = vmatmul.mubr.bf16.gmra.mrb[0].mxu1 %v15515_v14 }
0x12e1   : > { %14549 = vmatprep.mubr.bf16.mxu1 %v15516_v51  ;;  %v15562_v51 = vld [vmem:[%s20189_s17 + $0x24] ss:$8 sps:$4 sm:$0xff]  }
0x12e8   : > { %14550 = vmatmul.mubr.bf16.gmra.mrb[4].mxu1 %v15517_v58 }
0x12e9   : > { %14553 = vmatprep.mubr.bf16.mxu1 %v15518_v10 }
0x12f0   : > { %14554 = vmatmul.mubr.bf16.gmra.mrb[8].mxu1 %v15519_v46 }
0x12f1   : > { %14557 = vmatprep.mubr.bf16.mxu1 %v15520_v2 }
0x12f8   : > { %14558 = vmatmul.mubr.bf16.gmra.mrb[12].mxu1 %v15521_v4  ;;  %v15560_v4 = vld [vmem:[%s20189_s17 + $0x20] ss:$8 sps:$4 sm:$0xff]  }
0x12f9   : > { %14561 = vmatprep.mubr.bf16.mxu1 %v15522_v7 }
0x1300   : > { %14562 = vmatmul.mubr.bf16.gmra.mrb[16].mxu1 %v15523_v15  ;;  %v15565_v15 = vld [vmem:[%s20189_s17 + $0x34] ss:$8 sps:$4 sm:$0xff]  }
0x1301   : > { %14565 = vmatprep.mubr.bf16.mxu1 %v15524_v61  ;;  %v15563_v61 = vld [vmem:[%s20189_s17 + $0x30] ss:$8 sps:$4 sm:$0xff]  }
0x1308   : > { %14566 = vmatmul.mubr.bf16.gmra.mrb[20].mxu1 %v15525_v53 }
0x1309   : > { %14569 = vmatprep.mubr.bf16.mxu1 %v15529_v8  ;;  %v15568_v8 = vld [vmem:[%s20189_s17 + $0x44] ss:$8 sps:$4 sm:$0xff]  }
0x1310   : > { %14570 = vmatmul.mubr.bf16.gmra.mrb[24].mxu1 %v15530_v49 }
0x1311   : > { %14573 = vmatprep.mubr.bf16.mxu1 %v15531_v39 }
0x1318   : > { %14574 = vmatmul.mubr.bf16.gmra.mrb[28].mxu1 %v15532_v9 }
0x1393   : > { %v19408_v24 = vpop.f32.mrb[240].mxu1 }
0x1394   : > { %v19410_v59 = vpop.f32.mrb[241].mxu1 }
0x1395   : > { %v19412_v47 = vpop.f32.mrb[242].mxu1 }
0x1396   : > { %v10124_v54 = vpack.c.bf16 %v19412_v47, %v19408_v24  ;;  %v19416_v27 = vpop.f32.mrb[243].mxu1  ;;  %v15631_v24 = vld [vmem:[%s20190_s18 + $0x114] ss:$8 sps:$4 sm:$0xff]   ;;  %v15592_v47 = vld [vmem:[%s20189_s17 + $0x144] ss:$8 sps:$4 sm:$0xff]  }
0x1397   : > { %v10123_v33 = vpack.c.bf16 %v19416_v27, %v19410_v59  ;;  %v15589_v59 = vld [vmem:[%s20189_s17 + $0x134] ss:$8 sps:$4 sm:$0xff]   ;;  %v15626_v27 = vld [vmem:[%s20190_s18 + $0x100] ss:$8 sps:$4 sm:$0xff]  }
0x139b   : > { %v19420_v56 = vpop.f32.mrb[244].mxu1 }
0x139c   : > { %v19422_v11 = vpop.f32.mrb[245].mxu1 }
0x139d   : > { %v19424_v12 = vpop.f32.mrb[246].mxu1 }
0x139e   : > { %v10126_v23 = vpack.c.bf16 %v19424_v12, %v19420_v56  ;;  %v19428_v16 = vpop.f32.mrb[247].mxu1  ;;  %v15641_v56 = vld [vmem:[%s20190_s18 + $0x150] ss:$8 sps:$4 sm:$0xff]   ;;  %v15646_v12 = vld [vmem:[%s20190_s18 + $0x164] ss:$8 sps:$4 sm:$0xff]  }
0x139f   : > { %v10125_v1 = vpack.c.bf16 %v19428_v16, %v19422_v11  ;;  %v15635_v11 = vld [vmem:[%s20190_s18 + $0x130] ss:$8 sps:$4 sm:$0xff]   ;;  %v15640_v16 = vld [vmem:[%s20190_s18 + $0x144] ss:$8 sps:$4 sm:$0xff]  }
0x13a3   : > { %v19432_v35 = vpop.f32.mrb[248].mxu1 }
0x13a4   : > { %v19434_v5 = vpop.f32.mrb[249].mxu1 }
0x13a5   : > { %v19436_v36 = vpop.f32.mrb[250].mxu1 }
0x13a6   : > { %v10128_v32 = vpack.c.bf16 %v19436_v36, %v19432_v35  ;;  %v19440_v38 = vpop.f32.mrb[251].mxu1  ;;  %v15656_v35 = vld [vmem:[%s20190_s18 + $0x1a0] ss:$8 sps:$4 sm:$0xff]   ;;  %v15661_v36 = vld [vmem:[%s20190_s18 + $0x1b4] ss:$8 sps:$4 sm:$0xff]  }
0x13a7   : > { %v10127_v44 = vpack.c.bf16 %v19440_v38, %v19434_v5  ;;  %v15650_v5 = vld [vmem:[%s20190_s18 + $0x180] ss:$8 sps:$4 sm:$0xff]   ;;  %v15655_v38 = vld [vmem:[%s20190_s18 + $0x194] ss:$8 sps:$4 sm:$0xff]  }
0x13ab   : > { %v19444_v22 = vpop.f32.mrb[252].mxu1 }
0x13ac   : > { %v19446_v20 = vpop.f32.mrb[253].mxu1 }
0x13ad   : > { %v19448_v13 = vpop.f32.mrb[254].mxu1 }
0x13ae   : > { %v10130_v62 = vpack.c.bf16 %v19448_v13, %v19444_v22  ;;  %v19452_v19 = vpop.f32.mrb[255].mxu1  ;;  %v19735_v22 = vld [vmem:[%s20192_s20 + $0x14] ss:$8 sps:$4 sm:$0xff]   ;;  %v19745_v13 = vld [vmem:[%s20192_s20 + $0x10] ss:$8 sps:$4 sm:$0xff]  }
0x13af   : > { %v10129_v55 = vpack.c.bf16 %v19452_v19, %v19446_v20  ;;  %v15662_v20 = vld [vmem:[%s20190_s18 + $0x1c0] ss:$8 sps:$4 sm:$0xff]   ;;  %v15667_v19 = vld [vmem:[%s20190_s18 + $0x1d4] ss:$8 sps:$4 sm:$0xff]  }
0x13b3   : > { %v14547_v0 = vpop.f32.mrb[0].mxu1 }
0x13b4   : > { %v9996_v40 = vpop.f32.mrb[1].mxu1 }
0x13b5   : > { %v14548_v60 = vpop.f32.mrb[2].mxu1 }
0x13b6   : > { %v10148_v45 = vpack.c.bf16 %v14548_v60, %v14547_v0  ;;  %v9999_v42 = vpop.f32.mrb[3].mxu1  ;;  %v15572_v0 = vld [vmem:[%s20189_s17 + $0x60] ss:$8 sps:$4 sm:$0xff]   ;;  %v15577_v60 = vld [vmem:[%s20189_s17 + $0x74] ss:$8 sps:$4 sm:$0xff]  }
0x13b7   : > { %v10147_v30 = vpack.c.bf16 %v9999_v42, %v9996_v40  ;;  %v15580_v42 = vld [vmem:[%s20189_s17 + $0x104] ss:$8 sps:$4 sm:$0xff]  }
0x13b9   : > { %10285 = vmatmul.mubr.bf16.vlgmr.msra.gmra.mrb[0].mxu0 %v10147_v30 }
0x13ba   : > { %10294 = vmatprep.mubr.bf16.mxu0 %v20220_v57  ;;  %10446 = vmatpush1.bf16.msra.mxu0 %v15554_v52 }
0x13bb   : > { %v14551_v14 = vpop.f32.mrb[4].mxu1  ;;  %10447 = vmatprep.subr.bf16.mxu0 %v15559_v41 }
0x13bc   : > { %v10012_v58 = vpop.f32.mrb[5].mxu1 }
0x13bd   : > { %v14552_v10 = vpop.f32.mrb[6].mxu1 }
0x13be   : > { %v10150_v46 = vpack.c.bf16 %v14552_v10, %v14551_v14  ;;  %v10015_v2 = vpop.f32.mrb[7].mxu1  ;;  %10448 = vmatpush1.bf16.msra.mxu0 %v15557_v34 }
0x13bf   : > { %v10149_v7 = vpack.c.bf16 %v10015_v2, %v10012_v58  ;;  %10449 = vmatprep.subr.bf16.mxu0 %v15562_v51 }
0x13c1   : > { %10295 = vmatmul.mubr.bf16.gmra.mrb[4].mxu0 %v10148_v45  ;;  %v15575_v45 = vld [vmem:[%s20189_s17 + $0x70] ss:$8 sps:$4 sm:$0xff]  }
0x13c2   : > { %10304 = vmatprep.mubr.bf16.mxu0 %v20220_v57  ;;  %10450 = vmatpush1.bf16.msra.mxu0 %v15560_v4 }
0x13c3   : > { %v14555_v53 = vpop.f32.mrb[8].mxu1  ;;  %10451 = vmatprep.subr.bf16.mxu0 %v15565_v15 }
0x13c4   : > { %v10028_v49 = vpop.f32.mrb[9].mxu1 }
0x13c5   : > { %v14556_v39 = vpop.f32.mrb[10].mxu1 }
0x13c6   : > { %v10152_v9 = vpack.c.bf16 %v14556_v39, %v14555_v53  ;;  %v10031_v29 = vpop.f32.mrb[11].mxu1  ;;  %10452 = vmatpush1.bf16.msra.mxu0 %v15563_v61 }
0x13c7   : > { %v10151_v48 = vpack.c.bf16 %v10031_v29, %v10028_v49  ;;  %10453 = vmatprep.subr.bf16.mxu0 %v15568_v8 }
0x13c9   : > { %10305 = vmatmul.mubr.bf16.gmra.mrb[8].mxu0 %v10149_v7 }
0x13ca   : > { %10314 = vmatprep.mubr.bf16.mxu0 %v20220_v57  ;;  %10454 = vmatpush1.bf16.msra.mxu0 %v15566_v17 }
0x13cb   : > { %v14559_v25 = vpop.f32.mrb[12].mxu1  ;;  %10455 = vmatprep.subr.bf16.mxu0 %v15571_v28 }
0x13cc   : > { %v10044_v37 = vpop.f32.mrb[13].mxu1 }
0x13cd   : > { %v14560_v26 = vpop.f32.mrb[14].mxu1 }
0x13ce   : > { %v10154_v21 = vpack.c.bf16 %v14560_v26, %v14559_v25  ;;  %v10047_v63 = vpop.f32.mrb[15].mxu1  ;;  %10456 = vmatpush1.bf16.msra.mxu0 %v15569_v31  ;;  %v15578_v25 = vld [vmem:[%s20189_s17 + $0x100] ss:$8 sps:$4 sm:$0xff]   ;;  %v15586_v26 = vld [vmem:[%s20189_s17 + $0x124] ss:$8 sps:$4 sm:$0xff]  }
0x13cf   : > { %v10153_v40 = vpack.c.bf16 %v10047_v63, %v10044_v37  ;;  %10457 = vmatprep.subr.bf16.mxu0 %v15574_v43  ;;  %v15583_v43 = vld [vmem:[%s20189_s17 + $0x114] ss:$8 sps:$4 sm:$0xff]   ;;  %v15581_v37 = vld [vmem:[%s20189_s17 + $0x110] ss:$8 sps:$4 sm:$0xff]  }
0x13d0   : > { %v15587_v63 = vld [vmem:[%s20189_s17 + $0x130] ss:$8 sps:$4 sm:$0xff]  }
0x13d1   : > { %10315 = vmatmul.mubr.bf16.gmra.mrb[12].mxu0 %v10150_v46 }
0x13d2   : > { %10324 = vmatprep.mubr.bf16.mxu0 %v20220_v57  ;;  %10458 = vmatpush1.bf16.msra.mxu0 %v15572_v0  ;;  %v15634_v0 = vld [vmem:[%s20190_s18 + $0x124] ss:$8 sps:$4 sm:$0xff]  }
0x13d3   : > { %10459 = vmatprep.subr.bf16.mxu0 %v15577_v60  ;;  %v19508_v52 = vpop.f32.mrb[16].mxu1  ;;  %v15595_v60 = vld [vmem:[%s20189_s17 + $0x154] ss:$8 sps:$4 sm:$0xff]  }
0x13d4   : > { %v19510_v30 = vpop.f32.mrb[17].mxu1 }
0x13d5   : > { %v19512_v41 = vpop.f32.mrb[18].mxu1 }
0x13d6   : > { %10460 = vmatpush1.bf16.msra.mxu0 %v15575_v45  ;;  %v10559_v34 = vpack.c.bf16 %v19512_v41, %v19508_v52  ;;  %v19516_v14 = vpop.f32.mrb[19].mxu1  ;;  %v15632_v45 = vld [vmem:[%s20190_s18 + $0x120] ss:$8 sps:$4 sm:$0xff]   ;;  %v19791_v41 = vld [vmem:[%s20192_s20 + $0x54] ss:$8 sps:$4 sm:$0xff]  }
0x13d7   : > { %10663 = vmatprep.subr.bf16.mxu0 %v15580_v42  ;;  %v10558_v51 = vpack.c.bf16 %v19516_v14, %v19510_v30  ;;  %v15637_v42 = vld [vmem:[%s20190_s18 + $0x134] ss:$8 sps:$4 sm:$0xff]   ;;  %v19757_v30 = vld [vmem:[%s20192_s20 + $0x20] ss:$8 sps:$4 sm:$0xff]  }
0x13d8   : > { %v19763_v14 = vld [vmem:[%s20192_s20 + $0x34] ss:$8 sps:$4 sm:$0xff]   ;;  %v19785_v52 = vld [vmem:[%s20192_s20 + $0x40] ss:$8 sps:$4 sm:$0xff]  }
0x13d9   : > { %10325 = vmatmul.mubr.bf16.gmra.mrb[16].mxu0 %v10151_v48 }
0x13da   : > { %10334 = vmatprep.mubr.bf16.mxu0 %v20220_v57 }
0x13db   : > { %v19521_v58 = vpop.f32.mrb[20].mxu1 }
0x13dc   : > { %v19523_v10 = vpop.f32.mrb[21].mxu1 }
0x13dd   : > { %v19525_v46 = vpop.f32.mrb[22].mxu1 }
0x13de   : > { %v10561_v2 = vpack.c.bf16 %v19525_v46, %v19521_v58  ;;  %v19529_v4 = vpop.f32.mrb[23].mxu1  ;;  %v15670_v58 = vld [vmem:[%s20190_s18 + $0x1e4] ss:$8 sps:$4 sm:$0xff]   ;;  %v15668_v46 = vld [vmem:[%s20190_s18 + $0x1e0] ss:$8 sps:$4 sm:$0xff]  }
0x13df   : > { %v10560_v7 = vpack.c.bf16 %v19529_v4, %v19523_v10  ;;  %v19813_v10 = vld [vmem:[%s20192_s20 + $0x60] ss:$8 sps:$4 sm:$0xff]   ;;  %v19819_v4 = vld [vmem:[%s20192_s20 + $0x74] ss:$8 sps:$4 sm:$0xff]  }
0x13e1   : > { %10335 = vmatmul.mubr.bf16.gmra.mrb[20].mxu0 %v10152_v9 }
0x13e2   : > { %10344 = vmatprep.mubr.bf16.mxu0 %v20220_v57 }
0x13e3   : > { %v19534_v15 = vpop.f32.mrb[24].mxu1 }
0x13e4   : > { %v19536_v61 = vpop.f32.mrb[25].mxu1 }
0x13e5   : > { %v19538_v53 = vpop.f32.mrb[26].mxu1 }
0x13e6   : > { %v10563_v8 = vpack.c.bf16 %v19538_v53, %v19534_v15  ;;  %v19542_v49 = vpop.f32.mrb[27].mxu1 }
0x13e7   : > { %v10562_v39 = vpack.c.bf16 %v19542_v49, %v19536_v61 }
0x13e9   : > { %10345 = vmatmul.mubr.bf16.gmra.mrb[24].mxu0 %v10153_v40  ;;  %v15590_v40 = vld [vmem:[%s20189_s17 + $0x140] ss:$8 sps:$4 sm:$0xff]  }
0x13ea   : > { %10354 = vmatprep.mubr.bf16.mxu0 %v20220_v57 }
0x13eb   : > { %v19547_v9 = vpop.f32.mrb[28].mxu1 }
0x13ec   : > { %v19549_v29 = vpop.f32.mrb[29].mxu1 }
0x13ed   : > { %v19551_v17 = vpop.f32.mrb[30].mxu1 }
0x13ee   : > { %v10565_v48 = vpack.c.bf16 %v19551_v17, %v19547_v9  ;;  %v19555_v28 = vpop.f32.mrb[31].mxu1 }
0x13ef   : > { %v10564_v31 = vpack.c.bf16 %v19555_v28, %v19549_v29  ;;  %v15674_v28 = vld [vmem:[%s20190_s18] ss:$8 sps:$4 sm:$0xff]  }
0x13f1   : > { %10355 = vmatmul.mubr.bf16.gmra.mrb[28].mxu0 %v10154_v21  ;;  %v15584_v21 = vld [vmem:[%s20189_s17 + $0x120] ss:$8 sps:$4 sm:$0xff]  }
0x13f2   : > { %10477 = vmatprep.mubr.bf16.mxu0 %v20220_v57 }
0x13f9   : > { %10478 = vmatmul.mubr.bf16.vlgmr.msra.gmra.mrb[0].mxu0 %v10123_v33  ;;  %v15628_v33 = vld [vmem:[%s20190_s18 + $0x104] ss:$8 sps:$4 sm:$0xff]  }
0x13fa   : > { %10487 = vmatprep.mubr.bf16.mxu0 %v20220_v57  ;;  %10664 = vmatpush1.bf16.msra.mxu0 %v15578_v25  ;;  %v15593_v25 = vld [vmem:[%s20189_s17 + $0x150] ss:$8 sps:$4 sm:$0xff]  }
0x13fb   : > { %10665 = vmatprep.subr.bf16.mxu0 %v15583_v43  ;;  %11081 = vmatprep.subr.bf16.mxu1 %v15628_v33  ;;  %v15598_v43 = vld [vmem:[%s20189_s17 + $0x164] ss:$8 sps:$4 sm:$0xff]   ;;  %v15649_v33 = vld [vmem:[%s20190_s18 + $0x174] ss:$8 sps:$4 sm:$0xff]  }
0x13fc   : > { %11082 = vmatpush1.bf16.msra.mxu1 %v15626_v27  ;;  %v19657_v27 = vld [vmem:[%s20192_s20 + $0x4] ss:$8 sps:$4 sm:$0xff]  }
0x13fd   : > { %11083 = vmatprep.subr.bf16.mxu1 %v15631_v24  ;;  %v15652_v24 = vld [vmem:[%s20190_s18 + $0x184] ss:$8 sps:$4 sm:$0xff]  }
0x13fe   : > { %10666 = vmatpush1.bf16.msra.mxu0 %v15581_v37  ;;  %v15601_v37 = vld [vmem:[%s20189_s17 + $0x174] ss:$8 sps:$4 sm:$0xff]  }
0x13ff   : > { %10667 = vmatprep.subr.bf16.mxu0 %v15586_v26  ;;  %v15638_v26 = vld [vmem:[%s20190_s18 + $0x140] ss:$8 sps:$4 sm:$0xff]  }
0x1401   : > { %10488 = vmatmul.mubr.bf16.gmra.mrb[4].mxu0 %v10124_v54  ;;  %v15629_v54 = vld [vmem:[%s20190_s18 + $0x110] ss:$8 sps:$4 sm:$0xff]  }
0x1402   : > { %10497 = vmatprep.mubr.bf16.mxu0 %v20220_v57  ;;  %10668 = vmatpush1.bf16.msra.mxu0 %v15584_v21  ;;  %v15643_v21 = vld [vmem:[%s20190_s18 + $0x154] ss:$8 sps:$4 sm:$0xff]  }
0x1403   : > { %10669 = vmatprep.subr.bf16.mxu0 %v15589_v59  ;;  %11084 = vmatpush1.bf16.msra.mxu1 %v15629_v54  ;;  %v15599_v59 = vld [vmem:[%s20189_s17 + $0x170] ss:$8 sps:$4 sm:$0xff]   ;;  %v15664_v54 = vld [vmem:[%s20190_s18 + $0x1c4] ss:$8 sps:$4 sm:$0xff]  }
0x1404   : > { %11085 = vmatprep.subr.bf16.mxu1 %v15634_v0  ;;  %v19730_v0 = vld [vmem:[%s20192_s20] ss:$8 sps:$4 sm:$0xff]  }
0x1406   : > { %10670 = vmatpush1.bf16.msra.mxu0 %v15587_v63  ;;  %v15647_v63 = vld [vmem:[%s20190_s18 + $0x170] ss:$8 sps:$4 sm:$0xff]  }
0x1407   : > { %10671 = vmatprep.subr.bf16.mxu0 %v15592_v47  ;;  %11086 = vmatpush1.bf16.msra.mxu1 %v15632_v45  ;;  %v15658_v47 = vld [vmem:[%s20190_s18 + $0x1a4] ss:$8 sps:$4 sm:$0xff]  }
0x1408   : > { %11087 = vmatprep.subr.bf16.mxu1 %v15637_v42 }
0x1409   : > { %10498 = vmatmul.mubr.bf16.gmra.mrb[8].mxu0 %v10125_v1  ;;  %v15596_v1 = vld [vmem:[%s20189_s17 + $0x160] ss:$8 sps:$4 sm:$0xff]  }
0x140a   : > { %10507 = vmatprep.mubr.bf16.mxu0 %v20220_v57  ;;  %10672 = vmatpush1.bf16.msra.mxu0 %v15590_v40  ;;  %v19779_v40 = vld [vmem:[%s20192_s20 + $0x44] ss:$8 sps:$4 sm:$0xff]  }
0x140b   : > { %10673 = vmatprep.subr.bf16.mxu0 %v15595_v60  ;;  %11088 = vmatpush1.bf16.msra.mxu1 %v15635_v11  ;;  %v19807_v60 = vld [vmem:[%s20192_s20 + $0x64] ss:$8 sps:$4 sm:$0xff]  }
0x140c   : > { %11089 = vmatprep.subr.bf16.mxu1 %v15640_v16  ;;  %v15682_v11 = vld [vmem:[%s20190_s18 + $0x24] ss:$8 sps:$4 sm:$0xff]  }
0x140e   : > { %10674 = vmatpush1.bf16.msra.mxu0 %v15593_v25  ;;  %v15677_v25 = vld [vmem:[%s20190_s18 + $0x10] ss:$8 sps:$4 sm:$0xff]  }
0x140f   : > { %10675 = vmatprep.subr.bf16.mxu0 %v15598_v43  ;;  %11090 = vmatpush1.bf16.msra.mxu1 %v15638_v26 }
0x1410   : > { %11091 = vmatprep.subr.bf16.mxu1 %v15643_v21 }
0x1411   : > { %10508 = vmatmul.mubr.bf16.gmra.mrb[12].mxu0 %v10126_v23  ;;  %v15644_v23 = vld [vmem:[%s20190_s18 + $0x160] ss:$8 sps:$4 sm:$0xff]  }
0x1412   : > { %10517 = vmatprep.mubr.bf16.mxu0 %v20220_v57  ;;  %10676 = vmatpush1.bf16.msra.mxu0 %v15596_v1 }
0x1413   : > { %10677 = vmatprep.subr.bf16.mxu0 %v15601_v37  ;;  %11092 = vmatpush1.bf16.msra.mxu1 %v15641_v56  ;;  %v15680_v56 = vld [vmem:[%s20190_s18 + $0x20] ss:$8 sps:$4 sm:$0xff]  }
0x1414   : > { %11093 = vmatprep.subr.bf16.mxu1 %v15646_v12 }
0x1416   : > { %10678 = vmatpush1.bf16.msra.mxu0 %v15599_v59 }
0x1417   : > { %11765 = vmatprep.subr.bf16.mxu0 %v19657_v27  ;;  %11094 = vmatpush1.bf16.msra.mxu1 %v15644_v23  ;;  %v15685_v23 = vld [vmem:[%s20190_s18 + $0x34] ss:$8 sps:$4 sm:$0xff]  }
0x1418   : > { %11095 = vmatprep.subr.bf16.mxu1 %v15649_v33 }
0x1419   : > { %10518 = vmatmul.mubr.bf16.gmra.mrb[16].mxu0 %v10127_v44  ;;  %v15653_v44 = vld [vmem:[%s20190_s18 + $0x190] ss:$8 sps:$4 sm:$0xff]  }
0x141a   : > { %10527 = vmatprep.mubr.bf16.mxu0 %v20220_v57 }
0x141b   : > { %11096 = vmatpush1.bf16.msra.mxu1 %v15647_v63 }
0x141c   : > { %11097 = vmatprep.subr.bf16.mxu1 %v15652_v24  ;;  %v15683_v24 = vld [vmem:[%s20190_s18 + $0x30] ss:$8 sps:$4 sm:$0xff]  }
0x141f   : > { %11098 = vmatpush1.bf16.msra.mxu1 %v15650_v5 }
0x1420   : > { %11099 = vmatprep.subr.bf16.mxu1 %v15655_v38  ;;  %v15688_v38 = vld [vmem:[%s20190_s18 + $0x44] ss:$8 sps:$4 sm:$0xff]  }
0x1421   : > { %10528 = vmatmul.mubr.bf16.gmra.mrb[20].mxu0 %v10128_v32  ;;  %v15659_v32 = vld [vmem:[%s20190_s18 + $0x1b0] ss:$8 sps:$4 sm:$0xff]  }
0x1422   : > { %10537 = vmatprep.mubr.bf16.mxu0 %v20220_v57 }
0x1423   : > { %11100 = vmatpush1.bf16.msra.mxu1 %v15653_v44 }
0x1424   : > { %11101 = vmatprep.subr.bf16.mxu1 %v15658_v47 }
0x1427   : > { %11102 = vmatpush1.bf16.msra.mxu1 %v15656_v35 }
0x1428   : > { %11103 = vmatprep.subr.bf16.mxu1 %v15661_v36 }
0x1429   : > { %10538 = vmatmul.mubr.bf16.gmra.mrb[24].mxu0 %v10129_v55  ;;  %v15665_v55 = vld [vmem:[%s20190_s18 + $0x1d0] ss:$8 sps:$4 sm:$0xff]  }
0x142a   : > { %10547 = vmatprep.mubr.bf16.mxu0 %v20220_v57 }
0x142b   : > { %11104 = vmatpush1.bf16.msra.mxu1 %v15659_v32 }
0x142c   : > { %11105 = vmatprep.subr.bf16.mxu1 %v15664_v54 }
0x142f   : > { %11106 = vmatpush1.bf16.msra.mxu1 %v15662_v20  ;;  %v15686_v20 = vld [vmem:[%s20190_s18 + $0x40] ss:$8 sps:$4 sm:$0xff]  }
0x1430   : > { %11107 = vmatprep.subr.bf16.mxu1 %v15667_v19 }
0x1431   : > { %10548 = vmatmul.mubr.bf16.gmra.mrb[28].mxu0 %v10130_v62  ;;  %v19751_v62 = vld [vmem:[%s20192_s20 + $0x24] ss:$8 sps:$4 sm:$0xff]  }
0x1432   : > { %10695 = vmatprep.mubr.bf16.mxu0 %v20220_v57 }
0x1433   : > { %11108 = vmatpush1.bf16.msra.mxu1 %v15665_v55  ;;  %v15691_v55 = vld [vmem:[%s20190_s18 + $0x54] ss:$8 sps:$4 sm:$0xff]  }
0x1434   : > { %11109 = vmatprep.subr.bf16.mxu1 %v15670_v58 }
0x1437   : > { %11110 = vmatpush1.bf16.msra.mxu1 %v15668_v46 }
0x1439   : > { %10696 = vmatmul.mubr.bf16.vlgmr.msra.gmra.mrb[0].mxu0 %v10558_v51  ;;  %v19773_v51 = vld [vmem:[%s20192_s20 + $0x30] ss:$8 sps:$4 sm:$0xff]  }
0x143a   : > { %10705 = vmatprep.mubr.bf16.mxu0 %v20220_v57  ;;  %11766 = vmatpush1.bf16.msra.mxu0 %v19730_v0 }
0x143b   : > { %11767 = vmatprep.subr.bf16.mxu0 %v19735_v22 }
0x143e   : > { %11768 = vmatpush1.bf16.msra.mxu0 %v19745_v13 }
0x143f   : > { %11769 = vmatprep.subr.bf16.mxu0 %v19751_v62 }
0x1441   : > { %10706 = vmatmul.mubr.bf16.gmra.mrb[4].mxu0 %v10559_v34  ;;  %v19801_v34 = vld [vmem:[%s20192_s20 + $0x50] ss:$8 sps:$4 sm:$0xff]  }
0x1442   : > { %10715 = vmatprep.mubr.bf16.mxu0 %v20220_v57  ;;  %11770 = vmatpush1.bf16.msra.mxu0 %v19757_v30 }
0x1443   : > { %11771 = vmatprep.subr.bf16.mxu0 %v19763_v14 }
0x1446   : > { %11772 = vmatpush1.bf16.msra.mxu0 %v19773_v51 }
0x1447   : > { %11773 = vmatprep.subr.bf16.mxu0 %v19779_v40 }
0x1449   : > { %10716 = vmatmul.mubr.bf16.gmra.mrb[8].mxu0 %v10560_v7  ;;  %v19829_v7 = vld [vmem:[%s20192_s20 + $0x70] ss:$8 sps:$4 sm:$0xff]  }
0x144a   : > { %10725 = vmatprep.mubr.bf16.mxu0 %v20220_v57  ;;  %11774 = vmatpush1.bf16.msra.mxu0 %v19785_v52 }
0x144b   : > { %11775 = vmatprep.subr.bf16.mxu0 %v19791_v41 }
0x144e   : > { %11776 = vmatpush1.bf16.msra.mxu0 %v19801_v34 }
0x144f   : > { %11777 = vmatprep.subr.bf16.mxu0 %v19807_v60 }
0x1451   : > { %10726 = vmatmul.mubr.bf16.gmra.mrb[12].mxu0 %v10561_v2  ;;  %v15673_v2 = vld [vmem:[%s20190_s18 + $0x1f4] ss:$8 sps:$4 sm:$0xff]  }
0x1452   : > { %10735 = vmatprep.mubr.bf16.mxu0 %v20220_v57  ;;  %11778 = vmatpush1.bf16.msra.mxu0 %v19813_v10 }
0x1453   : > { %11779 = vmatprep.subr.bf16.mxu0 %v19819_v4  ;;  %11111 = vmatprep.subr.bf16.mxu1 %v15673_v2  ;;  %v15689_v2 = vld [vmem:[%s20190_s18 + $0x50] ss:$8 sps:$4 sm:$0xff]  }
0x1456   : > { %11780 = vmatpush1.bf16.msra.mxu0 %v19829_v7 }
0x1459   : > { %10736 = vmatmul.mubr.bf16.gmra.mrb[16].mxu0 %v10562_v39 }
0x145a   : > { %10745 = vmatprep.mubr.bf16.mxu0 %v20220_v57 }
0x1461   : > { %10746 = vmatmul.mubr.bf16.gmra.mrb[20].mxu0 %v10563_v8 }
0x1462   : > { %10755 = vmatprep.mubr.bf16.mxu0 %v20220_v57 }
0x1469   : > { %10756 = vmatmul.mubr.bf16.gmra.mrb[24].mxu0 %v10564_v31  ;;  %v15679_v31 = vld [vmem:[%s20190_s18 + $0x14] ss:$8 sps:$4 sm:$0xff]  }
0x146a   : > { %10765 = vmatprep.mubr.bf16.mxu0 %v20220_v57 }
0x1471   : > { %10766 = vmatmul.mubr.bf16.gmra.mrb[28].mxu0 %v10565_v48 }
0x1472   : > { %11797 = vmatprep.mubr.bf16.mxu0 %v20220_v57 }
0x1479   : > { %11798 = vmatmul.mubr.bf16.vlgmr.msra.gmra.mrb[32].mxu0 %v19278_v3  ;;  %v15671_v3 = vld [vmem:[%s20190_s18 + $0x1f0] ss:$8 sps:$4 sm:$0xff]  }
0x147a   : > { %11807 = vmatprep.mubr.bf16.mxu0 %v20220_v57  ;;  %11112 = vmatpush1.bf16.msra.mxu1 %v15671_v3 }
0x1481   : > { %11808 = vmatmul.mubr.bf16.gmra.mrb[36].mxu0 %v19286_v50  ;;  %v15676_v50 = vld [vmem:[%s20190_s18 + $0x4] ss:$8 sps:$4 sm:$0xff]  }
0x1482   : > { %11314 = vmatprep.subr.bf16.mxu1 %v15676_v50  ;;  %v15694_v50 = vld [vmem:[%s20190_s18 + $0x64] ss:$8 sps:$4 sm:$0xff]  }
0x150c   : > { %v10697_v15 = vpop.f32.mrb[0].mxu0 }
0x150d   : > { %v10699_v61 = vpop.f32.mrb[1].mxu0  ;;  %v10808_v8 = vmax.f32 %v10697_v15, 0.0 }
0x150e   : > { %v10701_v53 = vpop.f32.mrb[2].mxu0  ;;  %v10809_v9 = vmax.f32 %v10699_v61, 0.0 }
0x150f   : > { %v10810_v49 = vmax.f32 %v10701_v53, 0.0  ;;  %v10703_v39 = vpop.f32.mrb[3].mxu0 }
0x1510   : > { %v10811_v29 = vmax.f32 %v10703_v39, 0.0 }
0x1511   : > { %v10840_v17 = vpack.c.bf16 %v10810_v49, %v10808_v8 }
0x1512   : > { %v10841_v48 = vpack.c.bf16 %v10811_v29, %v10809_v9  ;;  %v15692_v9 = vld [vmem:[%s20190_s18 + $0x60] ss:$8 sps:$4 sm:$0xff]  }
0x1514   : > { %11113 = vmatprep.mubr.bf16.mxu1 %v10841_v48  ;;  %v10707_v45 = vpop.f32.mrb[4].mxu0 }
0x1515   : > { %11114 = vmatmul.mubr.bf16.vlgmr.msra.gmra.mrb[32].mxu1 %v10840_v17  ;;  %v10709_v42 = vpop.f32.mrb[5].mxu0  ;;  %v10812_v16 = vmax.f32 %v10707_v45, 0.0  ;;  %v15697_v17 = vld [vmem:[%s20190_s18 + $0x74] ss:$8 sps:$4 sm:$0xff]  }
0x1516   : > { %11315 = vmatpush1.bf16.msra.mxu1 %v15674_v28  ;;  %v10711_v43 = vpop.f32.mrb[6].mxu0  ;;  %v10813_v26 = vmax.f32 %v10709_v42, 0.0  ;;  %v15700_v42 = vld [vmem:[%s20190_s18 + $0x84] ss:$8 sps:$4 sm:$0xff]  }
0x1517   : > { %11316 = vmatprep.subr.bf16.mxu1 %v15679_v31  ;;  %v10814_v1 = vmax.f32 %v10711_v43, 0.0  ;;  %v10713_v37 = vpop.f32.mrb[7].mxu0  ;;  %v15695_v31 = vld [vmem:[%s20190_s18 + $0x70] ss:$8 sps:$4 sm:$0xff]  }
0x1518   : > { %v10815_v21 = vmax.f32 %v10713_v37, 0.0 }
0x1519   : > { %v19879_v59 = vpack.c.bf16 %v10814_v1, %v10812_v16 }
0x151a   : > { %11317 = vmatpush1.bf16.msra.mxu1 %v15677_v25  ;;  %v19884_v12 = vpack.c.bf16 %v10815_v21, %v10813_v26  ;;  %v15698_v26 = vld [vmem:[%s20190_s18 + $0x80] ss:$8 sps:$4 sm:$0xff]  }
0x151b   : > { %11318 = vmatprep.subr.bf16.mxu1 %v15682_v11 }
0x151c   : > { %v10717_v33 = vpop.f32.mrb[8].mxu0 }
0x151d   : > { %v10719_v63 = vpop.f32.mrb[9].mxu0  ;;  %v10816_v44 = vmax.f32 %v10717_v33, 0.0 }
0x151e   : > { %11319 = vmatpush1.bf16.msra.mxu1 %v15680_v56  ;;  %v10721_v5 = vpop.f32.mrb[10].mxu0  ;;  %v10817_v36 = vmax.f32 %v10719_v63, 0.0  ;;  %v15703_v56 = vld [vmem:[%s20190_s18 + $0x94] ss:$8 sps:$4 sm:$0xff]   ;;  %v15701_v63 = vld [vmem:[%s20190_s18 + $0x90] ss:$8 sps:$4 sm:$0xff]  }
0x151f   : > { %11320 = vmatprep.subr.bf16.mxu1 %v15685_v23  ;;  %v10818_v47 = vmax.f32 %v10721_v5, 0.0  ;;  %v10723_v35 = vpop.f32.mrb[11].mxu0  ;;  %v15706_v5 = vld [vmem:[%s20190_s18 + $0xa4] ss:$8 sps:$4 sm:$0xff]  }
0x1520   : > { %v10819_v32 = vmax.f32 %v10723_v35, 0.0 }
0x1521   : > { %v10844_v54 = vpack.c.bf16 %v10818_v47, %v10816_v44 }
0x1522   : > { %11321 = vmatpush1.bf16.msra.mxu1 %v15683_v24  ;;  %v10845_v19 = vpack.c.bf16 %v10819_v32, %v10817_v36 }
0x1523   : > { %11322 = vmatprep.subr.bf16.mxu1 %v15688_v38 }
0x1524   : > { %v10727_v58 = vpop.f32.mrb[12].mxu0  ;;  %11123 = vmatprep.mubr.bf16.mxu1 %v10845_v19  ;;  %v15709_v19 = vld [vmem:[%s20190_s18 + $0xb4] ss:$8 sps:$4 sm:$0xff]  }
0x1525   : > { %v10729_v46 = vpop.f32.mrb[13].mxu0  ;;  %11124 = vmatmul.mubr.bf16.gmra.mrb[36].mxu1 %v10844_v54  ;;  %v10820_v15 = vmax.f32 %v10727_v58, 0.0  ;;  %v15704_v54 = vld [vmem:[%s20190_s18 + $0xa0] ss:$8 sps:$4 sm:$0xff]  }
0x1526   : > { %11323 = vmatpush1.bf16.msra.mxu1 %v15686_v20  ;;  %v10731_v3 = vpop.f32.mrb[14].mxu0  ;;  %v10821_v8 = vmax.f32 %v10729_v46, 0.0  ;;  %v15707_v46 = vld [vmem:[%s20190_s18 + $0xb0] ss:$8 sps:$4 sm:$0xff]  }
0x1527   : > { %11324 = vmatprep.subr.bf16.mxu1 %v15691_v55  ;;  %v10822_v61 = vmax.f32 %v10731_v3, 0.0  ;;  %v10733_v53 = vpop.f32.mrb[15].mxu0 }
0x1528   : > { %v10823_v49 = vmax.f32 %v10733_v53, 0.0 }
0x1529   : > { %v19907_v39 = vpack.c.bf16 %v10822_v61, %v10820_v15 }
0x152a   : > { %11325 = vmatpush1.bf16.msra.mxu1 %v15689_v2  ;;  %v19912_v29 = vpack.c.bf16 %v10823_v49, %v10821_v8 }
0x152b   : > { %11326 = vmatprep.subr.bf16.mxu1 %v15694_v50  ;;  %v15712_v50 = vld [vmem:[%s20190_s18 + $0xc4] ss:$8 sps:$4 sm:$0xff]  }
0x152c   : > { %v10737_v48 = vpop.f32.mrb[16].mxu0 }
0x152d   : > { %v10739_v28 = vpop.f32.mrb[17].mxu0  ;;  %v10824_v25 = vmax.f32 %v10737_v48, 0.0  ;;  %v15715_v48 = vld [vmem:[%s20190_s18 + $0xd4] ss:$8 sps:$4 sm:$0xff]  }
0x152e   : > { %11327 = vmatpush1.bf16.msra.mxu1 %v15692_v9  ;;  %v10741_v45 = vpop.f32.mrb[18].mxu0  ;;  %v10825_v16 = vmax.f32 %v10739_v28, 0.0  ;;  %v15710_v9 = vld [vmem:[%s20190_s18 + $0xc0] ss:$8 sps:$4 sm:$0xff]  }
0x152f   : > { %11328 = vmatprep.subr.bf16.mxu1 %v15697_v17  ;;  %v10826_v43 = vmax.f32 %v10741_v45, 0.0  ;;  %v10743_v11 = vpop.f32.mrb[19].mxu0  ;;  %v15713_v45 = vld [vmem:[%s20190_s18 + $0xd0] ss:$8 sps:$4 sm:$0xff]  }
0x1530   : > { %v10827_v1 = vmax.f32 %v10743_v11, 0.0 }
0x1531   : > { %v10848_v37 = vpack.c.bf16 %v10826_v43, %v10824_v25 }
0x1532   : > { %11329 = vmatpush1.bf16.msra.mxu1 %v15695_v31  ;;  %v10849_v21 = vpack.c.bf16 %v10827_v1, %v10825_v16  ;;  %v15718_v16 = vld [vmem:[%s20190_s18 + $0xe4] ss:$8 sps:$4 sm:$0xff]  }
0x1533   : > { %11330 = vmatprep.subr.bf16.mxu1 %v15700_v42 }
0x1534   : > { %v10747_v23 = vpop.f32.mrb[20].mxu0  ;;  %11133 = vmatprep.mubr.bf16.mxu1 %v10849_v21 }
0x1535   : > { %v10749_v33 = vpop.f32.mrb[21].mxu0  ;;  %11134 = vmatmul.mubr.bf16.gmra.mrb[40].mxu1 %v10848_v37  ;;  %v10828_v38 = vmax.f32 %v10747_v23, 0.0  ;;  %v15721_v23 = vld [vmem:[%s20190_s18 + $0xf4] ss:$8 sps:$4 sm:$0xff]  }
0x1536   : > { %11331 = vmatpush1.bf16.msra.mxu1 %v15698_v26  ;;  %v10751_v24 = vpop.f32.mrb[22].mxu0  ;;  %v10829_v35 = vmax.f32 %v10749_v33, 0.0 }
0x1537   : > { %11332 = vmatprep.subr.bf16.mxu1 %v15703_v56  ;;  %v10830_v44 = vmax.f32 %v10751_v24, 0.0  ;;  %v10753_v47 = vpop.f32.mrb[23].mxu0  ;;  %v15716_v56 = vld [vmem:[%s20190_s18 + $0xe0] ss:$8 sps:$4 sm:$0xff]  }
0x1538   : > { %v10831_v36 = vmax.f32 %v10753_v47, 0.0  ;;  %v15722_v47 = vld [vmem:[%s20190_s18 + $0x200] ss:$8 sps:$4 sm:$0xff]  }
0x1539   : > { %v19935_v32 = vpack.c.bf16 %v10830_v44, %v10828_v38  ;;  %v15724_v44 = vld [vmem:[%s20190_s18 + $0x204] ss:$8 sps:$4 sm:$0xff]  }
0x153a   : > { %11333 = vmatpush1.bf16.msra.mxu1 %v15701_v63  ;;  %v19940_v20 = vpack.c.bf16 %v10831_v36, %v10829_v35  ;;  %v15727_v35 = vld [vmem:[%s20190_s18 + $0x214] ss:$8 sps:$4 sm:$0xff]  }
0x153b   : > { %11334 = vmatprep.subr.bf16.mxu1 %v15706_v5  ;;  %v15719_v5 = vld [vmem:[%s20190_s18 + $0xf0] ss:$8 sps:$4 sm:$0xff]  }
0x153c   : > { %v10757_v55 = vpop.f32.mrb[24].mxu0 }
0x153d   : > { %v10759_v58 = vpop.f32.mrb[25].mxu0  ;;  %v10832_v3 = vmax.f32 %v10757_v55, 0.0  ;;  %v15725_v55 = vld [vmem:[%s20190_s18 + $0x210] ss:$8 sps:$4 sm:$0xff]  }
0x153e   : > { %11335 = vmatpush1.bf16.msra.mxu1 %v15704_v54  ;;  %v10761_v2 = vpop.f32.mrb[26].mxu0  ;;  %v10833_v53 = vmax.f32 %v10759_v58, 0.0 }
0x153f   : > { %11336 = vmatprep.subr.bf16.mxu1 %v15709_v19  ;;  %v10834_v15 = vmax.f32 %v10761_v2, 0.0  ;;  %v10763_v61 = vpop.f32.mrb[27].mxu0  ;;  %v15728_v2 = vld [vmem:[%s20190_s18 + $0x220] ss:$8 sps:$4 sm:$0xff]  }
0x1540   : > { %v10835_v8 = vmax.f32 %v10763_v61, 0.0  ;;  %v15734_v61 = vld [vmem:[%s20190_s18 + $0x240] ss:$8 sps:$4 sm:$0xff]  }
0x1541   : > { %v10852_v49 = vpack.c.bf16 %v10834_v15, %v10832_v3  ;;  %v15733_v3 = vld [vmem:[%s20190_s18 + $0x234] ss:$8 sps:$4 sm:$0xff]   ;;  %v15736_v15 = vld [vmem:[%s20190_s18 + $0x244] ss:$8 sps:$4 sm:$0xff]  }
0x1542   : > { %11337 = vmatpush1.bf16.msra.mxu1 %v15707_v46  ;;  %v10853_v17 = vpack.c.bf16 %v10835_v8, %v10833_v53  ;;  %v15730_v46 = vld [vmem:[%s20190_s18 + $0x224] ss:$8 sps:$4 sm:$0xff]   ;;  %v15739_v53 = vld [vmem:[%s20190_s18 + $0x254] ss:$8 sps:$4 sm:$0xff]   ;;  %v15737_v8 = vld [vmem:[%s20190_s18 + $0x250] ss:$8 sps:$4 sm:$0xff]  }
0x1543   : > { %11338 = vmatprep.subr.bf16.mxu1 %v15712_v50  ;;  %v15731_v50 = vld [vmem:[%s20190_s18 + $0x230] ss:$8 sps:$4 sm:$0xff]  }
0x1544   : > { %v10767_v28 = vpop.f32.mrb[28].mxu0  ;;  %11143 = vmatprep.mubr.bf16.mxu1 %v10853_v17  ;;  %v15745_v17 = vld [vmem:[%s20190_s18 + $0x274] ss:$8 sps:$4 sm:$0xff]  }
0x1545   : > { %v10769_v31 = vpop.f32.mrb[29].mxu0  ;;  %11144 = vmatmul.mubr.bf16.gmra.mrb[44].mxu1 %v10852_v49  ;;  %v10836_v25 = vmax.f32 %v10767_v28, 0.0  ;;  %v15742_v49 = vld [vmem:[%s20190_s18 + $0x264] ss:$8 sps:$4 sm:$0xff]  }
0x1546   : > { %11339 = vmatpush1.bf16.msra.mxu1 %v15710_v9  ;;  %v10771_v42 = vpop.f32.mrb[30].mxu0  ;;  %11346 = vmatprep.mubr.bf16.mxu1 %v20220_v57  ;;  %v10837_v1 = vmax.f32 %v10769_v31, 0.0  ;;  %v15740_v9 = vld [vmem:[%s20190_s18 + $0x260] ss:$8 sps:$4 sm:$0xff]   ;;  %v15748_v28 = vld [vmem:[%s20190_s18 + $0x284] ss:$8 sps:$4 sm:$0xff]  }
0x1547   : > { %11340 = vmatprep.subr.bf16.mxu1 %v15715_v48  ;;  %v10838_v43 = vmax.f32 %v10771_v42, 0.0  ;;  %v10773_v11 = vpop.f32.mrb[31].mxu0  ;;  %v15743_v48 = vld [vmem:[%s20190_s18 + $0x270] ss:$8 sps:$4 sm:$0xff]   ;;  %v15746_v31 = vld [vmem:[%s20190_s18 + $0x280] ss:$8 sps:$4 sm:$0xff]  }
0x1548   : > { %v10839_v37 = vmax.f32 %v10773_v11, 0.0  ;;  %v15754_v42 = vld [vmem:[%s20190_s18 + $0x2a4] ss:$8 sps:$4 sm:$0xff]   ;;  %v15755_v11 = vld [vmem:[%s20190_s18 + $0x2b0] ss:$8 sps:$4 sm:$0xff]  }
0x1549   : > { %v19964_v26 = vpack.c.bf16 %v10838_v43, %v10836_v25  ;;  %v15752_v25 = vld [vmem:[%s20190_s18 + $0x2a0] ss:$8 sps:$4 sm:$0xff]   ;;  %v15757_v43 = vld [vmem:[%s20190_s18 + $0x2b4] ss:$8 sps:$4 sm:$0xff]  }
0x154a   : > { %11341 = vmatpush1.bf16.msra.mxu1 %v15713_v45  ;;  %v19966_v21 = vpack.c.bf16 %v10839_v37, %v10837_v1  ;;  %v15751_v45 = vld [vmem:[%s20190_s18 + $0x294] ss:$8 sps:$4 sm:$0xff]   ;;  %v15758_v1 = vld [vmem:[%s20190_s18 + $0x2c0] ss:$8 sps:$4 sm:$0xff]  }
0x154b   : > { %11342 = vmatprep.subr.bf16.mxu1 %v15718_v16  ;;  %v15760_v16 = vld [vmem:[%s20190_s18 + $0x2c4] ss:$8 sps:$4 sm:$0xff]   ;;  %v15763_v37 = vld [vmem:[%s20190_s18 + $0x2d4] ss:$8 sps:$4 sm:$0xff]  }
0x154c   : > { %v19974_v33 = vpop.f32.mrb[32].mxu0 }
0x154d   : > { %v19976_v63 = vpop.f32.mrb[33].mxu0 }
0x154e   : > { %11343 = vmatpush1.bf16.msra.mxu1 %v15716_v56  ;;  %v19978_v24 = vpop.f32.mrb[34].mxu0  ;;  %v15761_v56 = vld [vmem:[%s20190_s18 + $0x2d0] ss:$8 sps:$4 sm:$0xff]  }
0x154f   : > { %v19983_v38 = vpop.f32.mrb[35].mxu0  ;;  %11344 = vmatprep.subr.bf16.mxu1 %v15721_v23  ;;  %v15766_v23 = vld [vmem:[%s20190_s18 + $0x2e4] ss:$8 sps:$4 sm:$0xff]  }
0x1552   : > { %11345 = vmatpush1.bf16.msra.mxu1 %v15719_v5  ;;  %v15764_v5 = vld [vmem:[%s20190_s18 + $0x2e0] ss:$8 sps:$4 sm:$0xff]  }
0x1553   : > { %11580 = vmatprep.subr.bf16.mxu1 %v15724_v44  ;;  %v15769_v44 = vld [vmem:[%s20190_s18 + $0x2f4] ss:$8 sps:$4 sm:$0xff]  }
0x1554   : > { %v19994_v36 = vpop.f32.mrb[36].mxu0 }
0x1555   : > { %11347 = vmatmul.mubr.bf16.vlgmr.msra.gmra.mrb[32].mxu1 %v20220_v57  ;;  %v19997_v54 = vpop.f32.mrb[37].mxu0 }
0x1556   : > { %11581 = vmatpush1.bf16.msra.mxu1 %v15722_v47  ;;  %v19999_v19 = vpop.f32.mrb[38].mxu0  ;;  %11356 = vmatprep.mubr.bf16.mxu1 %v19884_v12  ;;  %v15767_v47 = vld [vmem:[%s20190_s18 + $0x2f0] ss:$8 sps:$4 sm:$0xff]  }
0x1557   : > { %v20005_v58 = vpop.f32.mrb[39].mxu0  ;;  %11582 = vmatprep.subr.bf16.mxu1 %v15727_v35 }
0x155a   : > { %11583 = vmatpush1.bf16.msra.mxu1 %v15725_v55 }
0x155b   : > { %11584 = vmatprep.subr.bf16.mxu1 %v15730_v46 }
0x155d   : > { %11357 = vmatmul.mubr.bf16.gmra.mrb[36].mxu1 %v19879_v59 }
0x155e   : > { %11585 = vmatpush1.bf16.msra.mxu1 %v15728_v2  ;;  %11366 = vmatprep.mubr.bf16.mxu1 %v20220_v57 }
0x155f   : > { %11586 = vmatprep.subr.bf16.mxu1 %v15733_v3 }
0x1562   : > { %11587 = vmatpush1.bf16.msra.mxu1 %v15731_v50 }
0x1563   : > { %11588 = vmatprep.subr.bf16.mxu1 %v15736_v15 }
0x1565   : > { %11367 = vmatmul.mubr.bf16.gmra.mrb[40].mxu1 %v20220_v57 }
0x1566   : > { %11589 = vmatpush1.bf16.msra.mxu1 %v15734_v61  ;;  %11376 = vmatprep.mubr.bf16.mxu1 %v19940_v20 }
0x1567   : > { %11590 = vmatprep.subr.bf16.mxu1 %v15739_v53 }
0x156a   : > { %11591 = vmatpush1.bf16.msra.mxu1 %v15737_v8 }
0x156b   : > { %11592 = vmatprep.subr.bf16.mxu1 %v15742_v49 }
0x156d   : > { %11377 = vmatmul.mubr.bf16.gmra.mrb[44].mxu1 %v19935_v32 }
0x156e   : > { %11593 = vmatpush1.bf16.msra.mxu1 %v15740_v9  ;;  %11612 = vmatprep.mubr.bf16.mxu1 %v19884_v12  ;;  %v15749_v12 = vld [vmem:[%s20190_s18 + $0x290] ss:$8 sps:$4 sm:$0xff]  }
0x156f   : > { %11594 = vmatprep.subr.bf16.mxu1 %v15745_v17 }
0x1572   : > { %11595 = vmatpush1.bf16.msra.mxu1 %v15743_v48 }
0x1573   : > { %11596 = vmatprep.subr.bf16.mxu1 %v15748_v28 }
0x1576   : > { %11597 = vmatpush1.bf16.msra.mxu1 %v15746_v31 }
0x1577   : > { %11598 = vmatprep.subr.bf16.mxu1 %v15751_v45 }
0x157a   : > { %11599 = vmatpush1.bf16.msra.mxu1 %v15749_v12 }
0x157b   : > { %11600 = vmatprep.subr.bf16.mxu1 %v15754_v42 }
0x157e   : > { %11601 = vmatpush1.bf16.msra.mxu1 %v15752_v25 }
0x157f   : > { %11602 = vmatprep.subr.bf16.mxu1 %v15757_v43 }
0x1582   : > { %11603 = vmatpush1.bf16.msra.mxu1 %v15755_v11 }
0x1583   : > { %11604 = vmatprep.subr.bf16.mxu1 %v15760_v16 }
0x1586   : > { %11605 = vmatpush1.bf16.msra.mxu1 %v15758_v1 }
0x1587   : > { %11606 = vmatprep.subr.bf16.mxu1 %v15763_v37 }
0x158a   : > { %11607 = vmatpush1.bf16.msra.mxu1 %v15761_v56 }
0x158b   : > { %11608 = vmatprep.subr.bf16.mxu1 %v15766_v23 }
0x158e   : > { %11609 = vmatpush1.bf16.msra.mxu1 %v15764_v5 }
0x158f   : > { %11610 = vmatprep.subr.bf16.mxu1 %v15769_v44 }
0x1592   : > { %11611 = vmatpush1.bf16.msra.mxu1 %v15767_v47 }
0x1593   : > { %14577 = vmatprep.subr.bf16.mxu1 %v19657_v27  ;;  %v11856_v27 = vlaneseq }
0x1595   : > { %11613 = vmatmul.mubr.bf16.vlgmr.msra.gmra.mrb[32].mxu1 %v19879_v59 }
0x1596   : > { %14585 = vmatpush1.bf16.msra.mxu1 %v19730_v0  ;;  %11622 = vmatprep.mubr.bf16.mxu1 %v19912_v29  ;;  %v11857_v0 = vshrl.u32 %v11856_v27, 7 }
0x1597   : > { %14578 = vmatprep.subr.bf16.mxu1 %v19735_v22 }
0x1598   : > { %v11858_v22 = vsub.s32 0, %v11857_v0 }
0x159a   : > { %14586 = vmatpush1.bf16.msra.mxu1 %v19745_v13  ;;  %v11854_v13 = vld [vmem:[%s20191_s19] sm:$0x3] }
0x159b   : > { %14579 = vmatprep.subr.bf16.mxu1 %v19751_v62  ;;  %v11862_v62 = vsub.s32 1, %v11857_v0 }
0x159d   : > { %11623 = vmatmul.mubr.bf16.gmra.mrb[36].mxu1 %v19907_v39 }
0x159e   : > { %14587 = vmatpush1.bf16.msra.mxu1 %v19757_v30  ;;  %11632 = vmatprep.mubr.bf16.mxu1 %v19940_v20  ;;  %v20127_v30 = vrot.slane %v11854_v13, %v11858_v22 }
0x159f   : > { %14580 = vmatprep.subr.bf16.mxu1 %v19763_v14 }
0x15a2   : > { %14588 = vmatpush1.bf16.msra.mxu1 %v19773_v51  ;;  %v20129_v51 = vrot.slane %v11854_v13, %v11862_v62 }
0x15a3   : > { %14581 = vmatprep.subr.bf16.mxu1 %v19779_v40 }
0x15a5   : > { %11633 = vmatmul.mubr.bf16.gmra.mrb[40].mxu1 %v19935_v32 }
0x15a6   : > { %14589 = vmatpush1.bf16.msra.mxu1 %v19785_v52  ;;  %11642 = vmatprep.mubr.bf16.mxu1 %v19966_v21 }
0x15a7   : > { %14582 = vmatprep.subr.bf16.mxu1 %v19791_v41 }
0x15aa   : > { %14590 = vmatpush1.bf16.msra.mxu1 %v19801_v34 }
0x15ab   : > { %14583 = vmatprep.subr.bf16.mxu1 %v19807_v60 }
0x15ad   : > { %11643 = vmatmul.mubr.bf16.gmra.mrb[44].mxu1 %v19964_v26 }
0x15ae   : > { %14591 = vmatpush1.bf16.msra.mxu1 %v19813_v10  ;;  %11817 = vmatprep.mubr.bf16.mxu1 %v20220_v57 }
0x15af   : > { %14584 = vmatprep.subr.bf16.mxu1 %v19819_v4 }
0x15b2   : > { %14592 = vmatpush1.bf16.msra.mxu1 %v19829_v7 }
0x15b5   : > { %11818 = vmatmul.mubr.bf16.vlgmr.msra.gmra.mrb[40].mxu1 %v19294_v6 }
0x15b6   : > { %11827 = vmatprep.mubr.bf16.mxu1 %v20220_v57 }
0x15bd   : > { %11828 = vmatmul.mubr.bf16.gmra.mrb[44].mxu1 %v19302_v18 }
0x1668   : > { %v11614_v14 = vpop.f32.mrb[32].mxu1 }
0x1669   : > { %v14593_v6 = vadd.f32 %v19974_v33, %v11614_v14  ;;  %v11616_v40 = vpop.f32.mrb[33].mxu1 }
0x166a   : > { %v14594_v57 = vadd.f32 %v19976_v63, %v11616_v40  ;;  %v11618_v18 = vpop.f32.mrb[34].mxu1 }
0x166b   : > { %v11866_v52 = vadd.f32 %v14593_v6, %v20127_v30  ;;  %v14595_v41 = vadd.f32 %v19978_v24, %v11618_v18  ;;  %v11620_v34 = vpop.f32.mrb[35].mxu1 }
0x166c   : > { %v11867_v60 = vadd.f32 %v14594_v57, %v20129_v51  ;;  %v14596_v10 = vadd.f32 %v19983_v38, %v11620_v34 }
0x166d   : > { %v11882_v4 = vmax.f32 %v11866_v52, 0.0  ;;  %v11868_v7 = vadd.f32 %v14595_v41, %v20127_v30 }
0x166e   : > { %v11883_v59 = vmax.f32 %v11867_v60, 0.0  ;;  %v11869_v39 = vadd.f32 %v14596_v10, %v20129_v51 }
0x166f   : > { %v11884_v29 = vmax.f32 %v11868_v7, 0.0 }
0x1670   : > { %v13009_v32 = vpack.c.bf16 %v11883_v59, %v11882_v4  ;;  %v11885_v20 = vmax.f32 %v11869_v39, 0.0  ;;  %v11624_v26 = vpop.f32.mrb[36].mxu1 }
0x1671   : > { %v14597_v21 = vadd.f32 %v19994_v36, %v11624_v26  ;;  %v11626_v33 = vpop.f32.mrb[37].mxu1 }
0x1672   : > { %11946 = vst [vmem:[%s20143_s1] sm:$0xff] %v13009_v32  ;;  %v13010_v63 = vpack.c.bf16 %v11885_v20, %v11884_v29  ;;  %v14598_v24 = vadd.f32 %v19997_v54, %v11626_v33  ;;  %v11628_v38 = vpop.f32.mrb[38].mxu1 }
0x1673   : > { %v11870_v35 = vadd.f32 %v14597_v21, %v20127_v30  ;;  %v14599_v55 = vadd.f32 %v19999_v19, %v11628_v38  ;;  %v11630_v46 = vpop.f32.mrb[39].mxu1 }
0x1674   : > { %11947 = vst [vmem:[%s20143_s1 + $0x8] sm:$0xff] %v13010_v63  ;;  %v11871_v2 = vadd.f32 %v14598_v24, %v20129_v51  ;;  %v14600_v3 = vadd.f32 %v20005_v58, %v11630_v46 }
0x1675   : > { %v11886_v50 = vmax.f32 %v11870_v35, 0.0  ;;  %v11872_v36 = vadd.f32 %v14599_v55, %v20127_v30 }
0x1676   : > { %v11887_v15 = vmax.f32 %v11871_v2, 0.0  ;;  %v11873_v61 = vadd.f32 %v14600_v3, %v20129_v51 }
0x1677   : > { %v11888_v53 = vmax.f32 %v11872_v36, 0.0 }
0x1678   : > { %v13011_v54 = vpack.c.bf16 %v11887_v15, %v11886_v50  ;;  %v11889_v8 = vmax.f32 %v11873_v61, 0.0 }
0x167a   : > { %11948 = vst [vmem:[%s20143_s1 + $0x10] sm:$0xff] %v13011_v54  ;;  %v13012_v49 = vpack.c.bf16 %v11889_v8, %v11888_v53 }
0x167c   : > { %11949 = vst [vmem:[%s20143_s1 + $0x18] sm:$0xff] %v13012_v49 }
0x1688   : > { %v11819_v19 = vpop.f32.mrb[40].mxu1 }
0x1689   : > { %v11874_v9 = vadd.f32 %v20127_v30, %v11819_v19  ;;  %v11821_v17 = vpop.f32.mrb[41].mxu1 }
0x168a   : > { %v11875_v58 = vadd.f32 %v20129_v51, %v11821_v17  ;;  %v11823_v48 = vpop.f32.mrb[42].mxu1 }
0x168b   : > { %v11890_v28 = vmax.f32 %v11874_v9, 0.0  ;;  %v11876_v31 = vadd.f32 %v20127_v30, %v11823_v48  ;;  %v11825_v45 = vpop.f32.mrb[43].mxu1 }
0x168c   : > { %v11891_v12 = vmax.f32 %v11875_v58, 0.0  ;;  %v11877_v42 = vadd.f32 %v20129_v51, %v11825_v45 }
0x168d   : > { %v11892_v25 = vmax.f32 %v11876_v31, 0.0 }
0x168e   : > { %v13013_v43 = vpack.c.bf16 %v11891_v12, %v11890_v28  ;;  %v11893_v11 = vmax.f32 %v11877_v42, 0.0 }
0x1690   : > { %11950 = vst [vmem:[%s20143_s1 + $0x20] sm:$0xff] %v13013_v43  ;;  %v13014_v16 = vpack.c.bf16 %v11893_v11, %v11892_v25  ;;  %v11829_v1 = vpop.f32.mrb[44].mxu1 }
0x1691   : > { %v11878_v37 = vadd.f32 %v20127_v30, %v11829_v1  ;;  %v11831_v56 = vpop.f32.mrb[45].mxu1 }
0x1692   : > { %11951 = vst [vmem:[%s20143_s1 + $0x28] sm:$0xff] %v13014_v16  ;;  %v11879_v23 = vadd.f32 %v20129_v51, %v11831_v56  ;;  %v11833_v5 = vpop.f32.mrb[46].mxu1 }
0x1693   : > { %v11894_v44 = vmax.f32 %v11878_v37, 0.0  ;;  %v11880_v47 = vadd.f32 %v20127_v30, %v11833_v5  ;;  %v11835_v27 = vpop.f32.mrb[47].mxu1 }
0x1694   : > { %v11895_v0 = vmax.f32 %v11879_v23, 0.0  ;;  %v11881_v22 = vadd.f32 %v20129_v51, %v11835_v27 }
0x1695   : > { %v11896_v13 = vmax.f32 %v11880_v47, 0.0 }
0x1696   : > { %v13015_v62 = vpack.c.bf16 %v11895_v0, %v11894_v44  ;;  %v11897_v14 = vmax.f32 %v11881_v22, 0.0 }
0x1698   : > { %11952 = vst [vmem:[%s20143_s1 + $0x30] sm:$0xff] %v13015_v62  ;;  %v13016_v6 = vpack.c.bf16 %v11897_v14, %v11896_v13 }
0x169a   : > { %11953 = vst [vmem:[%s20143_s1 + $0x38] sm:$0xff] %v13016_v6 }
0x169b PF: > { %s31_s2 = sadd.s32 1, %s16080_s2  }
0x169c   : > { %p28_p4 = scmp.ge.s32.totalorder %s31_s2, 4  }
0x169e   :  { %30 = sbr.rel (!%p28_p4) target bundleno = 8 (0x8), region = 154 }

</bundles_post_ra>
